<compile_context>
chip_gen: v7x
topology: tpu7x:2x2x1
jax: 0.10.0
libtpu: 0.0.40
codegen_flags: <defaults>
</compile_context>

<pallas_src>
import jax
import jax.numpy as jnp
from jax.experimental import pallas as pl
from jax.experimental.pallas import tpu as pltpu

D_IN = 20     # flattened action feature dim
H = 512       # hidden width
D_OUT = 128   # encoder output width

# Packed-bias layout: [b11 | b12 | b13 | b21 | b22 | b23] (all offsets 128-aligned)
_BIAS_SIZES = (H, H, H, D_OUT, H, D_OUT)
_BIAS_OFFS = []
_off = 0
for _s in _BIAS_SIZES:
    _BIAS_OFFS.append(_off)
    _off += _s
BIAS_TOTAL = _off  # 2304 = 18 * 128 (lane aligned)


def action_encoder_kernel(x_ref,
                          w11_ref, w12_ref, w13_ref,      # ResBlock 1 weights
                          w21_ref, w22_ref, w23_ref,      # ResBlock 2 weights
                          bias_ref,                       # packed (1, 2304) f32 biases
                          o_ref):
    relu = lambda v: jnp.maximum(v, 0.0)
    # bf16 MXU matmul with f32 accumulation; elementwise chain stays f32.
    dot = lambda a, w_ref: jnp.dot(a.astype(jnp.bfloat16), w_ref[...],
                                   preferred_element_type=jnp.float32)
    bias = lambda i: bias_ref[:, _BIAS_OFFS[i]:_BIAS_OFFS[i] + _BIAS_SIZES[i]]

    x = x_ref[...]                                   # (TILE_B, 20) bf16

    # ---- ResBlock 1: 20 -> 512, 512 -> 512, 512 -> 512 (skip = post-fc1 activation) ----
    h = relu(dot(x, w11_ref) + bias(0))
    ident = h
    h2 = relu(dot(h, w12_ref) + bias(1))
    h3 = dot(h2, w13_ref) + bias(2)
    h = relu(h3 + ident)

    # ---- ResBlock 2: 512 -> 128, 128 -> 512, 512 -> 128 ----
    h1 = relu(dot(h, w21_ref) + bias(3))
    ident2 = h1
    h2 = relu(dot(h1, w22_ref) + bias(4))
    h3 = dot(h2, w23_ref) + bias(5)
    o_ref[...] = relu(h3 + ident2).astype(o_ref.dtype)


def init_params(key):
    """nn.Linear-style init (uniform +-1/sqrt(fan_in)).
    Weights pre-transposed to (in, out) in bf16; biases (1, out) f32; the packed
    (1, 2304) bias block is built ONCE here, not per call."""
    dims = [
        ("w11", D_IN, H), ("w12", H, H), ("w13", H, H),          # ResBlock 1
        ("w21", H, D_OUT), ("w22", D_OUT, H), ("w23", H, D_OUT), # ResBlock 2
    ]
    params = {}
    for name, fan_in, fan_out in dims:
        key, kw, kb = jax.random.split(key, 3)
        bound = 1.0 / jnp.sqrt(jnp.float32(fan_in))
        w = jax.random.uniform(kw, (fan_in, fan_out), jnp.float32, -bound, bound)
        b = jax.random.uniform(kb, (1, fan_out), jnp.float32, -bound, bound)
        params[name] = w.astype(jnp.bfloat16)
        params["b" + name[1:]] = b
    params["bias_packed"] = jnp.concatenate(
        [params["b11"], params["b12"], params["b13"],
         params["b21"], params["b22"], params["b23"]], axis=1)
    return params


def _pick_tile_b(batch):
    # Largest MXU-friendly tile in {512, 256, 128} that still yields >= 2 grid steps
    # (keeps both v7x TensorCores busy); tiny batches use a single 128-row tile.
    for tile in (512, 256, 128):
        if batch > tile:
            return tile
    return 128


def _encoder_call(xp, weights, bias_packed, tile_b, single_buffer_weights):
    Bp = xp.shape[0]

    def resident(shape):
        # Constant index_map -> block is DMA'd once and held in VMEM for all steps.
        if single_buffer_weights:
            return pl.BlockSpec(shape, lambda i: (0, 0), pipeline_mode=pl.Buffered(1))
        return pl.BlockSpec(shape, lambda i: (0, 0))

    in_specs = [pl.BlockSpec((tile_b, D_IN), lambda i: (i, 0))]
    in_specs += [resident(tuple(w.shape)) for w in weights]
    in_specs += [resident((1, BIAS_TOTAL))]
    out_spec = pl.BlockSpec((tile_b, D_OUT), lambda i: (i, 0))

    # Advisory cost estimate for XLA scheduling.
    flops = 2 * Bp * (D_IN * H + H * H + H * H + H * D_OUT + D_OUT * H + H * D_OUT)
    weight_bytes = 2 * sum(int(w.size) for w in weights) + 4 * BIAS_TOTAL
    bytes_accessed = weight_bytes + Bp * (D_IN * 2 + D_OUT * 4)
    cost = pl.CostEstimate(flops=flops, transcendentals=0, bytes_accessed=bytes_accessed)

    return pl.pallas_call(
        action_encoder_kernel,
        out_shape=jax.ShapeDtypeStruct((Bp, D_OUT), jnp.float32),
        grid=(Bp // tile_b,),
        in_specs=in_specs,
        out_specs=out_spec,
        compiler_params=pltpu.CompilerParams(
            dimension_semantics=("parallel",),   # megacore/batch sharding on v7x
            vmem_limit_bytes=16 << 20,           # ~2x real working set at TILE_B=512
        ),
        cost_estimate=cost,
    )(xp, *weights, bias_packed)


def action_encoder(action, params):
    # nn.Flatten(): (B, ...) -> (B, 20)
    B = action.shape[0]
    x = action.reshape(B, -1)
    assert x.shape[1] == D_IN, f"flattened feature dim must be {D_IN}, got {x.shape[1]}"
    x = x.astype(jnp.bfloat16)

    tile_b = _pick_tile_b(B)
    Bp = pl.cdiv(B, tile_b) * tile_b
    if Bp != B:
        x = jnp.pad(x, ((0, Bp - B), (0, 0)))    # zero rows are inert; sliced off below

    weights = [params["w11"], params["w12"], params["w13"],
               params["w21"], params["w22"], params["w23"]]
    try:
        out = _encoder_call(x, weights, params["bias_packed"], tile_b,
                            single_buffer_weights=True)
    except Exception:
        # pl.Buffered(1) not accepted by this jax/Mosaic build: fall back to the
        # default double-buffered resident blocks (identical semantics).
        out = _encoder_call(x, weights, params["bias_packed"], tile_b,
                            single_buffer_weights=False)
    return out[:B]


def reference(action, params):
    """Mirrors the kernel numerics: bf16 matmul inputs, f32 accumulation/elementwise."""
    B = action.shape[0]
    x = action.reshape(B, -1).astype(jnp.float32)

    def lin(a, w, b):
        return jnp.dot(a.astype(jnp.bfloat16), w, preferred_element_type=jnp.float32) + b

    # ResBlock 1
    h = jax.nn.relu(lin(x, params["w11"], params["b11"]))
    ident = h
    h2 = jax.nn.relu(lin(h, params["w12"], params["b12"]))
    h3 = lin(h2, params["w13"], params["b13"])
    h = jax.nn.relu(h3 + ident)
    # ResBlock 2
    h1 = jax.nn.relu(lin(h, params["w21"], params["b21"]))
    ident2 = h1
    h2 = jax.nn.relu(lin(h1, params["w22"], params["b22"]))
    h3 = lin(h2, params["w23"], params["b23"])
    return jax.nn.relu(h3 + ident2)


if __name__ == "__main__":
    key = jax.random.PRNGKey(0)
    key, pkey, xkey = jax.random.split(key, 3)
    params = init_params(pkey)

    # action of shape (2, 4, 5) -> flatten -> (2, 20)
    action = jax.random.normal(xkey, (2, 4, 5), jnp.float32)

    out = jax.block_until_ready(action_encoder(action, params))
    ref = reference(action, params)

    assert out.shape == (2, D_OUT), out.shape
    assert jnp.allclose(out, ref, atol=1e-2, rtol=1e-2), float(jnp.max(jnp.abs(out - ref)))
    print("KERNEL_OK")
</pallas_src>

<mosaic_0001>
module attributes {stable_mosaic.version = 11 : i64} {
  func.func @action_encoder_kernel(%arg0: i32, %arg1: memref<128x20xbf16, #tpu.memory_space<vmem>>, %arg2: memref<20x512xbf16, #tpu.memory_space<vmem>>, %arg3: memref<512x512xbf16, #tpu.memory_space<vmem>>, %arg4: memref<512x512xbf16, #tpu.memory_space<vmem>>, %arg5: memref<512x128xbf16, #tpu.memory_space<vmem>>, %arg6: memref<128x512xbf16, #tpu.memory_space<vmem>>, %arg7: memref<512x128xbf16, #tpu.memory_space<vmem>>, %arg8: memref<1x2304xf32, #tpu.memory_space<vmem>>, %arg9: memref<128x128xf32, #tpu.memory_space<vmem>>) attributes {dimension_semantics = [#tpu.dimension_semantics<parallel>], iteration_bounds = array<i64: 1>, scalar_prefetch = 0 : i64, scratch_operands = 0 : i64, tpu.core_type = #tpu.core_type<tc>, window_params = [{transform_indices = @transform_0, window_bounds = array<i64: 128, 20>}, {pipeline_mode = #tpu.pipeline_mode<synchronous>, transform_indices = @transform_1, window_bounds = array<i64: 20, 512>}, {pipeline_mode = #tpu.pipeline_mode<synchronous>, transform_indices = @transform_2, window_bounds = array<i64: 512, 512>}, {pipeline_mode = #tpu.pipeline_mode<synchronous>, transform_indices = @transform_3, window_bounds = array<i64: 512, 512>}, {pipeline_mode = #tpu.pipeline_mode<synchronous>, transform_indices = @transform_4, window_bounds = array<i64: 512, 128>}, {pipeline_mode = #tpu.pipeline_mode<synchronous>, transform_indices = @transform_5, window_bounds = array<i64: 128, 512>}, {pipeline_mode = #tpu.pipeline_mode<synchronous>, transform_indices = @transform_6, window_bounds = array<i64: 512, 128>}, {pipeline_mode = #tpu.pipeline_mode<synchronous>, transform_indices = @transform_7, window_bounds = array<i64: 1, 2304>}, {transform_indices = @transform_8, window_bounds = array<i64: 128, 128>}]} {
    %c0 = arith.constant 0 : index
    %c0_0 = arith.constant 0 : index
    %0 = vector.load %arg1[%c0, %c0_0] : memref<128x20xbf16, #tpu.memory_space<vmem>>, vector<128x20xbf16>
    %c0_1 = arith.constant 0 : index
    %c0_2 = arith.constant 0 : index
    %1 = vector.load %arg2[%c0_1, %c0_2] : memref<20x512xbf16, #tpu.memory_space<vmem>>, vector<20x512xbf16>
    %cst = arith.constant dense<0.000000e+00> : vector<128x512xf32>
    %2 = tpu.matmul %0, %1, %cst {dimension_numbers = #tpu.dot_dimension_numbers<[1], [0], [0], [1], [0, 0, 1, 1], [], []>} : vector<128x20xbf16>, vector<20x512xbf16>, vector<128x512xf32> -> vector<128x512xf32>
    %c0_3 = arith.constant 0 : index
    %c0_4 = arith.constant 0 : index
    %3 = vector.load %arg8[%c0_3, %c0_4] : memref<1x2304xf32, #tpu.memory_space<vmem>>, vector<1x512xf32>
    %4 = vector.broadcast %3 : vector<1x512xf32> to vector<128x512xf32>
    %5 = arith.addf %2, %4 : vector<128x512xf32>
    %cst_5 = arith.constant 0.000000e+00 : f32
    %6 = vector.broadcast %cst_5 : f32 to vector<128x512xf32>
    %7 = arith.maximumf %5, %6 : vector<128x512xf32>
    %8 = arith.truncf %7 : vector<128x512xf32> to vector<128x512xbf16>
    %c0_6 = arith.constant 0 : index
    %c0_7 = arith.constant 0 : index
    %9 = vector.load %arg3[%c0_6, %c0_7] : memref<512x512xbf16, #tpu.memory_space<vmem>>, vector<512x512xbf16>
    %cst_8 = arith.constant dense<0.000000e+00> : vector<128x512xf32>
    %10 = tpu.matmul %8, %9, %cst_8 {dimension_numbers = #tpu.dot_dimension_numbers<[1], [0], [0], [1], [0, 0, 1, 1], [], []>} : vector<128x512xbf16>, vector<512x512xbf16>, vector<128x512xf32> -> vector<128x512xf32>
    %c0_9 = arith.constant 0 : index
    %c512 = arith.constant 512 : index
    %11 = vector.load %arg8[%c0_9, %c512] : memref<1x2304xf32, #tpu.memory_space<vmem>>, vector<1x512xf32>
    %12 = vector.broadcast %11 : vector<1x512xf32> to vector<128x512xf32>
    %13 = arith.addf %10, %12 : vector<128x512xf32>
    %cst_10 = arith.constant 0.000000e+00 : f32
    %14 = vector.broadcast %cst_10 : f32 to vector<128x512xf32>
    %15 = arith.maximumf %13, %14 : vector<128x512xf32>
    %16 = arith.truncf %15 : vector<128x512xf32> to vector<128x512xbf16>
    %c0_11 = arith.constant 0 : index
    %c0_12 = arith.constant 0 : index
    %17 = vector.load %arg4[%c0_11, %c0_12] : memref<512x512xbf16, #tpu.memory_space<vmem>>, vector<512x512xbf16>
    %cst_13 = arith.constant dense<0.000000e+00> : vector<128x512xf32>
    %18 = tpu.matmul %16, %17, %cst_13 {dimension_numbers = #tpu.dot_dimension_numbers<[1], [0], [0], [1], [0, 0, 1, 1], [], []>} : vector<128x512xbf16>, vector<512x512xbf16>, vector<128x512xf32> -> vector<128x512xf32>
    %c0_14 = arith.constant 0 : index
    %c1024 = arith.constant 1024 : index
    %19 = vector.load %arg8[%c0_14, %c1024] : memref<1x2304xf32, #tpu.memory_space<vmem>>, vector<1x512xf32>
    %20 = vector.broadcast %19 : vector<1x512xf32> to vector<128x512xf32>
    %21 = arith.addf %18, %20 : vector<128x512xf32>
    %22 = arith.addf %21, %7 : vector<128x512xf32>
    %cst_15 = arith.constant 0.000000e+00 : f32
    %23 = vector.broadcast %cst_15 : f32 to vector<128x512xf32>
    %24 = arith.maximumf %22, %23 : vector<128x512xf32>
    %25 = arith.truncf %24 : vector<128x512xf32> to vector<128x512xbf16>
    %c0_16 = arith.constant 0 : index
    %c0_17 = arith.constant 0 : index
    %26 = vector.load %arg5[%c0_16, %c0_17] : memref<512x128xbf16, #tpu.memory_space<vmem>>, vector<512x128xbf16>
    %cst_18 = arith.constant dense<0.000000e+00> : vector<128x128xf32>
    %27 = tpu.matmul %25, %26, %cst_18 {dimension_numbers = #tpu.dot_dimension_numbers<[1], [0], [0], [1], [0, 0, 1, 1], [], []>} : vector<128x512xbf16>, vector<512x128xbf16>, vector<128x128xf32> -> vector<128x128xf32>
    %c0_19 = arith.constant 0 : index
    %c1536 = arith.constant 1536 : index
    %28 = vector.load %arg8[%c0_19, %c1536] : memref<1x2304xf32, #tpu.memory_space<vmem>>, vector<1x128xf32>
    %29 = vector.broadcast %28 : vector<1x128xf32> to vector<128x128xf32>
    %30 = arith.addf %27, %29 : vector<128x128xf32>
    %cst_20 = arith.constant 0.000000e+00 : f32
    %31 = vector.broadcast %cst_20 : f32 to vector<128x128xf32>
    %32 = arith.maximumf %30, %31 : vector<128x128xf32>
    %33 = arith.truncf %32 : vector<128x128xf32> to vector<128x128xbf16>
    %c0_21 = arith.constant 0 : index
    %c0_22 = arith.constant 0 : index
    %34 = vector.load %arg6[%c0_21, %c0_22] : memref<128x512xbf16, #tpu.memory_space<vmem>>, vector<128x512xbf16>
    %cst_23 = arith.constant dense<0.000000e+00> : vector<128x512xf32>
    %35 = tpu.matmul %33, %34, %cst_23 {dimension_numbers = #tpu.dot_dimension_numbers<[1], [0], [0], [1], [0, 0, 1, 1], [], []>} : vector<128x128xbf16>, vector<128x512xbf16>, vector<128x512xf32> -> vector<128x512xf32>
    %c0_24 = arith.constant 0 : index
    %c1664 = arith.constant 1664 : index
    %36 = vector.load %arg8[%c0_24, %c1664] : memref<1x2304xf32, #tpu.memory_space<vmem>>, vector<1x512xf32>
    %37 = vector.broadcast %36 : vector<1x512xf32> to vector<128x512xf32>
    %38 = arith.addf %35, %37 : vector<128x512xf32>
    %cst_25 = arith.constant 0.000000e+00 : f32
    %39 = vector.broadcast %cst_25 : f32 to vector<128x512xf32>
    %40 = arith.maximumf %38, %39 : vector<128x512xf32>
    %41 = arith.truncf %40 : vector<128x512xf32> to vector<128x512xbf16>
    %c0_26 = arith.constant 0 : index
    %c0_27 = arith.constant 0 : index
    %42 = vector.load %arg7[%c0_26, %c0_27] : memref<512x128xbf16, #tpu.memory_space<vmem>>, vector<512x128xbf16>
    %cst_28 = arith.constant dense<0.000000e+00> : vector<128x128xf32>
    %43 = tpu.matmul %41, %42, %cst_28 {dimension_numbers = #tpu.dot_dimension_numbers<[1], [0], [0], [1], [0, 0, 1, 1], [], []>} : vector<128x512xbf16>, vector<512x128xbf16>, vector<128x128xf32> -> vector<128x128xf32>
    %c0_29 = arith.constant 0 : index
    %c2176 = arith.constant 2176 : index
    %44 = vector.load %arg8[%c0_29, %c2176] : memref<1x2304xf32, #tpu.memory_space<vmem>>, vector<1x128xf32>
    %45 = vector.broadcast %44 : vector<1x128xf32> to vector<128x128xf32>
    %46 = arith.addf %43, %45 : vector<128x128xf32>
    %47 = arith.addf %46, %32 : vector<128x128xf32>
    %cst_30 = arith.constant 0.000000e+00 : f32
    %48 = vector.broadcast %cst_30 : f32 to vector<128x128xf32>
    %49 = arith.maximumf %47, %48 : vector<128x128xf32>
    %c0_31 = arith.constant 0 : index
    %c0_32 = arith.constant 0 : index
    %50 = vector.load %arg9[%c0_31, %c0_32] : memref<128x128xf32, #tpu.memory_space<vmem>>, vector<128x128xf32>
    tpu.vector_store %arg9[%c0_31, %c0_32], %49 {strides = array<i32>} : memref<128x128xf32, #tpu.memory_space<vmem>>, vector<128x128xf32>,
    return
  }
  func.func @transform_0(%arg0: i32) -> (i32, i32) {
    %c0_i32 = arith.constant 0 : i32
    %c0_i32_0 = arith.constant 0 : i32
    return %arg0, %c0_i32 : i32, i32
  }
  func.func @transform_1(%arg0: i32) -> (i32, i32) {
    %c0_i32 = arith.constant 0 : i32
    %c0_i32_0 = arith.constant 0 : i32
    %c0_i32_1 = arith.constant 0 : i32
    return %c0_i32, %c0_i32_0 : i32, i32
  }
  func.func @transform_2(%arg0: i32) -> (i32, i32) {
    %c0_i32 = arith.constant 0 : i32
    %c0_i32_0 = arith.constant 0 : i32
    %c0_i32_1 = arith.constant 0 : i32
    return %c0_i32, %c0_i32_0 : i32, i32
  }
  func.func @transform_3(%arg0: i32) -> (i32, i32) {
    %c0_i32 = arith.constant 0 : i32
    %c0_i32_0 = arith.constant 0 : i32
    %c0_i32_1 = arith.constant 0 : i32
    return %c0_i32, %c0_i32_0 : i32, i32
  }
  func.func @transform_4(%arg0: i32) -> (i32, i32) {
    %c0_i32 = arith.constant 0 : i32
    %c0_i32_0 = arith.constant 0 : i32
    %c0_i32_1 = arith.constant 0 : i32
    return %c0_i32, %c0_i32_0 : i32, i32
  }
  func.func @transform_5(%arg0: i32) -> (i32, i32) {
    %c0_i32 = arith.constant 0 : i32
    %c0_i32_0 = arith.constant 0 : i32
    %c0_i32_1 = arith.constant 0 : i32
    return %c0_i32, %c0_i32_0 : i32, i32
  }
  func.func @transform_6(%arg0: i32) -> (i32, i32) {
    %c0_i32 = arith.constant 0 : i32
    %c0_i32_0 = arith.constant 0 : i32
    %c0_i32_1 = arith.constant 0 : i32
    return %c0_i32, %c0_i32_0 : i32, i32
  }
  func.func @transform_7(%arg0: i32) -> (i32, i32) {
    %c0_i32 = arith.constant 0 : i32
    %c0_i32_0 = arith.constant 0 : i32
    %c0_i32_1 = arith.constant 0 : i32
    return %c0_i32, %c0_i32_0 : i32, i32
  }
  func.func @transform_8(%arg0: i32) -> (i32, i32) {
    %c0_i32 = arith.constant 0 : i32
    %c0_i32_0 = arith.constant 0 : i32
    return %arg0, %c0_i32 : i32, i32
  }
}

module attributes {stable_mosaic.version = 11 : i64} {
  func.func @action_encoder_kernel(%arg0: i32, %arg1: memref<128x20xbf16, #tpu.memory_space<vmem>>, %arg2: memref<20x512xbf16, #tpu.memory_space<vmem>>, %arg3: memref<512x512xbf16, #tpu.memory_space<vmem>>, %arg4: memref<512x512xbf16, #tpu.memory_space<vmem>>, %arg5: memref<512x128xbf16, #tpu.memory_space<vmem>>, %arg6: memref<128x512xbf16, #tpu.memory_space<vmem>>, %arg7: memref<512x128xbf16, #tpu.memory_space<vmem>>, %arg8: memref<1x2304xf32, #tpu.memory_space<vmem>>, %arg9: memref<128x128xf32, #tpu.memory_space<vmem>>) attributes {dimension_semantics = [#tpu.dimension_semantics<parallel>], iteration_bounds = array<i64: 1>, scalar_prefetch = 0 : i64, scratch_operands = 0 : i64, tpu.core_type = #tpu.core_type<tc>, window_params = [{transform_indices = @transform_0, window_bounds = array<i64: 128, 20>}, {pipeline_mode = #tpu.pipeline_mode<synchronous>, transform_indices = @transform_1, window_bounds = array<i64: 20, 512>}, {pipeline_mode = #tpu.pipeline_mode<synchronous>, transform_indices = @transform_2, window_bounds = array<i64: 512, 512>}, {pipeline_mode = #tpu.pipeline_mode<synchronous>, transform_indices = @transform_3, window_bounds = array<i64: 512, 512>}, {pipeline_mode = #tpu.pipeline_mode<synchronous>, transform_indices = @transform_4, window_bounds = array<i64: 512, 128>}, {pipeline_mode = #tpu.pipeline_mode<synchronous>, transform_indices = @transform_5, window_bounds = array<i64: 128, 512>}, {pipeline_mode = #tpu.pipeline_mode<synchronous>, transform_indices = @transform_6, window_bounds = array<i64: 512, 128>}, {pipeline_mode = #tpu.pipeline_mode<synchronous>, transform_indices = @transform_7, window_bounds = array<i64: 1, 2304>}, {transform_indices = @transform_8, window_bounds = array<i64: 128, 128>}]} {
    %c0 = arith.constant 0 : index
    %c0_0 = arith.constant 0 : index
    %0 = vector.load %arg1[%c0, %c0_0] : memref<128x20xbf16, #tpu.memory_space<vmem>>, vector<128x20xbf16>
    %c0_1 = arith.constant 0 : index
    %c0_2 = arith.constant 0 : index
    %1 = vector.load %arg2[%c0_1, %c0_2] : memref<20x512xbf16, #tpu.memory_space<vmem>>, vector<20x512xbf16>
    %cst = arith.constant dense<0.000000e+00> : vector<128x512xf32>
    %2 = tpu.matmul %0, %1, %cst {dimension_numbers = #tpu.dot_dimension_numbers<[1], [0], [0], [1], [0, 0, 1, 1], [], []>} : vector<128x20xbf16>, vector<20x512xbf16>, vector<128x512xf32> -> vector<128x512xf32>
    %c0_3 = arith.constant 0 : index
    %c0_4 = arith.constant 0 : index
    %3 = vector.load %arg8[%c0_3, %c0_4] : memref<1x2304xf32, #tpu.memory_space<vmem>>, vector<1x512xf32>
    %4 = vector.broadcast %3 : vector<1x512xf32> to vector<128x512xf32>
    %5 = arith.addf %2, %4 : vector<128x512xf32>
    %cst_5 = arith.constant 0.000000e+00 : f32
    %6 = vector.broadcast %cst_5 : f32 to vector<128x512xf32>
    %7 = arith.maximumf %5, %6 : vector<128x512xf32>
    %8 = arith.truncf %7 : vector<128x512xf32> to vector<128x512xbf16>
    %c0_6 = arith.constant 0 : index
    %c0_7 = arith.constant 0 : index
    %9 = vector.load %arg3[%c0_6, %c0_7] : memref<512x512xbf16, #tpu.memory_space<vmem>>, vector<512x512xbf16>
    %cst_8 = arith.constant dense<0.000000e+00> : vector<128x512xf32>
    %10 = tpu.matmul %8, %9, %cst_8 {dimension_numbers = #tpu.dot_dimension_numbers<[1], [0], [0], [1], [0, 0, 1, 1], [], []>} : vector<128x512xbf16>, vector<512x512xbf16>, vector<128x512xf32> -> vector<128x512xf32>
    %c0_9 = arith.constant 0 : index
    %c512 = arith.constant 512 : index
    %11 = vector.load %arg8[%c0_9, %c512] : memref<1x2304xf32, #tpu.memory_space<vmem>>, vector<1x512xf32>
    %12 = vector.broadcast %11 : vector<1x512xf32> to vector<128x512xf32>
    %13 = arith.addf %10, %12 : vector<128x512xf32>
    %cst_10 = arith.constant 0.000000e+00 : f32
    %14 = vector.broadcast %cst_10 : f32 to vector<128x512xf32>
    %15 = arith.maximumf %13, %14 : vector<128x512xf32>
    %16 = arith.truncf %15 : vector<128x512xf32> to vector<128x512xbf16>
    %c0_11 = arith.constant 0 : index
    %c0_12 = arith.constant 0 : index
    %17 = vector.load %arg4[%c0_11, %c0_12] : memref<512x512xbf16, #tpu.memory_space<vmem>>, vector<512x512xbf16>
    %cst_13 = arith.constant dense<0.000000e+00> : vector<128x512xf32>
    %18 = tpu.matmul %16, %17, %cst_13 {dimension_numbers = #tpu.dot_dimension_numbers<[1], [0], [0], [1], [0, 0, 1, 1], [], []>} : vector<128x512xbf16>, vector<512x512xbf16>, vector<128x512xf32> -> vector<128x512xf32>
    %c0_14 = arith.constant 0 : index
    %c1024 = arith.constant 1024 : index
    %19 = vector.load %arg8[%c0_14, %c1024] : memref<1x2304xf32, #tpu.memory_space<vmem>>, vector<1x512xf32>
    %20 = vector.broadcast %19 : vector<1x512xf32> to vector<128x512xf32>
    %21 = arith.addf %18, %20 : vector<128x512xf32>
    %22 = arith.addf %21, %7 : vector<128x512xf32>
    %cst_15 = arith.constant 0.000000e+00 : f32
    %23 = vector.broadcast %cst_15 : f32 to vector<128x512xf32>
    %24 = arith.maximumf %22, %23 : vector<128x512xf32>
    %25 = arith.truncf %24 : vector<128x512xf32> to vector<128x512xbf16>
    %c0_16 = arith.constant 0 : index
    %c0_17 = arith.constant 0 : index
    %26 = vector.load %arg5[%c0_16, %c0_17] : memref<512x128xbf16, #tpu.memory_space<vmem>>, vector<512x128xbf16>
    %cst_18 = arith.constant dense<0.000000e+00> : vector<128x128xf32>
    %27 = tpu.matmul %25, %26, %cst_18 {dimension_numbers = #tpu.dot_dimension_numbers<[1], [0], [0], [1], [0, 0, 1, 1], [], []>} : vector<128x512xbf16>, vector<512x128xbf16>, vector<128x128xf32> -> vector<128x128xf32>
    %c0_19 = arith.constant 0 : index
    %c1536 = arith.constant 1536 : index
    %28 = vector.load %arg8[%c0_19, %c1536] : memref<1x2304xf32, #tpu.memory_space<vmem>>, vector<1x128xf32>
    %29 = vector.broadcast %28 : vector<1x128xf32> to vector<128x128xf32>
    %30 = arith.addf %27, %29 : vector<128x128xf32>
    %cst_20 = arith.constant 0.000000e+00 : f32
    %31 = vector.broadcast %cst_20 : f32 to vector<128x128xf32>
    %32 = arith.maximumf %30, %31 : vector<128x128xf32>
    %33 = arith.truncf %32 : vector<128x128xf32> to vector<128x128xbf16>
    %c0_21 = arith.constant 0 : index
    %c0_22 = arith.constant 0 : index
    %34 = vector.load %arg6[%c0_21, %c0_22] : memref<128x512xbf16, #tpu.memory_space<vmem>>, vector<128x512xbf16>
    %cst_23 = arith.constant dense<0.000000e+00> : vector<128x512xf32>
    %35 = tpu.matmul %33, %34, %cst_23 {dimension_numbers = #tpu.dot_dimension_numbers<[1], [0], [0], [1], [0, 0, 1, 1], [], []>} : vector<128x128xbf16>, vector<128x512xbf16>, vector<128x512xf32> -> vector<128x512xf32>
    %c0_24 = arith.constant 0 : index
    %c1664 = arith.constant 1664 : index
    %36 = vector.load %arg8[%c0_24, %c1664] : memref<1x2304xf32, #tpu.memory_space<vmem>>, vector<1x512xf32>
    %37 = vector.broadcast %36 : vector<1x512xf32> to vector<128x512xf32>
    %38 = arith.addf %35, %37 : vector<128x512xf32>
    %cst_25 = arith.constant 0.000000e+00 : f32
    %39 = vector.broadcast %cst_25 : f32 to vector<128x512xf32>
    %40 = arith.maximumf %38, %39 : vector<128x512xf32>
    %41 = arith.truncf %40 : vector<128x512xf32> to vector<128x512xbf16>
    %c0_26 = arith.constant 0 : index
    %c0_27 = arith.constant 0 : index
    %42 = vector.load %arg7[%c0_26, %c0_27] : memref<512x128xbf16, #tpu.memory_space<vmem>>, vector<512x128xbf16>
    %cst_28 = arith.constant dense<0.000000e+00> : vector<128x128xf32>
    %43 = tpu.matmul %41, %42, %cst_28 {dimension_numbers = #tpu.dot_dimension_numbers<[1], [0], [0], [1], [0, 0, 1, 1], [], []>} : vector<128x512xbf16>, vector<512x128xbf16>, vector<128x128xf32> -> vector<128x128xf32>
    %c0_29 = arith.constant 0 : index
    %c2176 = arith.constant 2176 : index
    %44 = vector.load %arg8[%c0_29, %c2176] : memref<1x2304xf32, #tpu.memory_space<vmem>>, vector<1x128xf32>
    %45 = vector.broadcast %44 : vector<1x128xf32> to vector<128x128xf32>
    %46 = arith.addf %43, %45 : vector<128x128xf32>
    %47 = arith.addf %46, %32 : vector<128x128xf32>
    %cst_30 = arith.constant 0.000000e+00 : f32
    %48 = vector.broadcast %cst_30 : f32 to vector<128x128xf32>
    %49 = arith.maximumf %47, %48 : vector<128x128xf32>
    %c0_31 = arith.constant 0 : index
    %c0_32 = arith.constant 0 : index
    %50 = vector.load %arg9[%c0_31, %c0_32] : memref<128x128xf32, #tpu.memory_space<vmem>>, vector<128x128xf32>
    tpu.vector_store %arg9[%c0_31, %c0_32], %49 {strides = array<i32>} : memref<128x128xf32, #tpu.memory_space<vmem>>, vector<128x128xf32>,
    return
  }
  func.func @transform_0(%arg0: i32) -> (i32, i32) {
    %c0_i32 = arith.constant 0 : i32
    %c0_i32_0 = arith.constant 0 : i32
    return %arg0, %c0_i32 : i32, i32
  }
  func.func @transform_1(%arg0: i32) -> (i32, i32) {
    %c0_i32 = arith.constant 0 : i32
    %c0_i32_0 = arith.constant 0 : i32
    %c0_i32_1 = arith.constant 0 : i32
    return %c0_i32, %c0_i32_0 : i32, i32
  }
  func.func @transform_2(%arg0: i32) -> (i32, i32) {
    %c0_i32 = arith.constant 0 : i32
    %c0_i32_0 = arith.constant 0 : i32
    %c0_i32_1 = arith.constant 0 : i32
    return %c0_i32, %c0_i32_0 : i32, i32
  }
  func.func @transform_3(%arg0: i32) -> (i32, i32) {
    %c0_i32 = arith.constant 0 : i32
    %c0_i32_0 = arith.constant 0 : i32
    %c0_i32_1 = arith.constant 0 : i32
    return %c0_i32, %c0_i32_0 : i32, i32
  }
  func.func @transform_4(%arg0: i32) -> (i32, i32) {
    %c0_i32 = arith.constant 0 : i32
    %c0_i32_0 = arith.constant 0 : i32
    %c0_i32_1 = arith.constant 0 : i32
    return %c0_i32, %c0_i32_0 : i32, i32
  }
  func.func @transform_5(%arg0: i32) -> (i32, i32) {
    %c0_i32 = arith.constant 0 : i32
    %c0_i32_0 = arith.constant 0 : i32
    %c0_i32_1 = arith.constant 0 : i32
    return %c0_i32, %c0_i32_0 : i32, i32
  }
  func.func @transform_6(%arg0: i32) -> (i32, i32) {
    %c0_i32 = arith.constant 0 : i32
    %c0_i32_0 = arith.constant 0 : i32
    %c0_i32_1 = arith.constant 0 : i32
    return %c0_i32, %c0_i32_0 : i32, i32
  }
  func.func @transform_7(%arg0: i32) -> (i32, i32) {
    %c0_i32 = arith.constant 0 : i32
    %c0_i32_0 = arith.constant 0 : i32
    %c0_i32_1 = arith.constant 0 : i32
    return %c0_i32, %c0_i32_0 : i32, i32
  }
  func.func @transform_8(%arg0: i32) -> (i32, i32) {
    %c0_i32 = arith.constant 0 : i32
    %c0_i32_0 = arith.constant 0 : i32
    return %arg0, %c0_i32 : i32, i32
  }
}

</mosaic_0001>

<bundles_post_ra>
// kernel: tpu_custom_call.1
= control target key start
LH: loop header
LB: loop body
LE: loop exit
PB: predicated region body
PF: predicated region fallthrough
CT: control target
= control target key end

     0   :  { %13 = vsyncpa [#allocation3], 0  ;;  %s7766_s0 = inlined_call_operand.vmem [shape: bf16[128,20], index: 0, kind: input, shape index: {}]   ;;  %s7767_s1 = inlined_call_operand.vmem [shape: bf16[20,512], index: 1, kind: input, shape index: {}]   ;;  %s7768_s2 = inlined_call_operand.hbm [shape: bf16[512,512], index: 2, kind: input, shape index: {}]   ;;  %s7769_s3 = inlined_call_operand.hbm [shape: bf16[512,512], index: 3, kind: input, shape index: {}]   ;;  %s7770_s4 = inlined_call_operand.hbm [shape: bf16[512,128], index: 4, kind: input, shape index: {}]   ;;  %s7771_s5 = inlined_call_operand.hbm [shape: bf16[128,512], index: 5, kind: input, shape index: {}]   ;;  %s7772_s6 = inlined_call_operand.hbm [shape: bf16[512,128], index: 6, kind: input, shape index: {}]   ;;  %s7773_s7 = inlined_call_operand.vmem [shape: f32[1,2304], index: 7, kind: input, shape index: {}]   ;;  %s7774_s8 = inlined_call_operand.hbm [shape: f32[128,128], index: 8, kind: output, shape index: {}]  }
   0x1   :  { %14 = vsyncpa [#allocation6], 0 }
   0x2   :  { %15 = vsyncpa [#allocation9], 0 }
   0x3   :  { %16 = vsyncpa [#allocation4], 0  ;;  %s6421_s27 = smov [#allocation5]   ;;  %s6422_s29 = smov [#allocation8]  }
   0x4   :  { %s38_s28 = sshll.u32 %s6421_s27, 4  ;;  %s62_s30 = sshll.u32 %s6422_s29, 4  ;;  %s39_s28 = int_to_ptr.vmem [resolvable:$true] %s38_s28  ;;  %s6479_s30 = int_to_ptr.vmem [resolvable:$true] %s62_s30 }
   0x5   :  { %s6281_s11 = scalar_lea.hbm %s7769_s3, 16384 }
   0x6   :  { %p6282_p0 = scmp.ne.s32.totalorder %s7769_s3, %s6281_s11  ;;  %p6285_p1 = scmp.lt.u32.totalorder %s6281_s11, %s7769_s3 }
   0x8   :  { %p6287_p2 = pnand %p6285_p1, %p6282_p0 }
   0xa   :  { %6290 = shalt.err (!%p6287_p2)
}
   0xb   :  { %s6291_s16 = scalar_lea.vmem %s39_s28, 16384  ;;  %p6296_p4 = scmp.lt.s32.totalorder %s39_s28, %s39_s28 }
   0xc   :  { %p6292_p3 = scmp.ne.s32.totalorder %s39_s28, %s6291_s16  ;;  %p6297_p5 = scmp.lt.s32.totalorder %s6291_s16, %s6291_s16 }
   0xe   :  { %p6298_p6 = por %p6297_p5, %p6296_p4 }
  0x10   :  { %p6299_p7 = pnand %p6298_p6, %p6292_p3 }
  0x12   :  { %6302 = shalt.err (!%p6299_p7)
}
  0x13   :  { %s6423_s17 = smov 256   ;;  %s6424_s18 = smov 16  }
  0x14   :  { %44 = dma.hbm_to_vmem [thread:$0]  %s7769_s3, 16384, %s39_s28, [#allocation6], %s6423_s17, %s6423_s17, %s6424_s18  }
  0x15   :  { %s6303_s23 = scalar_lea.hbm %s7771_s5, 4096 }
  0x16   :  { %p6304_p8 = scmp.ne.s32.totalorder %s7771_s5, %s6303_s23  ;;  %p6307_p9 = scmp.lt.u32.totalorder %s6303_s23, %s7771_s5 }
  0x18   :  { %p6309_p10 = pnand %p6307_p9, %p6304_p8 }
  0x1a   :  { %6312 = shalt.err (!%p6309_p10)
}
  0x1b   :  { %s6313_s29 = scalar_lea.vmem %s6479_s30, 4096  ;;  %p6318_p12 = scmp.lt.s32.totalorder %s6479_s30, %s6479_s30 }
  0x1c   :  { %p6314_p11 = scmp.ne.s32.totalorder %s6479_s30, %s6313_s29  ;;  %p6319_p13 = scmp.lt.s32.totalorder %s6313_s29, %s6313_s29 }
  0x1e   :  { %p6320_p0 = por %p6319_p13, %p6318_p12 }
  0x20   :  { %p6321_p1 = pnand %p6320_p0, %p6314_p11 }
  0x22   :  { %6324 = shalt.err (!%p6321_p1)
}
  0x23   :  { %68 = dma.hbm_to_vmem [thread:$0]  %s7771_s5, 4096, %s6479_s30, [#allocation9], %s6423_s17, %s6423_s17, %s6424_s18  }
  0x24   :  { %s6425_s9 = smov [#allocation2]   ;;  %s6426_s11 = smov [#allocation7]  }
  0x25   :  { %s26_s10 = sshll.u32 %s6425_s9, 4  ;;  %s50_s12 = sshll.u32 %s6426_s11, 4  ;;  %s27_s10 = int_to_ptr.vmem [resolvable:$true] %s26_s10  ;;  %s6516_s12 = int_to_ptr.vmem [resolvable:$true] %s50_s12 }
  0x26   :  { %s6325_s15 = scalar_lea.hbm %s7768_s2, 16384 }
  0x27   :  { %p6326_p2 = scmp.ne.s32.totalorder %s7768_s2, %s6325_s15  ;;  %p6329_p3 = scmp.lt.u32.totalorder %s6325_s15, %s7768_s2 }
  0x29   :  { %p6331_p4 = pnand %p6329_p3, %p6326_p2 }
  0x2b   :  { %6334 = shalt.err (!%p6331_p4)
}
  0x2c   :  { %s6335_s5 = scalar_lea.vmem %s27_s10, 16384  ;;  %p6340_p6 = scmp.lt.s32.totalorder %s27_s10, %s27_s10 }
  0x2d   :  { %p6336_p5 = scmp.ne.s32.totalorder %s27_s10, %s6335_s5  ;;  %p6341_p7 = scmp.lt.s32.totalorder %s6335_s5, %s6335_s5 }
  0x2f   :  { %p6342_p8 = por %p6341_p7, %p6340_p6 }
  0x31   :  { %p6343_p9 = pnand %p6342_p8, %p6336_p5 }
  0x33   :  { %6346 = shalt.err (!%p6343_p9)
}
  0x34   :  { %32 = dma.hbm_to_vmem [thread:$0]  %s7768_s2, 16384, %s27_s10, [#allocation3], %s6423_s17, %s6423_s17, %s6424_s18  }
  0x35   :  { %s6347_s25 = scalar_lea.hbm %s7770_s4, 4096 }
  0x36   :  { %p6348_p10 = scmp.ne.s32.totalorder %s7770_s4, %s6347_s25  ;;  %p6351_p11 = scmp.lt.u32.totalorder %s6347_s25, %s7770_s4 }
  0x38   :  { %p6353_p12 = pnand %p6351_p11, %p6348_p10 }
  0x3a   :  { %6356 = shalt.err (!%p6353_p12)
}
  0x3b   :  { %s6357_s28 = scalar_lea.vmem %s6516_s12, 4096  ;;  %p6362_p0 = scmp.lt.s32.totalorder %s6516_s12, %s6516_s12 }
  0x3c   :  { %p6358_p13 = scmp.ne.s32.totalorder %s6516_s12, %s6357_s28  ;;  %p6363_p1 = scmp.lt.s32.totalorder %s6357_s28, %s6357_s28 }
  0x3e   :  { %p6364_p2 = por %p6363_p1, %p6362_p0 }
  0x40   :  { %p6365_p3 = pnand %p6364_p2, %p6358_p13 }
  0x42   :  { %6368 = shalt.err (!%p6365_p3)
}
  0x43   :  { %s6427_s2 = smov 64   ;;  %s6428_s17 = smov 4  }
  0x44   :  { %56 = dma.hbm_to_vmem [thread:$0]  %s7770_s4, 4096, %s6516_s12, [#allocation6], %s6427_s2, %s6427_s2, %s6428_s17  }
  0x45   :  { %s6429_s10 = smov [#allocation10]   ;;  %s6369_s15 = scalar_lea.hbm %s7772_s6, 4096 }
  0x46   :  { %s74_s11 = sshll.u32 %s6429_s10, 4  ;;  %p6370_p4 = scmp.ne.s32.totalorder %s7772_s6, %s6369_s15  ;;  %s75_s11 = int_to_ptr.vmem [resolvable:$true] %s74_s11 }
  0x47   :  { %p6373_p5 = scmp.lt.u32.totalorder %s6369_s15, %s7772_s6 }
  0x49   :  { %p6375_p6 = pnand %p6373_p5, %p6370_p4 }
  0x4b   :  { %6378 = shalt.err (!%p6375_p6)
}
  0x4c   :  { %s6379_s5 = scalar_lea.vmem %s75_s11, 4096  ;;  %p6384_p8 = scmp.lt.s32.totalorder %s75_s11, %s75_s11 }
  0x4d   :  { %p6380_p7 = scmp.ne.s32.totalorder %s75_s11, %s6379_s5  ;;  %p6385_p9 = scmp.lt.s32.totalorder %s6379_s5, %s6379_s5 }
  0x4f   :  { %p6386_p10 = por %p6385_p9, %p6384_p8 }
  0x51   :  { %p6387_p11 = pnand %p6386_p10, %p6380_p7 }
  0x53   :  { %6390 = shalt.err (!%p6387_p11)
}
  0x54   :  { %80 = dma.hbm_to_vmem [thread:$0]  %s7772_s6, 4096, %s75_s11, [#allocation9], %s6427_s2, %s6427_s2, %s6428_s17  }
  0x55   :  { %6413 = dma.done.wait [#allocation3], 16384  }
  0x56   :  { %6414 = vsyncadd [#allocation3], 4294950912 }
  0x57   :  { %6415 = dma.done.wait [#allocation6], 20480  }
  0x58   :  { %6416 = vsyncadd [#allocation6], 4294946816 }
  0x59   :  { %6417 = dma.done.wait [#allocation9], 8192  }
  0x5a   :  { %6418 = vsyncadd [#allocation9], 4294959104  ;;  %v7775_v0 = vmov 0   ;;  %v5767_v1 = vld [vmem:[%s7767_s1 + $0x4] ss:$16 sps:$4 sm:$0xff]   ;;  %vm238_vm0 = vcmask 1041408  }
  0x5b   :  { %283 = vmatprep.mubr.bf16.mxu0 %v7775_v0  ;;  %396 = vmatprep.mubr.bf16.mxu1 %v7775_v0  ;;  %v5769_v2 = vld [vmem:[%s7767_s1] ss:$16 sps:$4 sm:$0xff]   ;;  %vm213_vm1 = vcmask 162816   ;;  %v5779_v8 = vld [vmem:[%s7767_s1 + $0xc] ss:$16 sps:$4 sm:$0xff]  }
  0x5c   :  { %v119_v3 = vld [vmem:[%s7767_s1 + $0x20] sm:$0x33]  ;;  %251 = vmatprep.subr.bf16.mxu0 %v5767_v1  ;;  %v5781_v9 = vld [vmem:[%s7767_s1 + $0x8] ss:$16 sps:$4 sm:$0xff]   ;;  %364 = vmatprep.subr.bf16.mxu1 %v5779_v8  ;;  %v5790_v15 = vld [vmem:[#allocation2 + $0xc] ss:$16 sps:$4 sm:$0xff]  }
  0x5d   :  { %v4867_v4 = vcombine.high %v119_v3, %v119_v3  ;;  %v4866_v5 = vcombine.low %v119_v3, %v119_v3  ;;  %252 = vmatpush1.bf16.msra.mxu0 %v5769_v2  ;;  %v5772_v7 = vld [vmem:[%s7766_s0] sm:$0xff]   ;;  %v120_v10 = vld [vmem:[%s7767_s1 + $0x28] sm:$0x33]  ;;  %365 = vmatpush1.bf16.msra.mxu1 %v5781_v9  ;;  %v5774_v23 = vld [vmem:[%s7766_s0 + $0x10] sm:$0xff]  }
  0x5e   :  { %v4869_v11 = vcombine.high %v120_v10, %v120_v10  ;;  %v4868_v12 = vcombine.low %v120_v10, %v120_v10  ;;  %v5785_v13 = vld [vmem:[#allocation2] ss:$16 sps:$4 sm:$0xff]   ;;  %v5787_v14 = vld [vmem:[#allocation2 + $0x4] ss:$16 sps:$4 sm:$0xff]   ;;  %v5773_v16 = vld [vmem:[%s7766_s0 + $0x8] sm:$0xff]  }
  0x5f   :  { %4870 = vmatprep.subr.msk.bf16.mxu0 %vm238_vm0, %v4867_v4  ;;  %v240_v6 = vsel %vm238_vm0, %v4866_v5, 0  ;;  %v5793_v18 = vld [vmem:[#allocation2 + $0x24] ss:$16 sps:$4 sm:$0xff]   ;;  %v5788_v19 = vld [vmem:[#allocation2 + $0x8] ss:$16 sps:$4 sm:$0xff]  }
  0x60   :  { %4879 = vmatprep.subr.msk.bf16.mxu1 %vm238_vm0, %v4869_v11  ;;  %v246_v17 = vsel %vm238_vm0, %v4868_v12, 0  ;;  %v5791_v20 = vld [vmem:[#allocation2 + $0x20] ss:$16 sps:$4 sm:$0xff]   ;;  %v5796_v21 = vld [vmem:[#allocation2 + $0x2c] ss:$16 sps:$4 sm:$0xff]  }
  0x61   :  { %254 = vmatpush1.bf16.msra.mxu0 %v240_v6  ;;  %367 = vmatpush1.bf16.msra.mxu1 %v246_v17  ;;  %v5799_v22 = vld [vmem:[#allocation2 + $0x44] ss:$16 sps:$4 sm:$0xff]   ;;  %v5794_v24 = vld [vmem:[#allocation2 + $0x28] ss:$16 sps:$4 sm:$0xff]   ;;  %v5797_v25 = vld [vmem:[#allocation2 + $0x40] ss:$16 sps:$4 sm:$0xff]  }
  0x62   :  { %1363 = vmatprep.subr.bf16.mxu0 %v5787_v14  ;;  %1589 = vmatprep.subr.bf16.mxu1 %v5790_v15  ;;  %v5802_v26 = vld [vmem:[#allocation2 + $0x4c] ss:$16 sps:$4 sm:$0xff]   ;;  %v5805_v27 = vld [vmem:[#allocation2 + $0x64] ss:$16 sps:$4 sm:$0xff]   ;;  %v5800_v28 = vld [vmem:[#allocation2 + $0x48] ss:$16 sps:$4 sm:$0xff]  }
  0x63   :  { %v5803_v29 = vld [vmem:[#allocation2 + $0x60] ss:$16 sps:$4 sm:$0xff]   ;;  %v5808_v30 = vld [vmem:[#allocation2 + $0x6c] ss:$16 sps:$4 sm:$0xff]   ;;  %v5811_v31 = vld [vmem:[#allocation2 + $0x84] ss:$16 sps:$4 sm:$0xff]  }
  0x64   :  { %4871 = vmatmul.mubr.msk.bf16.vlgmr.msra.gmra.mrb[0].mxu0 %vm213_vm1, %v5772_v7  ;;  %4880 = vmatmul.mubr.msk.bf16.vlgmr.msra.gmra.mrb[0].mxu1 %vm213_vm1, %v5772_v7  ;;  %v5775_v32 = vld [vmem:[%s7766_s0 + $0x18] sm:$0xff]   ;;  %v5809_v34 = vld [vmem:[#allocation2 + $0x80] ss:$16 sps:$4 sm:$0xff]   ;;  %v5817_v36 = vld [vmem:[#allocation2 + $0xa4] ss:$16 sps:$4 sm:$0xff]  }
  0x65   :  { %293 = vmatprep.mubr.bf16.mxu0 %v7775_v0  ;;  %1364 = vmatpush1.bf16.msra.mxu0 %v5785_v13  ;;  %v5806_v33 = vld [vmem:[#allocation2 + $0x68] ss:$16 sps:$4 sm:$0xff]   ;;  %v5814_v35 = vld [vmem:[#allocation2 + $0x8c] ss:$16 sps:$4 sm:$0xff]   ;;  %v5815_v38 = vld [vmem:[#allocation2 + $0xa0] ss:$16 sps:$4 sm:$0xff]  }
  0x66   :  { %1365 = vmatprep.subr.bf16.mxu0 %v5793_v18  ;;  %406 = vmatprep.mubr.bf16.mxu1 %v7775_v0  ;;  %v5812_v37 = vld [vmem:[#allocation2 + $0x88] ss:$16 sps:$4 sm:$0xff]   ;;  %v5820_v39 = vld [vmem:[#allocation2 + $0xac] ss:$16 sps:$4 sm:$0xff]   ;;  %v5823_v40 = vld [vmem:[#allocation2 + $0xc4] ss:$16 sps:$4 sm:$0xff]  }
  0x67   :  { %1590 = vmatpush1.bf16.msra.mxu1 %v5788_v19  ;;  %v5776_v41 = vld [vmem:[%s7766_s0 + $0x20] sm:$0xff]   ;;  %v5818_v42 = vld [vmem:[#allocation2 + $0xa8] ss:$16 sps:$4 sm:$0xff]   ;;  %v5826_v44 = vld [vmem:[#allocation2 + $0xcc] ss:$16 sps:$4 sm:$0xff]  }
  0x68   :  { %1591 = vmatprep.subr.bf16.mxu1 %v5796_v21  ;;  %v5821_v43 = vld [vmem:[#allocation2 + $0xc0] ss:$16 sps:$4 sm:$0xff]   ;;  %v5829_v45 = vld [vmem:[#allocation2 + $0xe4] ss:$16 sps:$4 sm:$0xff]   ;;  %v5824_v46 = vld [vmem:[#allocation2 + $0xc8] ss:$16 sps:$4 sm:$0xff]  }
  0x69   :  { %1366 = vmatpush1.bf16.msra.mxu0 %v5791_v20  ;;  %v5827_v47 = vld [vmem:[#allocation2 + $0xe0] ss:$16 sps:$4 sm:$0xff]   ;;  %v5832_v48 = vld [vmem:[#allocation2 + $0xec] ss:$16 sps:$4 sm:$0xff]   ;;  %v5835_v49 = vld [vmem:[#allocation2 + $0x104] ss:$16 sps:$4 sm:$0xff]  }
  0x6a   :  { %1367 = vmatprep.subr.bf16.mxu0 %v5799_v22  ;;  %v5777_v50 = vld [vmem:[%s7766_s0 + $0x28] sm:$0xff]   ;;  %v5833_v52 = vld [vmem:[#allocation2 + $0x100] ss:$16 sps:$4 sm:$0xff]   ;;  %v5841_v54 = vld [vmem:[#allocation2 + $0x124] ss:$16 sps:$4 sm:$0xff]  }
  0x6b   :  { %1592 = vmatpush1.bf16.msra.mxu1 %v5794_v24  ;;  %v5830_v51 = vld [vmem:[#allocation2 + $0xe8] ss:$16 sps:$4 sm:$0xff]   ;;  %v5838_v53 = vld [vmem:[#allocation2 + $0x10c] ss:$16 sps:$4 sm:$0xff]   ;;  %v5839_v56 = vld [vmem:[#allocation2 + $0x120] ss:$16 sps:$4 sm:$0xff]   ;;  %v123_v24 = vlaneseq }
  0x6c   :  { %4872 = vmatmul.mubr.msk.bf16.gmra.mrb[4].mxu0 %vm213_vm1, %v5773_v16  ;;  %1593 = vmatprep.subr.bf16.mxu1 %v5802_v26  ;;  %v5836_v55 = vld [vmem:[#allocation2 + $0x108] ss:$16 sps:$4 sm:$0xff]   ;;  %v5844_v57 = vld [vmem:[#allocation2 + $0x12c] ss:$16 sps:$4 sm:$0xff]   ;;  %v5847_v58 = vld [vmem:[#allocation2 + $0x144] ss:$16 sps:$4 sm:$0xff]  }
  0x6d   :  { %303 = vmatprep.mubr.bf16.mxu0 %v7775_v0  ;;  %1368 = vmatpush1.bf16.msra.mxu0 %v5797_v25  ;;  %v5842_v59 = vld [vmem:[#allocation2 + $0x128] ss:$16 sps:$4 sm:$0xff]   ;;  %v5845_v60 = vld [vmem:[#allocation2 + $0x140] ss:$16 sps:$4 sm:$0xff]   ;;  %v5850_v61 = vld [vmem:[#allocation2 + $0x14c] ss:$16 sps:$4 sm:$0xff]  }
  0x6e   :  { %1369 = vmatprep.subr.bf16.mxu0 %v5805_v27  ;;  %4881 = vmatmul.mubr.msk.bf16.gmra.mrb[4].mxu1 %vm213_vm1, %v5773_v16  ;;  %v5778_v62 = vld [vmem:[%s7766_s0 + $0x30] sm:$0xff]   ;;  %v5848_v1 = vld [vmem:[#allocation2 + $0x148] ss:$16 sps:$4 sm:$0xff]   ;;  %v5856_v3 = vld [vmem:[#allocation2 + $0x16c] ss:$16 sps:$4 sm:$0xff]   ;;  %v6640_v25 = vshrl.u32 %v123_v24, 7 }
  0x6f   :  { %416 = vmatprep.mubr.bf16.mxu1 %v7775_v0  ;;  %1594 = vmatpush1.bf16.msra.mxu1 %v5800_v28  ;;  %v5853_v63 = vld [vmem:[#allocation2 + $0x164] ss:$16 sps:$4 sm:$0xff]   ;;  %v5851_v2 = vld [vmem:[#allocation2 + $0x160] ss:$16 sps:$4 sm:$0xff]   ;;  %v5854_v5 = vld [vmem:[#allocation2 + $0x168] ss:$16 sps:$4 sm:$0xff]  }
  0x70   :  { %1595 = vmatprep.subr.bf16.mxu1 %v5808_v30  ;;  %v5859_v4 = vld [vmem:[#allocation2 + $0x184] ss:$16 sps:$4 sm:$0xff]   ;;  %v5857_v6 = vld [vmem:[#allocation2 + $0x180] ss:$16 sps:$4 sm:$0xff]   ;;  %v5862_v7 = vld [vmem:[#allocation2 + $0x18c] ss:$16 sps:$4 sm:$0xff]  }
  0x71   :  { %1370 = vmatpush1.bf16.msra.mxu0 %v5803_v29  ;;  %v5782_v8 = vld [vmem:[%s7766_s0 + $0x38] sm:$0xff]   ;;  %v5865_v9 = vld [vmem:[#allocation2 + $0x1a4] ss:$16 sps:$4 sm:$0xff]   ;;  %v5863_v11 = vld [vmem:[#allocation2 + $0x1a0] ss:$16 sps:$4 sm:$0xff]   ;;  %v6643_v26 = vsub.s32 1, %v6640_v25 }
  0x72   :  { %1371 = vmatprep.subr.bf16.mxu0 %v5811_v31  ;;  %v5860_v10 = vld [vmem:[#allocation2 + $0x188] ss:$16 sps:$4 sm:$0xff]   ;;  %v5868_v12 = vld [vmem:[#allocation2 + $0x1ac] ss:$16 sps:$4 sm:$0xff]   ;;  %v5871_v14 = vld [vmem:[#allocation2 + $0x1c4] ss:$16 sps:$4 sm:$0xff]  }
  0x73   :  { %1596 = vmatpush1.bf16.msra.mxu1 %v5806_v33  ;;  %v5866_v13 = vld [vmem:[#allocation2 + $0x1a8] ss:$16 sps:$4 sm:$0xff]   ;;  %v5874_v15 = vld [vmem:[#allocation2 + $0x1cc] ss:$16 sps:$4 sm:$0xff]   ;;  %v5869_v16 = vld [vmem:[#allocation2 + $0x1c0] ss:$16 sps:$4 sm:$0xff]  }
  0x74   :  { %4873 = vmatmul.mubr.msk.bf16.gmra.mrb[8].mxu0 %vm213_vm1, %v5774_v23  ;;  %1597 = vmatprep.subr.bf16.mxu1 %v5814_v35  ;;  %v5872_v17 = vld [vmem:[#allocation2 + $0x1c8] ss:$16 sps:$4 sm:$0xff]   ;;  %v5877_v18 = vld [vmem:[#allocation2 + $0x1e4] ss:$16 sps:$4 sm:$0xff]   ;;  %v5880_v19 = vld [vmem:[#allocation2 + $0x1ec] ss:$16 sps:$4 sm:$0xff]  }
  0x75   :  { %313 = vmatprep.mubr.bf16.mxu0 %v7775_v0  ;;  %1372 = vmatpush1.bf16.msra.mxu0 %v5809_v34  ;;  %v5875_v20 = vld [vmem:[#allocation2 + $0x1e0] ss:$16 sps:$4 sm:$0xff]   ;;  %v5878_v21 = vld [vmem:[#allocation2 + $0x1e8] ss:$16 sps:$4 sm:$0xff]   ;;  %v5883_v22 = vld [vmem:[#allocation2 + $0x204] ss:$16 sps:$4 sm:$0xff]  }
  0x76   :  { %1373 = vmatprep.subr.bf16.mxu0 %v5817_v36  ;;  %4882 = vmatmul.mubr.msk.bf16.gmra.mrb[8].mxu1 %vm213_vm1, %v5774_v23  ;;  %v5886_v23 = vld [vmem:[#allocation2 + $0x20c] ss:$16 sps:$4 sm:$0xff]   ;;  %v6648_v27 = vld [vmem:[%s7773_s7] sm:$0xf]  ;;  %v6651_v28 = vsub.s32 0, %v6640_v25 }
  0x77   :  { %426 = vmatprep.mubr.bf16.mxu1 %v7775_v0  ;;  %1598 = vmatpush1.bf16.msra.mxu1 %v5812_v37  ;;  %v6655_v29 = vrot.slane %v6648_v27, %v6643_v26  ;;  %v5902_v24 = vld [vmem:[#allocation2 + $0x268] ss:$16 sps:$4 sm:$0xff]  }
  0x78   :  { %1599 = vmatprep.subr.bf16.mxu1 %v5820_v39  ;;  %v6659_v30 = vrot.slane %v6648_v27, %v6651_v28 }
  0x79   :  { %1374 = vmatpush1.bf16.msra.mxu0 %v5815_v38 }
  0x7a   :  { %1375 = vmatprep.subr.bf16.mxu0 %v5823_v40 }
  0x7b   :  { %1600 = vmatpush1.bf16.msra.mxu1 %v5818_v42 }
  0x7c   :  { %4874 = vmatmul.mubr.msk.bf16.gmra.mrb[12].mxu0 %vm213_vm1, %v5775_v32  ;;  %1601 = vmatprep.subr.bf16.mxu1 %v5826_v44 }
  0x7d   :  { %323 = vmatprep.mubr.bf16.mxu0 %v7775_v0  ;;  %1376 = vmatpush1.bf16.msra.mxu0 %v5821_v43 }
  0x7e   :  { %1377 = vmatprep.subr.bf16.mxu0 %v5829_v45  ;;  %4883 = vmatmul.mubr.msk.bf16.gmra.mrb[12].mxu1 %vm213_vm1, %v5775_v32  ;;  %v5881_v45 = vld [vmem:[#allocation2 + $0x200] ss:$16 sps:$4 sm:$0xff]  }
  0x7f   :  { %436 = vmatprep.mubr.bf16.mxu1 %v7775_v0  ;;  %1602 = vmatpush1.bf16.msra.mxu1 %v5824_v46  ;;  %v5884_v46 = vld [vmem:[#allocation2 + $0x208] ss:$16 sps:$4 sm:$0xff]  }
  0x80   :  { %1603 = vmatprep.subr.bf16.mxu1 %v5832_v48 }
  0x81   :  { %1378 = vmatpush1.bf16.msra.mxu0 %v5827_v47 }
  0x82   :  { %1379 = vmatprep.subr.bf16.mxu0 %v5835_v49  ;;  %v5889_v49 = vld [vmem:[#allocation2 + $0x224] ss:$16 sps:$4 sm:$0xff]  }
  0x83   :  { %1604 = vmatpush1.bf16.msra.mxu1 %v5830_v51 }
  0x84   :  { %4875 = vmatmul.mubr.msk.bf16.gmra.mrb[16].mxu0 %vm213_vm1, %v5776_v41  ;;  %1605 = vmatprep.subr.bf16.mxu1 %v5838_v53 }
  0x85   :  { %333 = vmatprep.mubr.bf16.mxu0 %v7775_v0  ;;  %1380 = vmatpush1.bf16.msra.mxu0 %v5833_v52 }
  0x86   :  { %1381 = vmatprep.subr.bf16.mxu0 %v5841_v54  ;;  %4884 = vmatmul.mubr.msk.bf16.gmra.mrb[16].mxu1 %vm213_vm1, %v5776_v41 }
  0x87   :  { %446 = vmatprep.mubr.bf16.mxu1 %v7775_v0  ;;  %1606 = vmatpush1.bf16.msra.mxu1 %v5836_v55 }
  0x88   :  { %1607 = vmatprep.subr.bf16.mxu1 %v5844_v57 }
  0x89   :  { %1382 = vmatpush1.bf16.msra.mxu0 %v5839_v56 }
  0x8a   :  { %1383 = vmatprep.subr.bf16.mxu0 %v5847_v58 }
  0x8b   :  { %1608 = vmatpush1.bf16.msra.mxu1 %v5842_v59 }
  0x8c   :  { %4876 = vmatmul.mubr.msk.bf16.gmra.mrb[20].mxu0 %vm213_vm1, %v5777_v50  ;;  %1609 = vmatprep.subr.bf16.mxu1 %v5850_v61  ;;  %v5890_v61 = vld [vmem:[#allocation2 + $0x228] ss:$16 sps:$4 sm:$0xff]  }
  0x8d   :  { %343 = vmatprep.mubr.bf16.mxu0 %v7775_v0  ;;  %1384 = vmatpush1.bf16.msra.mxu0 %v5845_v60  ;;  %v5887_v60 = vld [vmem:[#allocation2 + $0x220] ss:$16 sps:$4 sm:$0xff]  }
  0x8e   :  { %1385 = vmatprep.subr.bf16.mxu0 %v5853_v63  ;;  %4885 = vmatmul.mubr.msk.bf16.gmra.mrb[20].mxu1 %vm213_vm1, %v5777_v50  ;;  %v5892_v50 = vld [vmem:[#allocation2 + $0x22c] ss:$16 sps:$4 sm:$0xff]  }
  0x8f   :  { %456 = vmatprep.mubr.bf16.mxu1 %v7775_v0  ;;  %1610 = vmatpush1.bf16.msra.mxu1 %v5848_v1  ;;  %v5895_v1 = vld [vmem:[#allocation2 + $0x244] ss:$16 sps:$4 sm:$0xff]  }
  0x90   :  { %1611 = vmatprep.subr.bf16.mxu1 %v5856_v3 }
  0x91   :  { %1386 = vmatpush1.bf16.msra.mxu0 %v5851_v2  ;;  %v5898_v2 = vld [vmem:[#allocation2 + $0x24c] ss:$16 sps:$4 sm:$0xff]  }
  0x92   :  { %1387 = vmatprep.subr.bf16.mxu0 %v5859_v4 }
  0x93   :  { %1612 = vmatpush1.bf16.msra.mxu1 %v5854_v5 }
  0x94   :  { %4877 = vmatmul.mubr.msk.bf16.gmra.mrb[24].mxu0 %vm213_vm1, %v5778_v62  ;;  %1613 = vmatprep.subr.bf16.mxu1 %v5862_v7 }
  0x95   :  { %353 = vmatprep.mubr.bf16.mxu0 %v7775_v0  ;;  %1388 = vmatpush1.bf16.msra.mxu0 %v5857_v6 }
  0x96   :  { %1389 = vmatprep.subr.bf16.mxu0 %v5865_v9  ;;  %4886 = vmatmul.mubr.msk.bf16.gmra.mrb[24].mxu1 %vm213_vm1, %v5778_v62  ;;  %v5896_v9 = vld [vmem:[#allocation2 + $0x248] ss:$16 sps:$4 sm:$0xff]  }
  0x97   :  { %466 = vmatprep.mubr.bf16.mxu1 %v7775_v0  ;;  %1614 = vmatpush1.bf16.msra.mxu1 %v5860_v10 }
  0x98   :  { %1615 = vmatprep.subr.bf16.mxu1 %v5868_v12  ;;  %v5901_v12 = vld [vmem:[#allocation2 + $0x264] ss:$16 sps:$4 sm:$0xff]  }
  0x99   :  { %1390 = vmatpush1.bf16.msra.mxu0 %v5863_v11 }
  0x9a   :  { %1391 = vmatprep.subr.bf16.mxu0 %v5871_v14 }
  0x9b   :  { %1616 = vmatpush1.bf16.msra.mxu1 %v5866_v13  ;;  %v5904_v13 = vld [vmem:[#allocation2 + $0x26c] ss:$16 sps:$4 sm:$0xff]  }
  0x9c   :  { %4878 = vmatmul.mubr.msk.bf16.gmra.mrb[28].mxu0 %vm213_vm1, %v5782_v8  ;;  %1617 = vmatprep.subr.bf16.mxu1 %v5874_v15 }
  0x9d   :  { %1392 = vmatpush1.bf16.msra.mxu0 %v5869_v16 }
  0x9e   :  { %4887 = vmatmul.mubr.msk.bf16.gmra.mrb[28].mxu1 %vm213_vm1, %v5782_v8  ;;  %1393 = vmatprep.subr.bf16.mxu0 %v5877_v18  ;;  %v5893_v8 = vld [vmem:[#allocation2 + $0x240] ss:$16 sps:$4 sm:$0xff]  }
  0x9f   :  { %1618 = vmatpush1.bf16.msra.mxu1 %v5872_v17 }
  0xa0   :  { %1619 = vmatprep.subr.bf16.mxu1 %v5880_v19 }
  0xa1   :  { %1394 = vmatpush1.bf16.msra.mxu0 %v5875_v20 }
  0xa2   :  { %1476 = vmatprep.subr.bf16.mxu0 %v5883_v22 }
  0xa3   :  { %1620 = vmatpush1.bf16.msra.mxu1 %v5878_v21 }
  0xa4   :  { %1702 = vmatprep.subr.bf16.mxu1 %v5886_v23  ;;  %v5899_v23 = vld [vmem:[#allocation2 + $0x260] ss:$16 sps:$4 sm:$0xff]  }
 0x137   :  { %v285_v31 = vpop.f32.mrb[0].mxu0  ;;  %v6685_v51 = vpop.f32.mrb[0].mxu1 }
 0x138   :  { %v287_v32 = vpop.f32.mrb[1].mxu0  ;;  %v6665_v35 = vadd.f32 %v285_v31, %v6659_v30  ;;  %v6690_v54 = vpop.f32.mrb[1].mxu1 }
 0x139   :  { %v6662_v33 = vadd.f32 %v287_v32, %v6655_v29  ;;  %v289_v34 = vpop.f32.mrb[2].mxu0  ;;  %v6698_v58 = vpop.f32.mrb[2].mxu1 }
 0x13a   :  { %v6668_v36 = vadd.f32 %v289_v34, %v6659_v30  ;;  %v291_v37 = vpop.f32.mrb[3].mxu0  ;;  %v7796_v42 = vmax.f32 %v6665_v35, 0.0  ;;  %v6703_v62 = vpop.f32.mrb[3].mxu1  ;;  %v5907_v34 = vld [vmem:[#allocation2 + $0x284] ss:$16 sps:$4 sm:$0xff]  }
 0x13b   :  { %v6671_v38 = vadd.f32 %v291_v37, %v6655_v29  ;;  %v7795_v40 = vmax.f32 %v6662_v33, 0.0  ;;  %v5910_v37 = vld [vmem:[#allocation2 + $0x28c] ss:$16 sps:$4 sm:$0xff]  }
 0x13c   :  { %v7794_v39 = vmax.f32 %v6668_v36, 0.0 }
 0x13d   :  { %v7793_v41 = vmax.f32 %v6671_v38, 0.0 }
 0x13e   :  { %v541_v47 = vpack.c.bf16 %v7794_v39, %v7796_v42  ;;  %v5944_v42 = vld [vmem:[#allocation2 + $0x348] ss:$16 sps:$4 sm:$0xff]  }
 0x13f   :  { %v542_v43 = vpack.c.bf16 %v7793_v41, %v7795_v40  ;;  %v295_v44 = vpop.f32.mrb[4].mxu0  ;;  %v5946_v41 = vld [vmem:[#allocation2 + $0x34c] ss:$16 sps:$4 sm:$0xff]  }
 0x140   :  { %v297_v48 = vpop.f32.mrb[5].mxu0  ;;  %v6693_v55 = vadd.f32 %v295_v44, %v6659_v30 }
 0x141   :  { %v6688_v52 = vadd.f32 %v297_v48, %v6655_v29  ;;  %v299_v53 = vpop.f32.mrb[6].mxu0  ;;  %1395 = vmatprep.mubr.bf16.mxu0 %v542_v43  ;;  %1621 = vmatprep.mubr.bf16.mxu1 %v542_v43  ;;  %v6717_v14 = vpop.f32.mrb[4].mxu1  ;;  %v5905_v48 = vld [vmem:[#allocation2 + $0x280] ss:$16 sps:$4 sm:$0xff]  }
 0x142   :  { %v6696_v56 = vadd.f32 %v299_v53, %v6659_v30  ;;  %v301_v57 = vpop.f32.mrb[7].mxu0  ;;  %1396 = vmatmul.mubr.bf16.vlgmr.msra.gmra.mrb[32].mxu0 %v541_v47  ;;  %1622 = vmatmul.mubr.bf16.vlgmr.msra.gmra.mrb[32].mxu1 %v541_v47  ;;  %v7788_v5 = vmax.f32 %v6693_v55, 0.0  ;;  %v6722_v17 = vpop.f32.mrb[5].mxu1 }
 0x143   :  { %v6701_v59 = vadd.f32 %v301_v57, %v6655_v29  ;;  %1477 = vmatpush1.bf16.msra.mxu0 %v5881_v45  ;;  %1703 = vmatpush1.bf16.msra.mxu1 %v5884_v46  ;;  %v7787_v3 = vmax.f32 %v6688_v52, 0.0  ;;  %v6730_v21 = vpop.f32.mrb[6].mxu1  ;;  %v5913_v57 = vld [vmem:[#allocation2 + $0x2a4] ss:$16 sps:$4 sm:$0xff]  }
 0x144   :  { %v7786_v63 = vmax.f32 %v6696_v56, 0.0  ;;  %1478 = vmatprep.subr.bf16.mxu0 %v5889_v49  ;;  %1704 = vmatprep.subr.bf16.mxu1 %v5892_v50  ;;  %v6735_v31 = vpop.f32.mrb[7].mxu1  ;;  %v5908_v49 = vld [vmem:[#allocation2 + $0x288] ss:$16 sps:$4 sm:$0xff]  }
 0x145   :  { %v7785_v4 = vmax.f32 %v6701_v59, 0.0 }
 0x146   :  { %v545_v10 = vpack.c.bf16 %v7786_v63, %v7788_v5  ;;  %v5940_v63 = vld [vmem:[#allocation2 + $0x32c] ss:$16 sps:$4 sm:$0xff]  }
 0x147   :  { %v546_v6 = vpack.c.bf16 %v7785_v4, %v7787_v3  ;;  %1479 = vmatpush1.bf16.msra.mxu0 %v5887_v60  ;;  %v305_v7 = vpop.f32.mrb[8].mxu0  ;;  %1705 = vmatpush1.bf16.msra.mxu1 %v5890_v61  ;;  %v5916_v60 = vld [vmem:[#allocation2 + $0x2ac] ss:$16 sps:$4 sm:$0xff]   ;;  %v5937_v4 = vld [vmem:[#allocation2 + $0x324] ss:$16 sps:$4 sm:$0xff]  }
 0x148   :  { %v307_v11 = vpop.f32.mrb[9].mxu0  ;;  %1480 = vmatprep.subr.bf16.mxu0 %v5895_v1  ;;  %1706 = vmatprep.subr.bf16.mxu1 %v5898_v2  ;;  %v6725_v18 = vadd.f32 %v305_v7, %v6659_v30 }
 0x149   :  { %v6720_v15 = vadd.f32 %v307_v11, %v6655_v29  ;;  %v309_v16 = vpop.f32.mrb[10].mxu0  ;;  %1405 = vmatprep.mubr.bf16.mxu0 %v546_v6  ;;  %1631 = vmatprep.mubr.bf16.mxu1 %v546_v6  ;;  %v6749_v61 = vpop.f32.mrb[8].mxu1 }
 0x14a   :  { %7881 = vst [vmem:[#allocation17_spill] sm:$0xff] %v6725_v18  ;;  %v6728_v19 = vadd.f32 %v309_v16, %v6659_v30  ;;  %v311_v20 = vpop.f32.mrb[11].mxu0  ;;  %1406 = vmatmul.mubr.bf16.gmra.mrb[36].mxu0 %v545_v10  ;;  %1632 = vmatmul.mubr.bf16.gmra.mrb[36].mxu1 %v545_v10  ;;  %v7784_v45 = vmax.f32 %v6725_v18, 0.0  ;;  %v6754_v6 = vpop.f32.mrb[9].mxu1 }
 0x14b   :  { %7880 = vst [vmem:[#allocation16_spill] sm:$0xff] %v6720_v15  ;;  %v6733_v22 = vadd.f32 %v311_v20, %v6655_v29  ;;  %1481 = vmatpush1.bf16.msra.mxu0 %v5893_v8  ;;  %1707 = vmatpush1.bf16.msra.mxu1 %v5896_v9  ;;  %v7783_v43 = vmax.f32 %v6720_v15, 0.0  ;;  %v6762_v10 = vpop.f32.mrb[10].mxu1 }
 0x14c   :  { %7882 = vst [vmem:[#allocation18_spill] sm:$0xff] %v6728_v19  ;;  %v7782_v32 = vmax.f32 %v6728_v19, 0.0  ;;  %1482 = vmatprep.subr.bf16.mxu0 %v5901_v12  ;;  %1708 = vmatprep.subr.bf16.mxu1 %v5904_v13  ;;  %v5911_v12 = vld [vmem:[#allocation2 + $0x2a0] ss:$16 sps:$4 sm:$0xff]   ;;  %v5914_v13 = vld [vmem:[#allocation2 + $0x2a8] ss:$16 sps:$4 sm:$0xff]  }
 0x14d   :  { %7883 = vst [vmem:[#allocation19_spill] sm:$0xff] %v6733_v22  ;;  %v7781_v44 = vmax.f32 %v6733_v22, 0.0  ;;  %v6767_v16 = vpop.f32.mrb[11].mxu1 }
 0x14e   :  { %v549_v50 = vpack.c.bf16 %v7782_v32, %v7784_v45  ;;  %v5932_v45 = vld [vmem:[#allocation2 + $0x308] ss:$16 sps:$4 sm:$0xff]  }
 0x14f   :  { %v550_v46 = vpack.c.bf16 %v7781_v44, %v7783_v43  ;;  %1483 = vmatpush1.bf16.msra.mxu0 %v5899_v23  ;;  %v315_v47 = vpop.f32.mrb[12].mxu0  ;;  %1709 = vmatpush1.bf16.msra.mxu1 %v5902_v24  ;;  %v5919_v23 = vld [vmem:[#allocation2 + $0x2c4] ss:$16 sps:$4 sm:$0xff]   ;;  %v5922_v24 = vld [vmem:[#allocation2 + $0x2cc] ss:$16 sps:$4 sm:$0xff]  }
 0x150   :  { %v317_v53 = vpop.f32.mrb[13].mxu0  ;;  %1484 = vmatprep.subr.bf16.mxu0 %v5907_v34  ;;  %1710 = vmatprep.subr.bf16.mxu1 %v5910_v37  ;;  %v6757_v7 = vadd.f32 %v315_v47, %v6659_v30  ;;  %v5934_v44 = vld [vmem:[#allocation2 + $0x30c] ss:$16 sps:$4 sm:$0xff]  }
 0x151   :  { %v6752_v1 = vadd.f32 %v317_v53, %v6655_v29  ;;  %v319_v2 = vpop.f32.mrb[14].mxu0  ;;  %1415 = vmatprep.mubr.bf16.mxu0 %v550_v46  ;;  %1641 = vmatprep.mubr.bf16.mxu1 %v550_v46 }
 0x152   :  { %7885 = vst [vmem:[#allocation21_spill] sm:$0xff] %v6757_v7  ;;  %v6760_v8 = vadd.f32 %v319_v2, %v6659_v30  ;;  %v321_v9 = vpop.f32.mrb[15].mxu0  ;;  %1416 = vmatmul.mubr.bf16.gmra.mrb[40].mxu0 %v549_v50  ;;  %1642 = vmatmul.mubr.bf16.gmra.mrb[40].mxu1 %v549_v50  ;;  %v7780_v46 = vmax.f32 %v6757_v7, 0.0  ;;  %v5920_v50 = vld [vmem:[#allocation2 + $0x2c8] ss:$16 sps:$4 sm:$0xff]  }
 0x153   :  { %7884 = vst [vmem:[#allocation20_spill] sm:$0xff] %v6752_v1  ;;  %v6765_v11 = vadd.f32 %v321_v9, %v6655_v29  ;;  %1485 = vmatpush1.bf16.msra.mxu0 %v5905_v48  ;;  %1711 = vmatpush1.bf16.msra.mxu1 %v5908_v49  ;;  %v7779_v34 = vmax.f32 %v6752_v1, 0.0  ;;  %v5917_v49 = vld [vmem:[#allocation2 + $0x2c0] ss:$16 sps:$4 sm:$0xff]   ;;  %v5928_v2 = vld [vmem:[#allocation2 + $0x2ec] ss:$16 sps:$4 sm:$0xff]  }
 0x154   :  { %7886 = vst [vmem:[#allocation22_spill] sm:$0xff] %v6760_v8  ;;  %v7778_v20 = vmax.f32 %v6760_v8, 0.0  ;;  %1486 = vmatprep.subr.bf16.mxu0 %v5913_v57  ;;  %1712 = vmatprep.subr.bf16.mxu1 %v5916_v60  ;;  %v5925_v60 = vld [vmem:[#allocation2 + $0x2e4] ss:$16 sps:$4 sm:$0xff]   ;;  %v6781_v9 = vpop.f32.mrb[12].mxu1 }
 0x155   :  { %7887 = vst [vmem:[#allocation23_spill] sm:$0xff] %v6765_v11  ;;  %v7777_v37 = vmax.f32 %v6765_v11, 0.0 }
 0x156   :  { %v553_v53 = vpack.c.bf16 %v7778_v20, %v7780_v46 }
 0x157   :  { %v554_v47 = vpack.c.bf16 %v7777_v37, %v7779_v34  ;;  %1487 = vmatpush1.bf16.msra.mxu0 %v5911_v12  ;;  %v325_v48 = vpop.f32.mrb[16].mxu0  ;;  %1713 = vmatpush1.bf16.msra.mxu1 %v5914_v13  ;;  %v6786_v13 = vpop.f32.mrb[13].mxu1 }
 0x158   :  { %v327_v57 = vpop.f32.mrb[17].mxu0  ;;  %1488 = vmatprep.subr.bf16.mxu0 %v5919_v23  ;;  %1714 = vmatprep.subr.bf16.mxu1 %v5922_v24  ;;  %v6789_v37 = vadd.f32 %v325_v48, %v6659_v30  ;;  %v6794_v24 = vpop.f32.mrb[14].mxu1 }
 0x159   :  { %v6784_v0 = vadd.f32 %v327_v57, %v6655_v29  ;;  %v329_v12 = vpop.f32.mrb[18].mxu0  ;;  %1425 = vmatprep.mubr.bf16.mxu0 %v554_v47  ;;  %1651 = vmatprep.mubr.bf16.mxu1 %v554_v47  ;;  %v5923_v57 = vld [vmem:[#allocation2 + $0x2e0] ss:$16 sps:$4 sm:$0xff]   ;;  %v5926_v47 = vld [vmem:[#allocation2 + $0x2e8] ss:$16 sps:$4 sm:$0xff]   ;;  %v6799_v46 = vpop.f32.mrb[15].mxu1 }
 0x15a   :  { %7889 = vst [vmem:[#allocation25_spill] sm:$0xff] %v6789_v37  ;;  %v6792_v20 = vadd.f32 %v329_v12, %v6659_v30  ;;  %v331_v23 = vpop.f32.mrb[19].mxu0  ;;  %1426 = vmatmul.mubr.bf16.gmra.mrb[44].mxu0 %v553_v53  ;;  %1652 = vmatmul.mubr.bf16.gmra.mrb[44].mxu1 %v553_v53  ;;  %v5931_v12 = vld [vmem:[#allocation2 + $0x304] ss:$16 sps:$4 sm:$0xff]   ;;  %v7792_v43 = vmax.f32 %v6789_v37, 0.0  ;;  %v6813_v3 = vpop.f32.mrb[16].mxu1 }
 0x15b   :  { %7888 = vst [vmem:[#allocation24_spill] sm:$0xff] %v6784_v0  ;;  %v6797_v34 = vadd.f32 %v331_v23, %v6655_v29  ;;  %1489 = vmatpush1.bf16.msra.mxu0 %v5917_v49  ;;  %1715 = vmatpush1.bf16.msra.mxu1 %v5920_v50  ;;  %v7791_v32 = vmax.f32 %v6784_v0, 0.0  ;;  %v5929_v23 = vld [vmem:[#allocation2 + $0x300] ss:$16 sps:$4 sm:$0xff]   ;;  %v6846_v0 = vsub.s32 3, %v6640_v25 }
 0x15c   :  { %7890 = vst [vmem:[#allocation26_spill] sm:$0xff] %v6792_v20  ;;  %v7790_v48 = vmax.f32 %v6792_v20, 0.0  ;;  %1490 = vmatprep.subr.bf16.mxu0 %v5925_v60  ;;  %1716 = vmatprep.subr.bf16.mxu1 %v5928_v2  ;;  %v5952_v20 = vld [vmem:[#allocation2 + $0x36c] ss:$16 sps:$4 sm:$0xff]   ;;  %v5956_v37 = vld [vmem:[#allocation2 + $0x388] ss:$16 sps:$4 sm:$0xff]  }
 0x15d   :  { %7891 = vst [vmem:[#allocation27_spill] sm:$0xff] %v6797_v34  ;;  %v7789_v53 = vmax.f32 %v6797_v34, 0.0 }
 0x15e   :  { %v557_v60 = vpack.c.bf16 %v7790_v48, %v7792_v43 }
 0x15f   :  { %v558_v49 = vpack.c.bf16 %v7789_v53, %v7791_v32  ;;  %1491 = vmatpush1.bf16.msra.mxu0 %v5923_v57  ;;  %v335_v50 = vpop.f32.mrb[20].mxu0  ;;  %1717 = vmatpush1.bf16.msra.mxu1 %v5926_v47  ;;  %v6818_v47 = vpop.f32.mrb[17].mxu1 }
 0x160   :  { %v337_v2 = vpop.f32.mrb[21].mxu0  ;;  %1492 = vmatprep.subr.bf16.mxu0 %v5931_v12  ;;  %1718 = vmatprep.subr.bf16.mxu1 %v5934_v44  ;;  %v6821_v53 = vadd.f32 %v335_v50, %v6659_v30  ;;  %v6826_v44 = vpop.f32.mrb[18].mxu1 }
 0x161   :  { %v6816_v5 = vadd.f32 %v337_v2, %v6655_v29  ;;  %v339_v57 = vpop.f32.mrb[22].mxu0  ;;  %1435 = vmatprep.mubr.bf16.mxu0 %v558_v49  ;;  %1661 = vmatprep.mubr.bf16.mxu1 %v558_v49  ;;  %v5935_v2 = vld [vmem:[#allocation2 + $0x320] ss:$16 sps:$4 sm:$0xff]   ;;  %v5938_v49 = vld [vmem:[#allocation2 + $0x328] ss:$16 sps:$4 sm:$0xff]   ;;  %v6831_v43 = vpop.f32.mrb[19].mxu1 }
 0x162   :  { %7893 = vst [vmem:[#allocation29_spill] sm:$0xff] %v6821_v53  ;;  %v6824_v48 = vadd.f32 %v339_v57, %v6659_v30  ;;  %v341_v12 = vpop.f32.mrb[23].mxu0  ;;  %1436 = vmatmul.mubr.bf16.gmra.mrb[48].mxu0 %v557_v60  ;;  %1662 = vmatmul.mubr.bf16.gmra.mrb[48].mxu1 %v557_v60  ;;  %v5943_v57 = vld [vmem:[#allocation2 + $0x344] ss:$16 sps:$4 sm:$0xff]   ;;  %v7804_v40 = vmax.f32 %v6821_v53, 0.0 }
 0x163   :  { %7892 = vst [vmem:[#allocation28_spill] sm:$0xff] %v6816_v5  ;;  %v6829_v32 = vadd.f32 %v341_v12, %v6655_v29  ;;  %1493 = vmatpush1.bf16.msra.mxu0 %v5929_v23  ;;  %1719 = vmatpush1.bf16.msra.mxu1 %v5932_v45  ;;  %v7802_v39 = vmax.f32 %v6816_v5, 0.0  ;;  %v5941_v12 = vld [vmem:[#allocation2 + $0x340] ss:$16 sps:$4 sm:$0xff]   ;;  %v6848_v5 = vpop.f32.mrb[20].mxu1 }
 0x164   :  { %7894 = vst [vmem:[#allocation30_spill] sm:$0xff] %v6824_v48  ;;  %v7803_v50 = vmax.f32 %v6824_v48, 0.0  ;;  %1494 = vmatprep.subr.bf16.mxu0 %v5937_v4  ;;  %1720 = vmatprep.subr.bf16.mxu1 %v5940_v63  ;;  %v5949_v4 = vld [vmem:[#allocation2 + $0x364] ss:$16 sps:$4 sm:$0xff]   ;;  %v5958_v48 = vld [vmem:[#allocation2 + $0x38c] ss:$16 sps:$4 sm:$0xff]  }
 0x165   :  { %7895 = vst [vmem:[#allocation31_spill] sm:$0xff] %v6829_v32  ;;  %v7801_v60 = vmax.f32 %v6829_v32, 0.0 }
 0x166   :  { %v561_v63 = vpack.c.bf16 %v7803_v50, %v7804_v40 }
 0x167   :  { %v562_v45 = vpack.c.bf16 %v7801_v60, %v7802_v39  ;;  %1495 = vmatpush1.bf16.msra.mxu0 %v5935_v2  ;;  %v345_v23 = vpop.f32.mrb[24].mxu0  ;;  %1721 = vmatpush1.bf16.msra.mxu1 %v5938_v49  ;;  %v6853_v60 = vpop.f32.mrb[21].mxu1 }
 0x168   :  { %v347_v34 = vpop.f32.mrb[25].mxu0  ;;  %1496 = vmatprep.subr.bf16.mxu0 %v5943_v57  ;;  %1722 = vmatprep.subr.bf16.mxu1 %v5946_v41  ;;  %v6856_v39 = vadd.f32 %v345_v23, %v6659_v30  ;;  %v6861_v50 = vpop.f32.mrb[22].mxu1  ;;  %v5953_v23 = vld [vmem:[#allocation2 + $0x380] ss:$16 sps:$4 sm:$0xff]  }
 0x169   :  { %v6851_v2 = vadd.f32 %v347_v34, %v6655_v29  ;;  %v349_v49 = vpop.f32.mrb[26].mxu0  ;;  %1445 = vmatprep.mubr.bf16.mxu0 %v562_v45  ;;  %1671 = vmatprep.mubr.bf16.mxu1 %v562_v45  ;;  %v5947_v34 = vld [vmem:[#allocation2 + $0x360] ss:$16 sps:$4 sm:$0xff]   ;;  %v5950_v45 = vld [vmem:[#allocation2 + $0x368] ss:$16 sps:$4 sm:$0xff]   ;;  %v6866_v32 = vpop.f32.mrb[23].mxu1 }
 0x16a   :  { %7897 = vst [vmem:[#allocation33_spill] sm:$0xff] %v6856_v39  ;;  %v6859_v57 = vadd.f32 %v349_v49, %v6659_v30  ;;  %v351_v41 = vpop.f32.mrb[27].mxu0  ;;  %1446 = vmatmul.mubr.bf16.gmra.mrb[52].mxu0 %v561_v63  ;;  %1672 = vmatmul.mubr.bf16.gmra.mrb[52].mxu1 %v561_v63  ;;  %v5955_v49 = vld [vmem:[#allocation2 + $0x384] ss:$16 sps:$4 sm:$0xff]   ;;  %v6871_v63 = vrot.slane %v6648_v27, %v6846_v0 }
 0x16b   :  { %7896 = vst [vmem:[#allocation32_spill] sm:$0xff] %v6851_v2  ;;  %v6864_v40 = vadd.f32 %v351_v41, %v6655_v29  ;;  %1497 = vmatpush1.bf16.msra.mxu0 %v5941_v12  ;;  %1723 = vmatpush1.bf16.msra.mxu1 %v5944_v42  ;;  %v7815_v53 = vmax.f32 %v6851_v2, 0.0  ;;  %v7816_v42 = vmax.f32 %v6856_v39, 0.0  ;;  %v6877_v12 = vsub.s32 2, %v6640_v25  ;;  %v5961_v2 = vld [vmem:[#allocation2 + $0x3a4] ss:$16 sps:$4 sm:$0xff]  }
 0x16c   :  { %7898 = vst [vmem:[#allocation34_spill] sm:$0xff] %v6859_v57  ;;  %1498 = vmatprep.subr.bf16.mxu0 %v5949_v4  ;;  %1724 = vmatprep.subr.bf16.mxu1 %v5952_v20  ;;  %v7900_v11 = vmax.f32 %v6859_v57, 0.0  ;;  %v6889_v25 = vadd.f32 %v6690_v54, %v6871_v63  ;;  %v5967_v57 = vld [vmem:[#allocation2 + $0x3c4] ss:$16 sps:$4 sm:$0xff]  }
 0x16d   :  { %7899 = vst [vmem:[#allocation35_spill] sm:$0xff] %v6864_v40  ;;  %v7814_v41 = vmax.f32 %v6864_v40, 0.0  ;;  %v5964_v40 = vld [vmem:[#allocation2 + $0x3ac] ss:$16 sps:$4 sm:$0xff]  }
 0x16e   :  { %v565_v8 = vpack.c.bf16 %v7900_v11, %v7816_v42 }
 0x16f   :  { %v566_v20 = vpack.c.bf16 %v7814_v41, %v7815_v53  ;;  %1499 = vmatpush1.bf16.msra.mxu0 %v5947_v34  ;;  %v355_v4 = vpop.f32.mrb[28].mxu0  ;;  %1725 = vmatpush1.bf16.msra.mxu1 %v5950_v45  ;;  %v6893_v34 = vadd.f32 %v6703_v62, %v6871_v63  ;;  %v6895_v45 = vpop.f32.mrb[24].mxu1  ;;  %v6910_v62 = vrot.slane %v6648_v27, %v6877_v12 }
 0x170   :  { %v357_v1 = vpop.f32.mrb[29].mxu0  ;;  %1500 = vmatprep.subr.bf16.mxu0 %v5955_v49  ;;  %1726 = vmatprep.subr.bf16.mxu1 %v5958_v48  ;;  %v6900_v11 = vpop.f32.mrb[25].mxu1  ;;  %v6903_v48 = vadd.f32 %v355_v4, %v6659_v30  ;;  %v5962_v4 = vld [vmem:[#allocation2 + $0x3a8] ss:$16 sps:$4 sm:$0xff]   ;;  %v6935_v27 = vadd.f32 %v6722_v17, %v6871_v63  ;;  %v5973_v17 = vld [vmem:[#allocation2 + $0x3e4] ss:$16 sps:$4 sm:$0xff]  }
 0x171   :  { %v6898_v41 = vadd.f32 %v357_v1, %v6655_v29  ;;  %v359_v53 = vpop.f32.mrb[30].mxu0  ;;  %1455 = vmatprep.mubr.bf16.mxu0 %v566_v20  ;;  %1681 = vmatprep.mubr.bf16.mxu1 %v566_v20  ;;  %v5959_v1 = vld [vmem:[#allocation2 + $0x3a0] ss:$16 sps:$4 sm:$0xff]   ;;  %v6912_v42 = vpop.f32.mrb[26].mxu1 }
 0x172   :  { %7902 = vst [vmem:[#allocation37_spill] sm:$0xff] %v6903_v48  ;;  %v6906_v54 = vadd.f32 %v359_v53, %v6659_v30  ;;  %v361_v49 = vpop.f32.mrb[31].mxu0  ;;  %1456 = vmatmul.mubr.bf16.gmra.mrb[56].mxu0 %v565_v8  ;;  %1682 = vmatmul.mubr.bf16.gmra.mrb[56].mxu1 %v565_v8  ;;  %v6917_v39 = vpop.f32.mrb[27].mxu1  ;;  %v5970_v53 = vld [vmem:[#allocation2 + $0x3cc] ss:$16 sps:$4 sm:$0xff]   ;;  %v6939_v8 = vadd.f32 %v6735_v31, %v6871_v63 }
 0x173   :  { %7901 = vst [vmem:[#allocation36_spill] sm:$0xff] %v6898_v41  ;;  %v6915_v20 = vadd.f32 %v361_v49, %v6655_v29  ;;  %1501 = vmatpush1.bf16.msra.mxu0 %v5953_v23  ;;  %1727 = vmatpush1.bf16.msra.mxu1 %v5956_v37  ;;  %v7821_v7 = vmax.f32 %v6898_v41, 0.0  ;;  %v7825_v23 = vmax.f32 %v6903_v48, 0.0  ;;  %v6927_v37 = vadd.f32 %v6685_v51, %v6910_v62  ;;  %v5976_v31 = vld [vmem:[#allocation2 + $0x3ec] ss:$16 sps:$4 sm:$0xff]  }
 0x174   :  { %7903 = vst [vmem:[#allocation38_spill] sm:$0xff] %v6906_v54  ;;  %v7824_v30 = vmax.f32 %v6906_v54, 0.0  ;;  %1502 = vmatprep.subr.bf16.mxu0 %v5961_v2  ;;  %1728 = vmatprep.subr.bf16.mxu1 %v5964_v40  ;;  %v5965_v40 = vld [vmem:[#allocation2 + $0x3c0] ss:$16 sps:$4 sm:$0xff]   ;;  %v5968_v2 = vld [vmem:[#allocation2 + $0x3c8] ss:$16 sps:$4 sm:$0xff]  }
 0x175   :  { %7904 = vst [vmem:[#allocation39_spill] sm:$0xff] %v6915_v20  ;;  %v7820_v29 = vmax.f32 %v6915_v20, 0.0  ;;  %v6953_v20 = vpop.f32.mrb[28].mxu1  ;;  %v5979_v54 = vld [vmem:[#allocation5 + $0x4] ss:$16 sps:$4 sm:$0xff]  }
 0x176   :  { %v569_v51 = vpack.c.bf16 %v7824_v30, %v7825_v23  ;;  %v6955_v41 = vpop.f32.mrb[29].mxu1  ;;  %v5971_v30 = vld [vmem:[#allocation2 + $0x3e0] ss:$16 sps:$4 sm:$0xff]   ;;  %v7828_v23 = vmax.f32 %v6935_v27, 0.0  ;;  %v5994_v48 = vld [vmem:[#allocation5 + $0x4c] ss:$16 sps:$4 sm:$0xff]  }
 0x177   :  { %v570_v49 = vpack.c.bf16 %v7820_v29, %v7821_v7  ;;  %1503 = vmatpush1.bf16.msra.mxu0 %v5959_v1  ;;  %1729 = vmatpush1.bf16.msra.mxu1 %v5962_v4  ;;  %v6947_v29 = vadd.f32 %v6698_v58, %v6910_v62  ;;  %v7905_v1 = vmax.f32 %v6889_v25, 0.0  ;;  %v7906_v4 = vmax.f32 %v6893_v34, 0.0  ;;  %v6957_v58 = vpop.f32.mrb[30].mxu1 }
 0x178   :  { %1504 = vmatprep.subr.bf16.mxu0 %v5967_v57  ;;  %1730 = vmatprep.subr.bf16.mxu1 %v5970_v53  ;;  %v7827_v57 = vmax.f32 %v6939_v8, 0.0  ;;  %v6961_v53 = vpop.f32.mrb[31].mxu1 }
 0x179   :  { %v544_v7 = vpack.c.bf16 %v7906_v4, %v7905_v1  ;;  %1465 = vmatprep.mubr.bf16.mxu0 %v570_v49  ;;  %1691 = vmatprep.mubr.bf16.mxu1 %v570_v49  ;;  %v5974_v1 = vld [vmem:[#allocation2 + $0x3e8] ss:$16 sps:$4 sm:$0xff]   ;;  %v7829_v4 = vmax.f32 %v6927_v37, 0.0  ;;  %v6975_v49 = vadd.f32 %v6767_v16, %v6871_v63  ;;  %v5988_v16 = vld [vmem:[#allocation5 + $0x2c] ss:$16 sps:$4 sm:$0xff]  }
 0x17a   :  { %1466 = vmatmul.mubr.bf16.gmra.mrb[60].mxu0 %v569_v51  ;;  %1692 = vmatmul.mubr.bf16.gmra.mrb[60].mxu1 %v569_v51  ;;  %v5982_v51 = vld [vmem:[#allocation5 + $0xc] ss:$16 sps:$4 sm:$0xff]  }
 0x17b   :  { %1505 = vmatpush1.bf16.msra.mxu0 %v5965_v40  ;;  %1731 = vmatpush1.bf16.msra.mxu1 %v5968_v2  ;;  %v548_v40 = vpack.c.bf16 %v7827_v57, %v7828_v23  ;;  %v6971_v2 = vadd.f32 %v6754_v6, %v6871_v63  ;;  %7908 = vst [vmem:[#allocation41_spill] sm:$0xff] %v6975_v49  ;;  %v5980_v6 = vld [vmem:[#allocation5 + $0x8] ss:$16 sps:$4 sm:$0xff]   ;;  %v5985_v57 = vld [vmem:[#allocation5 + $0x24] ss:$16 sps:$4 sm:$0xff]  }
 0x17c   :  { %1506 = vmatprep.subr.bf16.mxu0 %v5973_v17  ;;  %1508 = vmatprep.mubr.bf16.mxu0 %v544_v7  ;;  %v7909_v17 = vmax.f32 %v6947_v29, 0.0 }
 0x17d   :  { %1732 = vmatprep.subr.bf16.mxu1 %v5976_v31  ;;  %1734 = vmatprep.mubr.bf16.mxu1 %v544_v7  ;;  %7907 = vst [vmem:[#allocation40_spill] sm:$0xff] %v6971_v2  ;;  %v6987_v31 = vadd.f32 %v6730_v21, %v6910_v62  ;;  %v7832_v23 = vmax.f32 %v6971_v2, 0.0  ;;  %v5983_v21 = vld [vmem:[#allocation5 + $0x20] ss:$16 sps:$4 sm:$0xff]  }
 0x17e   :  { %v543_v7 = vpack.c.bf16 %v7909_v17, %v7829_v4  ;;  %v7831_v17 = vmax.f32 %v6975_v49, 0.0  ;;  %v7003_v4 = vadd.f32 %v6799_v46, %v6871_v63  ;;  %v5997_v46 = vld [vmem:[#allocation5 + $0x64] ss:$16 sps:$4 sm:$0xff]  }
 0x17f   :  { %1507 = vmatpush1.bf16.msra.mxu0 %v5971_v30  ;;  %1733 = vmatpush1.bf16.msra.mxu1 %v5974_v1  ;;  %v6983_v30 = vadd.f32 %v6717_v14, %v6910_v62  ;;  %v5977_v1 = vld [vmem:[#allocation5] ss:$16 sps:$4 sm:$0xff]  }
 0x180   :  { %2701 = vmatprep.subr.bf16.mxu0 %v5979_v54  ;;  %2927 = vmatprep.subr.bf16.mxu1 %v5982_v51  ;;  %v5986_v54 = vld [vmem:[#allocation5 + $0x28] ss:$16 sps:$4 sm:$0xff]   ;;  %v5991_v51 = vld [vmem:[#allocation5 + $0x44] ss:$16 sps:$4 sm:$0xff]   ;;  %7911 = vst [vmem:[#allocation43_spill] sm:$0xff] %v7003_v4 }
 0x181   :  { %v7833_v14 = vmax.f32 %v6983_v30, 0.0 }
 0x182   :  { %1509 = vmatmul.mubr.bf16.vlgmr.msra.gmra.mrb[32].mxu0 %v543_v7  ;;  %1735 = vmatmul.mubr.bf16.vlgmr.msra.gmra.mrb[32].mxu1 %v543_v7  ;;  %v552_v7 = vpack.c.bf16 %v7831_v17, %v7832_v23  ;;  %v5992_v17 = vld [vmem:[#allocation5 + $0x48] ss:$16 sps:$4 sm:$0xff]   ;;  %v6000_v23 = vld [vmem:[#allocation5 + $0x6c] ss:$16 sps:$4 sm:$0xff]  }
 0x183   :  { %1518 = vmatprep.mubr.bf16.mxu0 %v548_v40  ;;  %1744 = vmatprep.mubr.bf16.mxu1 %v548_v40  ;;  %v6999_v40 = vadd.f32 %v6786_v13, %v6871_v63  ;;  %v5989_v13 = vld [vmem:[#allocation5 + $0x40] ss:$16 sps:$4 sm:$0xff]  }
 0x184   :  { %2702 = vmatpush1.bf16.msra.mxu0 %v5977_v1  ;;  %2928 = vmatpush1.bf16.msra.mxu1 %v5980_v6  ;;  %v7011_v6 = vadd.f32 %v6749_v61, %v6910_v62  ;;  %v7834_v61 = vmax.f32 %v7003_v4, 0.0 }
 0x185   :  { %2703 = vmatprep.subr.bf16.mxu0 %v5985_v57  ;;  %2929 = vmatprep.subr.bf16.mxu1 %v5988_v16  ;;  %7910 = vst [vmem:[#allocation42_spill] sm:$0xff] %v6999_v40  ;;  %v7912_v57 = vmax.f32 %v6987_v31, 0.0  ;;  %v7015_v16 = vadd.f32 %v6762_v10, %v6910_v62  ;;  %v7031_v10 = vadd.f32 %v6831_v43, %v6871_v63  ;;  %v6009_v43 = vld [vmem:[#allocation5 + $0xa4] ss:$16 sps:$4 sm:$0xff]  }
 0x186   :  { %7913 = vst [vmem:[#allocation44_spill] sm:$0xff] %v7011_v6 }
 0x187   :  { %v547_v1 = vpack.c.bf16 %v7912_v57, %v7833_v14  ;;  %7914 = vst [vmem:[#allocation45_spill] sm:$0xff] %v7015_v16  ;;  %v7835_v57 = vmax.f32 %v6999_v40, 0.0  ;;  %v7836_v14 = vmax.f32 %v7011_v6, 0.0  ;;  %7916 = vst [vmem:[#allocation47_spill] sm:$0xff] %v7031_v10 }
 0x188   :  { %2704 = vmatpush1.bf16.msra.mxu0 %v5983_v21  ;;  %2930 = vmatpush1.bf16.msra.mxu1 %v5986_v54  ;;  %v5995_v21 = vld [vmem:[#allocation5 + $0x60] ss:$16 sps:$4 sm:$0xff]   ;;  %v5998_v54 = vld [vmem:[#allocation5 + $0x68] ss:$16 sps:$4 sm:$0xff]  }
 0x189   :  { %2705 = vmatprep.subr.bf16.mxu0 %v5991_v51  ;;  %2931 = vmatprep.subr.bf16.mxu1 %v5994_v48  ;;  %v6003_v48 = vld [vmem:[#allocation5 + $0x84] ss:$16 sps:$4 sm:$0xff]   ;;  %v6006_v51 = vld [vmem:[#allocation5 + $0x8c] ss:$16 sps:$4 sm:$0xff]  }
 0x18a   :  { %1519 = vmatmul.mubr.bf16.gmra.mrb[36].mxu0 %v547_v1  ;;  %1745 = vmatmul.mubr.bf16.gmra.mrb[36].mxu1 %v547_v1  ;;  %v556_v1 = vpack.c.bf16 %v7834_v61, %v7835_v57  ;;  %v6004_v61 = vld [vmem:[#allocation5 + $0x88] ss:$16 sps:$4 sm:$0xff]   ;;  %v6012_v57 = vld [vmem:[#allocation5 + $0xac] ss:$16 sps:$4 sm:$0xff]  }
 0x18b   :  { %1528 = vmatprep.mubr.bf16.mxu0 %v552_v7  ;;  %1754 = vmatprep.mubr.bf16.mxu1 %v552_v7  ;;  %v7027_v7 = vadd.f32 %v6818_v47, %v6871_v63  ;;  %v6001_v47 = vld [vmem:[#allocation5 + $0x80] ss:$16 sps:$4 sm:$0xff]  }
 0x18c   :  { %2706 = vmatpush1.bf16.msra.mxu0 %v5989_v13  ;;  %2932 = vmatpush1.bf16.msra.mxu1 %v5992_v17  ;;  %v7917_v17 = vmax.f32 %v7015_v16, 0.0  ;;  %v7039_v13 = vadd.f32 %v6781_v9, %v6910_v62  ;;  %v7837_v9 = vmax.f32 %v7031_v10, 0.0  ;;  %v6073_v10 = vld [vmem:[#allocation5 + $0x200] ss:$16 sps:$4 sm:$0xff]  }
 0x18d   :  { %2707 = vmatprep.subr.bf16.mxu0 %v5997_v46  ;;  %2933 = vmatprep.subr.bf16.mxu1 %v6000_v23  ;;  %7915 = vst [vmem:[#allocation46_spill] sm:$0xff] %v7027_v7  ;;  %v7043_v46 = vadd.f32 %v6794_v24, %v6910_v62  ;;  %v7059_v24 = vadd.f32 %v6866_v32, %v6871_v63  ;;  %v6021_v32 = vld [vmem:[#allocation5 + $0xe4] ss:$16 sps:$4 sm:$0xff]  }
 0x18e   :  { %v551_v23 = vpack.c.bf16 %v7917_v17, %v7836_v14  ;;  %7918 = vst [vmem:[#allocation48_spill] sm:$0xff] %v7039_v13  ;;  %v7838_v17 = vmax.f32 %v7027_v7, 0.0  ;;  %v7839_v14 = vmax.f32 %v7039_v13, 0.0 }
 0x18f   :  { %7919 = vst [vmem:[#allocation49_spill] sm:$0xff] %v7043_v46  ;;  %7921 = vst [vmem:[#allocation51_spill] sm:$0xff] %v7059_v24 }
 0x190   :  { %2708 = vmatpush1.bf16.msra.mxu0 %v5995_v21  ;;  %2934 = vmatpush1.bf16.msra.mxu1 %v5998_v54  ;;  %v6007_v21 = vld [vmem:[#allocation5 + $0xa0] ss:$16 sps:$4 sm:$0xff]   ;;  %v6010_v54 = vld [vmem:[#allocation5 + $0xa8] ss:$16 sps:$4 sm:$0xff]  }
 0x191   :  { %2709 = vmatprep.subr.bf16.mxu0 %v6003_v48  ;;  %2935 = vmatprep.subr.bf16.mxu1 %v6006_v51  ;;  %v6015_v48 = vld [vmem:[#allocation5 + $0xc4] ss:$16 sps:$4 sm:$0xff]   ;;  %v6018_v51 = vld [vmem:[#allocation5 + $0xcc] ss:$16 sps:$4 sm:$0xff]  }
 0x192   :  { %1529 = vmatmul.mubr.bf16.gmra.mrb[40].mxu0 %v551_v23  ;;  %1755 = vmatmul.mubr.bf16.gmra.mrb[40].mxu1 %v551_v23  ;;  %v560_v23 = vpack.c.bf16 %v7837_v9, %v7838_v17  ;;  %v6016_v9 = vld [vmem:[#allocation5 + $0xc8] ss:$16 sps:$4 sm:$0xff]   ;;  %v6024_v17 = vld [vmem:[#allocation5 + $0xec] ss:$16 sps:$4 sm:$0xff]  }
 0x193   :  { %1538 = vmatprep.mubr.bf16.mxu0 %v556_v1  ;;  %1764 = vmatprep.mubr.bf16.mxu1 %v556_v1  ;;  %v7055_v1 = vadd.f32 %v6853_v60, %v6871_v63  ;;  %v6013_v60 = vld [vmem:[#allocation5 + $0xc0] ss:$16 sps:$4 sm:$0xff]  }
 0x194   :  { %2710 = vmatpush1.bf16.msra.mxu0 %v6001_v47  ;;  %2936 = vmatpush1.bf16.msra.mxu1 %v6004_v61  ;;  %v7922_v61 = vmax.f32 %v7043_v46, 0.0  ;;  %v7067_v47 = vadd.f32 %v6813_v3, %v6910_v62  ;;  %v7840_v3 = vmax.f32 %v7059_v24, 0.0 }
 0x195   :  { %2711 = vmatprep.subr.bf16.mxu0 %v6009_v43  ;;  %2937 = vmatprep.subr.bf16.mxu1 %v6012_v57  ;;  %7920 = vst [vmem:[#allocation50_spill] sm:$0xff] %v7055_v1  ;;  %v7071_v43 = vadd.f32 %v6826_v44, %v6910_v62  ;;  %v7087_v44 = vadd.f32 %v6917_v39, %v6871_v63  ;;  %v6033_v39 = vld [vmem:[#allocation5 + $0x124] ss:$16 sps:$4 sm:$0xff]  }
 0x196   :  { %v555_v57 = vpack.c.bf16 %v7922_v61, %v7839_v14  ;;  %7923 = vst [vmem:[#allocation52_spill] sm:$0xff] %v7067_v47  ;;  %v7841_v61 = vmax.f32 %v7055_v1, 0.0  ;;  %v7842_v14 = vmax.f32 %v7067_v47, 0.0 }
 0x197   :  { %7924 = vst [vmem:[#allocation53_spill] sm:$0xff] %v7071_v43  ;;  %7926 = vst [vmem:[#allocation55_spill] sm:$0xff] %v7087_v44 }
 0x198   :  { %2712 = vmatpush1.bf16.msra.mxu0 %v6007_v21  ;;  %2938 = vmatpush1.bf16.msra.mxu1 %v6010_v54  ;;  %v6019_v21 = vld [vmem:[#allocation5 + $0xe0] ss:$16 sps:$4 sm:$0xff]   ;;  %v6022_v54 = vld [vmem:[#allocation5 + $0xe8] ss:$16 sps:$4 sm:$0xff]  }
 0x199   :  { %2713 = vmatprep.subr.bf16.mxu0 %v6015_v48  ;;  %2939 = vmatprep.subr.bf16.mxu1 %v6018_v51  ;;  %v6027_v48 = vld [vmem:[#allocation5 + $0x104] ss:$16 sps:$4 sm:$0xff]   ;;  %v6030_v51 = vld [vmem:[#allocation5 + $0x10c] ss:$16 sps:$4 sm:$0xff]  }
 0x19a   :  { %1539 = vmatmul.mubr.bf16.gmra.mrb[44].mxu0 %v555_v57  ;;  %1765 = vmatmul.mubr.bf16.gmra.mrb[44].mxu1 %v555_v57  ;;  %v564_v57 = vpack.c.bf16 %v7840_v3, %v7841_v61  ;;  %v6028_v3 = vld [vmem:[#allocation5 + $0x108] ss:$16 sps:$4 sm:$0xff]   ;;  %v6036_v61 = vld [vmem:[#allocation5 + $0x12c] ss:$16 sps:$4 sm:$0xff]  }
 0x19b   :  { %1548 = vmatprep.mubr.bf16.mxu0 %v560_v23  ;;  %1774 = vmatprep.mubr.bf16.mxu1 %v560_v23  ;;  %v7083_v23 = vadd.f32 %v6900_v11, %v6871_v63  ;;  %v6025_v11 = vld [vmem:[#allocation5 + $0x100] ss:$16 sps:$4 sm:$0xff]  }
 0x19c   :  { %2714 = vmatpush1.bf16.msra.mxu0 %v6013_v60  ;;  %2940 = vmatpush1.bf16.msra.mxu1 %v6016_v9  ;;  %v7927_v9 = vmax.f32 %v7071_v43, 0.0  ;;  %v7095_v60 = vadd.f32 %v6848_v5, %v6910_v62  ;;  %v7843_v5 = vmax.f32 %v7087_v44, 0.0 }
 0x19d   :  { %2715 = vmatprep.subr.bf16.mxu0 %v6021_v32  ;;  %2941 = vmatprep.subr.bf16.mxu1 %v6024_v17  ;;  %7925 = vst [vmem:[#allocation54_spill] sm:$0xff] %v7083_v23  ;;  %v7099_v32 = vadd.f32 %v6861_v50, %v6910_v62  ;;  %v7115_v50 = vadd.f32 %v6961_v53, %v6871_v63  ;;  %v6048_v53 = vld [vmem:[#allocation5 + $0x16c] ss:$16 sps:$4 sm:$0xff]  }
 0x19e   :  { %v559_v17 = vpack.c.bf16 %v7927_v9, %v7842_v14  ;;  %7928 = vst [vmem:[#allocation56_spill] sm:$0xff] %v7095_v60  ;;  %v7844_v9 = vmax.f32 %v7083_v23, 0.0  ;;  %v7851_v14 = vmax.f32 %v7095_v60, 0.0 }
 0x19f   :  { %7929 = vst [vmem:[#allocation57_spill] sm:$0xff] %v7099_v32  ;;  %7931 = vst [vmem:[#allocation59_spill] sm:$0xff] %v7115_v50 }
 0x1a0   :  { %2716 = vmatpush1.bf16.msra.mxu0 %v6019_v21  ;;  %2942 = vmatpush1.bf16.msra.mxu1 %v6022_v54  ;;  %v6031_v21 = vld [vmem:[#allocation5 + $0x120] ss:$16 sps:$4 sm:$0xff]   ;;  %v6034_v54 = vld [vmem:[#allocation5 + $0x128] ss:$16 sps:$4 sm:$0xff]  }
 0x1a1   :  { %2717 = vmatprep.subr.bf16.mxu0 %v6027_v48  ;;  %2943 = vmatprep.subr.bf16.mxu1 %v6030_v51  ;;  %v6039_v48 = vld [vmem:[#allocation5 + $0x144] ss:$16 sps:$4 sm:$0xff]   ;;  %v6042_v51 = vld [vmem:[#allocation5 + $0x14c] ss:$16 sps:$4 sm:$0xff]  }
 0x1a2   :  { %1549 = vmatmul.mubr.bf16.gmra.mrb[48].mxu0 %v559_v17  ;;  %1775 = vmatmul.mubr.bf16.gmra.mrb[48].mxu1 %v559_v17  ;;  %v568_v17 = vpack.c.bf16 %v7843_v5, %v7844_v9  ;;  %v6040_v5 = vld [vmem:[#allocation5 + $0x148] ss:$16 sps:$4 sm:$0xff]  }
 0x1a3   :  { %1558 = vmatprep.mubr.bf16.mxu0 %v564_v57  ;;  %1784 = vmatprep.mubr.bf16.mxu1 %v564_v57  ;;  %v7111_v57 = vadd.f32 %v6955_v41, %v6871_v63  ;;  %v6037_v41 = vld [vmem:[#allocation5 + $0x140] ss:$16 sps:$4 sm:$0xff]   ;;  %v6045_v63 = vld [vmem:[#allocation5 + $0x164] ss:$16 sps:$4 sm:$0xff]  }
 0x1a4   :  { %2718 = vmatpush1.bf16.msra.mxu0 %v6025_v11  ;;  %2944 = vmatpush1.bf16.msra.mxu1 %v6028_v3  ;;  %v7932_v3 = vmax.f32 %v7099_v32, 0.0  ;;  %v7123_v11 = vadd.f32 %v6895_v45, %v6910_v62  ;;  %v7845_v45 = vmax.f32 %v7115_v50, 0.0 }
 0x1a5   :  { %2719 = vmatprep.subr.bf16.mxu0 %v6033_v39  ;;  %2945 = vmatprep.subr.bf16.mxu1 %v6036_v61  ;;  %7930 = vst [vmem:[#allocation58_spill] sm:$0xff] %v7111_v57  ;;  %v7127_v39 = vadd.f32 %v6912_v42, %v6910_v62 }
 0x1a6   :  { %v563_v61 = vpack.c.bf16 %v7932_v3, %v7851_v14  ;;  %7933 = vst [vmem:[#allocation60_spill] sm:$0xff] %v7123_v11  ;;  %v7846_v3 = vmax.f32 %v7111_v57, 0.0  ;;  %v7850_v9 = vmax.f32 %v7123_v11, 0.0 }
 0x1a7   :  { %7934 = vst [vmem:[#allocation61_spill] sm:$0xff] %v7127_v39  ;;  %v7847_v42 = vmax.f32 %v7127_v39, 0.0 }
 0x1a8   :  { %2720 = vmatpush1.bf16.msra.mxu0 %v6031_v21  ;;  %2946 = vmatpush1.bf16.msra.mxu1 %v6034_v54  ;;  %v6043_v21 = vld [vmem:[#allocation5 + $0x160] ss:$16 sps:$4 sm:$0xff]   ;;  %v6046_v54 = vld [vmem:[#allocation5 + $0x168] ss:$16 sps:$4 sm:$0xff]  }
 0x1a9   :  { %2721 = vmatprep.subr.bf16.mxu0 %v6039_v48  ;;  %2947 = vmatprep.subr.bf16.mxu1 %v6042_v51  ;;  %v6051_v48 = vld [vmem:[#allocation5 + $0x184] ss:$16 sps:$4 sm:$0xff]   ;;  %v6054_v51 = vld [vmem:[#allocation5 + $0x18c] ss:$16 sps:$4 sm:$0xff]  }
 0x1aa   :  { %1559 = vmatmul.mubr.bf16.gmra.mrb[52].mxu0 %v563_v61  ;;  %1785 = vmatmul.mubr.bf16.gmra.mrb[52].mxu1 %v563_v61  ;;  %v572_v61 = vpack.c.bf16 %v7845_v45, %v7846_v3  ;;  %v6057_v45 = vld [vmem:[#allocation5 + $0x1a4] ss:$16 sps:$4 sm:$0xff]   ;;  %v6060_v3 = vld [vmem:[#allocation5 + $0x1ac] ss:$16 sps:$4 sm:$0xff]  }
 0x1ab   :  { %1568 = vmatprep.mubr.bf16.mxu0 %v568_v17  ;;  %1794 = vmatprep.mubr.bf16.mxu1 %v568_v17  ;;  %v567_v17 = vpack.c.bf16 %v7847_v42, %v7850_v9 }
 0x1ac   :  { %2722 = vmatpush1.bf16.msra.mxu0 %v6037_v41  ;;  %2948 = vmatpush1.bf16.msra.mxu1 %v6040_v5  ;;  %v7143_v41 = vadd.f32 %v6953_v20, %v6910_v62  ;;  %v7147_v5 = vadd.f32 %v6957_v58, %v6910_v62  ;;  %v6055_v62 = vld [vmem:[#allocation5 + $0x1a0] ss:$16 sps:$4 sm:$0xff]   ;;  %v6058_v58 = vld [vmem:[#allocation5 + $0x1a8] ss:$16 sps:$4 sm:$0xff]  }
 0x1ad   :  { %2723 = vmatprep.subr.bf16.mxu0 %v6045_v63  ;;  %2949 = vmatprep.subr.bf16.mxu1 %v6048_v53  ;;  %v6049_v63 = vld [vmem:[#allocation5 + $0x180] ss:$16 sps:$4 sm:$0xff]   ;;  %v6052_v53 = vld [vmem:[#allocation5 + $0x188] ss:$16 sps:$4 sm:$0xff]  }
 0x1ae   :  { %7935 = vst [vmem:[#allocation62_spill] sm:$0xff] %v7143_v41  ;;  %7936 = vst [vmem:[#allocation63_spill] sm:$0xff] %v7147_v5  ;;  %v7849_v42 = vmax.f32 %v7143_v41, 0.0  ;;  %v7848_v20 = vmax.f32 %v7147_v5, 0.0 }
 0x1b0   :  { %2724 = vmatpush1.bf16.msra.mxu0 %v6043_v21  ;;  %2950 = vmatpush1.bf16.msra.mxu1 %v6046_v54  ;;  %v571_v21 = vpack.c.bf16 %v7848_v20, %v7849_v42  ;;  %v6063_v54 = vld [vmem:[#allocation5 + $0x1c4] ss:$16 sps:$4 sm:$0xff]  }
 0x1b1   :  { %2725 = vmatprep.subr.bf16.mxu0 %v6051_v48  ;;  %2951 = vmatprep.subr.bf16.mxu1 %v6054_v51  ;;  %v6066_v48 = vld [vmem:[#allocation5 + $0x1cc] ss:$16 sps:$4 sm:$0xff]   ;;  %v6061_v51 = vld [vmem:[#allocation5 + $0x1c0] ss:$16 sps:$4 sm:$0xff]  }
 0x1b2   :  { %1569 = vmatmul.mubr.bf16.gmra.mrb[56].mxu0 %v567_v17  ;;  %1795 = vmatmul.mubr.bf16.gmra.mrb[56].mxu1 %v567_v17  ;;  %v6069_v17 = vld [vmem:[#allocation5 + $0x1e4] ss:$16 sps:$4 sm:$0xff]  }
 0x1b3   :  { %1578 = vmatprep.mubr.bf16.mxu0 %v572_v61  ;;  %1804 = vmatprep.mubr.bf16.mxu1 %v572_v61  ;;  %v6064_v61 = vld [vmem:[#allocation5 + $0x1c8] ss:$16 sps:$4 sm:$0xff]  }
 0x1b4   :  { %2726 = vmatpush1.bf16.msra.mxu0 %v6049_v63  ;;  %2952 = vmatpush1.bf16.msra.mxu1 %v6052_v53  ;;  %v6070_v63 = vld [vmem:[#allocation5 + $0x1e8] ss:$16 sps:$4 sm:$0xff]   ;;  %v6075_v53 = vld [vmem:[#allocation5 + $0x204] ss:$16 sps:$4 sm:$0xff]  }
 0x1b5   :  { %2727 = vmatprep.subr.bf16.mxu0 %v6057_v45  ;;  %2953 = vmatprep.subr.bf16.mxu1 %v6060_v3  ;;  %v6072_v45 = vld [vmem:[#allocation5 + $0x1ec] ss:$16 sps:$4 sm:$0xff]   ;;  %v6067_v3 = vld [vmem:[#allocation5 + $0x1e0] ss:$16 sps:$4 sm:$0xff]  }
 0x1b8   :  { %2728 = vmatpush1.bf16.msra.mxu0 %v6055_v62  ;;  %2954 = vmatpush1.bf16.msra.mxu1 %v6058_v58  ;;  %v6078_v62 = vld [vmem:[#allocation5 + $0x20c] ss:$16 sps:$4 sm:$0xff]   ;;  %v701_v58 = vld [vmem:[%s7773_s7 + $0x4] sm:$0xf] }
 0x1b9   :  { %2729 = vmatprep.subr.bf16.mxu0 %v6063_v54  ;;  %2955 = vmatprep.subr.bf16.mxu1 %v6066_v48  ;;  %v7162_v54 = vrot.slane %v701_v58, %v6877_v12  ;;  %v7165_v48 = vrot.slane %v701_v58, %v6643_v26 }
 0x1ba   :  { %1579 = vmatmul.mubr.bf16.gmra.mrb[60].mxu0 %v571_v21  ;;  %1805 = vmatmul.mubr.bf16.gmra.mrb[60].mxu1 %v571_v21  ;;  %v7159_v21 = vrot.slane %v701_v58, %v6651_v28 }
 0x1bc   :  { %2730 = vmatpush1.bf16.msra.mxu0 %v6061_v51  ;;  %2956 = vmatpush1.bf16.msra.mxu1 %v6064_v61  ;;  %v7168_v51 = vrot.slane %v701_v58, %v6846_v0 }
 0x1bd   :  { %2731 = vmatprep.subr.bf16.mxu0 %v6069_v17  ;;  %2957 = vmatprep.subr.bf16.mxu1 %v6072_v45 }
 0x1c0   :  { %2732 = vmatpush1.bf16.msra.mxu0 %v6067_v3  ;;  %2958 = vmatpush1.bf16.msra.mxu1 %v6070_v63 }
 0x1c1   :  { %2814 = vmatprep.subr.bf16.mxu0 %v6075_v53  ;;  %3040 = vmatprep.subr.bf16.mxu1 %v6078_v62 }
 0x255   :  { %v1510_v61 = vpop.f32.mrb[32].mxu0  ;;  %v1736_v17 = vpop.f32.mrb[32].mxu1 }
 0x256   :  { %v5498_v45 = vadd.f32 %v1510_v61, %v7159_v21  ;;  %v5530_v3 = vadd.f32 %v1736_v17, %v7162_v54  ;;  %v1512_v63 = vpop.f32.mrb[33].mxu0  ;;  %v1738_v53 = vpop.f32.mrb[33].mxu1 }
 0x257   :  { %v5499_v62 = vadd.f32 %v1512_v63, %v7165_v48  ;;  %v5531_v20 = vadd.f32 %v1738_v53, %v7168_v51  ;;  %v1514_v42 = vpop.f32.mrb[34].mxu0  ;;  %v1740_v9 = vpop.f32.mrb[34].mxu1 }
 0x258   :  { %v5500_v14 = vadd.f32 %v1514_v42, %v7159_v21  ;;  %v5532_v50 = vadd.f32 %v1740_v9, %v7162_v54  ;;  %v1516_v58 = vpop.f32.mrb[35].mxu0  ;;  %v1742_v5 = vpop.f32.mrb[35].mxu1  ;;  %v1815_v41 = vmax.f32 %v5498_v45, 0.0  ;;  %v1817_v17 = vmax.f32 %v5530_v3, 0.0  ;;  %v6081_v3 = vld [vmem:[#allocation5 + $0x224] ss:$16 sps:$4 sm:$0xff]  }
 0x259   :  { %v5501_v57 = vadd.f32 %v1516_v58, %v7165_v48  ;;  %v5533_v61 = vadd.f32 %v1742_v5, %v7168_v51  ;;  %v1816_v23 = vmax.f32 %v5499_v62, 0.0  ;;  %v1818_v63 = vmax.f32 %v5531_v20, 0.0  ;;  %v6076_v58 = vld [vmem:[#allocation5 + $0x208] ss:$16 sps:$4 sm:$0xff]   ;;  %v6084_v20 = vld [vmem:[#allocation5 + $0x22c] ss:$16 sps:$4 sm:$0xff]  }
 0x25a   :  { %v1819_v44 = vmax.f32 %v5500_v14, 0.0  ;;  %v1821_v39 = vmax.f32 %v5532_v50, 0.0 }
 0x25b   :  { %v1820_v11 = vmax.f32 %v5501_v57, 0.0  ;;  %v1822_v53 = vmax.f32 %v5533_v61, 0.0 }
 0x25c   :  { %v1879_v24 = vpack.c.bf16 %v1819_v44, %v1815_v41  ;;  %v7178_v32 = vpack.c.bf16 %v1821_v39, %v1817_v17 }
 0x25d   :  { %v1880_v42 = vpack.c.bf16 %v1820_v11, %v1816_v23  ;;  %v7180_v1 = vpack.c.bf16 %v1822_v53, %v1818_v63  ;;  %v1520_v9 = vpop.f32.mrb[36].mxu0  ;;  %v1746_v60 = vpop.f32.mrb[36].mxu1  ;;  %v6079_v63 = vld [vmem:[#allocation5 + $0x220] ss:$16 sps:$4 sm:$0xff]   ;;  %v6082_v53 = vld [vmem:[#allocation5 + $0x228] ss:$16 sps:$4 sm:$0xff]  }
 0x25e   :  { %v5502_v5 = vadd.f32 %v1520_v9, %v7159_v21  ;;  %v5534_v45 = vadd.f32 %v1746_v60, %v7162_v54  ;;  %v1522_v14 = vpop.f32.mrb[37].mxu0  ;;  %v1748_v50 = vpop.f32.mrb[37].mxu1  ;;  %v6087_v9 = vld [vmem:[#allocation5 + $0x244] ss:$16 sps:$4 sm:$0xff]  }
 0x25f   :  { %v5503_v57 = vadd.f32 %v1522_v14, %v7165_v48  ;;  %v5535_v44 = vadd.f32 %v1748_v50, %v7168_v51  ;;  %v1524_v39 = vpop.f32.mrb[38].mxu0  ;;  %v1750_v23 = vpop.f32.mrb[38].mxu1  ;;  %2733 = vmatprep.mubr.bf16.mxu0 %v1880_v42  ;;  %2959 = vmatprep.mubr.bf16.mxu1 %v1880_v42 }
 0x260   :  { %v5504_v11 = vadd.f32 %v1524_v39, %v7159_v21  ;;  %v5536_v41 = vadd.f32 %v1750_v23, %v7162_v54  ;;  %v1526_v62 = vpop.f32.mrb[39].mxu0  ;;  %v1752_v61 = vpop.f32.mrb[39].mxu1  ;;  %2734 = vmatmul.mubr.bf16.vlgmr.msra.gmra.mrb[64].mxu0 %v1879_v24  ;;  %2960 = vmatmul.mubr.bf16.vlgmr.msra.gmra.mrb[64].mxu1 %v1879_v24  ;;  %v1823_v14 = vmax.f32 %v5502_v5, 0.0  ;;  %v1825_v50 = vmax.f32 %v5534_v45, 0.0  ;;  %v6090_v39 = vld [vmem:[#allocation5 + $0x24c] ss:$16 sps:$4 sm:$0xff]  }
 0x261   :  { %v5505_v60 = vadd.f32 %v1526_v62, %v7165_v48  ;;  %v5537_v17 = vadd.f32 %v1752_v61, %v7168_v51  ;;  %2815 = vmatpush1.bf16.msra.mxu0 %v6073_v10  ;;  %3041 = vmatpush1.bf16.msra.mxu1 %v6076_v58  ;;  %v1824_v23 = vmax.f32 %v5503_v57, 0.0  ;;  %v1826_v7 = vmax.f32 %v5535_v44, 0.0  ;;  %v6085_v5 = vld [vmem:[#allocation5 + $0x240] ss:$16 sps:$4 sm:$0xff]   ;;  %v6088_v45 = vld [vmem:[#allocation5 + $0x248] ss:$16 sps:$4 sm:$0xff]  }
 0x262   :  { %v1827_v42 = vmax.f32 %v5504_v11, 0.0  ;;  %v1829_v43 = vmax.f32 %v5536_v41, 0.0  ;;  %2816 = vmatprep.subr.bf16.mxu0 %v6081_v3  ;;  %3042 = vmatprep.subr.bf16.mxu1 %v6084_v20  ;;  %v6093_v11 = vld [vmem:[#allocation5 + $0x264] ss:$16 sps:$4 sm:$0xff]  }
 0x263   :  { %v1828_v47 = vmax.f32 %v5505_v60, 0.0  ;;  %v1830_v24 = vmax.f32 %v5537_v17, 0.0 }
 0x264   :  { %v1883_v4 = vpack.c.bf16 %v1827_v42, %v1823_v14  ;;  %v7190_v62 = vpack.c.bf16 %v1829_v43, %v1825_v50  ;;  %v6096_v43 = vld [vmem:[#allocation5 + $0x26c] ss:$16 sps:$4 sm:$0xff]   ;;  %v6091_v50 = vld [vmem:[#allocation5 + $0x260] ss:$16 sps:$4 sm:$0xff]   ;;  %v6094_v42 = vld [vmem:[#allocation5 + $0x268] ss:$16 sps:$4 sm:$0xff]  }
 0x265   :  { %v1884_v61 = vpack.c.bf16 %v1828_v47, %v1824_v23  ;;  %v7192_v10 = vpack.c.bf16 %v1830_v24, %v1826_v7  ;;  %2817 = vmatpush1.bf16.msra.mxu0 %v6079_v63  ;;  %v1530_v58 = vpop.f32.mrb[40].mxu0  ;;  %v1756_v46 = vpop.f32.mrb[40].mxu1  ;;  %3043 = vmatpush1.bf16.msra.mxu1 %v6082_v53 }
 0x266   :  { %v5506_v3 = vadd.f32 %v1530_v58, %v7159_v21  ;;  %v5538_v20 = vadd.f32 %v1756_v46, %v7162_v54  ;;  %v1532_v57 = vpop.f32.mrb[41].mxu0  ;;  %v1758_v44 = vpop.f32.mrb[41].mxu1  ;;  %2818 = vmatprep.subr.bf16.mxu0 %v6087_v9  ;;  %3044 = vmatprep.subr.bf16.mxu1 %v6090_v39  ;;  %v6099_v39 = vld [vmem:[#allocation5 + $0x284] ss:$16 sps:$4 sm:$0xff]  }
 0x267   :  { %v5507_v47 = vadd.f32 %v1532_v57, %v7165_v48  ;;  %v5539_v7 = vadd.f32 %v1758_v44, %v7168_v51  ;;  %v1534_v41 = vpop.f32.mrb[42].mxu0  ;;  %v1760_v60 = vpop.f32.mrb[42].mxu1  ;;  %2743 = vmatprep.mubr.bf16.mxu0 %v1884_v61  ;;  %2969 = vmatprep.mubr.bf16.mxu1 %v1884_v61  ;;  %v6102_v57 = vld [vmem:[#allocation5 + $0x28c] ss:$16 sps:$4 sm:$0xff]  }
 0x268   :  { %v5508_v17 = vadd.f32 %v1534_v41, %v7159_v21  ;;  %v5540_v63 = vadd.f32 %v1760_v60, %v7162_v54  ;;  %v1536_v53 = vpop.f32.mrb[43].mxu0  ;;  %v1762_v46 = vpop.f32.mrb[43].mxu1  ;;  %2744 = vmatmul.mubr.bf16.gmra.mrb[68].mxu0 %v1883_v4  ;;  %2970 = vmatmul.mubr.bf16.gmra.mrb[68].mxu1 %v1883_v4  ;;  %v1831_v23 = vmax.f32 %v5506_v3, 0.0  ;;  %v1833_v24 = vmax.f32 %v5538_v20, 0.0  ;;  %v6097_v3 = vld [vmem:[#allocation5 + $0x280] ss:$16 sps:$4 sm:$0xff]  }
 0x269   :  { %v5509_v9 = vadd.f32 %v1536_v53, %v7165_v48  ;;  %v5541_v14 = vadd.f32 %v1762_v46, %v7168_v51  ;;  %2819 = vmatpush1.bf16.msra.mxu0 %v6085_v5  ;;  %3045 = vmatpush1.bf16.msra.mxu1 %v6088_v45  ;;  %v1832_v44 = vmax.f32 %v5507_v47, 0.0  ;;  %v1834_v41 = vmax.f32 %v5539_v7, 0.0  ;;  %v6100_v20 = vld [vmem:[#allocation5 + $0x288] ss:$16 sps:$4 sm:$0xff]  }
 0x26a   :  { %v1835_v61 = vmax.f32 %v5508_v17, 0.0  ;;  %v1837_v58 = vmax.f32 %v5540_v63, 0.0  ;;  %2820 = vmatprep.subr.bf16.mxu0 %v6093_v11  ;;  %3046 = vmatprep.subr.bf16.mxu1 %v6096_v43  ;;  %v6105_v17 = vld [vmem:[#allocation5 + $0x2a4] ss:$16 sps:$4 sm:$0xff]   ;;  %v6108_v63 = vld [vmem:[#allocation5 + $0x2ac] ss:$16 sps:$4 sm:$0xff]  }
 0x26b   :  { %v1836_v60 = vmax.f32 %v5509_v9, 0.0  ;;  %v1838_v4 = vmax.f32 %v5541_v14, 0.0 }
 0x26c   :  { %v1887_v40 = vpack.c.bf16 %v1835_v61, %v1831_v23  ;;  %v7202_v53 = vpack.c.bf16 %v1837_v58, %v1833_v24 }
 0x26d   :  { %v1888_v46 = vpack.c.bf16 %v1836_v60, %v1832_v44  ;;  %v7204_v5 = vpack.c.bf16 %v1838_v4, %v1834_v41  ;;  %2821 = vmatpush1.bf16.msra.mxu0 %v6091_v50  ;;  %v1540_v45 = vpop.f32.mrb[44].mxu0  ;;  %v1766_v13 = vpop.f32.mrb[44].mxu1  ;;  %3047 = vmatpush1.bf16.msra.mxu1 %v6094_v42  ;;  %v6106_v44 = vld [vmem:[#allocation5 + $0x2a8] ss:$16 sps:$4 sm:$0xff]   ;;  %v6111_v41 = vld [vmem:[#allocation5 + $0x2c4] ss:$16 sps:$4 sm:$0xff]  }
 0x26e   :  { %v5510_v11 = vadd.f32 %v1540_v45, %v7159_v21  ;;  %v5542_v43 = vadd.f32 %v1766_v13, %v7162_v54  ;;  %v1542_v47 = vpop.f32.mrb[45].mxu0  ;;  %v1768_v7 = vpop.f32.mrb[45].mxu1  ;;  %2822 = vmatprep.subr.bf16.mxu0 %v6099_v39  ;;  %3048 = vmatprep.subr.bf16.mxu1 %v6102_v57  ;;  %v6103_v57 = vld [vmem:[#allocation5 + $0x2a0] ss:$16 sps:$4 sm:$0xff]  }
 0x26f   :  { %v5511_v9 = vadd.f32 %v1542_v47, %v7165_v48  ;;  %v5543_v14 = vadd.f32 %v1768_v7, %v7168_v51  ;;  %v1544_v50 = vpop.f32.mrb[46].mxu0  ;;  %v1770_v23 = vpop.f32.mrb[46].mxu1  ;;  %2753 = vmatprep.mubr.bf16.mxu0 %v1888_v46  ;;  %2979 = vmatprep.mubr.bf16.mxu1 %v1888_v46  ;;  %v6114_v47 = vld [vmem:[#allocation5 + $0x2cc] ss:$16 sps:$4 sm:$0xff]  }
 0x270   :  { %v5512_v42 = vadd.f32 %v1544_v50, %v7159_v21  ;;  %v5544_v24 = vadd.f32 %v1770_v23, %v7162_v54  ;;  %v1546_v61 = vpop.f32.mrb[47].mxu0  ;;  %v1772_v13 = vpop.f32.mrb[47].mxu1  ;;  %2754 = vmatmul.mubr.bf16.gmra.mrb[72].mxu0 %v1887_v40  ;;  %2980 = vmatmul.mubr.bf16.gmra.mrb[72].mxu1 %v1887_v40  ;;  %v1839_v60 = vmax.f32 %v5510_v11, 0.0  ;;  %v1841_v4 = vmax.f32 %v5542_v43, 0.0  ;;  %v6109_v11 = vld [vmem:[#allocation5 + $0x2c0] ss:$16 sps:$4 sm:$0xff]  }
 0x271   :  { %v5513_v39 = vadd.f32 %v1546_v61, %v7165_v48  ;;  %v5545_v58 = vadd.f32 %v1772_v13, %v7168_v51  ;;  %2823 = vmatpush1.bf16.msra.mxu0 %v6097_v3  ;;  %3049 = vmatpush1.bf16.msra.mxu1 %v6100_v20  ;;  %v1840_v7 = vmax.f32 %v5511_v9, 0.0  ;;  %v1842_v50 = vmax.f32 %v5543_v14, 0.0  ;;  %v6112_v43 = vld [vmem:[#allocation5 + $0x2c8] ss:$16 sps:$4 sm:$0xff]  }
 0x272   :  { %v1843_v46 = vmax.f32 %v5512_v42, 0.0  ;;  %v1845_v45 = vmax.f32 %v5544_v24, 0.0  ;;  %2824 = vmatprep.subr.bf16.mxu0 %v6105_v17  ;;  %3050 = vmatprep.subr.bf16.mxu1 %v6108_v63  ;;  %v6117_v42 = vld [vmem:[#allocation5 + $0x2e4] ss:$16 sps:$4 sm:$0xff]   ;;  %v6120_v24 = vld [vmem:[#allocation5 + $0x2ec] ss:$16 sps:$4 sm:$0xff]  }
 0x273   :  { %v1844_v23 = vmax.f32 %v5513_v39, 0.0  ;;  %v1846_v40 = vmax.f32 %v5545_v58, 0.0 }
 0x274   :  { %v1891_v49 = vpack.c.bf16 %v1843_v46, %v1839_v60  ;;  %v7214_v61 = vpack.c.bf16 %v1845_v45, %v1841_v4 }
 0x275   :  { %v1892_v13 = vpack.c.bf16 %v1844_v23, %v1840_v7  ;;  %v7216_v3 = vpack.c.bf16 %v1846_v40, %v1842_v50  ;;  %2825 = vmatpush1.bf16.msra.mxu0 %v6103_v57  ;;  %v1550_v20 = vpop.f32.mrb[48].mxu0  ;;  %v1776_v22 = vpop.f32.mrb[48].mxu1  ;;  %3051 = vmatpush1.bf16.msra.mxu1 %v6106_v44  ;;  %v6118_v7 = vld [vmem:[#allocation5 + $0x2e8] ss:$16 sps:$4 sm:$0xff]   ;;  %v6123_v50 = vld [vmem:[#allocation5 + $0x304] ss:$16 sps:$4 sm:$0xff]  }
 0x276   :  { %v5514_v17 = vadd.f32 %v1550_v20, %v7159_v21  ;;  %v5546_v63 = vadd.f32 %v1776_v22, %v7162_v54  ;;  %v1552_v9 = vpop.f32.mrb[49].mxu0  ;;  %v1778_v14 = vpop.f32.mrb[49].mxu1  ;;  %2826 = vmatprep.subr.bf16.mxu0 %v6111_v41  ;;  %3052 = vmatprep.subr.bf16.mxu1 %v6114_v47  ;;  %v6115_v47 = vld [vmem:[#allocation5 + $0x2e0] ss:$16 sps:$4 sm:$0xff]  }
 0x277   :  { %v5515_v39 = vadd.f32 %v1552_v9, %v7165_v48  ;;  %v5547_v58 = vadd.f32 %v1778_v14, %v7168_v51  ;;  %v1554_v57 = vpop.f32.mrb[50].mxu0  ;;  %v1780_v60 = vpop.f32.mrb[50].mxu1  ;;  %2763 = vmatprep.mubr.bf16.mxu0 %v1892_v13  ;;  %2989 = vmatprep.mubr.bf16.mxu1 %v1892_v13  ;;  %v6126_v9 = vld [vmem:[#allocation5 + $0x30c] ss:$16 sps:$4 sm:$0xff]  }
 0x278   :  { %v5516_v44 = vadd.f32 %v1554_v57, %v7159_v21  ;;  %v5548_v4 = vadd.f32 %v1780_v60, %v7162_v54  ;;  %v1556_v46 = vpop.f32.mrb[51].mxu0  ;;  %v1782_v22 = vpop.f32.mrb[51].mxu1  ;;  %2764 = vmatmul.mubr.bf16.gmra.mrb[76].mxu0 %v1891_v49  ;;  %2990 = vmatmul.mubr.bf16.gmra.mrb[76].mxu1 %v1891_v49  ;;  %v1847_v23 = vmax.f32 %v5514_v17, 0.0  ;;  %v1849_v40 = vmax.f32 %v5546_v63, 0.0  ;;  %v6121_v17 = vld [vmem:[#allocation5 + $0x300] ss:$16 sps:$4 sm:$0xff]  }
 0x279   :  { %v5517_v41 = vadd.f32 %v1556_v46, %v7165_v48  ;;  %v5549_v45 = vadd.f32 %v1782_v22, %v7168_v51  ;;  %2827 = vmatpush1.bf16.msra.mxu0 %v6109_v11  ;;  %3053 = vmatpush1.bf16.msra.mxu1 %v6112_v43  ;;  %v1848_v14 = vmax.f32 %v5515_v39, 0.0  ;;  %v1850_v57 = vmax.f32 %v5547_v58, 0.0  ;;  %v6124_v63 = vld [vmem:[#allocation5 + $0x308] ss:$16 sps:$4 sm:$0xff]  }
 0x27a   :  { %v1851_v13 = vmax.f32 %v5516_v44, 0.0  ;;  %v1853_v20 = vmax.f32 %v5548_v4, 0.0  ;;  %2828 = vmatprep.subr.bf16.mxu0 %v6117_v42  ;;  %3054 = vmatprep.subr.bf16.mxu1 %v6120_v24  ;;  %v6129_v44 = vld [vmem:[#allocation5 + $0x324] ss:$16 sps:$4 sm:$0xff]   ;;  %v6132_v4 = vld [vmem:[#allocation5 + $0x32c] ss:$16 sps:$4 sm:$0xff]  }
 0x27b   :  { %v1852_v60 = vmax.f32 %v5517_v41, 0.0  ;;  %v1854_v49 = vmax.f32 %v5549_v45, 0.0 }
 0x27c   :  { %v1895_v16 = vpack.c.bf16 %v1851_v13, %v1847_v23  ;;  %v7226_v46 = vpack.c.bf16 %v1853_v20, %v1849_v40 }
 0x27d   :  { %v1896_v22 = vpack.c.bf16 %v1852_v60, %v1848_v14  ;;  %v7228_v11 = vpack.c.bf16 %v1854_v49, %v1850_v57  ;;  %2829 = vmatpush1.bf16.msra.mxu0 %v6115_v47  ;;  %v1560_v43 = vpop.f32.mrb[52].mxu0  ;;  %v1786_v19 = vpop.f32.mrb[52].mxu1  ;;  %3055 = vmatpush1.bf16.msra.mxu1 %v6118_v7  ;;  %v6130_v14 = vld [vmem:[#allocation5 + $0x328] ss:$16 sps:$4 sm:$0xff]   ;;  %v6135_v57 = vld [vmem:[#allocation5 + $0x344] ss:$16 sps:$4 sm:$0xff]  }
 0x27e   :  { %v5518_v42 = vadd.f32 %v1560_v43, %v7159_v21  ;;  %v5550_v24 = vadd.f32 %v1786_v19, %v7162_v54  ;;  %v1562_v39 = vpop.f32.mrb[53].mxu0  ;;  %v1788_v58 = vpop.f32.mrb[53].mxu1  ;;  %2830 = vmatprep.subr.bf16.mxu0 %v6123_v50  ;;  %3056 = vmatprep.subr.bf16.mxu1 %v6126_v9  ;;  %v6127_v9 = vld [vmem:[#allocation5 + $0x320] ss:$16 sps:$4 sm:$0xff]  }
 0x27f   :  { %v5519_v41 = vadd.f32 %v1562_v39, %v7165_v48  ;;  %v5551_v45 = vadd.f32 %v1788_v58, %v7168_v51  ;;  %v1564_v47 = vpop.f32.mrb[54].mxu0  ;;  %v1790_v23 = vpop.f32.mrb[54].mxu1  ;;  %2773 = vmatprep.mubr.bf16.mxu0 %v1896_v22  ;;  %2999 = vmatprep.mubr.bf16.mxu1 %v1896_v22  ;;  %v6138_v39 = vld [vmem:[#allocation5 + $0x34c] ss:$16 sps:$4 sm:$0xff]  }
 0x280   :  { %v5520_v7 = vadd.f32 %v1564_v47, %v7159_v21  ;;  %v5552_v40 = vadd.f32 %v1790_v23, %v7162_v54  ;;  %v1566_v13 = vpop.f32.mrb[55].mxu0  ;;  %v1792_v19 = vpop.f32.mrb[55].mxu1  ;;  %2774 = vmatmul.mubr.bf16.gmra.mrb[80].mxu0 %v1895_v16  ;;  %3000 = vmatmul.mubr.bf16.gmra.mrb[80].mxu1 %v1895_v16  ;;  %v1855_v60 = vmax.f32 %v5518_v42, 0.0  ;;  %v1857_v49 = vmax.f32 %v5550_v24, 0.0  ;;  %v6133_v42 = vld [vmem:[#allocation5 + $0x340] ss:$16 sps:$4 sm:$0xff]  }
 0x281   :  { %v5521_v50 = vadd.f32 %v1566_v13, %v7165_v48  ;;  %v5553_v20 = vadd.f32 %v1792_v19, %v7168_v51  ;;  %2831 = vmatpush1.bf16.msra.mxu0 %v6121_v17  ;;  %3057 = vmatpush1.bf16.msra.mxu1 %v6124_v63  ;;  %v1856_v58 = vmax.f32 %v5519_v41, 0.0  ;;  %v1858_v47 = vmax.f32 %v5551_v45, 0.0  ;;  %v6136_v24 = vld [vmem:[#allocation5 + $0x348] ss:$16 sps:$4 sm:$0xff]  }
 0x282   :  { %v1859_v22 = vmax.f32 %v5520_v7, 0.0  ;;  %v1861_v43 = vmax.f32 %v5552_v40, 0.0  ;;  %2832 = vmatprep.subr.bf16.mxu0 %v6129_v44  ;;  %3058 = vmatprep.subr.bf16.mxu1 %v6132_v4  ;;  %v6141_v7 = vld [vmem:[#allocation5 + $0x364] ss:$16 sps:$4 sm:$0xff]   ;;  %v6144_v40 = vld [vmem:[#allocation5 + $0x36c] ss:$16 sps:$4 sm:$0xff]  }
 0x283   :  { %v1860_v23 = vmax.f32 %v5521_v50, 0.0  ;;  %v1862_v16 = vmax.f32 %v5553_v20, 0.0 }
 0x284   :  { %v1899_v2 = vpack.c.bf16 %v1859_v22, %v1855_v60  ;;  %v7238_v13 = vpack.c.bf16 %v1861_v43, %v1857_v49 }
 0x285   :  { %v1900_v19 = vpack.c.bf16 %v1860_v23, %v1856_v58  ;;  %v7240_v17 = vpack.c.bf16 %v1862_v16, %v1858_v47  ;;  %2833 = vmatpush1.bf16.msra.mxu0 %v6127_v9  ;;  %v1570_v63 = vpop.f32.mrb[56].mxu0  ;;  %v1796_v15 = vpop.f32.mrb[56].mxu1  ;;  %3059 = vmatpush1.bf16.msra.mxu1 %v6130_v14  ;;  %v6142_v58 = vld [vmem:[#allocation5 + $0x368] ss:$16 sps:$4 sm:$0xff]   ;;  %v6147_v47 = vld [vmem:[#allocation5 + $0x384] ss:$16 sps:$4 sm:$0xff]  }
 0x286   :  { %v5522_v44 = vadd.f32 %v1570_v63, %v7159_v21  ;;  %v5554_v4 = vadd.f32 %v1796_v15, %v7162_v54  ;;  %v1572_v41 = vpop.f32.mrb[57].mxu0  ;;  %v1798_v45 = vpop.f32.mrb[57].mxu1  ;;  %2834 = vmatprep.subr.bf16.mxu0 %v6135_v57  ;;  %3060 = vmatprep.subr.bf16.mxu1 %v6138_v39  ;;  %v6139_v39 = vld [vmem:[#allocation5 + $0x360] ss:$16 sps:$4 sm:$0xff]  }
 0x287   :  { %v5523_v50 = vadd.f32 %v1572_v41, %v7165_v48  ;;  %v5555_v20 = vadd.f32 %v1798_v45, %v7168_v51  ;;  %v1574_v9 = vpop.f32.mrb[58].mxu0  ;;  %v1800_v60 = vpop.f32.mrb[58].mxu1  ;;  %2783 = vmatprep.mubr.bf16.mxu0 %v1900_v19  ;;  %3009 = vmatprep.mubr.bf16.mxu1 %v1900_v19  ;;  %v6150_v41 = vld [vmem:[#allocation5 + $0x38c] ss:$16 sps:$4 sm:$0xff]  }
 0x288   :  { %v5524_v14 = vadd.f32 %v1574_v9, %v7159_v21  ;;  %v5556_v49 = vadd.f32 %v1800_v60, %v7162_v54  ;;  %v1576_v22 = vpop.f32.mrb[59].mxu0  ;;  %v1802_v15 = vpop.f32.mrb[59].mxu1  ;;  %2784 = vmatmul.mubr.bf16.gmra.mrb[84].mxu0 %v1899_v2  ;;  %3010 = vmatmul.mubr.bf16.gmra.mrb[84].mxu1 %v1899_v2  ;;  %v1863_v23 = vmax.f32 %v5522_v44, 0.0  ;;  %v1865_v16 = vmax.f32 %v5554_v4, 0.0  ;;  %v6145_v44 = vld [vmem:[#allocation5 + $0x380] ss:$16 sps:$4 sm:$0xff]  }
 0x289   :  { %v5525_v57 = vadd.f32 %v1576_v22, %v7165_v48  ;;  %v5557_v43 = vadd.f32 %v1802_v15, %v7168_v51  ;;  %2835 = vmatpush1.bf16.msra.mxu0 %v6133_v42  ;;  %3061 = vmatpush1.bf16.msra.mxu1 %v6136_v24  ;;  %v1864_v45 = vmax.f32 %v5523_v50, 0.0  ;;  %v1866_v9 = vmax.f32 %v5555_v20, 0.0  ;;  %v6148_v4 = vld [vmem:[#allocation5 + $0x388] ss:$16 sps:$4 sm:$0xff]  }
 0x28a   :  { %v1867_v19 = vmax.f32 %v5524_v14, 0.0  ;;  %v1869_v63 = vmax.f32 %v5556_v49, 0.0  ;;  %2836 = vmatprep.subr.bf16.mxu0 %v6141_v7  ;;  %3062 = vmatprep.subr.bf16.mxu1 %v6144_v40  ;;  %v6153_v14 = vld [vmem:[#allocation5 + $0x3a4] ss:$16 sps:$4 sm:$0xff]   ;;  %v6156_v49 = vld [vmem:[#allocation5 + $0x3ac] ss:$16 sps:$4 sm:$0xff]  }
 0x28b   :  { %v1868_v60 = vmax.f32 %v5525_v57, 0.0  ;;  %v1870_v2 = vmax.f32 %v5557_v43, 0.0 }
 0x28c   :  { %v1903_v6 = vpack.c.bf16 %v1867_v19, %v1863_v23  ;;  %v7250_v22 = vpack.c.bf16 %v1869_v63, %v1865_v16 }
 0x28d   :  { %v1904_v15 = vpack.c.bf16 %v1868_v60, %v1864_v45  ;;  %v7252_v42 = vpack.c.bf16 %v1870_v2, %v1866_v9  ;;  %2837 = vmatpush1.bf16.msra.mxu0 %v6139_v39  ;;  %v1580_v24 = vpop.f32.mrb[60].mxu0  ;;  %v1806_v18 = vpop.f32.mrb[60].mxu1  ;;  %3063 = vmatpush1.bf16.msra.mxu1 %v6142_v58  ;;  %v6154_v45 = vld [vmem:[#allocation5 + $0x3a8] ss:$16 sps:$4 sm:$0xff]   ;;  %v6159_v9 = vld [vmem:[#allocation5 + $0x3c4] ss:$16 sps:$4 sm:$0xff]  }
 0x28e   :  { %v5526_v7 = vadd.f32 %v1580_v24, %v7159_v21  ;;  %v5558_v40 = vadd.f32 %v1806_v18, %v7162_v54  ;;  %v1582_v50 = vpop.f32.mrb[61].mxu0  ;;  %v1808_v20 = vpop.f32.mrb[61].mxu1  ;;  %2838 = vmatprep.subr.bf16.mxu0 %v6147_v47  ;;  %3064 = vmatprep.subr.bf16.mxu1 %v6150_v41  ;;  %v6151_v41 = vld [vmem:[#allocation5 + $0x3a0] ss:$16 sps:$4 sm:$0xff]  }
 0x28f   :  { %v5527_v57 = vadd.f32 %v1582_v50, %v7165_v48  ;;  %v5559_v43 = vadd.f32 %v1808_v20, %v7168_v51  ;;  %v1584_v39 = vpop.f32.mrb[62].mxu0  ;;  %v1810_v23 = vpop.f32.mrb[62].mxu1  ;;  %2793 = vmatprep.mubr.bf16.mxu0 %v1904_v15  ;;  %3019 = vmatprep.mubr.bf16.mxu1 %v1904_v15 }
 0x290   :  { %v5528_v58 = vadd.f32 %v1584_v39, %v7159_v21  ;;  %v5560_v16 = vadd.f32 %v1810_v23, %v7162_v54  ;;  %v1586_v19 = vpop.f32.mrb[63].mxu0  ;;  %v1812_v18 = vpop.f32.mrb[63].mxu1  ;;  %2794 = vmatmul.mubr.bf16.gmra.mrb[88].mxu0 %v1903_v6  ;;  %3020 = vmatmul.mubr.bf16.gmra.mrb[88].mxu1 %v1903_v6  ;;  %v1871_v60 = vmax.f32 %v5526_v7, 0.0  ;;  %v1873_v2 = vmax.f32 %v5558_v40, 0.0  ;;  %v6162_v21 = vld [vmem:[#allocation5 + $0x3cc] ss:$16 sps:$4 sm:$0xff]  }
 0x291   :  { %v5529_v47 = vadd.f32 %v1586_v19, %v7165_v48  ;;  %v5561_v63 = vadd.f32 %v1812_v18, %v7168_v51  ;;  %2839 = vmatpush1.bf16.msra.mxu0 %v6145_v44  ;;  %3065 = vmatpush1.bf16.msra.mxu1 %v6148_v4  ;;  %v1872_v54 = vmax.f32 %v5527_v57, 0.0  ;;  %v1874_v50 = vmax.f32 %v5559_v43, 0.0  ;;  %v6157_v4 = vld [vmem:[#allocation5 + $0x3c0] ss:$16 sps:$4 sm:$0xff]   ;;  %v6160_v7 = vld [vmem:[#allocation5 + $0x3c8] ss:$16 sps:$4 sm:$0xff]  }
 0x292   :  { %v1875_v15 = vmax.f32 %v5528_v58, 0.0  ;;  %v1877_v24 = vmax.f32 %v5560_v16, 0.0  ;;  %2840 = vmatprep.subr.bf16.mxu0 %v6153_v14  ;;  %3066 = vmatprep.subr.bf16.mxu1 %v6156_v49  ;;  %v6165_v40 = vld [vmem:[#allocation5 + $0x3e4] ss:$16 sps:$4 sm:$0xff]   ;;  %v6168_v14 = vld [vmem:[#allocation5 + $0x3ec] ss:$16 sps:$4 sm:$0xff]  }
 0x293   :  { %v1876_v20 = vmax.f32 %v5529_v47, 0.0  ;;  %v1878_v6 = vmax.f32 %v5561_v63, 0.0  ;;  %v6163_v49 = vld [vmem:[#allocation5 + $0x3e0] ss:$16 sps:$4 sm:$0xff]   ;;  %v6166_v57 = vld [vmem:[#allocation5 + $0x3e8] ss:$16 sps:$4 sm:$0xff]  }
 0x294   :  { %v1907_v39 = vpack.c.bf16 %v1875_v15, %v1871_v60  ;;  %v7262_v48 = vpack.c.bf16 %v1877_v24, %v1873_v2  ;;  %v6169_v43 = vld [vmem:[#allocation7 + $0x40] sm:$0xff]   ;;  %v6173_v19 = vld [vmem:[#allocation7 + $0x48] sm:$0xff]   ;;  %v6177_v63 = vld [vmem:[#allocation7 + $0x50] sm:$0xff]  }
 0x295   :  { %v1908_v51 = vpack.c.bf16 %v1876_v20, %v1872_v54  ;;  %v7264_v44 = vpack.c.bf16 %v1878_v6, %v1874_v50  ;;  %2841 = vmatpush1.bf16.msra.mxu0 %v6151_v41  ;;  %3067 = vmatpush1.bf16.msra.mxu1 %v6154_v45  ;;  %v6171_v23 = vld [vmem:[#allocation7 + $0xc0] sm:$0xff]   ;;  %v6175_v18 = vld [vmem:[#allocation7 + $0xc8] sm:$0xff]   ;;  %v6179_v41 = vld [vmem:[#allocation7 + $0xd0] sm:$0xff]  }
 0x296   :  { %2842 = vmatprep.subr.bf16.mxu0 %v6159_v9  ;;  %3068 = vmatprep.subr.bf16.mxu1 %v6162_v21  ;;  %v6170_v58 = vld [vmem:[#allocation7] sm:$0xff]   ;;  %v6176_v47 = vld [vmem:[#allocation7 + $0x88] sm:$0xff]   ;;  %v6178_v45 = vld [vmem:[#allocation7 + $0x10] sm:$0xff]  }
 0x297   :  { %2803 = vmatprep.mubr.bf16.mxu0 %v1908_v51  ;;  %3029 = vmatprep.mubr.bf16.mxu1 %v1908_v51  ;;  %v6172_v16 = vld [vmem:[#allocation7 + $0x80] sm:$0xff]   ;;  %v6180_v9 = vld [vmem:[#allocation7 + $0x90] sm:$0xff]   ;;  %v6181_v60 = vld [vmem:[#allocation7 + $0x58] sm:$0xff]  }
 0x298   :  { %2804 = vmatmul.mubr.bf16.gmra.mrb[92].mxu0 %v1907_v39  ;;  %3030 = vmatmul.mubr.bf16.gmra.mrb[92].mxu1 %v1907_v39  ;;  %v6184_v2 = vld [vmem:[#allocation7 + $0x98] sm:$0xff]   ;;  %v6185_v15 = vld [vmem:[#allocation7 + $0x60] sm:$0xff]   ;;  %v6189_v50 = vld [vmem:[#allocation7 + $0x68] sm:$0xff]  }
 0x299   :  { %2843 = vmatpush1.bf16.msra.mxu0 %v6157_v4  ;;  %2846 = vmatprep.mubr.bf16.mxu0 %v7180_v1  ;;  %v6187_v24 = vld [vmem:[#allocation7 + $0xe0] sm:$0xff]   ;;  %v6192_v20 = vld [vmem:[#allocation7 + $0xa8] sm:$0xff]   ;;  %v6193_v6 = vld [vmem:[#allocation7 + $0x70] sm:$0xff]  }
 0x29a   :  { %3069 = vmatpush1.bf16.msra.mxu1 %v6160_v7  ;;  %3072 = vmatprep.mubr.bf16.mxu1 %v7180_v1  ;;  %v6174_v1 = vld [vmem:[#allocation7 + $0x8] sm:$0xff]   ;;  %v6186_v21 = vld [vmem:[#allocation7 + $0x20] sm:$0xff]   ;;  %v6195_v39 = vld [vmem:[#allocation7 + $0xf0] sm:$0xff]  }
 0x29b   :  { %2844 = vmatprep.subr.bf16.mxu0 %v6165_v40  ;;  %3070 = vmatprep.subr.bf16.mxu1 %v6168_v14  ;;  %v6188_v54 = vld [vmem:[#allocation7 + $0xa0] sm:$0xff]   ;;  %v6194_v51 = vld [vmem:[#allocation7 + $0x30] sm:$0xff]  }
 0x29c   :  { %v6196_v4 = vld [vmem:[#allocation7 + $0xb0] sm:$0xff]  }
 0x29d   :  { %2845 = vmatpush1.bf16.msra.mxu0 %v6163_v49 }
 0x29e   :  { %3071 = vmatpush1.bf16.msra.mxu1 %v6166_v57  ;;  %5242 = vmatprep.subr.bf16.mxu0 %v6169_v43 }
 0x29f   :  { %5306 = vmatprep.subr.bf16.mxu1 %v6171_v23 }
 0x2a0   :  { %2847 = vmatmul.mubr.bf16.vlgmr.msra.gmra.mrb[64].mxu0 %v7178_v32 }
 0x2a1   :  { %3073 = vmatmul.mubr.bf16.vlgmr.msra.gmra.mrb[64].mxu1 %v7178_v32  ;;  %2856 = vmatprep.mubr.bf16.mxu0 %v7192_v10  ;;  %v6183_v32 = vld [vmem:[#allocation7 + $0xd8] sm:$0xff]  }
 0x2a2   :  { %3082 = vmatprep.mubr.bf16.mxu1 %v7192_v10  ;;  %5243 = vmatpush3.bf16.msra.mxu0 %v6170_v58  ;;  %v6182_v10 = vld [vmem:[#allocation7 + $0x18] sm:$0xff]  }
 0x2a3   :  { %5307 = vmatpush3.bf16.msra.mxu1 %v6172_v16  ;;  %5244 = vmatprep.subr.bf16.mxu0 %v6173_v19  ;;  %v7937_v16 = vmax.f32 %v6665_v35, 0.0  ;;  %v7940_v35 = vmax.f32 %v6889_v25, 0.0 }
 0x2a4   :  { %5308 = vmatprep.subr.bf16.mxu1 %v6175_v18 }
 0x2a6   :  { %5245 = vmatpush3.bf16.msra.mxu0 %v6174_v1 }
 0x2a7   :  { %5309 = vmatpush3.bf16.msra.mxu1 %v6176_v47  ;;  %5246 = vmatprep.subr.bf16.mxu0 %v6177_v63 }
 0x2a8   :  { %2857 = vmatmul.mubr.bf16.gmra.mrb[68].mxu0 %v7190_v62  ;;  %5310 = vmatprep.subr.bf16.mxu1 %v6179_v41  ;;  %v7938_v41 = vmax.f32 %v6927_v37, 0.0 }
 0x2a9   :  { %3083 = vmatmul.mubr.bf16.gmra.mrb[68].mxu1 %v7190_v62  ;;  %2866 = vmatprep.mubr.bf16.mxu0 %v7204_v5  ;;  %v6191_v62 = vld [vmem:[#allocation7 + $0xe8] sm:$0xff]  }
 0x2aa   :  { %3092 = vmatprep.mubr.bf16.mxu1 %v7204_v5  ;;  %5247 = vmatpush3.bf16.msra.mxu0 %v6178_v45  ;;  %v6190_v5 = vld [vmem:[#allocation7 + $0x28] sm:$0xff]  }
 0x2ab   :  { %5311 = vmatpush3.bf16.msra.mxu1 %v6180_v9  ;;  %5248 = vmatprep.subr.bf16.mxu0 %v6181_v60  ;;  %v7939_v9 = vmax.f32 %v6662_v33, 0.0 }
 0x2ac   :  { %5312 = vmatprep.subr.bf16.mxu1 %v6183_v32 }
 0x2ae   :  { %5249 = vmatpush3.bf16.msra.mxu0 %v6182_v10 }
 0x2af   :  { %5313 = vmatpush3.bf16.msra.mxu1 %v6184_v2  ;;  %5250 = vmatprep.subr.bf16.mxu0 %v6185_v15 }
 0x2b0   :  { %2867 = vmatmul.mubr.bf16.gmra.mrb[72].mxu0 %v7202_v53  ;;  %5314 = vmatprep.subr.bf16.mxu1 %v6187_v24  ;;  %v7941_v24 = vmax.f32 %v6668_v36, 0.0 }
 0x2b1   :  { %3093 = vmatmul.mubr.bf16.gmra.mrb[72].mxu1 %v7202_v53  ;;  %2876 = vmatprep.mubr.bf16.mxu0 %v7216_v3  ;;  %v6197_v53 = vld [vmem:[#allocation7 + $0x78] sm:$0xff]  }
 0x2b2   :  { %3102 = vmatprep.mubr.bf16.mxu1 %v7216_v3  ;;  %5251 = vmatpush3.bf16.msra.mxu0 %v6186_v21  ;;  %v6198_v3 = vld [vmem:[#allocation7 + $0x38] sm:$0xff]  }
 0x2b3   :  { %5315 = vmatpush3.bf16.msra.mxu1 %v6188_v54  ;;  %5252 = vmatprep.subr.bf16.mxu0 %v6189_v50  ;;  %v7942_v50 = vmax.f32 %v6947_v29, 0.0 }
 0x2b4   :  { %5316 = vmatprep.subr.bf16.mxu1 %v6191_v62  ;;  %v7943_v62 = vmax.f32 %v6671_v38, 0.0 }
 0x2b6   :  { %5253 = vmatpush3.bf16.msra.mxu0 %v6190_v5 }
 0x2b7   :  { %5317 = vmatpush3.bf16.msra.mxu1 %v6192_v20  ;;  %5254 = vmatprep.subr.bf16.mxu0 %v6193_v6  ;;  %v7944_v6 = vmax.f32 %v6893_v34, 0.0 }
 0x2b8   :  { %2877 = vmatmul.mubr.bf16.gmra.mrb[76].mxu0 %v7214_v61  ;;  %5318 = vmatprep.subr.bf16.mxu1 %v6195_v39 }
 0x2b9   :  { %3103 = vmatmul.mubr.bf16.gmra.mrb[76].mxu1 %v7214_v61  ;;  %2886 = vmatprep.mubr.bf16.mxu0 %v7228_v11  ;;  %v6199_v61 = vld [vmem:[#allocation7 + $0xf8] sm:$0xff]  }
 0x2ba   :  { %3112 = vmatprep.mubr.bf16.mxu1 %v7228_v11  ;;  %5255 = vmatpush3.bf16.msra.mxu0 %v6194_v51  ;;  %v6203_v11 = vld [vmem:[#allocation8 + $0x4] ss:$16 sps:$4 sm:$0xff]  }
 0x2bb   :  { %5319 = vmatpush3.bf16.msra.mxu1 %v6196_v4  ;;  %5256 = vmatprep.subr.bf16.mxu0 %v6197_v53 }
 0x2bc   :  { %5320 = vmatprep.subr.bf16.mxu1 %v6199_v61 }
 0x2be   :  { %5257 = vmatpush3.bf16.msra.mxu0 %v6198_v3 }
 0x2bf   :  { %4008 = vmatprep.subr.bf16.mxu0 %v6203_v11 }
 0x2c0   :  { %2887 = vmatmul.mubr.bf16.gmra.mrb[80].mxu0 %v7226_v46 }
 0x2c1   :  { %3113 = vmatmul.mubr.bf16.gmra.mrb[80].mxu1 %v7226_v46  ;;  %2896 = vmatprep.mubr.bf16.mxu0 %v7240_v17  ;;  %v6200_v46 = vld [vmem:[#allocation7 + $0xb8] sm:$0xff]  }
 0x2c2   :  { %3122 = vmatprep.mubr.bf16.mxu1 %v7240_v17  ;;  %5321 = vmatpush3.bf16.msra.mxu1 %v6200_v46  ;;  %v2039_v17 = vld [vmem:[%s7773_s7 + $0x8] sm:$0xf] }
 0x2c8   :  { %2897 = vmatmul.mubr.bf16.gmra.mrb[84].mxu0 %v7238_v13 }
 0x2c9   :  { %3123 = vmatmul.mubr.bf16.gmra.mrb[84].mxu1 %v7238_v13  ;;  %2906 = vmatprep.mubr.bf16.mxu0 %v7252_v42  ;;  %v6206_v13 = vld [vmem:[#allocation8 + $0xc] ss:$16 sps:$4 sm:$0xff]  }
 0x2ca   :  { %3132 = vmatprep.mubr.bf16.mxu1 %v7252_v42  ;;  %4121 = vmatprep.subr.bf16.mxu1 %v6206_v13  ;;  %v7305_v42 = vrot.slane %v2039_v17, %v6877_v12 }
 0x2d0   :  { %2907 = vmatmul.mubr.bf16.gmra.mrb[88].mxu0 %v7250_v22 }
 0x2d1   :  { %3133 = vmatmul.mubr.bf16.gmra.mrb[88].mxu1 %v7250_v22  ;;  %2916 = vmatprep.mubr.bf16.mxu0 %v7264_v44  ;;  %v7302_v22 = vrot.slane %v2039_v17, %v6651_v28 }
 0x2d2   :  { %3142 = vmatprep.mubr.bf16.mxu1 %v7264_v44  ;;  %v7311_v44 = vrot.slane %v2039_v17, %v6846_v0 }
 0x2d8   :  { %2917 = vmatmul.mubr.bf16.gmra.mrb[92].mxu0 %v7262_v48 }
 0x2d9   :  { %3143 = vmatmul.mubr.bf16.gmra.mrb[92].mxu1 %v7262_v48  ;;  %v7308_v48 = vrot.slane %v2039_v17, %v6643_v26 }
 0x373   :  { %v2848_v7 = vpop.f32.mrb[64].mxu0 }
 0x374   :  { %v5562_v40 = vadd.f32 %v2848_v7, %v7302_v22  ;;  %v3074_v14 = vpop.f32.mrb[64].mxu1  ;;  %v2850_v49 = vpop.f32.mrb[65].mxu0 }
 0x375   :  { %v5594_v57 = vadd.f32 %v3074_v14, %v7305_v42  ;;  %v5563_v43 = vadd.f32 %v2850_v49, %v7308_v48  ;;  %v3076_v23 = vpop.f32.mrb[65].mxu1  ;;  %v2852_v58 = vpop.f32.mrb[66].mxu0  ;;  %v6201_v49 = vld [vmem:[#allocation8] ss:$16 sps:$4 sm:$0xff]  }
 0x376   :  { %v3153_v19 = vadd.f32 %v5562_v40, %v7937_v16  ;;  %v5595_v18 = vadd.f32 %v3076_v23, %v7311_v44  ;;  %v5564_v1 = vadd.f32 %v2852_v58, %v7302_v22  ;;  %v3078_v47 = vpop.f32.mrb[66].mxu1  ;;  %v2854_v63 = vpop.f32.mrb[67].mxu0 }
 0x377   :  { %v3155_v45 = vadd.f32 %v5594_v57, %v7938_v41  ;;  %v3154_v60 = vadd.f32 %v5563_v43, %v7939_v9  ;;  %v5596_v32 = vadd.f32 %v3078_v47, %v7305_v42  ;;  %v5565_v10 = vadd.f32 %v2854_v63, %v7308_v48  ;;  %v3080_v2 = vpop.f32.mrb[67].mxu1  ;;  %v6209_v47 = vld [vmem:[#allocation8 + $0x24] ss:$16 sps:$4 sm:$0xff]  }
 0x378   :  { %v3156_v15 = vadd.f32 %v5595_v18, %v7940_v35  ;;  %v3157_v21 = vadd.f32 %v5564_v1, %v7941_v24  ;;  %v5597_v54 = vadd.f32 %v3080_v2, %v7311_v44  ;;  %v3217_v5 = vmax.f32 %v3153_v19, 0.0  ;;  %v6204_v1 = vld [vmem:[#allocation8 + $0x8] ss:$16 sps:$4 sm:$0xff]  }
 0x379   :  { %v3159_v37 = vadd.f32 %v5596_v32, %v7942_v50  ;;  %v3158_v33 = vadd.f32 %v5565_v10, %v7943_v62  ;;  %v3219_v51 = vmax.f32 %v3155_v45, 0.0  ;;  %v3218_v4 = vmax.f32 %v3154_v60, 0.0  ;;  %v6212_v10 = vld [vmem:[#allocation8 + $0x2c] ss:$16 sps:$4 sm:$0xff]  }
 0x37a   :  { %v3221_v20 = vmax.f32 %v3157_v21, 0.0  ;;  %v3160_v39 = vadd.f32 %v5597_v54, %v7944_v6  ;;  %v3220_v36 = vmax.f32 %v3156_v15, 0.0  ;;  %v7945_v57 = vmax.f32 %v6693_v55, 0.0 }
 0x37b   :  { %v3223_v25 = vmax.f32 %v3159_v37, 0.0  ;;  %v3222_v53 = vmax.f32 %v3158_v33, 0.0  ;;  %v2858_v61 = vpop.f32.mrb[68].mxu0  ;;  %v7946_v63 = vmax.f32 %v6983_v30, 0.0  ;;  %v7947_v45 = vmax.f32 %v6688_v52, 0.0 }
 0x37c   :  { %v3281_v3 = vpack.c.bf16 %v3221_v20, %v3217_v5  ;;  %v3224_v46 = vmax.f32 %v3160_v39, 0.0  ;;  %v5566_v11 = vadd.f32 %v2858_v61, %v7302_v22  ;;  %v3084_v29 = vpop.f32.mrb[68].mxu1  ;;  %v2860_v13 = vpop.f32.mrb[69].mxu0  ;;  %v7948_v2 = vmax.f32 %v6935_v27, 0.0  ;;  %v6207_v37 = vld [vmem:[#allocation8 + $0x20] ss:$16 sps:$4 sm:$0xff]  }
 0x37d   :  { %v3283_v17 = vpack.c.bf16 %v3223_v25, %v3219_v51  ;;  %v5598_v38 = vadd.f32 %v3084_v29, %v7305_v42  ;;  %v5567_v7 = vadd.f32 %v2860_v13, %v7308_v48  ;;  %v3086_v40 = vpop.f32.mrb[69].mxu1  ;;  %v2862_v34 = vpop.f32.mrb[70].mxu0  ;;  %v3282_v14 = vpack.c.bf16 %v3222_v53, %v3218_v4 }
 0x37e   :  { %v3161_v43 = vadd.f32 %v5566_v11, %v7945_v57  ;;  %v5599_v23 = vadd.f32 %v3086_v40, %v7311_v44  ;;  %v5568_v58 = vadd.f32 %v2862_v34, %v7302_v22  ;;  %v3088_v16 = vpop.f32.mrb[70].mxu1  ;;  %v2864_v19 = vpop.f32.mrb[71].mxu0  ;;  %v3284_v18 = vpack.c.bf16 %v3224_v46, %v3220_v36 }
 0x37f   :  { %v3163_v41 = vadd.f32 %v5598_v38, %v7946_v63  ;;  %v3162_v9 = vadd.f32 %v5567_v7, %v7947_v45  ;;  %v5600_v60 = vadd.f32 %v3088_v16, %v7305_v42  ;;  %v5569_v55 = vadd.f32 %v2864_v19, %v7308_v48  ;;  %v3090_v32 = vpop.f32.mrb[71].mxu1  ;;  %3608 = vmatprep.mubr.bf16.mxu0 %v3282_v14  ;;  %v7953_v38 = vld [vmem:[#allocation17_spill] sm:$0xff]  ;;  %v7955_v16 = vld [vmem:[#allocation44_spill] sm:$0xff] }
 0x380   :  { %v3164_v35 = vadd.f32 %v5599_v23, %v7948_v2  ;;  %v7949_v15 = vmax.f32 %v6696_v56, 0.0  ;;  %v5601_v21 = vadd.f32 %v3090_v32, %v7311_v44  ;;  %3705 = vmatprep.mubr.bf16.mxu1 %v3284_v18  ;;  %3609 = vmatmul.mubr.bf16.vlgmr.msra.gmra.mrb[96].mxu0 %v3281_v3  ;;  %v7950_v52 = vmax.f32 %v6987_v31, 0.0  ;;  %v6210_v56 = vld [vmem:[#allocation8 + $0x28] ss:$16 sps:$4 sm:$0xff]   ;;  %v6213_v23 = vld [vmem:[#allocation8 + $0x40] ss:$16 sps:$4 sm:$0xff]  }
 0x381   :  { %v7951_v54 = vmax.f32 %v6701_v59, 0.0  ;;  %3706 = vmatmul.mubr.bf16.vlgmr.msra.gmra.mrb[96].mxu1 %v3283_v17  ;;  %4009 = vmatpush1.bf16.msra.mxu0 %v6201_v49  ;;  %v3225_v62 = vmax.f32 %v3161_v43, 0.0  ;;  %v7952_v27 = vmax.f32 %v6939_v8, 0.0  ;;  %v3227_v20 = vmax.f32 %v3163_v41, 0.0  ;;  %v6215_v17 = vld [vmem:[#allocation8 + $0x44] ss:$16 sps:$4 sm:$0xff]  }
 0x382   :  { %v3165_v24 = vadd.f32 %v5568_v58, %v7949_v15  ;;  %v3167_v30 = vadd.f32 %v5600_v60, %v7950_v52  ;;  %4122 = vmatpush1.bf16.msra.mxu1 %v6204_v1  ;;  %4010 = vmatprep.subr.bf16.mxu0 %v6209_v47  ;;  %v3226_v6 = vmax.f32 %v3162_v9, 0.0  ;;  %v3228_v4 = vmax.f32 %v3164_v35, 0.0  ;;  %v6218_v58 = vld [vmem:[#allocation8 + $0x4c] ss:$16 sps:$4 sm:$0xff]   ;;  %v7957_v1 = vld [vmem:[#allocation16_spill] sm:$0xff]  ;;  %v7961_v35 = vld [vmem:[#allocation18_spill] sm:$0xff] }
 0x383   :  { %v3166_v50 = vadd.f32 %v5569_v55, %v7951_v54  ;;  %v3168_v5 = vadd.f32 %v5601_v21, %v7952_v27  ;;  %v2868_v31 = vpop.f32.mrb[72].mxu0  ;;  %4123 = vmatprep.subr.bf16.mxu1 %v6212_v10  ;;  %v7954_v7 = vmax.f32 %v7953_v38, 0.0  ;;  %v7956_v19 = vmax.f32 %v7955_v16, 0.0  ;;  %v6216_v60 = vld [vmem:[#allocation8 + $0x48] ss:$16 sps:$4 sm:$0xff]   ;;  %v7959_v32 = vld [vmem:[#allocation40_spill] sm:$0xff] }
 0x384   :  { %v3229_v33 = vmax.f32 %v3165_v24, 0.0  ;;  %v3231_v39 = vmax.f32 %v3167_v30, 0.0  ;;  %v5570_v25 = vadd.f32 %v2868_v31, %v7302_v22  ;;  %v3094_v53 = vpop.f32.mrb[72].mxu1  ;;  %v2870_v61 = vpop.f32.mrb[73].mxu0  ;;  %v7958_v47 = vmax.f32 %v7957_v1, 0.0  ;;  %v7963_v30 = vld [vmem:[#allocation45_spill] sm:$0xff] }
 0x385   :  { %v3230_v51 = vmax.f32 %v3166_v50, 0.0  ;;  %v3232_v59 = vmax.f32 %v3168_v5, 0.0  ;;  %v5602_v3 = vadd.f32 %v3094_v53, %v7305_v42  ;;  %v5571_v8 = vadd.f32 %v2870_v61, %v7308_v48  ;;  %v3096_v46 = vpop.f32.mrb[73].mxu1  ;;  %v2872_v11 = vpop.f32.mrb[74].mxu0  ;;  %4011 = vmatpush1.bf16.msra.mxu0 %v6207_v37  ;;  %v6221_v55 = vld [vmem:[#allocation8 + $0x64] ss:$16 sps:$4 sm:$0xff]  }
 0x386   :  { %v3285_v36 = vpack.c.bf16 %v3229_v33, %v3225_v62  ;;  %v3287_v13 = vpack.c.bf16 %v3231_v39, %v3227_v20  ;;  %v3169_v40 = vadd.f32 %v5570_v25, %v7954_v7  ;;  %v5603_v34 = vadd.f32 %v3096_v46, %v7311_v44  ;;  %v3098_v49 = vpop.f32.mrb[74].mxu1  ;;  %v2874_v57 = vpop.f32.mrb[75].mxu0  ;;  %4124 = vmatpush1.bf16.msra.mxu1 %v6210_v56  ;;  %v6224_v52 = vld [vmem:[#allocation8 + $0x6c] ss:$16 sps:$4 sm:$0xff]   ;;  %v6219_v39 = vld [vmem:[#allocation8 + $0x60] ss:$16 sps:$4 sm:$0xff]  }
 0x387   :  { %v3286_v29 = vpack.c.bf16 %v3230_v51, %v3226_v6  ;;  %v5572_v14 = vadd.f32 %v2872_v11, %v7302_v22  ;;  %v3288_v43 = vpack.c.bf16 %v3232_v59, %v3228_v4  ;;  %v3171_v18 = vadd.f32 %v5602_v3, %v7956_v19  ;;  %v3100_v9 = vpop.f32.mrb[75].mxu1  ;;  %v7965_v37 = vld [vmem:[#allocation19_spill] sm:$0xff]  ;;  %4012 = vmatprep.subr.bf16.mxu0 %v6215_v17  ;;  %v7967_v56 = vld [vmem:[#allocation41_spill] sm:$0xff]  ;;  %v7971_v1 = vld [vmem:[#allocation48_spill] sm:$0xff] }
 0x388   :  { %v3170_v63 = vadd.f32 %v5571_v8, %v7958_v47  ;;  %v5604_v41 = vadd.f32 %v3098_v49, %v7305_v42  ;;  %v5573_v45 = vadd.f32 %v2874_v57, %v7308_v48  ;;  %v7960_v10 = vmax.f32 %v7959_v32, 0.0  ;;  %4125 = vmatprep.subr.bf16.mxu1 %v6218_v58  ;;  %v6222_v19 = vld [vmem:[#allocation8 + $0x68] ss:$16 sps:$4 sm:$0xff]  }
 0x389   :  { %3616 = vmatprep.mubr.bf16.mxu0 %v3286_v29  ;;  %v7962_v15 = vmax.f32 %v7961_v35, 0.0  ;;  %v5605_v21 = vadd.f32 %v3100_v9, %v7311_v44  ;;  %3713 = vmatprep.mubr.bf16.mxu1 %v3288_v43  ;;  %v7964_v54 = vmax.f32 %v7963_v30, 0.0  ;;  %v7966_v62 = vmax.f32 %v7965_v37, 0.0  ;;  %v7975_v35 = vld [vmem:[#allocation42_spill] sm:$0xff] }
 0x38a   :  { %v3172_v2 = vadd.f32 %v5603_v34, %v7960_v10  ;;  %3617 = vmatmul.mubr.bf16.gmra.mrb[100].mxu0 %v3285_v36  ;;  %3714 = vmatmul.mubr.bf16.gmra.mrb[100].mxu1 %v3287_v13  ;;  %v3233_v27 = vmax.f32 %v3169_v40, 0.0  ;;  %v7968_v20 = vmax.f32 %v7967_v56, 0.0  ;;  %v3235_v51 = vmax.f32 %v3171_v18, 0.0  ;;  %v6227_v40 = vld [vmem:[#allocation8 + $0x84] ss:$16 sps:$4 sm:$0xff]   ;;  %v7969_v34 = vld [vmem:[#allocation21_spill] sm:$0xff] }
 0x38b   :  { %v3173_v24 = vadd.f32 %v5572_v14, %v7962_v15  ;;  %v3175_v50 = vadd.f32 %v5604_v41, %v7964_v54  ;;  %v3174_v33 = vadd.f32 %v5573_v45, %v7966_v62  ;;  %4013 = vmatpush1.bf16.msra.mxu0 %v6213_v23  ;;  %v3234_v31 = vmax.f32 %v3170_v63, 0.0  ;;  %v2878_v25 = vpop.f32.mrb[76].mxu0  ;;  %4126 = vmatpush1.bf16.msra.mxu1 %v6216_v60  ;;  %v6225_v18 = vld [vmem:[#allocation8 + $0x80] ss:$16 sps:$4 sm:$0xff]   ;;  %v6230_v10 = vld [vmem:[#allocation8 + $0x8c] ss:$16 sps:$4 sm:$0xff]  }
 0x38c   :  { %v3176_v6 = vadd.f32 %v5605_v21, %v7968_v20  ;;  %4014 = vmatprep.subr.bf16.mxu0 %v6221_v55  ;;  %v3236_v53 = vmax.f32 %v3172_v2, 0.0  ;;  %v5574_v36 = vadd.f32 %v2878_v25, %v7302_v22  ;;  %v3104_v3 = vpop.f32.mrb[76].mxu1  ;;  %v2880_v8 = vpop.f32.mrb[77].mxu0  ;;  %4127 = vmatprep.subr.bf16.mxu1 %v6224_v52  ;;  %v7970_v14 = vmax.f32 %v7969_v34, 0.0  ;;  %v7973_v41 = vld [vmem:[#allocation20_spill] sm:$0xff]  ;;  %v7977_v21 = vld [vmem:[#allocation22_spill] sm:$0xff] }
 0x38d   :  { %v3237_v5 = vmax.f32 %v3173_v24, 0.0  ;;  %v3239_v4 = vmax.f32 %v3175_v50, 0.0  ;;  %v3238_v59 = vmax.f32 %v3174_v33, 0.0  ;;  %v5606_v11 = vadd.f32 %v3104_v3, %v7305_v42  ;;  %v3106_v13 = vpop.f32.mrb[77].mxu1  ;;  %v2882_v17 = vpop.f32.mrb[78].mxu0  ;;  %v7979_v50 = vld [vmem:[#allocation49_spill] sm:$0xff] }
 0x38e   :  { %v3240_v61 = vmax.f32 %v3176_v6, 0.0  ;;  %v5575_v29 = vadd.f32 %v2880_v8, %v7308_v48  ;;  %v3177_v49 = vadd.f32 %v5574_v36, %v7970_v14  ;;  %v5607_v57 = vadd.f32 %v3106_v13, %v7311_v44  ;;  %v3108_v23 = vpop.f32.mrb[78].mxu1  ;;  %v2884_v58 = vpop.f32.mrb[79].mxu0  ;;  %v6233_v2 = vld [vmem:[#allocation8 + $0xa4] ss:$16 sps:$4 sm:$0xff]   ;;  %v7981_v33 = vld [vmem:[#allocation23_spill] sm:$0xff] }
 0x38f   :  { %v3289_v46 = vpack.c.bf16 %v3237_v5, %v3233_v27  ;;  %v3290_v38 = vpack.c.bf16 %v3238_v59, %v3234_v31  ;;  %v3291_v7 = vpack.c.bf16 %v3239_v4, %v3235_v51  ;;  %v5576_v43 = vadd.f32 %v2882_v17, %v7302_v22  ;;  %4015 = vmatpush1.bf16.msra.mxu0 %v6219_v39  ;;  %v3110_v32 = vpop.f32.mrb[79].mxu1  ;;  %v7983_v6 = vld [vmem:[#allocation43_spill] sm:$0xff]  ;;  %v6231_v14 = vld [vmem:[#allocation8 + $0xa0] ss:$16 sps:$4 sm:$0xff]  }
 0x390   :  { %v3292_v16 = vpack.c.bf16 %v3240_v61, %v3236_v53  ;;  %v7972_v47 = vmax.f32 %v7971_v1, 0.0  ;;  %v7974_v45 = vmax.f32 %v7973_v41, 0.0  ;;  %v5608_v60 = vadd.f32 %v3108_v23, %v7305_v42  ;;  %4016 = vmatprep.subr.bf16.mxu0 %v6227_v40  ;;  %4128 = vmatpush1.bf16.msra.mxu1 %v6222_v19  ;;  %v6228_v31 = vld [vmem:[#allocation8 + $0x88] ss:$16 sps:$4 sm:$0xff]   ;;  %v6236_v1 = vld [vmem:[#allocation8 + $0xac] ss:$16 sps:$4 sm:$0xff]  }
 0x391   :  { %v5577_v55 = vadd.f32 %v2884_v58, %v7308_v48  ;;  %3624 = vmatprep.mubr.bf16.mxu0 %v3290_v38  ;;  %v7976_v15 = vmax.f32 %v7975_v35, 0.0  ;;  %v7978_v52 = vmax.f32 %v7977_v21, 0.0  ;;  %v5609_v54 = vadd.f32 %v3110_v32, %v7311_v44  ;;  %4129 = vmatprep.subr.bf16.mxu1 %v6230_v10  ;;  %v6234_v35 = vld [vmem:[#allocation8 + $0xa8] ss:$16 sps:$4 sm:$0xff]  }
 0x392   :  { %v3179_v63 = vadd.f32 %v5606_v11, %v7972_v47  ;;  %v3178_v9 = vadd.f32 %v5575_v29, %v7974_v45  ;;  %3721 = vmatprep.mubr.bf16.mxu1 %v3292_v16  ;;  %3625 = vmatmul.mubr.bf16.gmra.mrb[104].mxu0 %v3289_v46  ;;  %v7980_v37 = vmax.f32 %v7979_v50, 0.0  ;;  %v7982_v27 = vmax.f32 %v7981_v33, 0.0  ;;  %v6239_v47 = vld [vmem:[#allocation8 + $0xc4] ss:$16 sps:$4 sm:$0xff]  }
 0x393   :  { %v3180_v24 = vadd.f32 %v5607_v57, %v7976_v15  ;;  %v3181_v30 = vadd.f32 %v5576_v43, %v7978_v52  ;;  %3722 = vmatmul.mubr.bf16.gmra.mrb[104].mxu1 %v3291_v7  ;;  %v3241_v56 = vmax.f32 %v3177_v49, 0.0  ;;  %v7984_v39 = vmax.f32 %v7983_v6, 0.0  ;;  %4017 = vmatpush1.bf16.msra.mxu0 %v6225_v18  ;;  %v2888_v61 = vpop.f32.mrb[80].mxu0  ;;  %v7985_v49 = vld [vmem:[#allocation25_spill] sm:$0xff]  ;;  %v7991_v15 = vld [vmem:[#allocation46_spill] sm:$0xff] }
 0x394   :  { %v3183_v62 = vadd.f32 %v5608_v60, %v7980_v37  ;;  %v3182_v5 = vadd.f32 %v5577_v55, %v7982_v27  ;;  %v3243_v4 = vmax.f32 %v3179_v63, 0.0  ;;  %v3242_v59 = vmax.f32 %v3178_v9, 0.0  ;;  %4018 = vmatprep.subr.bf16.mxu0 %v6233_v2  ;;  %v3114_v46 = vpop.f32.mrb[80].mxu1  ;;  %v2890_v11 = vpop.f32.mrb[81].mxu0  ;;  %4130 = vmatpush1.bf16.msra.mxu1 %v6228_v31  ;;  %v7987_v63 = vld [vmem:[#allocation52_spill] sm:$0xff]  ;;  %v7993_v52 = vld [vmem:[#allocation26_spill] sm:$0xff] }
 0x395   :  { %v3245_v20 = vmax.f32 %v3181_v30, 0.0  ;;  %v3184_v51 = vadd.f32 %v5609_v54, %v7984_v39  ;;  %v3244_v36 = vmax.f32 %v3180_v24, 0.0  ;;  %v5578_v8 = vadd.f32 %v2888_v61, %v7302_v22  ;;  %v3116_v38 = vpop.f32.mrb[81].mxu1  ;;  %v2892_v7 = vpop.f32.mrb[82].mxu0  ;;  %v7989_v9 = vld [vmem:[#allocation24_spill] sm:$0xff]  ;;  %v7999_v31 = vld [vmem:[#allocation47_spill] sm:$0xff]  ;;  %4131 = vmatprep.subr.bf16.mxu1 %v6236_v1 }
 0x396   :  { %v3247_v25 = vmax.f32 %v3183_v62, 0.0  ;;  %v3246_v53 = vmax.f32 %v3182_v5, 0.0  ;;  %v5610_v13 = vadd.f32 %v3114_v46, %v7305_v42  ;;  %v5579_v17 = vadd.f32 %v2890_v11, %v7308_v48  ;;  %v3118_v16 = vpop.f32.mrb[82].mxu1  ;;  %v2894_v19 = vpop.f32.mrb[83].mxu0  ;;  %v6242_v37 = vld [vmem:[#allocation8 + $0xcc] ss:$16 sps:$4 sm:$0xff]  }
 0x397   :  { %v3248_v3 = vmax.f32 %v3184_v51, 0.0  ;;  %v3293_v29 = vpack.c.bf16 %v3245_v20, %v3241_v56  ;;  %v7986_v57 = vmax.f32 %v7985_v49, 0.0  ;;  %v5611_v23 = vadd.f32 %v3116_v38, %v7311_v44  ;;  %v3120_v2 = vpop.f32.mrb[83].mxu1  ;;  %v7995_v62 = vld [vmem:[#allocation53_spill] sm:$0xff]  ;;  %v7997_v5 = vld [vmem:[#allocation27_spill] sm:$0xff]  ;;  %4019 = vmatpush1.bf16.msra.mxu0 %v6231_v14 }
 0x398   :  { %v3294_v40 = vpack.c.bf16 %v3246_v53, %v3242_v59  ;;  %v3295_v34 = vpack.c.bf16 %v3247_v25, %v3243_v4  ;;  %v5580_v58 = vadd.f32 %v2892_v7, %v7302_v22  ;;  %v7988_v41 = vmax.f32 %v7987_v63, 0.0  ;;  %v6237_v6 = vld [vmem:[#allocation8 + $0xc0] ss:$16 sps:$4 sm:$0xff]   ;;  %4020 = vmatprep.subr.bf16.mxu0 %v6239_v47  ;;  %4132 = vmatpush1.bf16.msra.mxu1 %v6234_v35  ;;  %v6240_v47 = vld [vmem:[#allocation8 + $0xc8] ss:$16 sps:$4 sm:$0xff]  }
 0x399   :  { %v3185_v43 = vadd.f32 %v5578_v8, %v7986_v57  ;;  %v3296_v18 = vpack.c.bf16 %v3248_v3, %v3244_v36  ;;  %v7990_v60 = vmax.f32 %v7989_v9, 0.0  ;;  %v5612_v32 = vadd.f32 %v3118_v16, %v7305_v42  ;;  %4133 = vmatprep.subr.bf16.mxu1 %v6242_v37  ;;  %v8001_v57 = vld [vmem:[#allocation29_spill] sm:$0xff]  ;;  %v8003_v63 = vld [vmem:[#allocation56_spill] sm:$0xff]  ;;  %v8007_v35 = vld [vmem:[#allocation50_spill] sm:$0xff] }
 0x39a   :  { %v3187_v45 = vadd.f32 %v5610_v13, %v7988_v41  ;;  %v5581_v10 = vadd.f32 %v2894_v19, %v7308_v48  ;;  %3632 = vmatprep.mubr.bf16.mxu0 %v3294_v40  ;;  %v7992_v24 = vmax.f32 %v7991_v15, 0.0  ;;  %v7994_v30 = vmax.f32 %v7993_v52, 0.0  ;;  %v8005_v9 = vld [vmem:[#allocation28_spill] sm:$0xff] }
 0x39b   :  { %v3186_v55 = vadd.f32 %v5579_v17, %v7990_v60  ;;  %v5613_v50 = vadd.f32 %v3120_v2, %v7311_v44  ;;  %3729 = vmatprep.mubr.bf16.mxu1 %v3296_v18  ;;  %3633 = vmatmul.mubr.bf16.gmra.mrb[108].mxu0 %v3293_v29  ;;  %v7996_v33 = vmax.f32 %v7995_v62, 0.0  ;;  %v7998_v56 = vmax.f32 %v7997_v5, 0.0  ;;  %v2898_v3 = vpop.f32.mrb[84].mxu0 }
 0x39c   :  { %v3188_v21 = vadd.f32 %v5611_v23, %v7992_v24  ;;  %v3189_v54 = vadd.f32 %v5580_v58, %v7994_v30  ;;  %3730 = vmatmul.mubr.bf16.gmra.mrb[108].mxu1 %v3295_v34  ;;  %v3249_v39 = vmax.f32 %v3185_v43, 0.0  ;;  %v8000_v4 = vmax.f32 %v7999_v31, 0.0  ;;  %v3124_v29 = vpop.f32.mrb[84].mxu1  ;;  %v2900_v13 = vpop.f32.mrb[85].mxu0  ;;  %4021 = vmatpush1.bf16.msra.mxu0 %v6237_v6  ;;  %v8015_v6 = vld [vmem:[#allocation51_spill] sm:$0xff] }
 0x39d   :  { %v3191_v27 = vadd.f32 %v5612_v32, %v7996_v33  ;;  %v3190_v20 = vadd.f32 %v5581_v10, %v7998_v56  ;;  %v3251_v25 = vmax.f32 %v3187_v45, 0.0  ;;  %v3250_v53 = vmax.f32 %v3186_v55, 0.0  ;;  %v3126_v40 = vpop.f32.mrb[85].mxu1  ;;  %v2902_v34 = vpop.f32.mrb[86].mxu0  ;;  %v8013_v33 = vld [vmem:[#allocation31_spill] sm:$0xff]  ;;  %4134 = vmatpush1.bf16.msra.mxu1 %v6240_v47  ;;  %v8021_v47 = vld [vmem:[#allocation32_spill] sm:$0xff] }
 0x39e   :  { %v3253_v51 = vmax.f32 %v3189_v54, 0.0  ;;  %v3192_v59 = vadd.f32 %v5613_v50, %v8000_v4  ;;  %v3252_v8 = vmax.f32 %v3188_v21, 0.0  ;;  %v5582_v11 = vadd.f32 %v2898_v3, %v7302_v22  ;;  %v3128_v19 = vpop.f32.mrb[86].mxu1  ;;  %v2904_v18 = vpop.f32.mrb[87].mxu0  ;;  %v8009_v21 = vld [vmem:[#allocation30_spill] sm:$0xff]  ;;  %v8011_v50 = vld [vmem:[#allocation57_spill] sm:$0xff] }
 0x39f   :  { %v3255_v61 = vmax.f32 %v3191_v27, 0.0  ;;  %v3254_v36 = vmax.f32 %v3190_v20, 0.0  ;;  %v5614_v38 = vadd.f32 %v3124_v29, %v7305_v42  ;;  %v5583_v7 = vadd.f32 %v2900_v13, %v7308_v48  ;;  %v3130_v2 = vpop.f32.mrb[87].mxu1 }
 0x3a0   :  { %v3256_v46 = vmax.f32 %v3192_v59, 0.0  ;;  %v3297_v17 = vpack.c.bf16 %v3253_v51, %v3249_v39  ;;  %v8002_v43 = vmax.f32 %v8001_v57, 0.0  ;;  %v5615_v58 = vadd.f32 %v3126_v40, %v7311_v44 }
 0x3a1   :  { %v3298_v14 = vpack.c.bf16 %v3254_v36, %v3250_v53  ;;  %v3299_v49 = vpack.c.bf16 %v3255_v61, %v3251_v25  ;;  %v5584_v16 = vadd.f32 %v2902_v34, %v7302_v22  ;;  %v8004_v41 = vmax.f32 %v8003_v63, 0.0  ;;  %v8017_v34 = vld [vmem:[#allocation33_spill] sm:$0xff] }
 0x3a2   :  { %v3193_v23 = vadd.f32 %v5582_v11, %v8002_v43  ;;  %v3300_v1 = vpack.c.bf16 %v3256_v46, %v3252_v8  ;;  %v8006_v60 = vmax.f32 %v8005_v9, 0.0  ;;  %v5616_v32 = vadd.f32 %v3128_v19, %v7305_v42  ;;  %v8019_v19 = vld [vmem:[#allocation60_spill] sm:$0xff] }
 0x3a3   :  { %v3195_v45 = vadd.f32 %v5614_v38, %v8004_v41  ;;  %v5585_v10 = vadd.f32 %v2904_v18, %v7308_v48  ;;  %3640 = vmatprep.mubr.bf16.mxu0 %v3298_v14  ;;  %v8008_v15 = vmax.f32 %v8007_v35, 0.0  ;;  %v8010_v52 = vmax.f32 %v8009_v21, 0.0  ;;  %v2908_v53 = vpop.f32.mrb[88].mxu0  ;;  %v8027_v21 = vld [vmem:[#allocation61_spill] sm:$0xff] }
 0x3a4   :  { %v3194_v55 = vadd.f32 %v5583_v7, %v8006_v60  ;;  %v5617_v54 = vadd.f32 %v3130_v2, %v7311_v44  ;;  %3737 = vmatprep.mubr.bf16.mxu1 %v3300_v1  ;;  %3641 = vmatmul.mubr.bf16.gmra.mrb[112].mxu0 %v3297_v17  ;;  %v8012_v37 = vmax.f32 %v8011_v50, 0.0  ;;  %v8014_v27 = vmax.f32 %v8013_v33, 0.0  ;;  %v3134_v8 = vpop.f32.mrb[88].mxu1  ;;  %v2910_v46 = vpop.f32.mrb[89].mxu0  ;;  %v8025_v2 = vld [vmem:[#allocation34_spill] sm:$0xff] }
 0x3a5   :  { %v3196_v24 = vadd.f32 %v5615_v58, %v8008_v15  ;;  %v3197_v30 = vadd.f32 %v5584_v16, %v8010_v52  ;;  %3738 = vmatmul.mubr.bf16.gmra.mrb[112].mxu1 %v3299_v49  ;;  %v3257_v56 = vmax.f32 %v3193_v23, 0.0  ;;  %v8016_v39 = vmax.f32 %v8015_v6, 0.0  ;;  %v3136_v17 = vpop.f32.mrb[89].mxu1  ;;  %v2912_v38 = vpop.f32.mrb[90].mxu0 }
 0x3a6   :  { %v3199_v62 = vadd.f32 %v5616_v32, %v8012_v37  ;;  %v3198_v5 = vadd.f32 %v5585_v10, %v8014_v27  ;;  %v3259_v31 = vmax.f32 %v3195_v45, 0.0  ;;  %v3258_v4 = vmax.f32 %v3194_v55, 0.0  ;;  %v3138_v23 = vpop.f32.mrb[90].mxu1  ;;  %v2914_v58 = vpop.f32.mrb[91].mxu0  ;;  %v8023_v55 = vld [vmem:[#allocation54_spill] sm:$0xff]  ;;  %v8031_v27 = vld [vmem:[#allocation55_spill] sm:$0xff] }
 0x3a7   :  { %v3261_v20 = vmax.f32 %v3197_v30, 0.0  ;;  %v3200_v51 = vadd.f32 %v5617_v54, %v8016_v39  ;;  %v3260_v61 = vmax.f32 %v3196_v24, 0.0  ;;  %v5586_v3 = vadd.f32 %v2908_v53, %v7302_v22  ;;  %v3140_v60 = vpop.f32.mrb[91].mxu1  ;;  %v8029_v54 = vld [vmem:[#allocation35_spill] sm:$0xff] }
 0x3a8   :  { %v3263_v59 = vmax.f32 %v3199_v62, 0.0  ;;  %v3262_v25 = vmax.f32 %v3198_v5, 0.0  ;;  %v5618_v29 = vadd.f32 %v3134_v8, %v7305_v42  ;;  %v5587_v13 = vadd.f32 %v2910_v46, %v7308_v48 }
 0x3a9   :  { %v3264_v36 = vmax.f32 %v3200_v51, 0.0  ;;  %v3301_v11 = vpack.c.bf16 %v3261_v20, %v3257_v56  ;;  %v8018_v14 = vmax.f32 %v8017_v34, 0.0  ;;  %v5619_v57 = vadd.f32 %v3136_v17, %v7311_v44  ;;  %v8033_v17 = vld [vmem:[#allocation37_spill] sm:$0xff] }
 0x3aa   :  { %v3302_v7 = vpack.c.bf16 %v3262_v25, %v3258_v4  ;;  %v3303_v40 = vpack.c.bf16 %v3263_v59, %v3259_v31  ;;  %v5588_v43 = vadd.f32 %v2912_v38, %v7302_v22  ;;  %v8020_v18 = vmax.f32 %v8019_v19, 0.0 }
 0x3ab   :  { %v3201_v49 = vadd.f32 %v5586_v3, %v8018_v14  ;;  %v3304_v16 = vpack.c.bf16 %v3264_v36, %v3260_v61  ;;  %v8022_v63 = vmax.f32 %v8021_v47, 0.0  ;;  %v5620_v45 = vadd.f32 %v3138_v23, %v7305_v42  ;;  %v2918_v31 = vpop.f32.mrb[92].mxu0 }
 0x3ac   :  { %v3203_v1 = vadd.f32 %v5618_v29, %v8020_v18  ;;  %v5589_v9 = vadd.f32 %v2914_v58, %v7308_v48  ;;  %3648 = vmatprep.mubr.bf16.mxu0 %v3302_v7  ;;  %v8024_v32 = vmax.f32 %v8023_v55, 0.0  ;;  %v8026_v35 = vmax.f32 %v8025_v2, 0.0  ;;  %v3144_v53 = vpop.f32.mrb[92].mxu1  ;;  %v2920_v61 = vpop.f32.mrb[93].mxu0 }
 0x3ad   :  { %v3202_v41 = vadd.f32 %v5587_v13, %v8022_v63  ;;  %v5621_v24 = vadd.f32 %v3140_v60, %v7311_v44  ;;  %3745 = vmatprep.mubr.bf16.mxu1 %v3304_v16  ;;  %3649 = vmatmul.mubr.bf16.gmra.mrb[116].mxu0 %v3301_v11  ;;  %v8028_v52 = vmax.f32 %v8027_v21, 0.0  ;;  %v8030_v50 = vmax.f32 %v8029_v54, 0.0  ;;  %v3146_v46 = vpop.f32.mrb[93].mxu1  ;;  %v2922_v11 = vpop.f32.mrb[94].mxu0  ;;  %v8037_v16 = vld [vmem:[#allocation36_spill] sm:$0xff]  ;;  %v8041_v60 = vld [vmem:[#allocation38_spill] sm:$0xff] }
 0x3ae   :  { %v3204_v10 = vadd.f32 %v5619_v57, %v8024_v32  ;;  %v3205_v15 = vadd.f32 %v5588_v43, %v8026_v35  ;;  %3746 = vmatmul.mubr.bf16.gmra.mrb[116].mxu1 %v3303_v40  ;;  %v3265_v62 = vmax.f32 %v3201_v49, 0.0  ;;  %v8032_v5 = vmax.f32 %v8031_v27, 0.0  ;;  %v3148_v14 = vpop.f32.mrb[94].mxu1  ;;  %v2924_v49 = vpop.f32.mrb[95].mxu0  ;;  %v8035_v43 = vld [vmem:[#allocation62_spill] sm:$0xff] }
 0x3af   :  { %v3207_v30 = vadd.f32 %v5620_v45, %v8028_v52  ;;  %v3206_v37 = vadd.f32 %v5589_v9, %v8030_v50  ;;  %v3267_v20 = vmax.f32 %v3203_v1, 0.0  ;;  %v3266_v6 = vmax.f32 %v3202_v41, 0.0  ;;  %v3150_v63 = vpop.f32.mrb[95].mxu1  ;;  %v8039_v41 = vld [vmem:[#allocation58_spill] sm:$0xff]  ;;  %v8047_v52 = vld [vmem:[#allocation59_spill] sm:$0xff] }
 0x3b0   :  { %v3269_v33 = vmax.f32 %v3205_v15, 0.0  ;;  %v3208_v56 = vadd.f32 %v5621_v24, %v8032_v5  ;;  %v3268_v4 = vmax.f32 %v3204_v10, 0.0  ;;  %v5590_v25 = vadd.f32 %v2918_v31, %v7302_v22  ;;  %v8043_v10 = vld [vmem:[#allocation63_spill] sm:$0xff] }
 0x3b1   :  { %v3271_v39 = vmax.f32 %v3207_v30, 0.0  ;;  %v3270_v51 = vmax.f32 %v3206_v37, 0.0  ;;  %v5622_v3 = vadd.f32 %v3144_v53, %v7305_v42  ;;  %v5591_v8 = vadd.f32 %v2920_v61, %v7308_v48  ;;  %v8045_v15 = vld [vmem:[#allocation39_spill] sm:$0xff]  ;;  %v6251_v53 = vld [vmem:[#allocation10 + $0xc0] sm:$0xff]  }
 0x3b2   :  { %v3272_v59 = vmax.f32 %v3208_v56, 0.0  ;;  %v3305_v36 = vpack.c.bf16 %v3269_v33, %v3265_v62  ;;  %v8034_v38 = vmax.f32 %v8033_v17, 0.0  ;;  %v5623_v40 = vadd.f32 %v3146_v46, %v7311_v44  ;;  %v6248_v31 = vld [vmem:[#allocation8 + $0xec] ss:$16 sps:$4 sm:$0xff]  }
 0x3b3   :  { %v3306_v29 = vpack.c.bf16 %v3270_v51, %v3266_v6  ;;  %v3307_v13 = vpack.c.bf16 %v3271_v39, %v3267_v20  ;;  %v5592_v34 = vadd.f32 %v2922_v11, %v7302_v22  ;;  %v8036_v23 = vmax.f32 %v8035_v43, 0.0  ;;  %v6245_v51 = vld [vmem:[#allocation8 + $0xe4] ss:$16 sps:$4 sm:$0xff]   ;;  %4135 = vmatprep.subr.bf16.mxu1 %v6248_v31 }
 0x3b4   :  { %v3209_v7 = vadd.f32 %v5590_v25, %v8034_v38  ;;  %v3308_v57 = vpack.c.bf16 %v3272_v59, %v3268_v4  ;;  %v8038_v19 = vmax.f32 %v8037_v16, 0.0  ;;  %v5624_v1 = vadd.f32 %v3148_v14, %v7305_v42  ;;  %v6243_v4 = vld [vmem:[#allocation8 + $0xe0] ss:$16 sps:$4 sm:$0xff]   ;;  %v6246_v59 = vld [vmem:[#allocation8 + $0xe8] ss:$16 sps:$4 sm:$0xff]   ;;  %4022 = vmatprep.subr.bf16.mxu0 %v6245_v51 }
 0x3b5   :  { %v3211_v58 = vadd.f32 %v5622_v3, %v8036_v23  ;;  %v5593_v47 = vadd.f32 %v2924_v49, %v7308_v48  ;;  %3656 = vmatprep.mubr.bf16.mxu0 %v3306_v29  ;;  %v8040_v45 = vmax.f32 %v8039_v41, 0.0  ;;  %v8042_v22 = vmax.f32 %v8041_v60, 0.0  ;;  %4023 = vmatpush1.bf16.msra.mxu0 %v6243_v4  ;;  %v6249_v25 = vld [vmem:[#allocation10 + $0x40] sm:$0xff]   ;;  %v7510_v3 = vld [vmem:[%s7773_s7 + $0xc] ss:$0 sm:$0xff] }
 0x3b6   :  { %v3210_v18 = vadd.f32 %v5591_v8, %v8038_v19  ;;  %v5625_v32 = vadd.f32 %v3150_v63, %v7311_v44  ;;  %3753 = vmatprep.mubr.bf16.mxu1 %v3308_v57  ;;  %3657 = vmatmul.mubr.bf16.gmra.mrb[120].mxu0 %v3305_v36  ;;  %v8044_v2 = vmax.f32 %v8043_v10, 0.0  ;;  %v8046_v24 = vmax.f32 %v8045_v15, 0.0  ;;  %v6250_v10 = vld [vmem:[#allocation10] sm:$0xff]   ;;  %v6253_v15 = vld [vmem:[#allocation10 + $0x48] sm:$0xff]  }
 0x3b7   :  { %v3212_v9 = vadd.f32 %v5623_v40, %v8040_v45  ;;  %v3213_v55 = vadd.f32 %v5592_v34, %v8042_v22  ;;  %3754 = vmatmul.mubr.bf16.gmra.mrb[120].mxu1 %v3307_v13  ;;  %v3273_v48 = vmax.f32 %v3209_v7, 0.0  ;;  %v8048_v30 = vmax.f32 %v8047_v52, 0.0  ;;  %5370 = vmatprep.subr.bf16.mxu0 %v6249_v25 }
 0x3b8   :  { %v3215_v35 = vadd.f32 %v5624_v1, %v8044_v2  ;;  %v3214_v42 = vadd.f32 %v5593_v47, %v8046_v24  ;;  %v3275_v50 = vmax.f32 %v3211_v58, 0.0  ;;  %v3274_v37 = vmax.f32 %v3210_v18, 0.0  ;;  %4136 = vmatpush1.bf16.msra.mxu1 %v6246_v59  ;;  %v6252_v2 = vld [vmem:[#allocation10 + $0x80] sm:$0xff]   ;;  %v6255_v24 = vld [vmem:[#allocation10 + $0xc8] sm:$0xff]  }
 0x3b9   :  { %v3277_v21 = vmax.f32 %v3213_v55, 0.0  ;;  %v3216_v54 = vadd.f32 %v5625_v32, %v8048_v30  ;;  %v3276_v27 = vmax.f32 %v3212_v9, 0.0  ;;  %v8049_v39 = vmov 0   ;;  %5434 = vmatprep.subr.bf16.mxu1 %v6251_v53  ;;  %v6254_v30 = vld [vmem:[#allocation10 + $0x8] sm:$0xff]  }
 0x3ba   :  { %v3279_v62 = vmax.f32 %v3215_v35, 0.0  ;;  %v3278_v33 = vmax.f32 %v3214_v42, 0.0 }
 0x3bb   :  { %v3280_v44 = vmax.f32 %v3216_v54, 0.0  ;;  %v3309_v5 = vpack.c.bf16 %v3277_v21, %v3273_v48  ;;  %v6256_v54 = vld [vmem:[#allocation10 + $0x88] sm:$0xff]  }
 0x3bc   :  { %v3310_v56 = vpack.c.bf16 %v3278_v33, %v3274_v37  ;;  %v3311_v20 = vpack.c.bf16 %v3279_v62, %v3275_v50  ;;  %v6257_v62 = vld [vmem:[#allocation10 + $0x50] sm:$0xff]  }
 0x3bd   :  { %v3312_v6 = vpack.c.bf16 %v3280_v44, %v3276_v27  ;;  %v6259_v33 = vld [vmem:[#allocation10 + $0xd0] sm:$0xff]  }
 0x3be   :  { %3664 = vmatprep.mubr.bf16.mxu0 %v3310_v56 }
 0x3bf   :  { %3761 = vmatprep.mubr.bf16.mxu1 %v3312_v6  ;;  %3665 = vmatmul.mubr.bf16.gmra.mrb[124].mxu0 %v3309_v5 }
 0x3c0   :  { %3762 = vmatmul.mubr.bf16.gmra.mrb[124].mxu1 %v3311_v20  ;;  %4040 = vmatprep.mubr.bf16.mxu0 %v8049_v39 }
 0x3c1   :  { %4153 = vmatprep.mubr.bf16.mxu1 %v8049_v39 }
 0x453   :  { %v5258_v61 = vpop.f32.mrb[96].mxu0 }
 0x454   :  { %v5322_v36 = vpop.f32.mrb[96].mxu1  ;;  %v5259_v8 = vpop.f32.mrb[97].mxu0 }
 0x455   :  { %v5260_v46 = vadd.f32 %v5259_v8, %v5258_v61  ;;  %v5323_v11 = vpop.f32.mrb[97].mxu1  ;;  %v5261_v29 = vpop.f32.mrb[98].mxu0  ;;  %v6258_v61 = vld [vmem:[#allocation10 + $0x10] sm:$0xff]  }
 0x456   :  { %v5324_v13 = vadd.f32 %v5323_v11, %v5322_v36  ;;  %v5325_v17 = vpop.f32.mrb[98].mxu1  ;;  %v5262_v38 = vpop.f32.mrb[99].mxu0  ;;  %v6260_v36 = vld [vmem:[#allocation10 + $0x90] sm:$0xff]   ;;  %v6263_v11 = vld [vmem:[#allocation10 + $0xd8] sm:$0xff]  }
 0x457   :  { %v3611_v7 = vadd.f32 %v5260_v46, %v7510_v3  ;;  %v5263_v40 = vadd.f32 %v5262_v38, %v5261_v29  ;;  %v5326_v34 = vpop.f32.mrb[99].mxu1  ;;  %v6261_v46 = vld [vmem:[#allocation10 + $0x58] sm:$0xff]  }
 0x458   :  { %v5327_v14 = vadd.f32 %v5326_v34, %v5325_v17 }
 0x459   :  { %v7513_v49 = vadd.f32 %v5324_v13, %v3611_v7  ;;  %v3614_v57 = vadd.f32 %v5263_v40, %v7510_v3  ;;  %v6262_v7 = vld [vmem:[#allocation10 + $0x18] sm:$0xff]  }
 0x45a   :  { %v6264_v40 = vld [vmem:[#allocation10 + $0x98] sm:$0xff]  }
 0x45b   :  { %v7516_v43 = vadd.f32 %v5327_v14, %v3614_v57  ;;  %v3770_v19 = vmax.f32 %v7513_v49, 0.0  ;;  %v6265_v57 = vld [vmem:[#allocation10 + $0x60] sm:$0xff]  }
 0x45d   :  { %v5264_v23 = vpop.f32.mrb[100].mxu0  ;;  %v5328_v58 = vpop.f32.mrb[100].mxu1  ;;  %v3771_v18 = vmax.f32 %v7516_v43, 0.0 }
 0x45e   :  { %v5265_v16 = vpop.f32.mrb[101].mxu0  ;;  %v5329_v47 = vpop.f32.mrb[101].mxu1 }
 0x45f   :  { %v5266_v1 = vadd.f32 %v5265_v16, %v5264_v23  ;;  %v5267_v63 = vpop.f32.mrb[102].mxu0  ;;  %v5330_v41 = vadd.f32 %v5329_v47, %v5328_v58  ;;  %v5331_v45 = vpop.f32.mrb[102].mxu1  ;;  %v3786_v60 = vpack.c.bf16 %v3771_v18, %v3770_v19  ;;  %v6267_v23 = vld [vmem:[#allocation10 + $0xe0] sm:$0xff]  }
 0x460   :  { %v5268_v9 = vpop.f32.mrb[103].mxu0  ;;  %v5332_v32 = vpop.f32.mrb[103].mxu1 }
 0x461   :  { %v3619_v22 = vadd.f32 %v5266_v1, %v7510_v3  ;;  %v5269_v55 = vadd.f32 %v5268_v9, %v5267_v63  ;;  %v5333_v35 = vadd.f32 %v5332_v32, %v5331_v45  ;;  %4041 = vmatmul.mubr.bf16.vlgmr.msra.gmra.mrb[128].mxu0 %v3786_v60  ;;  %4154 = vmatmul.mubr.bf16.vlgmr.msra.gmra.mrb[128].mxu1 %v3786_v60 }
 0x462   :  { %4050 = vmatprep.mubr.bf16.mxu0 %v8049_v39  ;;  %4163 = vmatprep.mubr.bf16.mxu1 %v8049_v39 }
 0x463   :  { %v7525_v42 = vadd.f32 %v5330_v41, %v3619_v22  ;;  %v3622_v48 = vadd.f32 %v5269_v55, %v7510_v3  ;;  %5371 = vmatpush3.bf16.msra.mxu0 %v6250_v10  ;;  %5435 = vmatpush3.bf16.msra.mxu1 %v6252_v2  ;;  %v6266_v10 = vld [vmem:[#allocation10 + $0x20] sm:$0xff]  }
 0x464   :  { %5372 = vmatprep.subr.bf16.mxu0 %v6253_v15  ;;  %5436 = vmatprep.subr.bf16.mxu1 %v6255_v24  ;;  %v6268_v2 = vld [vmem:[#allocation10 + $0xa0] sm:$0xff]   ;;  %v6269_v15 = vld [vmem:[#allocation10 + $0x68] sm:$0xff]  }
 0x465   :  { %v7530_v21 = vadd.f32 %v5333_v35, %v3622_v48  ;;  %v5270_v52 = vpop.f32.mrb[104].mxu0  ;;  %v3772_v27 = vmax.f32 %v7525_v42, 0.0  ;;  %v6271_v24 = vld [vmem:[#allocation10 + $0xe8] sm:$0xff]  }
 0x466   :  { %v5334_v50 = vpop.f32.mrb[104].mxu1  ;;  %v5271_v37 = vpop.f32.mrb[105].mxu0 }
 0x467   :  { %v3773_v44 = vmax.f32 %v7530_v21, 0.0  ;;  %v5272_v5 = vadd.f32 %v5271_v37, %v5270_v52  ;;  %v5335_v56 = vpop.f32.mrb[105].mxu1  ;;  %v5273_v20 = vpop.f32.mrb[106].mxu0  ;;  %5373 = vmatpush3.bf16.msra.mxu0 %v6254_v30  ;;  %5437 = vmatpush3.bf16.msra.mxu1 %v6256_v54  ;;  %v6272_v37 = vld [vmem:[#allocation10 + $0xa8] sm:$0xff]  }
 0x468   :  { %v5336_v6 = vadd.f32 %v5335_v56, %v5334_v50  ;;  %v5337_v51 = vpop.f32.mrb[106].mxu1  ;;  %v5274_v31 = vpop.f32.mrb[107].mxu0  ;;  %5374 = vmatprep.subr.bf16.mxu0 %v6257_v62  ;;  %5438 = vmatprep.subr.bf16.mxu1 %v6259_v33  ;;  %v6270_v50 = vld [vmem:[#allocation10 + $0x28] sm:$0xff]   ;;  %v6275_v56 = vld [vmem:[#allocation10 + $0xf0] sm:$0xff]  }
 0x469   :  { %v3627_v4 = vadd.f32 %v5272_v5, %v7510_v3  ;;  %v5275_v59 = vadd.f32 %v5274_v31, %v5273_v20  ;;  %v5338_v25 = vpop.f32.mrb[107].mxu1  ;;  %v3787_v53 = vpack.c.bf16 %v3773_v44, %v3772_v27  ;;  %v6273_v5 = vld [vmem:[#allocation10 + $0x70] sm:$0xff]  }
 0x46a   :  { %v5339_v8 = vadd.f32 %v5338_v25, %v5337_v51 }
 0x46b   :  { %v7539_v29 = vadd.f32 %v5336_v6, %v3627_v4  ;;  %v3630_v13 = vadd.f32 %v5275_v59, %v7510_v3  ;;  %4051 = vmatmul.mubr.bf16.gmra.mrb[132].mxu0 %v3787_v53  ;;  %4164 = vmatmul.mubr.bf16.gmra.mrb[132].mxu1 %v3787_v53 }
 0x46c   :  { %4060 = vmatprep.mubr.bf16.mxu0 %v8049_v39  ;;  %4173 = vmatprep.mubr.bf16.mxu1 %v8049_v39 }
 0x46d   :  { %v7544_v17 = vadd.f32 %v5339_v8, %v3630_v13  ;;  %5375 = vmatpush3.bf16.msra.mxu0 %v6258_v61  ;;  %5439 = vmatpush3.bf16.msra.mxu1 %v6260_v36  ;;  %v3774_v58 = vmax.f32 %v7539_v29, 0.0  ;;  %v6276_v13 = vld [vmem:[#allocation10 + $0xb0] sm:$0xff]  }
 0x46e   :  { %v5276_v38 = vpop.f32.mrb[108].mxu0  ;;  %5376 = vmatprep.subr.bf16.mxu0 %v6261_v46  ;;  %5440 = vmatprep.subr.bf16.mxu1 %v6263_v11  ;;  %v6274_v11 = vld [vmem:[#allocation10 + $0x30] sm:$0xff]  }
 0x46f   :  { %v5340_v34 = vpop.f32.mrb[108].mxu1  ;;  %v5277_v14 = vpop.f32.mrb[109].mxu0  ;;  %v3775_v16 = vmax.f32 %v7544_v17, 0.0 }
 0x470   :  { %v5278_v1 = vadd.f32 %v5277_v14, %v5276_v38  ;;  %v5341_v47 = vpop.f32.mrb[109].mxu1  ;;  %v5279_v63 = vpop.f32.mrb[110].mxu0 }
 0x471   :  { %v5342_v41 = vadd.f32 %v5341_v47, %v5340_v34  ;;  %v5343_v45 = vpop.f32.mrb[110].mxu1  ;;  %v5280_v9 = vpop.f32.mrb[111].mxu0  ;;  %v3788_v32 = vpack.c.bf16 %v3775_v16, %v3774_v58  ;;  %5377 = vmatpush3.bf16.msra.mxu0 %v6262_v7  ;;  %5441 = vmatpush3.bf16.msra.mxu1 %v6264_v40 }
 0x472   :  { %v3635_v60 = vadd.f32 %v5278_v1, %v7510_v3  ;;  %v5281_v22 = vadd.f32 %v5280_v9, %v5279_v63  ;;  %v5344_v55 = vpop.f32.mrb[111].mxu1  ;;  %5378 = vmatprep.subr.bf16.mxu0 %v6265_v57  ;;  %5442 = vmatprep.subr.bf16.mxu1 %v6267_v23 }
 0x473   :  { %v5345_v35 = vadd.f32 %v5344_v55, %v5343_v45  ;;  %4061 = vmatmul.mubr.bf16.gmra.mrb[136].mxu0 %v3788_v32  ;;  %4174 = vmatmul.mubr.bf16.gmra.mrb[136].mxu1 %v3788_v32 }
 0x474   :  { %v7553_v48 = vadd.f32 %v5342_v41, %v3635_v60  ;;  %v3638_v52 = vadd.f32 %v5281_v22, %v7510_v3  ;;  %4070 = vmatprep.mubr.bf16.mxu0 %v8049_v39  ;;  %4183 = vmatprep.mubr.bf16.mxu1 %v8049_v39 }
 0x475   :  { %5379 = vmatpush3.bf16.msra.mxu0 %v6266_v10  ;;  %5443 = vmatpush3.bf16.msra.mxu1 %v6268_v2 }
 0x476   :  { %v7558_v30 = vadd.f32 %v5345_v35, %v3638_v52  ;;  %5380 = vmatprep.subr.bf16.mxu0 %v6269_v15  ;;  %5444 = vmatprep.subr.bf16.mxu1 %v6271_v24  ;;  %v3776_v20 = vmax.f32 %v7553_v48, 0.0 }
 0x477   :  { %v5282_v54 = vpop.f32.mrb[112].mxu0 }
 0x478   :  { %v5346_v62 = vpop.f32.mrb[112].mxu1  ;;  %v5283_v33 = vpop.f32.mrb[113].mxu0  ;;  %v3777_v6 = vmax.f32 %v7558_v30, 0.0 }
 0x479   :  { %v5284_v51 = vadd.f32 %v5283_v33, %v5282_v54  ;;  %v5347_v31 = vpop.f32.mrb[113].mxu1  ;;  %v5285_v4 = vpop.f32.mrb[114].mxu0  ;;  %5381 = vmatpush3.bf16.msra.mxu0 %v6270_v50  ;;  %5445 = vmatpush3.bf16.msra.mxu1 %v6272_v37 }
 0x47a   :  { %v5348_v59 = vadd.f32 %v5347_v31, %v5346_v62  ;;  %v5349_v25 = vpop.f32.mrb[114].mxu1  ;;  %v5286_v53 = vpop.f32.mrb[115].mxu0  ;;  %v3789_v46 = vpack.c.bf16 %v3777_v6, %v3776_v20  ;;  %5382 = vmatprep.subr.bf16.mxu0 %v6273_v5  ;;  %5446 = vmatprep.subr.bf16.mxu1 %v6275_v56 }
 0x47b   :  { %v3643_v61 = vadd.f32 %v5284_v51, %v7510_v3  ;;  %v5287_v36 = vadd.f32 %v5286_v53, %v5285_v4  ;;  %v5350_v8 = vpop.f32.mrb[115].mxu1 }
 0x47c   :  { %v5351_v38 = vadd.f32 %v5350_v8, %v5349_v25  ;;  %4071 = vmatmul.mubr.bf16.gmra.mrb[140].mxu0 %v3789_v46  ;;  %4184 = vmatmul.mubr.bf16.gmra.mrb[140].mxu1 %v3789_v46 }
 0x47d   :  { %v7567_v7 = vadd.f32 %v5348_v59, %v3643_v61  ;;  %v3646_v40 = vadd.f32 %v5287_v36, %v7510_v3  ;;  %4080 = vmatprep.mubr.bf16.mxu0 %v8049_v39  ;;  %4193 = vmatprep.mubr.bf16.mxu1 %v8049_v39 }
 0x47e   :  { %5383 = vmatpush3.bf16.msra.mxu0 %v6274_v11  ;;  %5447 = vmatpush3.bf16.msra.mxu1 %v6276_v13 }
 0x47f   :  { %v7572_v34 = vadd.f32 %v5351_v38, %v3646_v40  ;;  %v3778_v1 = vmax.f32 %v7567_v7, 0.0 }
 0x480   :  { %v5288_v14 = vpop.f32.mrb[116].mxu0 }
 0x481   :  { %v5352_v57 = vpop.f32.mrb[116].mxu1  ;;  %v5289_v23 = vpop.f32.mrb[117].mxu0  ;;  %v3779_v47 = vmax.f32 %v7572_v34, 0.0 }
 0x482   :  { %v5290_v63 = vadd.f32 %v5289_v23, %v5288_v14  ;;  %v5353_v41 = vpop.f32.mrb[117].mxu1  ;;  %v5291_v45 = vpop.f32.mrb[118].mxu0 }
 0x483   :  { %v5354_v9 = vadd.f32 %v5353_v41, %v5352_v57  ;;  %v5355_v60 = vpop.f32.mrb[118].mxu1  ;;  %v5292_v22 = vpop.f32.mrb[119].mxu0  ;;  %v3790_v2 = vpack.c.bf16 %v3779_v47, %v3778_v1 }
 0x484   :  { %v3651_v55 = vadd.f32 %v5290_v63, %v7510_v3  ;;  %v5293_v32 = vadd.f32 %v5292_v22, %v5291_v45  ;;  %v5356_v10 = vpop.f32.mrb[119].mxu1 }
 0x485   :  { %v5357_v35 = vadd.f32 %v5356_v10, %v5355_v60  ;;  %4081 = vmatmul.mubr.bf16.gmra.mrb[144].mxu0 %v3790_v2  ;;  %4194 = vmatmul.mubr.bf16.gmra.mrb[144].mxu1 %v3790_v2 }
 0x486   :  { %v7581_v15 = vadd.f32 %v5354_v9, %v3651_v55  ;;  %v3654_v24 = vadd.f32 %v5293_v32, %v7510_v3  ;;  %4090 = vmatprep.mubr.bf16.mxu0 %v8049_v39  ;;  %4203 = vmatprep.mubr.bf16.mxu1 %v8049_v39 }
 0x488   :  { %v7586_v52 = vadd.f32 %v5357_v35, %v3654_v24  ;;  %v3780_v62 = vmax.f32 %v7581_v15, 0.0 }
 0x489   :  { %v5294_v54 = vpop.f32.mrb[120].mxu0 }
 0x48a   :  { %v5358_v50 = vpop.f32.mrb[120].mxu1  ;;  %v5295_v37 = vpop.f32.mrb[121].mxu0  ;;  %v3781_v33 = vmax.f32 %v7586_v52, 0.0 }
 0x48b   :  { %v5296_v5 = vadd.f32 %v5295_v37, %v5294_v54  ;;  %v5359_v56 = vpop.f32.mrb[121].mxu1  ;;  %v5297_v51 = vpop.f32.mrb[122].mxu0 }
 0x48c   :  { %v5360_v31 = vadd.f32 %v5359_v56, %v5358_v50  ;;  %v5361_v4 = vpop.f32.mrb[122].mxu1  ;;  %v5298_v59 = vpop.f32.mrb[123].mxu0  ;;  %v3791_v36 = vpack.c.bf16 %v3781_v33, %v3780_v62 }
 0x48d   :  { %v3659_v25 = vadd.f32 %v5296_v5, %v7510_v3  ;;  %v5299_v53 = vadd.f32 %v5298_v59, %v5297_v51  ;;  %v5362_v61 = vpop.f32.mrb[123].mxu1  ;;  %v6279_v51 = vld [vmem:[#allocation10 + $0xf8] sm:$0xff]  }
 0x48e   :  { %v5363_v8 = vadd.f32 %v5362_v61, %v5361_v4  ;;  %4091 = vmatmul.mubr.bf16.gmra.mrb[148].mxu0 %v3791_v36  ;;  %4204 = vmatmul.mubr.bf16.gmra.mrb[148].mxu1 %v3791_v36  ;;  %v6280_v4 = vld [vmem:[#allocation10 + $0xb8] sm:$0xff]  }
 0x48f   :  { %v7595_v46 = vadd.f32 %v5360_v31, %v3659_v25  ;;  %v3662_v11 = vadd.f32 %v5299_v53, %v7510_v3  ;;  %4100 = vmatprep.mubr.bf16.mxu0 %v8049_v39  ;;  %4213 = vmatprep.mubr.bf16.mxu1 %v8049_v39  ;;  %v6278_v31 = vld [vmem:[#allocation10 + $0x38] sm:$0xff]  }
 0x490   :  { %5448 = vmatprep.subr.bf16.mxu1 %v6279_v51 }
 0x491   :  { %v7600_v13 = vadd.f32 %v5363_v8, %v3662_v11  ;;  %v3782_v57 = vmax.f32 %v7595_v46, 0.0  ;;  %5449 = vmatpush3.bf16.msra.mxu1 %v6280_v4 }
 0x492   :  { %v5300_v38 = vpop.f32.mrb[124].mxu0 }
 0x493   :  { %v5364_v40 = vpop.f32.mrb[124].mxu1  ;;  %v5301_v14 = vpop.f32.mrb[125].mxu0  ;;  %v3783_v23 = vmax.f32 %v7600_v13, 0.0 }
 0x494   :  { %v5302_v63 = vadd.f32 %v5301_v14, %v5300_v38  ;;  %v5365_v41 = vpop.f32.mrb[125].mxu1  ;;  %v5303_v45 = vpop.f32.mrb[126].mxu0 }
 0x495   :  { %v5366_v9 = vadd.f32 %v5365_v41, %v5364_v40  ;;  %v5367_v60 = vpop.f32.mrb[126].mxu1  ;;  %v5304_v22 = vpop.f32.mrb[127].mxu0  ;;  %v3792_v2 = vpack.c.bf16 %v3783_v23, %v3782_v57 }
 0x496   :  { %v3667_v55 = vadd.f32 %v5302_v63, %v7510_v3  ;;  %v5305_v32 = vadd.f32 %v5304_v22, %v5303_v45  ;;  %v5368_v10 = vpop.f32.mrb[127].mxu1 }
 0x497   :  { %v5369_v35 = vadd.f32 %v5368_v10, %v5367_v60  ;;  %4101 = vmatmul.mubr.bf16.gmra.mrb[152].mxu0 %v3792_v2  ;;  %4214 = vmatmul.mubr.bf16.gmra.mrb[152].mxu1 %v3792_v2 }
 0x498   :  { %v7609_v24 = vadd.f32 %v5366_v9, %v3667_v55  ;;  %v3670_v54 = vadd.f32 %v5305_v32, %v7510_v3  ;;  %4110 = vmatprep.mubr.bf16.mxu0 %v8049_v39  ;;  %4223 = vmatprep.mubr.bf16.mxu1 %v8049_v39  ;;  %v6277_v3 = vld [vmem:[#allocation10 + $0x78] sm:$0xff]  }
 0x499   :  { %5384 = vmatprep.subr.bf16.mxu0 %v6277_v3  ;;  %v3826_v39 = vld [vmem:[%s7773_s7 + $0xd] sm:$0xf] }
 0x49a   :  { %v7614_v50 = vadd.f32 %v5369_v35, %v3670_v54  ;;  %v3784_v37 = vmax.f32 %v7609_v24, 0.0  ;;  %5385 = vmatpush3.bf16.msra.mxu0 %v6278_v31  ;;  %v7626_v59 = vrot.slane %v3826_v39, %v6651_v28  ;;  %v7629_v25 = vrot.slane %v3826_v39, %v6877_v12 }
 0x49b   :  { %v7632_v53 = vrot.slane %v3826_v39, %v6643_v26  ;;  %v7635_v61 = vrot.slane %v3826_v39, %v6846_v0 }
 0x49c   :  { %v3785_v5 = vmax.f32 %v7614_v50, 0.0 }
 0x49e   :  { %v3793_v56 = vpack.c.bf16 %v3785_v5, %v3784_v37 }
 0x4a0   :  { %4111 = vmatmul.mubr.bf16.gmra.mrb[156].mxu0 %v3793_v56  ;;  %4224 = vmatmul.mubr.bf16.gmra.mrb[156].mxu1 %v3793_v56 }
 0x534   :  { %v4042_v36 = vpop.f32.mrb[128].mxu0  ;;  %v4155_v8 = vpop.f32.mrb[128].mxu1 }
 0x535   :  { %v4043_v11 = vadd.f32 %v4042_v36, %v7626_v59  ;;  %v4156_v38 = vadd.f32 %v4155_v8, %v7629_v25  ;;  %v4044_v40 = vpop.f32.mrb[129].mxu0  ;;  %v4157_v14 = vpop.f32.mrb[129].mxu1 }
 0x536   :  { %v4045_v28 = vadd.f32 %v4044_v40, %v7632_v53  ;;  %v4158_v63 = vadd.f32 %v4157_v14, %v7635_v61  ;;  %v4046_v12 = vpop.f32.mrb[130].mxu0  ;;  %v4159_v41 = vpop.f32.mrb[130].mxu1 }
 0x537   :  { %v4047_v26 = vadd.f32 %v4046_v12, %v7626_v59  ;;  %v4160_v45 = vadd.f32 %v4159_v41, %v7629_v25  ;;  %v4048_v0 = vpop.f32.mrb[131].mxu0  ;;  %v4161_v9 = vpop.f32.mrb[131].mxu1  ;;  %v4234_v55 = vmax.f32 %v4043_v11, 0.0  ;;  %v4236_v32 = vmax.f32 %v4156_v38, 0.0 }
 0x538   :  { %v4049_v60 = vadd.f32 %v4048_v0, %v7632_v53  ;;  %v4162_v22 = vadd.f32 %v4161_v9, %v7635_v61  ;;  %v4235_v35 = vmax.f32 %v4045_v28, 0.0  ;;  %v4237_v54 = vmax.f32 %v4158_v63, 0.0 }
 0x539   :  { %v4238_v10 = vmax.f32 %v4047_v26, 0.0  ;;  %v4240_v2 = vmax.f32 %v4160_v45, 0.0 }
 0x53a   :  { %v4239_v56 = vmax.f32 %v4049_v60, 0.0  ;;  %v4241_v3 = vmax.f32 %v4162_v22, 0.0 }
 0x53b   :  { %v4298_v51 = vpack.c.bf16 %v4238_v10, %v4234_v55  ;;  %v4300_v31 = vpack.c.bf16 %v4240_v2, %v4236_v32 }
 0x53c   :  { %v4299_v4 = vpack.c.bf16 %v4239_v56, %v4235_v35  ;;  %v4301_v39 = vpack.c.bf16 %v4241_v3, %v4237_v54 }
 0x53e   :  { %v4052_v36 = vpop.f32.mrb[132].mxu0  ;;  %v4165_v8 = vpop.f32.mrb[132].mxu1  ;;  %4625 = vmatprep.mubr.bf16.mxu0 %v4299_v4  ;;  %4722 = vmatprep.mubr.bf16.mxu1 %v4301_v39 }
 0x53f   :  { %v4053_v40 = vadd.f32 %v4052_v36, %v7626_v59  ;;  %v4166_v14 = vadd.f32 %v4165_v8, %v7629_v25  ;;  %v4054_v12 = vpop.f32.mrb[133].mxu0  ;;  %v4167_v41 = vpop.f32.mrb[133].mxu1  ;;  %4626 = vmatmul.mubr.bf16.vlgmr.msra.gmra.mrb[160].mxu0 %v4298_v51  ;;  %4723 = vmatmul.mubr.bf16.vlgmr.msra.gmra.mrb[160].mxu1 %v4300_v31 }
 0x540   :  { %v4055_v11 = vadd.f32 %v4054_v12, %v7632_v53  ;;  %v4168_v38 = vadd.f32 %v4167_v41, %v7635_v61  ;;  %v4056_v28 = vpop.f32.mrb[134].mxu0  ;;  %v4169_v63 = vpop.f32.mrb[134].mxu1 }
 0x541   :  { %v4057_v26 = vadd.f32 %v4056_v28, %v7626_v59  ;;  %v4170_v45 = vadd.f32 %v4169_v63, %v7629_v25  ;;  %v4058_v0 = vpop.f32.mrb[135].mxu0  ;;  %v4171_v9 = vpop.f32.mrb[135].mxu1  ;;  %v4242_v55 = vmax.f32 %v4053_v40, 0.0  ;;  %v4244_v32 = vmax.f32 %v4166_v14, 0.0 }
 0x542   :  { %v4059_v60 = vadd.f32 %v4058_v0, %v7632_v53  ;;  %v4172_v22 = vadd.f32 %v4171_v9, %v7635_v61  ;;  %v4243_v35 = vmax.f32 %v4055_v11, 0.0  ;;  %v4245_v54 = vmax.f32 %v4168_v38, 0.0 }
 0x543   :  { %v4246_v10 = vmax.f32 %v4057_v26, 0.0  ;;  %v4248_v2 = vmax.f32 %v4170_v45, 0.0 }
 0x544   :  { %v4247_v56 = vmax.f32 %v4059_v60, 0.0  ;;  %v4249_v3 = vmax.f32 %v4172_v22, 0.0 }
 0x545   :  { %v4302_v4 = vpack.c.bf16 %v4246_v10, %v4242_v55  ;;  %v4304_v39 = vpack.c.bf16 %v4248_v2, %v4244_v32 }
 0x546   :  { %v4303_v36 = vpack.c.bf16 %v4247_v56, %v4243_v35  ;;  %v4305_v8 = vpack.c.bf16 %v4249_v3, %v4245_v54  ;;  %v4062_v12 = vpop.f32.mrb[136].mxu0  ;;  %v4175_v41 = vpop.f32.mrb[136].mxu1 }
 0x547   :  { %v4063_v51 = vadd.f32 %v4062_v12, %v7626_v59  ;;  %v4176_v31 = vadd.f32 %v4175_v41, %v7629_v25  ;;  %v4064_v28 = vpop.f32.mrb[137].mxu0  ;;  %v4177_v63 = vpop.f32.mrb[137].mxu1 }
 0x548   :  { %v4065_v40 = vadd.f32 %v4064_v28, %v7632_v53  ;;  %v4178_v14 = vadd.f32 %v4177_v63, %v7635_v61  ;;  %v4066_v11 = vpop.f32.mrb[138].mxu0  ;;  %v4179_v38 = vpop.f32.mrb[138].mxu1  ;;  %4633 = vmatprep.mubr.bf16.mxu0 %v4303_v36  ;;  %4730 = vmatprep.mubr.bf16.mxu1 %v4305_v8 }
 0x549   :  { %v4067_v26 = vadd.f32 %v4066_v11, %v7626_v59  ;;  %v4180_v45 = vadd.f32 %v4179_v38, %v7629_v25  ;;  %v4068_v0 = vpop.f32.mrb[139].mxu0  ;;  %v4181_v9 = vpop.f32.mrb[139].mxu1  ;;  %4634 = vmatmul.mubr.bf16.gmra.mrb[164].mxu0 %v4302_v4  ;;  %4731 = vmatmul.mubr.bf16.gmra.mrb[164].mxu1 %v4304_v39  ;;  %v4250_v55 = vmax.f32 %v4063_v51, 0.0  ;;  %v4252_v32 = vmax.f32 %v4176_v31, 0.0 }
 0x54a   :  { %v4069_v60 = vadd.f32 %v4068_v0, %v7632_v53  ;;  %v4182_v22 = vadd.f32 %v4181_v9, %v7635_v61  ;;  %v4251_v35 = vmax.f32 %v4065_v40, 0.0  ;;  %v4253_v54 = vmax.f32 %v4178_v14, 0.0 }
 0x54b   :  { %v4254_v10 = vmax.f32 %v4067_v26, 0.0  ;;  %v4256_v2 = vmax.f32 %v4180_v45, 0.0 }
 0x54c   :  { %v4255_v56 = vmax.f32 %v4069_v60, 0.0  ;;  %v4257_v3 = vmax.f32 %v4182_v22, 0.0 }
 0x54d   :  { %v4306_v36 = vpack.c.bf16 %v4254_v10, %v4250_v55  ;;  %v4308_v8 = vpack.c.bf16 %v4256_v2, %v4252_v32 }
 0x54e   :  { %v4307_v12 = vpack.c.bf16 %v4255_v56, %v4251_v35  ;;  %v4309_v41 = vpack.c.bf16 %v4257_v3, %v4253_v54 }
 0x54f   :  { %v4072_v28 = vpop.f32.mrb[140].mxu0  ;;  %v4185_v63 = vpop.f32.mrb[140].mxu1 }
 0x550   :  { %v4073_v4 = vadd.f32 %v4072_v28, %v7626_v59  ;;  %v4186_v39 = vadd.f32 %v4185_v63, %v7629_v25  ;;  %v4074_v11 = vpop.f32.mrb[141].mxu0  ;;  %v4187_v38 = vpop.f32.mrb[141].mxu1  ;;  %4641 = vmatprep.mubr.bf16.mxu0 %v4307_v12  ;;  %4738 = vmatprep.mubr.bf16.mxu1 %v4309_v41 }
 0x551   :  { %v4075_v51 = vadd.f32 %v4074_v11, %v7632_v53  ;;  %v4188_v31 = vadd.f32 %v4187_v38, %v7635_v61  ;;  %v4076_v40 = vpop.f32.mrb[142].mxu0  ;;  %v4189_v14 = vpop.f32.mrb[142].mxu1  ;;  %4642 = vmatmul.mubr.bf16.gmra.mrb[168].mxu0 %v4306_v36  ;;  %4739 = vmatmul.mubr.bf16.gmra.mrb[168].mxu1 %v4308_v8 }
 0x552   :  { %v4077_v26 = vadd.f32 %v4076_v40, %v7626_v59  ;;  %v4190_v45 = vadd.f32 %v4189_v14, %v7629_v25  ;;  %v4078_v0 = vpop.f32.mrb[143].mxu0  ;;  %v4191_v9 = vpop.f32.mrb[143].mxu1  ;;  %v4258_v55 = vmax.f32 %v4073_v4, 0.0  ;;  %v4260_v32 = vmax.f32 %v4186_v39, 0.0 }
 0x553   :  { %v4079_v60 = vadd.f32 %v4078_v0, %v7632_v53  ;;  %v4192_v22 = vadd.f32 %v4191_v9, %v7635_v61  ;;  %v4259_v35 = vmax.f32 %v4075_v51, 0.0  ;;  %v4261_v54 = vmax.f32 %v4188_v31, 0.0 }
 0x554   :  { %v4262_v10 = vmax.f32 %v4077_v26, 0.0  ;;  %v4264_v2 = vmax.f32 %v4190_v45, 0.0 }
 0x555   :  { %v4263_v56 = vmax.f32 %v4079_v60, 0.0  ;;  %v4265_v3 = vmax.f32 %v4192_v22, 0.0 }
 0x556   :  { %v4310_v12 = vpack.c.bf16 %v4262_v10, %v4258_v55  ;;  %v4312_v41 = vpack.c.bf16 %v4264_v2, %v4260_v32 }
 0x557   :  { %v4311_v28 = vpack.c.bf16 %v4263_v56, %v4259_v35  ;;  %v4313_v63 = vpack.c.bf16 %v4265_v3, %v4261_v54 }
 0x558   :  { %v4082_v11 = vpop.f32.mrb[144].mxu0  ;;  %v4195_v38 = vpop.f32.mrb[144].mxu1 }
 0x559   :  { %v4083_v36 = vadd.f32 %v4082_v11, %v7626_v59  ;;  %v4196_v8 = vadd.f32 %v4195_v38, %v7629_v25  ;;  %v4084_v40 = vpop.f32.mrb[145].mxu0  ;;  %v4197_v14 = vpop.f32.mrb[145].mxu1  ;;  %4649 = vmatprep.mubr.bf16.mxu0 %v4311_v28  ;;  %4746 = vmatprep.mubr.bf16.mxu1 %v4313_v63 }
 0x55a   :  { %v4085_v4 = vadd.f32 %v4084_v40, %v7632_v53  ;;  %v4198_v39 = vadd.f32 %v4197_v14, %v7635_v61  ;;  %v4086_v51 = vpop.f32.mrb[146].mxu0  ;;  %v4199_v31 = vpop.f32.mrb[146].mxu1  ;;  %4650 = vmatmul.mubr.bf16.gmra.mrb[172].mxu0 %v4310_v12  ;;  %4747 = vmatmul.mubr.bf16.gmra.mrb[172].mxu1 %v4312_v41 }
 0x55b   :  { %v4087_v26 = vadd.f32 %v4086_v51, %v7626_v59  ;;  %v4200_v45 = vadd.f32 %v4199_v31, %v7629_v25  ;;  %v4088_v0 = vpop.f32.mrb[147].mxu0  ;;  %v4201_v9 = vpop.f32.mrb[147].mxu1  ;;  %v4266_v55 = vmax.f32 %v4083_v36, 0.0  ;;  %v4268_v32 = vmax.f32 %v4196_v8, 0.0 }
 0x55c   :  { %v4089_v60 = vadd.f32 %v4088_v0, %v7632_v53  ;;  %v4202_v22 = vadd.f32 %v4201_v9, %v7635_v61  ;;  %v4267_v35 = vmax.f32 %v4085_v4, 0.0  ;;  %v4269_v54 = vmax.f32 %v4198_v39, 0.0 }
 0x55d   :  { %v4270_v10 = vmax.f32 %v4087_v26, 0.0  ;;  %v4272_v2 = vmax.f32 %v4200_v45, 0.0 }
 0x55e   :  { %v4271_v56 = vmax.f32 %v4089_v60, 0.0  ;;  %v4273_v3 = vmax.f32 %v4202_v22, 0.0 }
 0x55f   :  { %v4314_v28 = vpack.c.bf16 %v4270_v10, %v4266_v55  ;;  %v4316_v63 = vpack.c.bf16 %v4272_v2, %v4268_v32 }
 0x560   :  { %v4315_v11 = vpack.c.bf16 %v4271_v56, %v4267_v35  ;;  %v4317_v38 = vpack.c.bf16 %v4273_v3, %v4269_v54 }
 0x561   :  { %v4092_v40 = vpop.f32.mrb[148].mxu0  ;;  %v4205_v14 = vpop.f32.mrb[148].mxu1 }
 0x562   :  { %v4093_v12 = vadd.f32 %v4092_v40, %v7626_v59  ;;  %v4206_v41 = vadd.f32 %v4205_v14, %v7629_v25  ;;  %v4094_v51 = vpop.f32.mrb[149].mxu0  ;;  %v4207_v31 = vpop.f32.mrb[149].mxu1  ;;  %4657 = vmatprep.mubr.bf16.mxu0 %v4315_v11  ;;  %4754 = vmatprep.mubr.bf16.mxu1 %v4317_v38 }
 0x563   :  { %v4095_v36 = vadd.f32 %v4094_v51, %v7632_v53  ;;  %v4208_v8 = vadd.f32 %v4207_v31, %v7635_v61  ;;  %v4096_v4 = vpop.f32.mrb[150].mxu0  ;;  %v4209_v39 = vpop.f32.mrb[150].mxu1  ;;  %4658 = vmatmul.mubr.bf16.gmra.mrb[176].mxu0 %v4314_v28  ;;  %4755 = vmatmul.mubr.bf16.gmra.mrb[176].mxu1 %v4316_v63 }
 0x564   :  { %v4097_v26 = vadd.f32 %v4096_v4, %v7626_v59  ;;  %v4210_v45 = vadd.f32 %v4209_v39, %v7629_v25  ;;  %v4098_v0 = vpop.f32.mrb[151].mxu0  ;;  %v4211_v9 = vpop.f32.mrb[151].mxu1  ;;  %v4274_v55 = vmax.f32 %v4093_v12, 0.0  ;;  %v4276_v32 = vmax.f32 %v4206_v41, 0.0 }
 0x565   :  { %v4099_v60 = vadd.f32 %v4098_v0, %v7632_v53  ;;  %v4212_v22 = vadd.f32 %v4211_v9, %v7635_v61  ;;  %v4275_v35 = vmax.f32 %v4095_v36, 0.0  ;;  %v4277_v54 = vmax.f32 %v4208_v8, 0.0 }
 0x566   :  { %v4278_v10 = vmax.f32 %v4097_v26, 0.0  ;;  %v4280_v2 = vmax.f32 %v4210_v45, 0.0 }
 0x567   :  { %v4279_v56 = vmax.f32 %v4099_v60, 0.0  ;;  %v4281_v3 = vmax.f32 %v4212_v22, 0.0 }
 0x568   :  { %v4318_v11 = vpack.c.bf16 %v4278_v10, %v4274_v55  ;;  %v4320_v38 = vpack.c.bf16 %v4280_v2, %v4276_v32 }
 0x569   :  { %v4319_v40 = vpack.c.bf16 %v4279_v56, %v4275_v35  ;;  %v4321_v14 = vpack.c.bf16 %v4281_v3, %v4277_v54 }
 0x56a   :  { %v4102_v51 = vpop.f32.mrb[152].mxu0  ;;  %v4215_v31 = vpop.f32.mrb[152].mxu1 }
 0x56b   :  { %v4103_v28 = vadd.f32 %v4102_v51, %v7626_v59  ;;  %v4216_v63 = vadd.f32 %v4215_v31, %v7629_v25  ;;  %v4104_v4 = vpop.f32.mrb[153].mxu0  ;;  %v4217_v39 = vpop.f32.mrb[153].mxu1  ;;  %4665 = vmatprep.mubr.bf16.mxu0 %v4319_v40  ;;  %4762 = vmatprep.mubr.bf16.mxu1 %v4321_v14 }
 0x56c   :  { %v4105_v12 = vadd.f32 %v4104_v4, %v7632_v53  ;;  %v4218_v41 = vadd.f32 %v4217_v39, %v7635_v61  ;;  %v4106_v36 = vpop.f32.mrb[154].mxu0  ;;  %v4219_v8 = vpop.f32.mrb[154].mxu1  ;;  %4666 = vmatmul.mubr.bf16.gmra.mrb[180].mxu0 %v4318_v11  ;;  %4763 = vmatmul.mubr.bf16.gmra.mrb[180].mxu1 %v4320_v38 }
 0x56d   :  { %v4107_v26 = vadd.f32 %v4106_v36, %v7626_v59  ;;  %v4220_v45 = vadd.f32 %v4219_v8, %v7629_v25  ;;  %v4108_v0 = vpop.f32.mrb[155].mxu0  ;;  %v4221_v9 = vpop.f32.mrb[155].mxu1  ;;  %v4282_v55 = vmax.f32 %v4103_v28, 0.0  ;;  %v4284_v32 = vmax.f32 %v4216_v63, 0.0 }
 0x56e   :  { %v4109_v60 = vadd.f32 %v4108_v0, %v7632_v53  ;;  %v4222_v22 = vadd.f32 %v4221_v9, %v7635_v61  ;;  %v4283_v35 = vmax.f32 %v4105_v12, 0.0  ;;  %v4285_v54 = vmax.f32 %v4218_v41, 0.0 }
 0x56f   :  { %v4286_v10 = vmax.f32 %v4107_v26, 0.0  ;;  %v4288_v2 = vmax.f32 %v4220_v45, 0.0 }
 0x570   :  { %v4287_v56 = vmax.f32 %v4109_v60, 0.0  ;;  %v4289_v3 = vmax.f32 %v4222_v22, 0.0 }
 0x571   :  { %v4322_v40 = vpack.c.bf16 %v4286_v10, %v4282_v55  ;;  %v4324_v14 = vpack.c.bf16 %v4288_v2, %v4284_v32 }
 0x572   :  { %v4323_v51 = vpack.c.bf16 %v4287_v56, %v4283_v35  ;;  %v4325_v31 = vpack.c.bf16 %v4289_v3, %v4285_v54 }
 0x573   :  { %v4112_v4 = vpop.f32.mrb[156].mxu0  ;;  %v4225_v39 = vpop.f32.mrb[156].mxu1 }
 0x574   :  { %v4113_v11 = vadd.f32 %v4112_v4, %v7626_v59  ;;  %v4226_v38 = vadd.f32 %v4225_v39, %v7629_v25  ;;  %v4114_v36 = vpop.f32.mrb[157].mxu0  ;;  %v4227_v8 = vpop.f32.mrb[157].mxu1  ;;  %4673 = vmatprep.mubr.bf16.mxu0 %v4323_v51  ;;  %4770 = vmatprep.mubr.bf16.mxu1 %v4325_v31 }
 0x575   :  { %v4115_v28 = vadd.f32 %v4114_v36, %v7632_v53  ;;  %v4228_v63 = vadd.f32 %v4227_v8, %v7635_v61  ;;  %v4116_v12 = vpop.f32.mrb[158].mxu0  ;;  %v4229_v41 = vpop.f32.mrb[158].mxu1  ;;  %4674 = vmatmul.mubr.bf16.gmra.mrb[184].mxu0 %v4322_v40  ;;  %4771 = vmatmul.mubr.bf16.gmra.mrb[184].mxu1 %v4324_v14 }
 0x576   :  { %v4117_v26 = vadd.f32 %v4116_v12, %v7626_v59  ;;  %v4230_v45 = vadd.f32 %v4229_v41, %v7629_v25  ;;  %v4118_v0 = vpop.f32.mrb[159].mxu0  ;;  %v4231_v9 = vpop.f32.mrb[159].mxu1  ;;  %v4290_v55 = vmax.f32 %v4113_v11, 0.0  ;;  %v4292_v32 = vmax.f32 %v4226_v38, 0.0 }
 0x577   :  { %v4119_v60 = vadd.f32 %v4118_v0, %v7632_v53  ;;  %v4232_v22 = vadd.f32 %v4231_v9, %v7635_v61  ;;  %v4291_v35 = vmax.f32 %v4115_v28, 0.0  ;;  %v4293_v54 = vmax.f32 %v4228_v63, 0.0  ;;  %v7704_v61 = vld [vmem:[%s7773_s7 + $0x11] ss:$0 sm:$0xff]  ;;  %s6431_s7 = smov [#allocation11]  }
 0x578   :  { %v4294_v10 = vmax.f32 %v4117_v26, 0.0  ;;  %v4296_v2 = vmax.f32 %v4230_v45, 0.0  ;;  %s4840_s2 = sshll.u32 %s6431_s7, 4  ;;  %s4841_s2 = int_to_ptr.vmem [resolvable:$true] %s4840_s2 }
 0x579   :  { %v4295_v56 = vmax.f32 %v4119_v60, 0.0  ;;  %v4297_v3 = vmax.f32 %v4232_v22, 0.0  ;;  %s6391_s17 = scalar_lea.vmem %s4841_s2, 2048  ;;  %p6396_p13 = scmp.lt.s32.totalorder %s4841_s2, %s4841_s2 }
 0x57a   :  { %v4326_v51 = vpack.c.bf16 %v4294_v10, %v4290_v55  ;;  %v4328_v59 = vpack.c.bf16 %v4296_v2, %v4292_v32  ;;  %p6392_p12 = scmp.ne.s32.totalorder %s4841_s2, %s6391_s17  ;;  %p6397_p0 = scmp.lt.s32.totalorder %s6391_s17, %s6391_s17 }
 0x57b   :  { %v4327_v31 = vpack.c.bf16 %v4295_v56, %v4291_v35  ;;  %v4329_v25 = vpack.c.bf16 %v4297_v3, %v4293_v54 }
 0x57c   :  { %p6398_p1 = por %p6397_p0, %p6396_p13 }
 0x57d   :  { %4681 = vmatprep.mubr.bf16.mxu0 %v4327_v31  ;;  %4778 = vmatprep.mubr.bf16.mxu1 %v4329_v25 }
 0x57e   :  { %4682 = vmatmul.mubr.bf16.gmra.mrb[188].mxu0 %v4326_v51  ;;  %4779 = vmatmul.mubr.bf16.gmra.mrb[188].mxu1 %v4328_v59  ;;  %p6399_p2 = pnand %p6398_p1, %p6392_p12 }
 0x612   :  { %v5386_v40 = vpop.f32.mrb[160].mxu0  ;;  %v5450_v53 = vpop.f32.mrb[160].mxu1 }
 0x613   :  { %v5387_v14 = vpop.f32.mrb[161].mxu0  ;;  %v5451_v4 = vpop.f32.mrb[161].mxu1 }
 0x614   :  { %v5388_v39 = vadd.f32 %v5387_v14, %v5386_v40  ;;  %v5452_v11 = vadd.f32 %v5451_v4, %v5450_v53  ;;  %v5389_v38 = vpop.f32.mrb[162].mxu0  ;;  %v5453_v36 = vpop.f32.mrb[162].mxu1 }
 0x615   :  { %v5390_v8 = vpop.f32.mrb[163].mxu0  ;;  %v5454_v28 = vpop.f32.mrb[163].mxu1 }
 0x616   :  { %v4628_v63 = vadd.f32 %v5388_v39, %v7704_v61  ;;  %v5391_v12 = vadd.f32 %v5390_v8, %v5389_v38  ;;  %v5455_v41 = vadd.f32 %v5454_v28, %v5453_v36 }
 0x618   :  { %v4725_v26 = vadd.f32 %v5452_v11, %v4628_v63  ;;  %v4631_v45 = vadd.f32 %v5391_v12, %v7704_v61 }
 0x61a   :  { %v4787_v0 = vadd.f32 %v4725_v26, %v3770_v19  ;;  %v4728_v9 = vadd.f32 %v5455_v41, %v4631_v45 }
 0x61c   :  { %v5392_v60 = vpop.f32.mrb[164].mxu0  ;;  %v5456_v22 = vpop.f32.mrb[164].mxu1  ;;  %v4803_v10 = vmax.f32 %v4787_v0, 0.0  ;;  %v4788_v2 = vadd.f32 %v4728_v9, %v3771_v18 }
 0x61d   :  { %v5393_v55 = vpop.f32.mrb[165].mxu0  ;;  %v5457_v32 = vpop.f32.mrb[165].mxu1 }
 0x61e   :  { %v5394_v35 = vadd.f32 %v5393_v55, %v5392_v60  ;;  %v5458_v54 = vadd.f32 %v5457_v32, %v5456_v22  ;;  %v5395_v56 = vpop.f32.mrb[166].mxu0  ;;  %v5459_v3 = vpop.f32.mrb[166].mxu1  ;;  %4819 = vst [vmem:[#allocation11] sm:$0xff] %v4803_v10  ;;  %v4804_v31 = vmax.f32 %v4788_v2, 0.0 }
 0x61f   :  { %v5396_v51 = vpop.f32.mrb[167].mxu0  ;;  %v5460_v59 = vpop.f32.mrb[167].mxu1 }
 0x620   :  { %v4636_v49 = vadd.f32 %v5394_v35, %v7704_v61  ;;  %v5397_v19 = vadd.f32 %v5396_v51, %v5395_v56  ;;  %v5461_v25 = vadd.f32 %v5460_v59, %v5459_v3  ;;  %4820 = vst [vmem:[#allocation11 + $0x8] sm:$0xff] %v4804_v31 }
 0x622   :  { %v4733_v40 = vadd.f32 %v5458_v54, %v4636_v49  ;;  %v4639_v53 = vadd.f32 %v5397_v19, %v7704_v61 }
 0x624   :  { %v4789_v43 = vadd.f32 %v4733_v40, %v3772_v27  ;;  %v4736_v18 = vadd.f32 %v5461_v25, %v4639_v53  ;;  %v5398_v14 = vpop.f32.mrb[168].mxu0  ;;  %v5462_v4 = vpop.f32.mrb[168].mxu1 }
 0x625   :  { %v5399_v39 = vpop.f32.mrb[169].mxu0  ;;  %v5463_v11 = vpop.f32.mrb[169].mxu1 }
 0x626   :  { %v4805_v38 = vmax.f32 %v4789_v43, 0.0  ;;  %v4790_v36 = vadd.f32 %v4736_v18, %v3773_v44  ;;  %v5400_v8 = vadd.f32 %v5399_v39, %v5398_v14  ;;  %v5464_v28 = vadd.f32 %v5463_v11, %v5462_v4  ;;  %v5401_v63 = vpop.f32.mrb[170].mxu0  ;;  %v5465_v12 = vpop.f32.mrb[170].mxu1 }
 0x627   :  { %v5402_v41 = vpop.f32.mrb[171].mxu0  ;;  %v5466_v26 = vpop.f32.mrb[171].mxu1 }
 0x628   :  { %4821 = vst [vmem:[#allocation11 + $0x10] sm:$0xff] %v4805_v38  ;;  %v4806_v45 = vmax.f32 %v4790_v36, 0.0  ;;  %v4644_v42 = vadd.f32 %v5400_v8, %v7704_v61  ;;  %v5403_v27 = vadd.f32 %v5402_v41, %v5401_v63  ;;  %v5467_v0 = vadd.f32 %v5466_v26, %v5465_v12 }
 0x62a   :  { %4822 = vst [vmem:[#allocation11 + $0x18] sm:$0xff] %v4806_v45  ;;  %v4741_v9 = vadd.f32 %v5464_v28, %v4644_v42  ;;  %v4647_v60 = vadd.f32 %v5403_v27, %v7704_v61 }
 0x62c   :  { %v4791_v21 = vadd.f32 %v4741_v9, %v3774_v58  ;;  %v4744_v44 = vadd.f32 %v5467_v0, %v4647_v60 }
 0x62d   :  { %v5404_v22 = vpop.f32.mrb[172].mxu0  ;;  %v5468_v55 = vpop.f32.mrb[172].mxu1 }
 0x62e   :  { %v5405_v32 = vpop.f32.mrb[173].mxu0  ;;  %v5469_v10 = vpop.f32.mrb[173].mxu1  ;;  %v4807_v2 = vmax.f32 %v4791_v21, 0.0  ;;  %v4792_v35 = vadd.f32 %v4744_v44, %v3775_v16 }
 0x62f   :  { %v5406_v54 = vadd.f32 %v5405_v32, %v5404_v22  ;;  %v5470_v56 = vadd.f32 %v5469_v10, %v5468_v55  ;;  %v5407_v3 = vpop.f32.mrb[174].mxu0  ;;  %v5471_v51 = vpop.f32.mrb[174].mxu1 }
 0x630   :  { %v5408_v59 = vpop.f32.mrb[175].mxu0  ;;  %v5472_v31 = vpop.f32.mrb[175].mxu1  ;;  %4823 = vst [vmem:[#allocation11 + $0x20] sm:$0xff] %v4807_v2  ;;  %v4808_v49 = vmax.f32 %v4792_v35, 0.0 }
 0x631   :  { %v4652_v29 = vadd.f32 %v5406_v54, %v7704_v61  ;;  %v5409_v58 = vadd.f32 %v5408_v59, %v5407_v3  ;;  %v5473_v19 = vadd.f32 %v5472_v31, %v5471_v51 }
 0x632   :  { %4824 = vst [vmem:[#allocation11 + $0x28] sm:$0xff] %v4808_v49 }
 0x633   :  { %v4749_v25 = vadd.f32 %v5470_v56, %v4652_v29  ;;  %v4655_v40 = vadd.f32 %v5409_v58, %v7704_v61 }
 0x635   :  { %v4793_v17 = vadd.f32 %v4749_v25, %v3776_v20  ;;  %v4752_v16 = vadd.f32 %v5473_v19, %v4655_v40 }
 0x636   :  { %v5410_v53 = vpop.f32.mrb[176].mxu0  ;;  %v5474_v43 = vpop.f32.mrb[176].mxu1 }
 0x637   :  { %v5411_v18 = vpop.f32.mrb[177].mxu0  ;;  %v5475_v14 = vpop.f32.mrb[177].mxu1  ;;  %v4809_v4 = vmax.f32 %v4793_v17, 0.0  ;;  %v4794_v39 = vadd.f32 %v4752_v16, %v3777_v6 }
 0x638   :  { %v5412_v11 = vadd.f32 %v5411_v18, %v5410_v53  ;;  %v5476_v38 = vadd.f32 %v5475_v14, %v5474_v43  ;;  %v5413_v36 = vpop.f32.mrb[178].mxu0  ;;  %v5477_v8 = vpop.f32.mrb[178].mxu1 }
 0x639   :  { %v5414_v28 = vpop.f32.mrb[179].mxu0  ;;  %v5478_v63 = vpop.f32.mrb[179].mxu1  ;;  %4825 = vst [vmem:[#allocation11 + $0x30] sm:$0xff] %v4809_v4  ;;  %v4810_v12 = vmax.f32 %v4794_v39, 0.0 }
 0x63a   :  { %v4660_v48 = vadd.f32 %v5412_v11, %v7704_v61  ;;  %v5415_v20 = vadd.f32 %v5414_v28, %v5413_v36  ;;  %v5479_v41 = vadd.f32 %v5478_v63, %v5477_v8 }
 0x63b   :  { %4826 = vst [vmem:[#allocation11 + $0x38] sm:$0xff] %v4810_v12 }
 0x63c   :  { %v4757_v26 = vadd.f32 %v5476_v38, %v4660_v48  ;;  %v4663_v45 = vadd.f32 %v5415_v20, %v7704_v61 }
 0x63e   :  { %v4795_v30 = vadd.f32 %v4757_v26, %v3778_v1  ;;  %v4760_v6 = vadd.f32 %v5479_v41, %v4663_v45 }
 0x63f   :  { %v5416_v42 = vpop.f32.mrb[180].mxu0  ;;  %v5480_v27 = vpop.f32.mrb[180].mxu1 }
 0x640   :  { %v5417_v0 = vpop.f32.mrb[181].mxu0  ;;  %v5481_v9 = vpop.f32.mrb[181].mxu1  ;;  %v4811_v60 = vmax.f32 %v4795_v30, 0.0  ;;  %v4796_v21 = vadd.f32 %v4760_v6, %v3779_v47 }
 0x641   :  { %v5418_v44 = vadd.f32 %v5417_v0, %v5416_v42  ;;  %v5482_v22 = vadd.f32 %v5481_v9, %v5480_v27  ;;  %v5419_v55 = vpop.f32.mrb[182].mxu0  ;;  %v5483_v32 = vpop.f32.mrb[182].mxu1 }
 0x642   :  { %v5420_v10 = vpop.f32.mrb[183].mxu0  ;;  %v5484_v2 = vpop.f32.mrb[183].mxu1  ;;  %4827 = vst [vmem:[#allocation11 + $0x40] sm:$0xff] %v4811_v60  ;;  %v4812_v35 = vmax.f32 %v4796_v21, 0.0 }
 0x643   :  { %v4668_v7 = vadd.f32 %v5418_v44, %v7704_v61  ;;  %v5421_v1 = vadd.f32 %v5420_v10, %v5419_v55  ;;  %v5485_v54 = vadd.f32 %v5484_v2, %v5483_v32 }
 0x644   :  { %4828 = vst [vmem:[#allocation11 + $0x48] sm:$0xff] %v4812_v35 }
 0x645   :  { %v4765_v56 = vadd.f32 %v5482_v22, %v4668_v7  ;;  %v4671_v3 = vadd.f32 %v5421_v1, %v7704_v61 }
 0x647   :  { %v4797_v34 = vadd.f32 %v4765_v56, %v3780_v62  ;;  %v4768_v47 = vadd.f32 %v5485_v54, %v4671_v3 }
 0x648   :  { %v5422_v51 = vpop.f32.mrb[184].mxu0  ;;  %v5486_v59 = vpop.f32.mrb[184].mxu1 }
 0x649   :  { %v5423_v31 = vpop.f32.mrb[185].mxu0  ;;  %v5487_v49 = vpop.f32.mrb[185].mxu1  ;;  %v4813_v29 = vmax.f32 %v4797_v34, 0.0  ;;  %v4798_v58 = vadd.f32 %v4768_v47, %v3781_v33 }
 0x64a   :  { %v5424_v19 = vadd.f32 %v5423_v31, %v5422_v51  ;;  %v5488_v25 = vadd.f32 %v5487_v49, %v5486_v59  ;;  %v5425_v40 = vpop.f32.mrb[186].mxu0  ;;  %v5489_v17 = vpop.f32.mrb[186].mxu1 }
 0x64b   :  { %v5426_v16 = vpop.f32.mrb[187].mxu0  ;;  %v5490_v53 = vpop.f32.mrb[187].mxu1  ;;  %4829 = vst [vmem:[#allocation11 + $0x50] sm:$0xff] %v4813_v29  ;;  %v4814_v43 = vmax.f32 %v4798_v58, 0.0 }
 0x64c   :  { %v4676_v15 = vadd.f32 %v5424_v19, %v7704_v61  ;;  %v5427_v62 = vadd.f32 %v5426_v16, %v5425_v40  ;;  %v5491_v18 = vadd.f32 %v5490_v53, %v5489_v17 }
 0x64d   :  { %4830 = vst [vmem:[#allocation11 + $0x58] sm:$0xff] %v4814_v43 }
 0x64e   :  { %v4773_v14 = vadd.f32 %v5488_v25, %v4676_v15  ;;  %v4679_v4 = vadd.f32 %v5427_v62, %v7704_v61 }
 0x650   :  { %v4799_v52 = vadd.f32 %v4773_v14, %v3782_v57  ;;  %v4776_v33 = vadd.f32 %v5491_v18, %v4679_v4 }
 0x651   :  { %v5428_v39 = vpop.f32.mrb[188].mxu0  ;;  %v5492_v11 = vpop.f32.mrb[188].mxu1 }
 0x652   :  { %v5429_v38 = vpop.f32.mrb[189].mxu0  ;;  %v5493_v36 = vpop.f32.mrb[189].mxu1  ;;  %v4815_v8 = vmax.f32 %v4799_v52, 0.0  ;;  %v4800_v28 = vadd.f32 %v4776_v33, %v3783_v23 }
 0x653   :  { %v5430_v63 = vadd.f32 %v5429_v38, %v5428_v39  ;;  %v5494_v12 = vadd.f32 %v5493_v36, %v5492_v11  ;;  %v5431_v48 = vpop.f32.mrb[190].mxu0  ;;  %v5495_v20 = vpop.f32.mrb[190].mxu1 }
 0x654   :  { %v5432_v41 = vpop.f32.mrb[191].mxu0  ;;  %v5496_v26 = vpop.f32.mrb[191].mxu1  ;;  %4831 = vst [vmem:[#allocation11 + $0x60] sm:$0xff] %v4815_v8  ;;  %v4816_v45 = vmax.f32 %v4800_v28, 0.0 }
 0x655   :  { %v4684_v46 = vadd.f32 %v5430_v63, %v7704_v61  ;;  %v5433_v57 = vadd.f32 %v5432_v41, %v5431_v48  ;;  %v5497_v30 = vadd.f32 %v5496_v26, %v5495_v20 }
 0x656   :  { %4832 = vst [vmem:[#allocation11 + $0x68] sm:$0xff] %v4816_v45 }
 0x657   :  { %v4781_v6 = vadd.f32 %v5494_v12, %v4684_v46  ;;  %v4687_v42 = vadd.f32 %v5433_v57, %v7704_v61 }
 0x659   :  { %v4801_v13 = vadd.f32 %v4781_v6, %v3784_v37  ;;  %v4784_v23 = vadd.f32 %v5497_v30, %v4687_v42 }
 0x65b   :  { %v4817_v27 = vmax.f32 %v4801_v13, 0.0  ;;  %v4802_v0 = vadd.f32 %v4784_v23, %v3785_v5 }
 0x65d   :  { %4833 = vst [vmem:[#allocation11 + $0x70] sm:$0xff] %v4817_v27  ;;  %v4818_v9 = vmax.f32 %v4802_v0, 0.0 }
 0x65f   :  { %4834 = vst [vmem:[#allocation11 + $0x78] sm:$0xff] %v4818_v9 }
 0x660   :  { %6402 = shalt.err (!%p6399_p2)
}
 0x661   :  { %s6403_s10 = scalar_lea.hbm %s7774_s8, 2048 }
 0x662   :  { %p6404_p3 = scmp.ne.s32.totalorder %s7774_s8, %s6403_s10  ;;  %p6407_p4 = scmp.lt.u32.totalorder %s6403_s10, %s7774_s8 }
 0x664   :  { %p6409_p5 = pnand %p6407_p4, %p6404_p3 }
 0x666   :  { %6412 = shalt.err (!%p6409_p5)
}
 0x667   :  { %s6432_s15 = smov 128   ;;  %s6433_s16 = smov 8  }
 0x668   :  { %4846 = dma.vmem_to_hbm [thread:$0]  %s4841_s2, 2048, %s7774_s8, [#allocation4], %s6432_s15, %s6432_s15, %s6433_s16  }
 0x669   :  { %6419 = dma.done.wait [#allocation4], 2048  }
 0x66a   :  { %6420 = vsyncadd [#allocation4], 4294965248 }
 0x66b   :  { %4850 = vsyncpa [#allocation3], 1 }
 0x66c   :  { %4851 = vsyncpa [#allocation6], 1 }
 0x66d   :  { %4852 = vsyncpa [#allocation9], 1 }
 0x66e   :  { %4853 = vsyncpa [#allocation4], 1 }

// kernel: tpu_custom_call.1
= control target key start
LH: loop header
LB: loop body
LE: loop exit
PB: predicated region body
PF: predicated region fallthrough
CT: control target
= control target key end

     0   :  { %13 = vsyncpa [#allocation3], 0  ;;  %s7766_s0 = inlined_call_operand.vmem [shape: bf16[128,20], index: 0, kind: input, shape index: {}]   ;;  %s7767_s1 = inlined_call_operand.vmem [shape: bf16[20,512], index: 1, kind: input, shape index: {}]   ;;  %s7768_s2 = inlined_call_operand.hbm [shape: bf16[512,512], index: 2, kind: input, shape index: {}]   ;;  %s7769_s3 = inlined_call_operand.hbm [shape: bf16[512,512], index: 3, kind: input, shape index: {}]   ;;  %s7770_s4 = inlined_call_operand.hbm [shape: bf16[512,128], index: 4, kind: input, shape index: {}]   ;;  %s7771_s5 = inlined_call_operand.hbm [shape: bf16[128,512], index: 5, kind: input, shape index: {}]   ;;  %s7772_s6 = inlined_call_operand.hbm [shape: bf16[512,128], index: 6, kind: input, shape index: {}]   ;;  %s7773_s7 = inlined_call_operand.vmem [shape: f32[1,2304], index: 7, kind: input, shape index: {}]   ;;  %s7774_s8 = inlined_call_operand.hbm [shape: f32[128,128], index: 8, kind: output, shape index: {}]  }
   0x1   :  { %14 = vsyncpa [#allocation6], 0 }
   0x2   :  { %15 = vsyncpa [#allocation9], 0 }
   0x3   :  { %16 = vsyncpa [#allocation4], 0  ;;  %s6421_s27 = smov [#allocation5]   ;;  %s6422_s29 = smov [#allocation8]  }
   0x4   :  { %s38_s28 = sshll.u32 %s6421_s27, 4  ;;  %s62_s30 = sshll.u32 %s6422_s29, 4  ;;  %s39_s28 = int_to_ptr.vmem [resolvable:$true] %s38_s28  ;;  %s6479_s30 = int_to_ptr.vmem [resolvable:$true] %s62_s30 }
   0x5   :  { %s6281_s11 = scalar_lea.hbm %s7769_s3, 16384 }
   0x6   :  { %p6282_p0 = scmp.ne.s32.totalorder %s7769_s3, %s6281_s11  ;;  %p6285_p1 = scmp.lt.u32.totalorder %s6281_s11, %s7769_s3 }
   0x8   :  { %p6287_p2 = pnand %p6285_p1, %p6282_p0 }
   0xa   :  { %6290 = shalt.err (!%p6287_p2)
}
   0xb   :  { %s6291_s16 = scalar_lea.vmem %s39_s28, 16384  ;;  %p6296_p4 = scmp.lt.s32.totalorder %s39_s28, %s39_s28 }
   0xc   :  { %p6292_p3 = scmp.ne.s32.totalorder %s39_s28, %s6291_s16  ;;  %p6297_p5 = scmp.lt.s32.totalorder %s6291_s16, %s6291_s16 }
   0xe   :  { %p6298_p6 = por %p6297_p5, %p6296_p4 }
  0x10   :  { %p6299_p7 = pnand %p6298_p6, %p6292_p3 }
  0x12   :  { %6302 = shalt.err (!%p6299_p7)
}
  0x13   :  { %s6423_s17 = smov 256   ;;  %s6424_s18 = smov 16  }
  0x14   :  { %44 = dma.hbm_to_vmem [thread:$0]  %s7769_s3, 16384, %s39_s28, [#allocation6], %s6423_s17, %s6423_s17, %s6424_s18  }
  0x15   :  { %s6303_s23 = scalar_lea.hbm %s7771_s5, 4096 }
  0x16   :  { %p6304_p8 = scmp.ne.s32.totalorder %s7771_s5, %s6303_s23  ;;  %p6307_p9 = scmp.lt.u32.totalorder %s6303_s23, %s7771_s5 }
  0x18   :  { %p6309_p10 = pnand %p6307_p9, %p6304_p8 }
  0x1a   :  { %6312 = shalt.err (!%p6309_p10)
}
  0x1b   :  { %s6313_s29 = scalar_lea.vmem %s6479_s30, 4096  ;;  %p6318_p12 = scmp.lt.s32.totalorder %s6479_s30, %s6479_s30 }
  0x1c   :  { %p6314_p11 = scmp.ne.s32.totalorder %s6479_s30, %s6313_s29  ;;  %p6319_p13 = scmp.lt.s32.totalorder %s6313_s29, %s6313_s29 }
  0x1e   :  { %p6320_p0 = por %p6319_p13, %p6318_p12 }
  0x20   :  { %p6321_p1 = pnand %p6320_p0, %p6314_p11 }
  0x22   :  { %6324 = shalt.err (!%p6321_p1)
}
  0x23   :  { %68 = dma.hbm_to_vmem [thread:$0]  %s7771_s5, 4096, %s6479_s30, [#allocation9], %s6423_s17, %s6423_s17, %s6424_s18  }
  0x24   :  { %s6425_s9 = smov [#allocation2]   ;;  %s6426_s11 = smov [#allocation7]  }
  0x25   :  { %s26_s10 = sshll.u32 %s6425_s9, 4  ;;  %s50_s12 = sshll.u32 %s6426_s11, 4  ;;  %s27_s10 = int_to_ptr.vmem [resolvable:$true] %s26_s10  ;;  %s6516_s12 = int_to_ptr.vmem [resolvable:$true] %s50_s12 }
  0x26   :  { %s6325_s15 = scalar_lea.hbm %s7768_s2, 16384 }
  0x27   :  { %p6326_p2 = scmp.ne.s32.totalorder %s7768_s2, %s6325_s15  ;;  %p6329_p3 = scmp.lt.u32.totalorder %s6325_s15, %s7768_s2 }
  0x29   :  { %p6331_p4 = pnand %p6329_p3, %p6326_p2 }
  0x2b   :  { %6334 = shalt.err (!%p6331_p4)
}
  0x2c   :  { %s6335_s5 = scalar_lea.vmem %s27_s10, 16384  ;;  %p6340_p6 = scmp.lt.s32.totalorder %s27_s10, %s27_s10 }
  0x2d   :  { %p6336_p5 = scmp.ne.s32.totalorder %s27_s10, %s6335_s5  ;;  %p6341_p7 = scmp.lt.s32.totalorder %s6335_s5, %s6335_s5 }
  0x2f   :  { %p6342_p8 = por %p6341_p7, %p6340_p6 }
  0x31   :  { %p6343_p9 = pnand %p6342_p8, %p6336_p5 }
  0x33   :  { %6346 = shalt.err (!%p6343_p9)
}
  0x34   :  { %32 = dma.hbm_to_vmem [thread:$0]  %s7768_s2, 16384, %s27_s10, [#allocation3], %s6423_s17, %s6423_s17, %s6424_s18  }
  0x35   :  { %s6347_s25 = scalar_lea.hbm %s7770_s4, 4096 }
  0x36   :  { %p6348_p10 = scmp.ne.s32.totalorder %s7770_s4, %s6347_s25  ;;  %p6351_p11 = scmp.lt.u32.totalorder %s6347_s25, %s7770_s4 }
  0x38   :  { %p6353_p12 = pnand %p6351_p11, %p6348_p10 }
  0x3a   :  { %6356 = shalt.err (!%p6353_p12)
}
  0x3b   :  { %s6357_s28 = scalar_lea.vmem %s6516_s12, 4096  ;;  %p6362_p0 = scmp.lt.s32.totalorder %s6516_s12, %s6516_s12 }
  0x3c   :  { %p6358_p13 = scmp.ne.s32.totalorder %s6516_s12, %s6357_s28  ;;  %p6363_p1 = scmp.lt.s32.totalorder %s6357_s28, %s6357_s28 }
  0x3e   :  { %p6364_p2 = por %p6363_p1, %p6362_p0 }
  0x40   :  { %p6365_p3 = pnand %p6364_p2, %p6358_p13 }
  0x42   :  { %6368 = shalt.err (!%p6365_p3)
}
  0x43   :  { %s6427_s2 = smov 64   ;;  %s6428_s17 = smov 4  }
  0x44   :  { %56 = dma.hbm_to_vmem [thread:$0]  %s7770_s4, 4096, %s6516_s12, [#allocation6], %s6427_s2, %s6427_s2, %s6428_s17  }
  0x45   :  { %s6429_s10 = smov [#allocation10]   ;;  %s6369_s15 = scalar_lea.hbm %s7772_s6, 4096 }
  0x46   :  { %s74_s11 = sshll.u32 %s6429_s10, 4  ;;  %p6370_p4 = scmp.ne.s32.totalorder %s7772_s6, %s6369_s15  ;;  %s75_s11 = int_to_ptr.vmem [resolvable:$true] %s74_s11 }
  0x47   :  { %p6373_p5 = scmp.lt.u32.totalorder %s6369_s15, %s7772_s6 }
  0x49   :  { %p6375_p6 = pnand %p6373_p5, %p6370_p4 }
  0x4b   :  { %6378 = shalt.err (!%p6375_p6)
}
  0x4c   :  { %s6379_s5 = scalar_lea.vmem %s75_s11, 4096  ;;  %p6384_p8 = scmp.lt.s32.totalorder %s75_s11, %s75_s11 }
  0x4d   :  { %p6380_p7 = scmp.ne.s32.totalorder %s75_s11, %s6379_s5  ;;  %p6385_p9 = scmp.lt.s32.totalorder %s6379_s5, %s6379_s5 }
  0x4f   :  { %p6386_p10 = por %p6385_p9, %p6384_p8 }
  0x51   :  { %p6387_p11 = pnand %p6386_p10, %p6380_p7 }
  0x53   :  { %6390 = shalt.err (!%p6387_p11)
}
  0x54   :  { %80 = dma.hbm_to_vmem [thread:$0]  %s7772_s6, 4096, %s75_s11, [#allocation9], %s6427_s2, %s6427_s2, %s6428_s17  }
  0x55   :  { %6413 = dma.done.wait [#allocation3], 16384  }
  0x56   :  { %6414 = vsyncadd [#allocation3], 4294950912 }
  0x57   :  { %6415 = dma.done.wait [#allocation6], 20480  }
  0x58   :  { %6416 = vsyncadd [#allocation6], 4294946816 }
  0x59   :  { %6417 = dma.done.wait [#allocation9], 8192  }
  0x5a   :  { %6418 = vsyncadd [#allocation9], 4294959104  ;;  %v7775_v0 = vmov 0   ;;  %v5767_v1 = vld [vmem:[%s7767_s1 + $0x4] ss:$16 sps:$4 sm:$0xff]   ;;  %vm238_vm0 = vcmask 1041408  }
  0x5b   :  { %283 = vmatprep.mubr.bf16.mxu0 %v7775_v0  ;;  %396 = vmatprep.mubr.bf16.mxu1 %v7775_v0  ;;  %v5769_v2 = vld [vmem:[%s7767_s1] ss:$16 sps:$4 sm:$0xff]   ;;  %vm213_vm1 = vcmask 162816   ;;  %v5779_v8 = vld [vmem:[%s7767_s1 + $0xc] ss:$16 sps:$4 sm:$0xff]  }
  0x5c   :  { %v119_v3 = vld [vmem:[%s7767_s1 + $0x20] sm:$0x33]  ;;  %251 = vmatprep.subr.bf16.mxu0 %v5767_v1  ;;  %v5781_v9 = vld [vmem:[%s7767_s1 + $0x8] ss:$16 sps:$4 sm:$0xff]   ;;  %364 = vmatprep.subr.bf16.mxu1 %v5779_v8  ;;  %v5790_v15 = vld [vmem:[#allocation2 + $0xc] ss:$16 sps:$4 sm:$0xff]  }
  0x5d   :  { %v4867_v4 = vcombine.high %v119_v3, %v119_v3  ;;  %v4866_v5 = vcombine.low %v119_v3, %v119_v3  ;;  %252 = vmatpush1.bf16.msra.mxu0 %v5769_v2  ;;  %v5772_v7 = vld [vmem:[%s7766_s0] sm:$0xff]   ;;  %v120_v10 = vld [vmem:[%s7767_s1 + $0x28] sm:$0x33]  ;;  %365 = vmatpush1.bf16.msra.mxu1 %v5781_v9  ;;  %v5774_v23 = vld [vmem:[%s7766_s0 + $0x10] sm:$0xff]  }
  0x5e   :  { %v4869_v11 = vcombine.high %v120_v10, %v120_v10  ;;  %v4868_v12 = vcombine.low %v120_v10, %v120_v10  ;;  %v5785_v13 = vld [vmem:[#allocation2] ss:$16 sps:$4 sm:$0xff]   ;;  %v5787_v14 = vld [vmem:[#allocation2 + $0x4] ss:$16 sps:$4 sm:$0xff]   ;;  %v5773_v16 = vld [vmem:[%s7766_s0 + $0x8] sm:$0xff]  }
  0x5f   :  { %4870 = vmatprep.subr.msk.bf16.mxu0 %vm238_vm0, %v4867_v4  ;;  %v240_v6 = vsel %vm238_vm0, %v4866_v5, 0  ;;  %v5793_v18 = vld [vmem:[#allocation2 + $0x24] ss:$16 sps:$4 sm:$0xff]   ;;  %v5788_v19 = vld [vmem:[#allocation2 + $0x8] ss:$16 sps:$4 sm:$0xff]  }
  0x60   :  { %4879 = vmatprep.subr.msk.bf16.mxu1 %vm238_vm0, %v4869_v11  ;;  %v246_v17 = vsel %vm238_vm0, %v4868_v12, 0  ;;  %v5791_v20 = vld [vmem:[#allocation2 + $0x20] ss:$16 sps:$4 sm:$0xff]   ;;  %v5796_v21 = vld [vmem:[#allocation2 + $0x2c] ss:$16 sps:$4 sm:$0xff]  }
  0x61   :  { %254 = vmatpush1.bf16.msra.mxu0 %v240_v6  ;;  %367 = vmatpush1.bf16.msra.mxu1 %v246_v17  ;;  %v5799_v22 = vld [vmem:[#allocation2 + $0x44] ss:$16 sps:$4 sm:$0xff]   ;;  %v5794_v24 = vld [vmem:[#allocation2 + $0x28] ss:$16 sps:$4 sm:$0xff]   ;;  %v5797_v25 = vld [vmem:[#allocation2 + $0x40] ss:$16 sps:$4 sm:$0xff]  }
  0x62   :  { %1363 = vmatprep.subr.bf16.mxu0 %v5787_v14  ;;  %1589 = vmatprep.subr.bf16.mxu1 %v5790_v15  ;;  %v5802_v26 = vld [vmem:[#allocation2 + $0x4c] ss:$16 sps:$4 sm:$0xff]   ;;  %v5805_v27 = vld [vmem:[#allocation2 + $0x64] ss:$16 sps:$4 sm:$0xff]   ;;  %v5800_v28 = vld [vmem:[#allocation2 + $0x48] ss:$16 sps:$4 sm:$0xff]  }
  0x63   :  { %v5803_v29 = vld [vmem:[#allocation2 + $0x60] ss:$16 sps:$4 sm:$0xff]   ;;  %v5808_v30 = vld [vmem:[#allocation2 + $0x6c] ss:$16 sps:$4 sm:$0xff]   ;;  %v5811_v31 = vld [vmem:[#allocation2 + $0x84] ss:$16 sps:$4 sm:$0xff]  }
  0x64   :  { %4871 = vmatmul.mubr.msk.bf16.vlgmr.msra.gmra.mrb[0].mxu0 %vm213_vm1, %v5772_v7  ;;  %4880 = vmatmul.mubr.msk.bf16.vlgmr.msra.gmra.mrb[0].mxu1 %vm213_vm1, %v5772_v7  ;;  %v5775_v32 = vld [vmem:[%s7766_s0 + $0x18] sm:$0xff]   ;;  %v5809_v34 = vld [vmem:[#allocation2 + $0x80] ss:$16 sps:$4 sm:$0xff]   ;;  %v5817_v36 = vld [vmem:[#allocation2 + $0xa4] ss:$16 sps:$4 sm:$0xff]  }
  0x65   :  { %293 = vmatprep.mubr.bf16.mxu0 %v7775_v0  ;;  %1364 = vmatpush1.bf16.msra.mxu0 %v5785_v13  ;;  %v5806_v33 = vld [vmem:[#allocation2 + $0x68] ss:$16 sps:$4 sm:$0xff]   ;;  %v5814_v35 = vld [vmem:[#allocation2 + $0x8c] ss:$16 sps:$4 sm:$0xff]   ;;  %v5815_v38 = vld [vmem:[#allocation2 + $0xa0] ss:$16 sps:$4 sm:$0xff]  }
  0x66   :  { %1365 = vmatprep.subr.bf16.mxu0 %v5793_v18  ;;  %406 = vmatprep.mubr.bf16.mxu1 %v7775_v0  ;;  %v5812_v37 = vld [vmem:[#allocation2 + $0x88] ss:$16 sps:$4 sm:$0xff]   ;;  %v5820_v39 = vld [vmem:[#allocation2 + $0xac] ss:$16 sps:$4 sm:$0xff]   ;;  %v5823_v40 = vld [vmem:[#allocation2 + $0xc4] ss:$16 sps:$4 sm:$0xff]  }
  0x67   :  { %1590 = vmatpush1.bf16.msra.mxu1 %v5788_v19  ;;  %v5776_v41 = vld [vmem:[%s7766_s0 + $0x20] sm:$0xff]   ;;  %v5818_v42 = vld [vmem:[#allocation2 + $0xa8] ss:$16 sps:$4 sm:$0xff]   ;;  %v5826_v44 = vld [vmem:[#allocation2 + $0xcc] ss:$16 sps:$4 sm:$0xff]  }
  0x68   :  { %1591 = vmatprep.subr.bf16.mxu1 %v5796_v21  ;;  %v5821_v43 = vld [vmem:[#allocation2 + $0xc0] ss:$16 sps:$4 sm:$0xff]   ;;  %v5829_v45 = vld [vmem:[#allocation2 + $0xe4] ss:$16 sps:$4 sm:$0xff]   ;;  %v5824_v46 = vld [vmem:[#allocation2 + $0xc8] ss:$16 sps:$4 sm:$0xff]  }
  0x69   :  { %1366 = vmatpush1.bf16.msra.mxu0 %v5791_v20  ;;  %v5827_v47 = vld [vmem:[#allocation2 + $0xe0] ss:$16 sps:$4 sm:$0xff]   ;;  %v5832_v48 = vld [vmem:[#allocation2 + $0xec] ss:$16 sps:$4 sm:$0xff]   ;;  %v5835_v49 = vld [vmem:[#allocation2 + $0x104] ss:$16 sps:$4 sm:$0xff]  }
  0x6a   :  { %1367 = vmatprep.subr.bf16.mxu0 %v5799_v22  ;;  %v5777_v50 = vld [vmem:[%s7766_s0 + $0x28] sm:$0xff]   ;;  %v5833_v52 = vld [vmem:[#allocation2 + $0x100] ss:$16 sps:$4 sm:$0xff]   ;;  %v5841_v54 = vld [vmem:[#allocation2 + $0x124] ss:$16 sps:$4 sm:$0xff]  }
  0x6b   :  { %1592 = vmatpush1.bf16.msra.mxu1 %v5794_v24  ;;  %v5830_v51 = vld [vmem:[#allocation2 + $0xe8] ss:$16 sps:$4 sm:$0xff]   ;;  %v5838_v53 = vld [vmem:[#allocation2 + $0x10c] ss:$16 sps:$4 sm:$0xff]   ;;  %v5839_v56 = vld [vmem:[#allocation2 + $0x120] ss:$16 sps:$4 sm:$0xff]   ;;  %v123_v24 = vlaneseq }
  0x6c   :  { %4872 = vmatmul.mubr.msk.bf16.gmra.mrb[4].mxu0 %vm213_vm1, %v5773_v16  ;;  %1593 = vmatprep.subr.bf16.mxu1 %v5802_v26  ;;  %v5836_v55 = vld [vmem:[#allocation2 + $0x108] ss:$16 sps:$4 sm:$0xff]   ;;  %v5844_v57 = vld [vmem:[#allocation2 + $0x12c] ss:$16 sps:$4 sm:$0xff]   ;;  %v5847_v58 = vld [vmem:[#allocation2 + $0x144] ss:$16 sps:$4 sm:$0xff]  }
  0x6d   :  { %303 = vmatprep.mubr.bf16.mxu0 %v7775_v0  ;;  %1368 = vmatpush1.bf16.msra.mxu0 %v5797_v25  ;;  %v5842_v59 = vld [vmem:[#allocation2 + $0x128] ss:$16 sps:$4 sm:$0xff]   ;;  %v5845_v60 = vld [vmem:[#allocation2 + $0x140] ss:$16 sps:$4 sm:$0xff]   ;;  %v5850_v61 = vld [vmem:[#allocation2 + $0x14c] ss:$16 sps:$4 sm:$0xff]  }
  0x6e   :  { %1369 = vmatprep.subr.bf16.mxu0 %v5805_v27  ;;  %4881 = vmatmul.mubr.msk.bf16.gmra.mrb[4].mxu1 %vm213_vm1, %v5773_v16  ;;  %v5778_v62 = vld [vmem:[%s7766_s0 + $0x30] sm:$0xff]   ;;  %v5848_v1 = vld [vmem:[#allocation2 + $0x148] ss:$16 sps:$4 sm:$0xff]   ;;  %v5856_v3 = vld [vmem:[#allocation2 + $0x16c] ss:$16 sps:$4 sm:$0xff]   ;;  %v6640_v25 = vshrl.u32 %v123_v24, 7 }
  0x6f   :  { %416 = vmatprep.mubr.bf16.mxu1 %v7775_v0  ;;  %1594 = vmatpush1.bf16.msra.mxu1 %v5800_v28  ;;  %v5853_v63 = vld [vmem:[#allocation2 + $0x164] ss:$16 sps:$4 sm:$0xff]   ;;  %v5851_v2 = vld [vmem:[#allocation2 + $0x160] ss:$16 sps:$4 sm:$0xff]   ;;  %v5854_v5 = vld [vmem:[#allocation2 + $0x168] ss:$16 sps:$4 sm:$0xff]  }
  0x70   :  { %1595 = vmatprep.subr.bf16.mxu1 %v5808_v30  ;;  %v5859_v4 = vld [vmem:[#allocation2 + $0x184] ss:$16 sps:$4 sm:$0xff]   ;;  %v5857_v6 = vld [vmem:[#allocation2 + $0x180] ss:$16 sps:$4 sm:$0xff]   ;;  %v5862_v7 = vld [vmem:[#allocation2 + $0x18c] ss:$16 sps:$4 sm:$0xff]  }
  0x71   :  { %1370 = vmatpush1.bf16.msra.mxu0 %v5803_v29  ;;  %v5782_v8 = vld [vmem:[%s7766_s0 + $0x38] sm:$0xff]   ;;  %v5865_v9 = vld [vmem:[#allocation2 + $0x1a4] ss:$16 sps:$4 sm:$0xff]   ;;  %v5863_v11 = vld [vmem:[#allocation2 + $0x1a0] ss:$16 sps:$4 sm:$0xff]   ;;  %v6643_v26 = vsub.s32 1, %v6640_v25 }
  0x72   :  { %1371 = vmatprep.subr.bf16.mxu0 %v5811_v31  ;;  %v5860_v10 = vld [vmem:[#allocation2 + $0x188] ss:$16 sps:$4 sm:$0xff]   ;;  %v5868_v12 = vld [vmem:[#allocation2 + $0x1ac] ss:$16 sps:$4 sm:$0xff]   ;;  %v5871_v14 = vld [vmem:[#allocation2 + $0x1c4] ss:$16 sps:$4 sm:$0xff]  }
  0x73   :  { %1596 = vmatpush1.bf16.msra.mxu1 %v5806_v33  ;;  %v5866_v13 = vld [vmem:[#allocation2 + $0x1a8] ss:$16 sps:$4 sm:$0xff]   ;;  %v5874_v15 = vld [vmem:[#allocation2 + $0x1cc] ss:$16 sps:$4 sm:$0xff]   ;;  %v5869_v16 = vld [vmem:[#allocation2 + $0x1c0] ss:$16 sps:$4 sm:$0xff]  }
  0x74   :  { %4873 = vmatmul.mubr.msk.bf16.gmra.mrb[8].mxu0 %vm213_vm1, %v5774_v23  ;;  %1597 = vmatprep.subr.bf16.mxu1 %v5814_v35  ;;  %v5872_v17 = vld [vmem:[#allocation2 + $0x1c8] ss:$16 sps:$4 sm:$0xff]   ;;  %v5877_v18 = vld [vmem:[#allocation2 + $0x1e4] ss:$16 sps:$4 sm:$0xff]   ;;  %v5880_v19 = vld [vmem:[#allocation2 + $0x1ec] ss:$16 sps:$4 sm:$0xff]  }
  0x75   :  { %313 = vmatprep.mubr.bf16.mxu0 %v7775_v0  ;;  %1372 = vmatpush1.bf16.msra.mxu0 %v5809_v34  ;;  %v5875_v20 = vld [vmem:[#allocation2 + $0x1e0] ss:$16 sps:$4 sm:$0xff]   ;;  %v5878_v21 = vld [vmem:[#allocation2 + $0x1e8] ss:$16 sps:$4 sm:$0xff]   ;;  %v5883_v22 = vld [vmem:[#allocation2 + $0x204] ss:$16 sps:$4 sm:$0xff]  }
  0x76   :  { %1373 = vmatprep.subr.bf16.mxu0 %v5817_v36  ;;  %4882 = vmatmul.mubr.msk.bf16.gmra.mrb[8].mxu1 %vm213_vm1, %v5774_v23  ;;  %v5886_v23 = vld [vmem:[#allocation2 + $0x20c] ss:$16 sps:$4 sm:$0xff]   ;;  %v6648_v27 = vld [vmem:[%s7773_s7] sm:$0xf]  ;;  %v6651_v28 = vsub.s32 0, %v6640_v25 }
  0x77   :  { %426 = vmatprep.mubr.bf16.mxu1 %v7775_v0  ;;  %1598 = vmatpush1.bf16.msra.mxu1 %v5812_v37  ;;  %v6655_v29 = vrot.slane %v6648_v27, %v6643_v26  ;;  %v5902_v24 = vld [vmem:[#allocation2 + $0x268] ss:$16 sps:$4 sm:$0xff]  }
  0x78   :  { %1599 = vmatprep.subr.bf16.mxu1 %v5820_v39  ;;  %v6659_v30 = vrot.slane %v6648_v27, %v6651_v28 }
  0x79   :  { %1374 = vmatpush1.bf16.msra.mxu0 %v5815_v38 }
  0x7a   :  { %1375 = vmatprep.subr.bf16.mxu0 %v5823_v40 }
  0x7b   :  { %1600 = vmatpush1.bf16.msra.mxu1 %v5818_v42 }
  0x7c   :  { %4874 = vmatmul.mubr.msk.bf16.gmra.mrb[12].mxu0 %vm213_vm1, %v5775_v32  ;;  %1601 = vmatprep.subr.bf16.mxu1 %v5826_v44 }
  0x7d   :  { %323 = vmatprep.mubr.bf16.mxu0 %v7775_v0  ;;  %1376 = vmatpush1.bf16.msra.mxu0 %v5821_v43 }
  0x7e   :  { %1377 = vmatprep.subr.bf16.mxu0 %v5829_v45  ;;  %4883 = vmatmul.mubr.msk.bf16.gmra.mrb[12].mxu1 %vm213_vm1, %v5775_v32  ;;  %v5881_v45 = vld [vmem:[#allocation2 + $0x200] ss:$16 sps:$4 sm:$0xff]  }
  0x7f   :  { %436 = vmatprep.mubr.bf16.mxu1 %v7775_v0  ;;  %1602 = vmatpush1.bf16.msra.mxu1 %v5824_v46  ;;  %v5884_v46 = vld [vmem:[#allocation2 + $0x208] ss:$16 sps:$4 sm:$0xff]  }
  0x80   :  { %1603 = vmatprep.subr.bf16.mxu1 %v5832_v48 }
  0x81   :  { %1378 = vmatpush1.bf16.msra.mxu0 %v5827_v47 }
  0x82   :  { %1379 = vmatprep.subr.bf16.mxu0 %v5835_v49  ;;  %v5889_v49 = vld [vmem:[#allocation2 + $0x224] ss:$16 sps:$4 sm:$0xff]  }
  0x83   :  { %1604 = vmatpush1.bf16.msra.mxu1 %v5830_v51 }
  0x84   :  { %4875 = vmatmul.mubr.msk.bf16.gmra.mrb[16].mxu0 %vm213_vm1, %v5776_v41  ;;  %1605 = vmatprep.subr.bf16.mxu1 %v5838_v53 }
  0x85   :  { %333 = vmatprep.mubr.bf16.mxu0 %v7775_v0  ;;  %1380 = vmatpush1.bf16.msra.mxu0 %v5833_v52 }
  0x86   :  { %1381 = vmatprep.subr.bf16.mxu0 %v5841_v54  ;;  %4884 = vmatmul.mubr.msk.bf16.gmra.mrb[16].mxu1 %vm213_vm1, %v5776_v41 }
  0x87   :  { %446 = vmatprep.mubr.bf16.mxu1 %v7775_v0  ;;  %1606 = vmatpush1.bf16.msra.mxu1 %v5836_v55 }
  0x88   :  { %1607 = vmatprep.subr.bf16.mxu1 %v5844_v57 }
  0x89   :  { %1382 = vmatpush1.bf16.msra.mxu0 %v5839_v56 }
  0x8a   :  { %1383 = vmatprep.subr.bf16.mxu0 %v5847_v58 }
  0x8b   :  { %1608 = vmatpush1.bf16.msra.mxu1 %v5842_v59 }
  0x8c   :  { %4876 = vmatmul.mubr.msk.bf16.gmra.mrb[20].mxu0 %vm213_vm1, %v5777_v50  ;;  %1609 = vmatprep.subr.bf16.mxu1 %v5850_v61  ;;  %v5890_v61 = vld [vmem:[#allocation2 + $0x228] ss:$16 sps:$4 sm:$0xff]  }
  0x8d   :  { %343 = vmatprep.mubr.bf16.mxu0 %v7775_v0  ;;  %1384 = vmatpush1.bf16.msra.mxu0 %v5845_v60  ;;  %v5887_v60 = vld [vmem:[#allocation2 + $0x220] ss:$16 sps:$4 sm:$0xff]  }
  0x8e   :  { %1385 = vmatprep.subr.bf16.mxu0 %v5853_v63  ;;  %4885 = vmatmul.mubr.msk.bf16.gmra.mrb[20].mxu1 %vm213_vm1, %v5777_v50  ;;  %v5892_v50 = vld [vmem:[#allocation2 + $0x22c] ss:$16 sps:$4 sm:$0xff]  }
  0x8f   :  { %456 = vmatprep.mubr.bf16.mxu1 %v7775_v0  ;;  %1610 = vmatpush1.bf16.msra.mxu1 %v5848_v1  ;;  %v5895_v1 = vld [vmem:[#allocation2 + $0x244] ss:$16 sps:$4 sm:$0xff]  }
  0x90   :  { %1611 = vmatprep.subr.bf16.mxu1 %v5856_v3 }
  0x91   :  { %1386 = vmatpush1.bf16.msra.mxu0 %v5851_v2  ;;  %v5898_v2 = vld [vmem:[#allocation2 + $0x24c] ss:$16 sps:$4 sm:$0xff]  }
  0x92   :  { %1387 = vmatprep.subr.bf16.mxu0 %v5859_v4 }
  0x93   :  { %1612 = vmatpush1.bf16.msra.mxu1 %v5854_v5 }
  0x94   :  { %4877 = vmatmul.mubr.msk.bf16.gmra.mrb[24].mxu0 %vm213_vm1, %v5778_v62  ;;  %1613 = vmatprep.subr.bf16.mxu1 %v5862_v7 }
  0x95   :  { %353 = vmatprep.mubr.bf16.mxu0 %v7775_v0  ;;  %1388 = vmatpush1.bf16.msra.mxu0 %v5857_v6 }
  0x96   :  { %1389 = vmatprep.subr.bf16.mxu0 %v5865_v9  ;;  %4886 = vmatmul.mubr.msk.bf16.gmra.mrb[24].mxu1 %vm213_vm1, %v5778_v62  ;;  %v5896_v9 = vld [vmem:[#allocation2 + $0x248] ss:$16 sps:$4 sm:$0xff]  }
  0x97   :  { %466 = vmatprep.mubr.bf16.mxu1 %v7775_v0  ;;  %1614 = vmatpush1.bf16.msra.mxu1 %v5860_v10 }
  0x98   :  { %1615 = vmatprep.subr.bf16.mxu1 %v5868_v12  ;;  %v5901_v12 = vld [vmem:[#allocation2 + $0x264] ss:$16 sps:$4 sm:$0xff]  }
  0x99   :  { %1390 = vmatpush1.bf16.msra.mxu0 %v5863_v11 }
  0x9a   :  { %1391 = vmatprep.subr.bf16.mxu0 %v5871_v14 }
  0x9b   :  { %1616 = vmatpush1.bf16.msra.mxu1 %v5866_v13  ;;  %v5904_v13 = vld [vmem:[#allocation2 + $0x26c] ss:$16 sps:$4 sm:$0xff]  }
  0x9c   :  { %4878 = vmatmul.mubr.msk.bf16.gmra.mrb[28].mxu0 %vm213_vm1, %v5782_v8  ;;  %1617 = vmatprep.subr.bf16.mxu1 %v5874_v15 }
  0x9d   :  { %1392 = vmatpush1.bf16.msra.mxu0 %v5869_v16 }
  0x9e   :  { %4887 = vmatmul.mubr.msk.bf16.gmra.mrb[28].mxu1 %vm213_vm1, %v5782_v8  ;;  %1393 = vmatprep.subr.bf16.mxu0 %v5877_v18  ;;  %v5893_v8 = vld [vmem:[#allocation2 + $0x240] ss:$16 sps:$4 sm:$0xff]  }
  0x9f   :  { %1618 = vmatpush1.bf16.msra.mxu1 %v5872_v17 }
  0xa0   :  { %1619 = vmatprep.subr.bf16.mxu1 %v5880_v19 }
  0xa1   :  { %1394 = vmatpush1.bf16.msra.mxu0 %v5875_v20 }
  0xa2   :  { %1476 = vmatprep.subr.bf16.mxu0 %v5883_v22 }
  0xa3   :  { %1620 = vmatpush1.bf16.msra.mxu1 %v5878_v21 }
  0xa4   :  { %1702 = vmatprep.subr.bf16.mxu1 %v5886_v23  ;;  %v5899_v23 = vld [vmem:[#allocation2 + $0x260] ss:$16 sps:$4 sm:$0xff]  }
 0x137   :  { %v285_v31 = vpop.f32.mrb[0].mxu0  ;;  %v6685_v51 = vpop.f32.mrb[0].mxu1 }
 0x138   :  { %v287_v32 = vpop.f32.mrb[1].mxu0  ;;  %v6665_v35 = vadd.f32 %v285_v31, %v6659_v30  ;;  %v6690_v54 = vpop.f32.mrb[1].mxu1 }
 0x139   :  { %v6662_v33 = vadd.f32 %v287_v32, %v6655_v29  ;;  %v289_v34 = vpop.f32.mrb[2].mxu0  ;;  %v6698_v58 = vpop.f32.mrb[2].mxu1 }
 0x13a   :  { %v6668_v36 = vadd.f32 %v289_v34, %v6659_v30  ;;  %v291_v37 = vpop.f32.mrb[3].mxu0  ;;  %v7796_v42 = vmax.f32 %v6665_v35, 0.0  ;;  %v6703_v62 = vpop.f32.mrb[3].mxu1  ;;  %v5907_v34 = vld [vmem:[#allocation2 + $0x284] ss:$16 sps:$4 sm:$0xff]  }
 0x13b   :  { %v6671_v38 = vadd.f32 %v291_v37, %v6655_v29  ;;  %v7795_v40 = vmax.f32 %v6662_v33, 0.0  ;;  %v5910_v37 = vld [vmem:[#allocation2 + $0x28c] ss:$16 sps:$4 sm:$0xff]  }
 0x13c   :  { %v7794_v39 = vmax.f32 %v6668_v36, 0.0 }
 0x13d   :  { %v7793_v41 = vmax.f32 %v6671_v38, 0.0 }
 0x13e   :  { %v541_v47 = vpack.c.bf16 %v7794_v39, %v7796_v42  ;;  %v5944_v42 = vld [vmem:[#allocation2 + $0x348] ss:$16 sps:$4 sm:$0xff]  }
 0x13f   :  { %v542_v43 = vpack.c.bf16 %v7793_v41, %v7795_v40  ;;  %v295_v44 = vpop.f32.mrb[4].mxu0  ;;  %v5946_v41 = vld [vmem:[#allocation2 + $0x34c] ss:$16 sps:$4 sm:$0xff]  }
 0x140   :  { %v297_v48 = vpop.f32.mrb[5].mxu0  ;;  %v6693_v55 = vadd.f32 %v295_v44, %v6659_v30 }
 0x141   :  { %v6688_v52 = vadd.f32 %v297_v48, %v6655_v29  ;;  %v299_v53 = vpop.f32.mrb[6].mxu0  ;;  %1395 = vmatprep.mubr.bf16.mxu0 %v542_v43  ;;  %1621 = vmatprep.mubr.bf16.mxu1 %v542_v43  ;;  %v6717_v14 = vpop.f32.mrb[4].mxu1  ;;  %v5905_v48 = vld [vmem:[#allocation2 + $0x280] ss:$16 sps:$4 sm:$0xff]  }
 0x142   :  { %v6696_v56 = vadd.f32 %v299_v53, %v6659_v30  ;;  %v301_v57 = vpop.f32.mrb[7].mxu0  ;;  %1396 = vmatmul.mubr.bf16.vlgmr.msra.gmra.mrb[32].mxu0 %v541_v47  ;;  %1622 = vmatmul.mubr.bf16.vlgmr.msra.gmra.mrb[32].mxu1 %v541_v47  ;;  %v7788_v5 = vmax.f32 %v6693_v55, 0.0  ;;  %v6722_v17 = vpop.f32.mrb[5].mxu1 }
 0x143   :  { %v6701_v59 = vadd.f32 %v301_v57, %v6655_v29  ;;  %1477 = vmatpush1.bf16.msra.mxu0 %v5881_v45  ;;  %1703 = vmatpush1.bf16.msra.mxu1 %v5884_v46  ;;  %v7787_v3 = vmax.f32 %v6688_v52, 0.0  ;;  %v6730_v21 = vpop.f32.mrb[6].mxu1  ;;  %v5913_v57 = vld [vmem:[#allocation2 + $0x2a4] ss:$16 sps:$4 sm:$0xff]  }
 0x144   :  { %v7786_v63 = vmax.f32 %v6696_v56, 0.0  ;;  %1478 = vmatprep.subr.bf16.mxu0 %v5889_v49  ;;  %1704 = vmatprep.subr.bf16.mxu1 %v5892_v50  ;;  %v6735_v31 = vpop.f32.mrb[7].mxu1  ;;  %v5908_v49 = vld [vmem:[#allocation2 + $0x288] ss:$16 sps:$4 sm:$0xff]  }
 0x145   :  { %v7785_v4 = vmax.f32 %v6701_v59, 0.0 }
 0x146   :  { %v545_v10 = vpack.c.bf16 %v7786_v63, %v7788_v5  ;;  %v5940_v63 = vld [vmem:[#allocation2 + $0x32c] ss:$16 sps:$4 sm:$0xff]  }
 0x147   :  { %v546_v6 = vpack.c.bf16 %v7785_v4, %v7787_v3  ;;  %1479 = vmatpush1.bf16.msra.mxu0 %v5887_v60  ;;  %v305_v7 = vpop.f32.mrb[8].mxu0  ;;  %1705 = vmatpush1.bf16.msra.mxu1 %v5890_v61  ;;  %v5916_v60 = vld [vmem:[#allocation2 + $0x2ac] ss:$16 sps:$4 sm:$0xff]   ;;  %v5937_v4 = vld [vmem:[#allocation2 + $0x324] ss:$16 sps:$4 sm:$0xff]  }
 0x148   :  { %v307_v11 = vpop.f32.mrb[9].mxu0  ;;  %1480 = vmatprep.subr.bf16.mxu0 %v5895_v1  ;;  %1706 = vmatprep.subr.bf16.mxu1 %v5898_v2  ;;  %v6725_v18 = vadd.f32 %v305_v7, %v6659_v30 }
 0x149   :  { %v6720_v15 = vadd.f32 %v307_v11, %v6655_v29  ;;  %v309_v16 = vpop.f32.mrb[10].mxu0  ;;  %1405 = vmatprep.mubr.bf16.mxu0 %v546_v6  ;;  %1631 = vmatprep.mubr.bf16.mxu1 %v546_v6  ;;  %v6749_v61 = vpop.f32.mrb[8].mxu1 }
 0x14a   :  { %7881 = vst [vmem:[#allocation17_spill] sm:$0xff] %v6725_v18  ;;  %v6728_v19 = vadd.f32 %v309_v16, %v6659_v30  ;;  %v311_v20 = vpop.f32.mrb[11].mxu0  ;;  %1406 = vmatmul.mubr.bf16.gmra.mrb[36].mxu0 %v545_v10  ;;  %1632 = vmatmul.mubr.bf16.gmra.mrb[36].mxu1 %v545_v10  ;;  %v7784_v45 = vmax.f32 %v6725_v18, 0.0  ;;  %v6754_v6 = vpop.f32.mrb[9].mxu1 }
 0x14b   :  { %7880 = vst [vmem:[#allocation16_spill] sm:$0xff] %v6720_v15  ;;  %v6733_v22 = vadd.f32 %v311_v20, %v6655_v29  ;;  %1481 = vmatpush1.bf16.msra.mxu0 %v5893_v8  ;;  %1707 = vmatpush1.bf16.msra.mxu1 %v5896_v9  ;;  %v7783_v43 = vmax.f32 %v6720_v15, 0.0  ;;  %v6762_v10 = vpop.f32.mrb[10].mxu1 }
 0x14c   :  { %7882 = vst [vmem:[#allocation18_spill] sm:$0xff] %v6728_v19  ;;  %v7782_v32 = vmax.f32 %v6728_v19, 0.0  ;;  %1482 = vmatprep.subr.bf16.mxu0 %v5901_v12  ;;  %1708 = vmatprep.subr.bf16.mxu1 %v5904_v13  ;;  %v5911_v12 = vld [vmem:[#allocation2 + $0x2a0] ss:$16 sps:$4 sm:$0xff]   ;;  %v5914_v13 = vld [vmem:[#allocation2 + $0x2a8] ss:$16 sps:$4 sm:$0xff]  }
 0x14d   :  { %7883 = vst [vmem:[#allocation19_spill] sm:$0xff] %v6733_v22  ;;  %v7781_v44 = vmax.f32 %v6733_v22, 0.0  ;;  %v6767_v16 = vpop.f32.mrb[11].mxu1 }
 0x14e   :  { %v549_v50 = vpack.c.bf16 %v7782_v32, %v7784_v45  ;;  %v5932_v45 = vld [vmem:[#allocation2 + $0x308] ss:$16 sps:$4 sm:$0xff]  }
 0x14f   :  { %v550_v46 = vpack.c.bf16 %v7781_v44, %v7783_v43  ;;  %1483 = vmatpush1.bf16.msra.mxu0 %v5899_v23  ;;  %v315_v47 = vpop.f32.mrb[12].mxu0  ;;  %1709 = vmatpush1.bf16.msra.mxu1 %v5902_v24  ;;  %v5919_v23 = vld [vmem:[#allocation2 + $0x2c4] ss:$16 sps:$4 sm:$0xff]   ;;  %v5922_v24 = vld [vmem:[#allocation2 + $0x2cc] ss:$16 sps:$4 sm:$0xff]  }
 0x150   :  { %v317_v53 = vpop.f32.mrb[13].mxu0  ;;  %1484 = vmatprep.subr.bf16.mxu0 %v5907_v34  ;;  %1710 = vmatprep.subr.bf16.mxu1 %v5910_v37  ;;  %v6757_v7 = vadd.f32 %v315_v47, %v6659_v30  ;;  %v5934_v44 = vld [vmem:[#allocation2 + $0x30c] ss:$16 sps:$4 sm:$0xff]  }
 0x151   :  { %v6752_v1 = vadd.f32 %v317_v53, %v6655_v29  ;;  %v319_v2 = vpop.f32.mrb[14].mxu0  ;;  %1415 = vmatprep.mubr.bf16.mxu0 %v550_v46  ;;  %1641 = vmatprep.mubr.bf16.mxu1 %v550_v46 }
 0x152   :  { %7885 = vst [vmem:[#allocation21_spill] sm:$0xff] %v6757_v7  ;;  %v6760_v8 = vadd.f32 %v319_v2, %v6659_v30  ;;  %v321_v9 = vpop.f32.mrb[15].mxu0  ;;  %1416 = vmatmul.mubr.bf16.gmra.mrb[40].mxu0 %v549_v50  ;;  %1642 = vmatmul.mubr.bf16.gmra.mrb[40].mxu1 %v549_v50  ;;  %v7780_v46 = vmax.f32 %v6757_v7, 0.0  ;;  %v5920_v50 = vld [vmem:[#allocation2 + $0x2c8] ss:$16 sps:$4 sm:$0xff]  }
 0x153   :  { %7884 = vst [vmem:[#allocation20_spill] sm:$0xff] %v6752_v1  ;;  %v6765_v11 = vadd.f32 %v321_v9, %v6655_v29  ;;  %1485 = vmatpush1.bf16.msra.mxu0 %v5905_v48  ;;  %1711 = vmatpush1.bf16.msra.mxu1 %v5908_v49  ;;  %v7779_v34 = vmax.f32 %v6752_v1, 0.0  ;;  %v5917_v49 = vld [vmem:[#allocation2 + $0x2c0] ss:$16 sps:$4 sm:$0xff]   ;;  %v5928_v2 = vld [vmem:[#allocation2 + $0x2ec] ss:$16 sps:$4 sm:$0xff]  }
 0x154   :  { %7886 = vst [vmem:[#allocation22_spill] sm:$0xff] %v6760_v8  ;;  %v7778_v20 = vmax.f32 %v6760_v8, 0.0  ;;  %1486 = vmatprep.subr.bf16.mxu0 %v5913_v57  ;;  %1712 = vmatprep.subr.bf16.mxu1 %v5916_v60  ;;  %v5925_v60 = vld [vmem:[#allocation2 + $0x2e4] ss:$16 sps:$4 sm:$0xff]   ;;  %v6781_v9 = vpop.f32.mrb[12].mxu1 }
 0x155   :  { %7887 = vst [vmem:[#allocation23_spill] sm:$0xff] %v6765_v11  ;;  %v7777_v37 = vmax.f32 %v6765_v11, 0.0 }
 0x156   :  { %v553_v53 = vpack.c.bf16 %v7778_v20, %v7780_v46 }
 0x157   :  { %v554_v47 = vpack.c.bf16 %v7777_v37, %v7779_v34  ;;  %1487 = vmatpush1.bf16.msra.mxu0 %v5911_v12  ;;  %v325_v48 = vpop.f32.mrb[16].mxu0  ;;  %1713 = vmatpush1.bf16.msra.mxu1 %v5914_v13  ;;  %v6786_v13 = vpop.f32.mrb[13].mxu1 }
 0x158   :  { %v327_v57 = vpop.f32.mrb[17].mxu0  ;;  %1488 = vmatprep.subr.bf16.mxu0 %v5919_v23  ;;  %1714 = vmatprep.subr.bf16.mxu1 %v5922_v24  ;;  %v6789_v37 = vadd.f32 %v325_v48, %v6659_v30  ;;  %v6794_v24 = vpop.f32.mrb[14].mxu1 }
 0x159   :  { %v6784_v0 = vadd.f32 %v327_v57, %v6655_v29  ;;  %v329_v12 = vpop.f32.mrb[18].mxu0  ;;  %1425 = vmatprep.mubr.bf16.mxu0 %v554_v47  ;;  %1651 = vmatprep.mubr.bf16.mxu1 %v554_v47  ;;  %v5923_v57 = vld [vmem:[#allocation2 + $0x2e0] ss:$16 sps:$4 sm:$0xff]   ;;  %v5926_v47 = vld [vmem:[#allocation2 + $0x2e8] ss:$16 sps:$4 sm:$0xff]   ;;  %v6799_v46 = vpop.f32.mrb[15].mxu1 }
 0x15a   :  { %7889 = vst [vmem:[#allocation25_spill] sm:$0xff] %v6789_v37  ;;  %v6792_v20 = vadd.f32 %v329_v12, %v6659_v30  ;;  %v331_v23 = vpop.f32.mrb[19].mxu0  ;;  %1426 = vmatmul.mubr.bf16.gmra.mrb[44].mxu0 %v553_v53  ;;  %1652 = vmatmul.mubr.bf16.gmra.mrb[44].mxu1 %v553_v53  ;;  %v5931_v12 = vld [vmem:[#allocation2 + $0x304] ss:$16 sps:$4 sm:$0xff]   ;;  %v7792_v43 = vmax.f32 %v6789_v37, 0.0  ;;  %v6813_v3 = vpop.f32.mrb[16].mxu1 }
 0x15b   :  { %7888 = vst [vmem:[#allocation24_spill] sm:$0xff] %v6784_v0  ;;  %v6797_v34 = vadd.f32 %v331_v23, %v6655_v29  ;;  %1489 = vmatpush1.bf16.msra.mxu0 %v5917_v49  ;;  %1715 = vmatpush1.bf16.msra.mxu1 %v5920_v50  ;;  %v7791_v32 = vmax.f32 %v6784_v0, 0.0  ;;  %v5929_v23 = vld [vmem:[#allocation2 + $0x300] ss:$16 sps:$4 sm:$0xff]   ;;  %v6846_v0 = vsub.s32 3, %v6640_v25 }
 0x15c   :  { %7890 = vst [vmem:[#allocation26_spill] sm:$0xff] %v6792_v20  ;;  %v7790_v48 = vmax.f32 %v6792_v20, 0.0  ;;  %1490 = vmatprep.subr.bf16.mxu0 %v5925_v60  ;;  %1716 = vmatprep.subr.bf16.mxu1 %v5928_v2  ;;  %v5952_v20 = vld [vmem:[#allocation2 + $0x36c] ss:$16 sps:$4 sm:$0xff]   ;;  %v5956_v37 = vld [vmem:[#allocation2 + $0x388] ss:$16 sps:$4 sm:$0xff]  }
 0x15d   :  { %7891 = vst [vmem:[#allocation27_spill] sm:$0xff] %v6797_v34  ;;  %v7789_v53 = vmax.f32 %v6797_v34, 0.0 }
 0x15e   :  { %v557_v60 = vpack.c.bf16 %v7790_v48, %v7792_v43 }
 0x15f   :  { %v558_v49 = vpack.c.bf16 %v7789_v53, %v7791_v32  ;;  %1491 = vmatpush1.bf16.msra.mxu0 %v5923_v57  ;;  %v335_v50 = vpop.f32.mrb[20].mxu0  ;;  %1717 = vmatpush1.bf16.msra.mxu1 %v5926_v47  ;;  %v6818_v47 = vpop.f32.mrb[17].mxu1 }
 0x160   :  { %v337_v2 = vpop.f32.mrb[21].mxu0  ;;  %1492 = vmatprep.subr.bf16.mxu0 %v5931_v12  ;;  %1718 = vmatprep.subr.bf16.mxu1 %v5934_v44  ;;  %v6821_v53 = vadd.f32 %v335_v50, %v6659_v30  ;;  %v6826_v44 = vpop.f32.mrb[18].mxu1 }
 0x161   :  { %v6816_v5 = vadd.f32 %v337_v2, %v6655_v29  ;;  %v339_v57 = vpop.f32.mrb[22].mxu0  ;;  %1435 = vmatprep.mubr.bf16.mxu0 %v558_v49  ;;  %1661 = vmatprep.mubr.bf16.mxu1 %v558_v49  ;;  %v5935_v2 = vld [vmem:[#allocation2 + $0x320] ss:$16 sps:$4 sm:$0xff]   ;;  %v5938_v49 = vld [vmem:[#allocation2 + $0x328] ss:$16 sps:$4 sm:$0xff]   ;;  %v6831_v43 = vpop.f32.mrb[19].mxu1 }
 0x162   :  { %7893 = vst [vmem:[#allocation29_spill] sm:$0xff] %v6821_v53  ;;  %v6824_v48 = vadd.f32 %v339_v57, %v6659_v30  ;;  %v341_v12 = vpop.f32.mrb[23].mxu0  ;;  %1436 = vmatmul.mubr.bf16.gmra.mrb[48].mxu0 %v557_v60  ;;  %1662 = vmatmul.mubr.bf16.gmra.mrb[48].mxu1 %v557_v60  ;;  %v5943_v57 = vld [vmem:[#allocation2 + $0x344] ss:$16 sps:$4 sm:$0xff]   ;;  %v7804_v40 = vmax.f32 %v6821_v53, 0.0 }
 0x163   :  { %7892 = vst [vmem:[#allocation28_spill] sm:$0xff] %v6816_v5  ;;  %v6829_v32 = vadd.f32 %v341_v12, %v6655_v29  ;;  %1493 = vmatpush1.bf16.msra.mxu0 %v5929_v23  ;;  %1719 = vmatpush1.bf16.msra.mxu1 %v5932_v45  ;;  %v7802_v39 = vmax.f32 %v6816_v5, 0.0  ;;  %v5941_v12 = vld [vmem:[#allocation2 + $0x340] ss:$16 sps:$4 sm:$0xff]   ;;  %v6848_v5 = vpop.f32.mrb[20].mxu1 }
 0x164   :  { %7894 = vst [vmem:[#allocation30_spill] sm:$0xff] %v6824_v48  ;;  %v7803_v50 = vmax.f32 %v6824_v48, 0.0  ;;  %1494 = vmatprep.subr.bf16.mxu0 %v5937_v4  ;;  %1720 = vmatprep.subr.bf16.mxu1 %v5940_v63  ;;  %v5949_v4 = vld [vmem:[#allocation2 + $0x364] ss:$16 sps:$4 sm:$0xff]   ;;  %v5958_v48 = vld [vmem:[#allocation2 + $0x38c] ss:$16 sps:$4 sm:$0xff]  }
 0x165   :  { %7895 = vst [vmem:[#allocation31_spill] sm:$0xff] %v6829_v32  ;;  %v7801_v60 = vmax.f32 %v6829_v32, 0.0 }
 0x166   :  { %v561_v63 = vpack.c.bf16 %v7803_v50, %v7804_v40 }
 0x167   :  { %v562_v45 = vpack.c.bf16 %v7801_v60, %v7802_v39  ;;  %1495 = vmatpush1.bf16.msra.mxu0 %v5935_v2  ;;  %v345_v23 = vpop.f32.mrb[24].mxu0  ;;  %1721 = vmatpush1.bf16.msra.mxu1 %v5938_v49  ;;  %v6853_v60 = vpop.f32.mrb[21].mxu1 }
 0x168   :  { %v347_v34 = vpop.f32.mrb[25].mxu0  ;;  %1496 = vmatprep.subr.bf16.mxu0 %v5943_v57  ;;  %1722 = vmatprep.subr.bf16.mxu1 %v5946_v41  ;;  %v6856_v39 = vadd.f32 %v345_v23, %v6659_v30  ;;  %v6861_v50 = vpop.f32.mrb[22].mxu1  ;;  %v5953_v23 = vld [vmem:[#allocation2 + $0x380] ss:$16 sps:$4 sm:$0xff]  }
 0x169   :  { %v6851_v2 = vadd.f32 %v347_v34, %v6655_v29  ;;  %v349_v49 = vpop.f32.mrb[26].mxu0  ;;  %1445 = vmatprep.mubr.bf16.mxu0 %v562_v45  ;;  %1671 = vmatprep.mubr.bf16.mxu1 %v562_v45  ;;  %v5947_v34 = vld [vmem:[#allocation2 + $0x360] ss:$16 sps:$4 sm:$0xff]   ;;  %v5950_v45 = vld [vmem:[#allocation2 + $0x368] ss:$16 sps:$4 sm:$0xff]   ;;  %v6866_v32 = vpop.f32.mrb[23].mxu1 }
 0x16a   :  { %7897 = vst [vmem:[#allocation33_spill] sm:$0xff] %v6856_v39  ;;  %v6859_v57 = vadd.f32 %v349_v49, %v6659_v30  ;;  %v351_v41 = vpop.f32.mrb[27].mxu0  ;;  %1446 = vmatmul.mubr.bf16.gmra.mrb[52].mxu0 %v561_v63  ;;  %1672 = vmatmul.mubr.bf16.gmra.mrb[52].mxu1 %v561_v63  ;;  %v5955_v49 = vld [vmem:[#allocation2 + $0x384] ss:$16 sps:$4 sm:$0xff]   ;;  %v6871_v63 = vrot.slane %v6648_v27, %v6846_v0 }
 0x16b   :  { %7896 = vst [vmem:[#allocation32_spill] sm:$0xff] %v6851_v2  ;;  %v6864_v40 = vadd.f32 %v351_v41, %v6655_v29  ;;  %1497 = vmatpush1.bf16.msra.mxu0 %v5941_v12  ;;  %1723 = vmatpush1.bf16.msra.mxu1 %v5944_v42  ;;  %v7815_v53 = vmax.f32 %v6851_v2, 0.0  ;;  %v7816_v42 = vmax.f32 %v6856_v39, 0.0  ;;  %v6877_v12 = vsub.s32 2, %v6640_v25  ;;  %v5961_v2 = vld [vmem:[#allocation2 + $0x3a4] ss:$16 sps:$4 sm:$0xff]  }
 0x16c   :  { %7898 = vst [vmem:[#allocation34_spill] sm:$0xff] %v6859_v57  ;;  %1498 = vmatprep.subr.bf16.mxu0 %v5949_v4  ;;  %1724 = vmatprep.subr.bf16.mxu1 %v5952_v20  ;;  %v7900_v11 = vmax.f32 %v6859_v57, 0.0  ;;  %v6889_v25 = vadd.f32 %v6690_v54, %v6871_v63  ;;  %v5967_v57 = vld [vmem:[#allocation2 + $0x3c4] ss:$16 sps:$4 sm:$0xff]  }
 0x16d   :  { %7899 = vst [vmem:[#allocation35_spill] sm:$0xff] %v6864_v40  ;;  %v7814_v41 = vmax.f32 %v6864_v40, 0.0  ;;  %v5964_v40 = vld [vmem:[#allocation2 + $0x3ac] ss:$16 sps:$4 sm:$0xff]  }
 0x16e   :  { %v565_v8 = vpack.c.bf16 %v7900_v11, %v7816_v42 }
 0x16f   :  { %v566_v20 = vpack.c.bf16 %v7814_v41, %v7815_v53  ;;  %1499 = vmatpush1.bf16.msra.mxu0 %v5947_v34  ;;  %v355_v4 = vpop.f32.mrb[28].mxu0  ;;  %1725 = vmatpush1.bf16.msra.mxu1 %v5950_v45  ;;  %v6893_v34 = vadd.f32 %v6703_v62, %v6871_v63  ;;  %v6895_v45 = vpop.f32.mrb[24].mxu1  ;;  %v6910_v62 = vrot.slane %v6648_v27, %v6877_v12 }
 0x170   :  { %v357_v1 = vpop.f32.mrb[29].mxu0  ;;  %1500 = vmatprep.subr.bf16.mxu0 %v5955_v49  ;;  %1726 = vmatprep.subr.bf16.mxu1 %v5958_v48  ;;  %v6900_v11 = vpop.f32.mrb[25].mxu1  ;;  %v6903_v48 = vadd.f32 %v355_v4, %v6659_v30  ;;  %v5962_v4 = vld [vmem:[#allocation2 + $0x3a8] ss:$16 sps:$4 sm:$0xff]   ;;  %v6935_v27 = vadd.f32 %v6722_v17, %v6871_v63  ;;  %v5973_v17 = vld [vmem:[#allocation2 + $0x3e4] ss:$16 sps:$4 sm:$0xff]  }
 0x171   :  { %v6898_v41 = vadd.f32 %v357_v1, %v6655_v29  ;;  %v359_v53 = vpop.f32.mrb[30].mxu0  ;;  %1455 = vmatprep.mubr.bf16.mxu0 %v566_v20  ;;  %1681 = vmatprep.mubr.bf16.mxu1 %v566_v20  ;;  %v5959_v1 = vld [vmem:[#allocation2 + $0x3a0] ss:$16 sps:$4 sm:$0xff]   ;;  %v6912_v42 = vpop.f32.mrb[26].mxu1 }
 0x172   :  { %7902 = vst [vmem:[#allocation37_spill] sm:$0xff] %v6903_v48  ;;  %v6906_v54 = vadd.f32 %v359_v53, %v6659_v30  ;;  %v361_v49 = vpop.f32.mrb[31].mxu0  ;;  %1456 = vmatmul.mubr.bf16.gmra.mrb[56].mxu0 %v565_v8  ;;  %1682 = vmatmul.mubr.bf16.gmra.mrb[56].mxu1 %v565_v8  ;;  %v6917_v39 = vpop.f32.mrb[27].mxu1  ;;  %v5970_v53 = vld [vmem:[#allocation2 + $0x3cc] ss:$16 sps:$4 sm:$0xff]   ;;  %v6939_v8 = vadd.f32 %v6735_v31, %v6871_v63 }
 0x173   :  { %7901 = vst [vmem:[#allocation36_spill] sm:$0xff] %v6898_v41  ;;  %v6915_v20 = vadd.f32 %v361_v49, %v6655_v29  ;;  %1501 = vmatpush1.bf16.msra.mxu0 %v5953_v23  ;;  %1727 = vmatpush1.bf16.msra.mxu1 %v5956_v37  ;;  %v7821_v7 = vmax.f32 %v6898_v41, 0.0  ;;  %v7825_v23 = vmax.f32 %v6903_v48, 0.0  ;;  %v6927_v37 = vadd.f32 %v6685_v51, %v6910_v62  ;;  %v5976_v31 = vld [vmem:[#allocation2 + $0x3ec] ss:$16 sps:$4 sm:$0xff]  }
 0x174   :  { %7903 = vst [vmem:[#allocation38_spill] sm:$0xff] %v6906_v54  ;;  %v7824_v30 = vmax.f32 %v6906_v54, 0.0  ;;  %1502 = vmatprep.subr.bf16.mxu0 %v5961_v2  ;;  %1728 = vmatprep.subr.bf16.mxu1 %v5964_v40  ;;  %v5965_v40 = vld [vmem:[#allocation2 + $0x3c0] ss:$16 sps:$4 sm:$0xff]   ;;  %v5968_v2 = vld [vmem:[#allocation2 + $0x3c8] ss:$16 sps:$4 sm:$0xff]  }
 0x175   :  { %7904 = vst [vmem:[#allocation39_spill] sm:$0xff] %v6915_v20  ;;  %v7820_v29 = vmax.f32 %v6915_v20, 0.0  ;;  %v6953_v20 = vpop.f32.mrb[28].mxu1  ;;  %v5979_v54 = vld [vmem:[#allocation5 + $0x4] ss:$16 sps:$4 sm:$0xff]  }
 0x176   :  { %v569_v51 = vpack.c.bf16 %v7824_v30, %v7825_v23  ;;  %v6955_v41 = vpop.f32.mrb[29].mxu1  ;;  %v5971_v30 = vld [vmem:[#allocation2 + $0x3e0] ss:$16 sps:$4 sm:$0xff]   ;;  %v7828_v23 = vmax.f32 %v6935_v27, 0.0  ;;  %v5994_v48 = vld [vmem:[#allocation5 + $0x4c] ss:$16 sps:$4 sm:$0xff]  }
 0x177   :  { %v570_v49 = vpack.c.bf16 %v7820_v29, %v7821_v7  ;;  %1503 = vmatpush1.bf16.msra.mxu0 %v5959_v1  ;;  %1729 = vmatpush1.bf16.msra.mxu1 %v5962_v4  ;;  %v6947_v29 = vadd.f32 %v6698_v58, %v6910_v62  ;;  %v7905_v1 = vmax.f32 %v6889_v25, 0.0  ;;  %v7906_v4 = vmax.f32 %v6893_v34, 0.0  ;;  %v6957_v58 = vpop.f32.mrb[30].mxu1 }
 0x178   :  { %1504 = vmatprep.subr.bf16.mxu0 %v5967_v57  ;;  %1730 = vmatprep.subr.bf16.mxu1 %v5970_v53  ;;  %v7827_v57 = vmax.f32 %v6939_v8, 0.0  ;;  %v6961_v53 = vpop.f32.mrb[31].mxu1 }
 0x179   :  { %v544_v7 = vpack.c.bf16 %v7906_v4, %v7905_v1  ;;  %1465 = vmatprep.mubr.bf16.mxu0 %v570_v49  ;;  %1691 = vmatprep.mubr.bf16.mxu1 %v570_v49  ;;  %v5974_v1 = vld [vmem:[#allocation2 + $0x3e8] ss:$16 sps:$4 sm:$0xff]   ;;  %v7829_v4 = vmax.f32 %v6927_v37, 0.0  ;;  %v6975_v49 = vadd.f32 %v6767_v16, %v6871_v63  ;;  %v5988_v16 = vld [vmem:[#allocation5 + $0x2c] ss:$16 sps:$4 sm:$0xff]  }
 0x17a   :  { %1466 = vmatmul.mubr.bf16.gmra.mrb[60].mxu0 %v569_v51  ;;  %1692 = vmatmul.mubr.bf16.gmra.mrb[60].mxu1 %v569_v51  ;;  %v5982_v51 = vld [vmem:[#allocation5 + $0xc] ss:$16 sps:$4 sm:$0xff]  }
 0x17b   :  { %1505 = vmatpush1.bf16.msra.mxu0 %v5965_v40  ;;  %1731 = vmatpush1.bf16.msra.mxu1 %v5968_v2  ;;  %v548_v40 = vpack.c.bf16 %v7827_v57, %v7828_v23  ;;  %v6971_v2 = vadd.f32 %v6754_v6, %v6871_v63  ;;  %7908 = vst [vmem:[#allocation41_spill] sm:$0xff] %v6975_v49  ;;  %v5980_v6 = vld [vmem:[#allocation5 + $0x8] ss:$16 sps:$4 sm:$0xff]   ;;  %v5985_v57 = vld [vmem:[#allocation5 + $0x24] ss:$16 sps:$4 sm:$0xff]  }
 0x17c   :  { %1506 = vmatprep.subr.bf16.mxu0 %v5973_v17  ;;  %1508 = vmatprep.mubr.bf16.mxu0 %v544_v7  ;;  %v7909_v17 = vmax.f32 %v6947_v29, 0.0 }
 0x17d   :  { %1732 = vmatprep.subr.bf16.mxu1 %v5976_v31  ;;  %1734 = vmatprep.mubr.bf16.mxu1 %v544_v7  ;;  %7907 = vst [vmem:[#allocation40_spill] sm:$0xff] %v6971_v2  ;;  %v6987_v31 = vadd.f32 %v6730_v21, %v6910_v62  ;;  %v7832_v23 = vmax.f32 %v6971_v2, 0.0  ;;  %v5983_v21 = vld [vmem:[#allocation5 + $0x20] ss:$16 sps:$4 sm:$0xff]  }
 0x17e   :  { %v543_v7 = vpack.c.bf16 %v7909_v17, %v7829_v4  ;;  %v7831_v17 = vmax.f32 %v6975_v49, 0.0  ;;  %v7003_v4 = vadd.f32 %v6799_v46, %v6871_v63  ;;  %v5997_v46 = vld [vmem:[#allocation5 + $0x64] ss:$16 sps:$4 sm:$0xff]  }
 0x17f   :  { %1507 = vmatpush1.bf16.msra.mxu0 %v5971_v30  ;;  %1733 = vmatpush1.bf16.msra.mxu1 %v5974_v1  ;;  %v6983_v30 = vadd.f32 %v6717_v14, %v6910_v62  ;;  %v5977_v1 = vld [vmem:[#allocation5] ss:$16 sps:$4 sm:$0xff]  }
 0x180   :  { %2701 = vmatprep.subr.bf16.mxu0 %v5979_v54  ;;  %2927 = vmatprep.subr.bf16.mxu1 %v5982_v51  ;;  %v5986_v54 = vld [vmem:[#allocation5 + $0x28] ss:$16 sps:$4 sm:$0xff]   ;;  %v5991_v51 = vld [vmem:[#allocation5 + $0x44] ss:$16 sps:$4 sm:$0xff]   ;;  %7911 = vst [vmem:[#allocation43_spill] sm:$0xff] %v7003_v4 }
 0x181   :  { %v7833_v14 = vmax.f32 %v6983_v30, 0.0 }
 0x182   :  { %1509 = vmatmul.mubr.bf16.vlgmr.msra.gmra.mrb[32].mxu0 %v543_v7  ;;  %1735 = vmatmul.mubr.bf16.vlgmr.msra.gmra.mrb[32].mxu1 %v543_v7  ;;  %v552_v7 = vpack.c.bf16 %v7831_v17, %v7832_v23  ;;  %v5992_v17 = vld [vmem:[#allocation5 + $0x48] ss:$16 sps:$4 sm:$0xff]   ;;  %v6000_v23 = vld [vmem:[#allocation5 + $0x6c] ss:$16 sps:$4 sm:$0xff]  }
 0x183   :  { %1518 = vmatprep.mubr.bf16.mxu0 %v548_v40  ;;  %1744 = vmatprep.mubr.bf16.mxu1 %v548_v40  ;;  %v6999_v40 = vadd.f32 %v6786_v13, %v6871_v63  ;;  %v5989_v13 = vld [vmem:[#allocation5 + $0x40] ss:$16 sps:$4 sm:$0xff]  }
 0x184   :  { %2702 = vmatpush1.bf16.msra.mxu0 %v5977_v1  ;;  %2928 = vmatpush1.bf16.msra.mxu1 %v5980_v6  ;;  %v7011_v6 = vadd.f32 %v6749_v61, %v6910_v62  ;;  %v7834_v61 = vmax.f32 %v7003_v4, 0.0 }
 0x185   :  { %2703 = vmatprep.subr.bf16.mxu0 %v5985_v57  ;;  %2929 = vmatprep.subr.bf16.mxu1 %v5988_v16  ;;  %7910 = vst [vmem:[#allocation42_spill] sm:$0xff] %v6999_v40  ;;  %v7912_v57 = vmax.f32 %v6987_v31, 0.0  ;;  %v7015_v16 = vadd.f32 %v6762_v10, %v6910_v62  ;;  %v7031_v10 = vadd.f32 %v6831_v43, %v6871_v63  ;;  %v6009_v43 = vld [vmem:[#allocation5 + $0xa4] ss:$16 sps:$4 sm:$0xff]  }
 0x186   :  { %7913 = vst [vmem:[#allocation44_spill] sm:$0xff] %v7011_v6 }
 0x187   :  { %v547_v1 = vpack.c.bf16 %v7912_v57, %v7833_v14  ;;  %7914 = vst [vmem:[#allocation45_spill] sm:$0xff] %v7015_v16  ;;  %v7835_v57 = vmax.f32 %v6999_v40, 0.0  ;;  %v7836_v14 = vmax.f32 %v7011_v6, 0.0  ;;  %7916 = vst [vmem:[#allocation47_spill] sm:$0xff] %v7031_v10 }
 0x188   :  { %2704 = vmatpush1.bf16.msra.mxu0 %v5983_v21  ;;  %2930 = vmatpush1.bf16.msra.mxu1 %v5986_v54  ;;  %v5995_v21 = vld [vmem:[#allocation5 + $0x60] ss:$16 sps:$4 sm:$0xff]   ;;  %v5998_v54 = vld [vmem:[#allocation5 + $0x68] ss:$16 sps:$4 sm:$0xff]  }
 0x189   :  { %2705 = vmatprep.subr.bf16.mxu0 %v5991_v51  ;;  %2931 = vmatprep.subr.bf16.mxu1 %v5994_v48  ;;  %v6003_v48 = vld [vmem:[#allocation5 + $0x84] ss:$16 sps:$4 sm:$0xff]   ;;  %v6006_v51 = vld [vmem:[#allocation5 + $0x8c] ss:$16 sps:$4 sm:$0xff]  }
 0x18a   :  { %1519 = vmatmul.mubr.bf16.gmra.mrb[36].mxu0 %v547_v1  ;;  %1745 = vmatmul.mubr.bf16.gmra.mrb[36].mxu1 %v547_v1  ;;  %v556_v1 = vpack.c.bf16 %v7834_v61, %v7835_v57  ;;  %v6004_v61 = vld [vmem:[#allocation5 + $0x88] ss:$16 sps:$4 sm:$0xff]   ;;  %v6012_v57 = vld [vmem:[#allocation5 + $0xac] ss:$16 sps:$4 sm:$0xff]  }
 0x18b   :  { %1528 = vmatprep.mubr.bf16.mxu0 %v552_v7  ;;  %1754 = vmatprep.mubr.bf16.mxu1 %v552_v7  ;;  %v7027_v7 = vadd.f32 %v6818_v47, %v6871_v63  ;;  %v6001_v47 = vld [vmem:[#allocation5 + $0x80] ss:$16 sps:$4 sm:$0xff]  }
 0x18c   :  { %2706 = vmatpush1.bf16.msra.mxu0 %v5989_v13  ;;  %2932 = vmatpush1.bf16.msra.mxu1 %v5992_v17  ;;  %v7917_v17 = vmax.f32 %v7015_v16, 0.0  ;;  %v7039_v13 = vadd.f32 %v6781_v9, %v6910_v62  ;;  %v7837_v9 = vmax.f32 %v7031_v10, 0.0  ;;  %v6073_v10 = vld [vmem:[#allocation5 + $0x200] ss:$16 sps:$4 sm:$0xff]  }
 0x18d   :  { %2707 = vmatprep.subr.bf16.mxu0 %v5997_v46  ;;  %2933 = vmatprep.subr.bf16.mxu1 %v6000_v23  ;;  %7915 = vst [vmem:[#allocation46_spill] sm:$0xff] %v7027_v7  ;;  %v7043_v46 = vadd.f32 %v6794_v24, %v6910_v62  ;;  %v7059_v24 = vadd.f32 %v6866_v32, %v6871_v63  ;;  %v6021_v32 = vld [vmem:[#allocation5 + $0xe4] ss:$16 sps:$4 sm:$0xff]  }
 0x18e   :  { %v551_v23 = vpack.c.bf16 %v7917_v17, %v7836_v14  ;;  %7918 = vst [vmem:[#allocation48_spill] sm:$0xff] %v7039_v13  ;;  %v7838_v17 = vmax.f32 %v7027_v7, 0.0  ;;  %v7839_v14 = vmax.f32 %v7039_v13, 0.0 }
 0x18f   :  { %7919 = vst [vmem:[#allocation49_spill] sm:$0xff] %v7043_v46  ;;  %7921 = vst [vmem:[#allocation51_spill] sm:$0xff] %v7059_v24 }
 0x190   :  { %2708 = vmatpush1.bf16.msra.mxu0 %v5995_v21  ;;  %2934 = vmatpush1.bf16.msra.mxu1 %v5998_v54  ;;  %v6007_v21 = vld [vmem:[#allocation5 + $0xa0] ss:$16 sps:$4 sm:$0xff]   ;;  %v6010_v54 = vld [vmem:[#allocation5 + $0xa8] ss:$16 sps:$4 sm:$0xff]  }
 0x191   :  { %2709 = vmatprep.subr.bf16.mxu0 %v6003_v48  ;;  %2935 = vmatprep.subr.bf16.mxu1 %v6006_v51  ;;  %v6015_v48 = vld [vmem:[#allocation5 + $0xc4] ss:$16 sps:$4 sm:$0xff]   ;;  %v6018_v51 = vld [vmem:[#allocation5 + $0xcc] ss:$16 sps:$4 sm:$0xff]  }
 0x192   :  { %1529 = vmatmul.mubr.bf16.gmra.mrb[40].mxu0 %v551_v23  ;;  %1755 = vmatmul.mubr.bf16.gmra.mrb[40].mxu1 %v551_v23  ;;  %v560_v23 = vpack.c.bf16 %v7837_v9, %v7838_v17  ;;  %v6016_v9 = vld [vmem:[#allocation5 + $0xc8] ss:$16 sps:$4 sm:$0xff]   ;;  %v6024_v17 = vld [vmem:[#allocation5 + $0xec] ss:$16 sps:$4 sm:$0xff]  }
 0x193   :  { %1538 = vmatprep.mubr.bf16.mxu0 %v556_v1  ;;  %1764 = vmatprep.mubr.bf16.mxu1 %v556_v1  ;;  %v7055_v1 = vadd.f32 %v6853_v60, %v6871_v63  ;;  %v6013_v60 = vld [vmem:[#allocation5 + $0xc0] ss:$16 sps:$4 sm:$0xff]  }
 0x194   :  { %2710 = vmatpush1.bf16.msra.mxu0 %v6001_v47  ;;  %2936 = vmatpush1.bf16.msra.mxu1 %v6004_v61  ;;  %v7922_v61 = vmax.f32 %v7043_v46, 0.0  ;;  %v7067_v47 = vadd.f32 %v6813_v3, %v6910_v62  ;;  %v7840_v3 = vmax.f32 %v7059_v24, 0.0 }
 0x195   :  { %2711 = vmatprep.subr.bf16.mxu0 %v6009_v43  ;;  %2937 = vmatprep.subr.bf16.mxu1 %v6012_v57  ;;  %7920 = vst [vmem:[#allocation50_spill] sm:$0xff] %v7055_v1  ;;  %v7071_v43 = vadd.f32 %v6826_v44, %v6910_v62  ;;  %v7087_v44 = vadd.f32 %v6917_v39, %v6871_v63  ;;  %v6033_v39 = vld [vmem:[#allocation5 + $0x124] ss:$16 sps:$4 sm:$0xff]  }
 0x196   :  { %v555_v57 = vpack.c.bf16 %v7922_v61, %v7839_v14  ;;  %7923 = vst [vmem:[#allocation52_spill] sm:$0xff] %v7067_v47  ;;  %v7841_v61 = vmax.f32 %v7055_v1, 0.0  ;;  %v7842_v14 = vmax.f32 %v7067_v47, 0.0 }
 0x197   :  { %7924 = vst [vmem:[#allocation53_spill] sm:$0xff] %v7071_v43  ;;  %7926 = vst [vmem:[#allocation55_spill] sm:$0xff] %v7087_v44 }
 0x198   :  { %2712 = vmatpush1.bf16.msra.mxu0 %v6007_v21  ;;  %2938 = vmatpush1.bf16.msra.mxu1 %v6010_v54  ;;  %v6019_v21 = vld [vmem:[#allocation5 + $0xe0] ss:$16 sps:$4 sm:$0xff]   ;;  %v6022_v54 = vld [vmem:[#allocation5 + $0xe8] ss:$16 sps:$4 sm:$0xff]  }
 0x199   :  { %2713 = vmatprep.subr.bf16.mxu0 %v6015_v48  ;;  %2939 = vmatprep.subr.bf16.mxu1 %v6018_v51  ;;  %v6027_v48 = vld [vmem:[#allocation5 + $0x104] ss:$16 sps:$4 sm:$0xff]   ;;  %v6030_v51 = vld [vmem:[#allocation5 + $0x10c] ss:$16 sps:$4 sm:$0xff]  }
 0x19a   :  { %1539 = vmatmul.mubr.bf16.gmra.mrb[44].mxu0 %v555_v57  ;;  %1765 = vmatmul.mubr.bf16.gmra.mrb[44].mxu1 %v555_v57  ;;  %v564_v57 = vpack.c.bf16 %v7840_v3, %v7841_v61  ;;  %v6028_v3 = vld [vmem:[#allocation5 + $0x108] ss:$16 sps:$4 sm:$0xff]   ;;  %v6036_v61 = vld [vmem:[#allocation5 + $0x12c] ss:$16 sps:$4 sm:$0xff]  }
 0x19b   :  { %1548 = vmatprep.mubr.bf16.mxu0 %v560_v23  ;;  %1774 = vmatprep.mubr.bf16.mxu1 %v560_v23  ;;  %v7083_v23 = vadd.f32 %v6900_v11, %v6871_v63  ;;  %v6025_v11 = vld [vmem:[#allocation5 + $0x100] ss:$16 sps:$4 sm:$0xff]  }
 0x19c   :  { %2714 = vmatpush1.bf16.msra.mxu0 %v6013_v60  ;;  %2940 = vmatpush1.bf16.msra.mxu1 %v6016_v9  ;;  %v7927_v9 = vmax.f32 %v7071_v43, 0.0  ;;  %v7095_v60 = vadd.f32 %v6848_v5, %v6910_v62  ;;  %v7843_v5 = vmax.f32 %v7087_v44, 0.0 }
 0x19d   :  { %2715 = vmatprep.subr.bf16.mxu0 %v6021_v32  ;;  %2941 = vmatprep.subr.bf16.mxu1 %v6024_v17  ;;  %7925 = vst [vmem:[#allocation54_spill] sm:$0xff] %v7083_v23  ;;  %v7099_v32 = vadd.f32 %v6861_v50, %v6910_v62  ;;  %v7115_v50 = vadd.f32 %v6961_v53, %v6871_v63  ;;  %v6048_v53 = vld [vmem:[#allocation5 + $0x16c] ss:$16 sps:$4 sm:$0xff]  }
 0x19e   :  { %v559_v17 = vpack.c.bf16 %v7927_v9, %v7842_v14  ;;  %7928 = vst [vmem:[#allocation56_spill] sm:$0xff] %v7095_v60  ;;  %v7844_v9 = vmax.f32 %v7083_v23, 0.0  ;;  %v7851_v14 = vmax.f32 %v7095_v60, 0.0 }
 0x19f   :  { %7929 = vst [vmem:[#allocation57_spill] sm:$0xff] %v7099_v32  ;;  %7931 = vst [vmem:[#allocation59_spill] sm:$0xff] %v7115_v50 }
 0x1a0   :  { %2716 = vmatpush1.bf16.msra.mxu0 %v6019_v21  ;;  %2942 = vmatpush1.bf16.msra.mxu1 %v6022_v54  ;;  %v6031_v21 = vld [vmem:[#allocation5 + $0x120] ss:$16 sps:$4 sm:$0xff]   ;;  %v6034_v54 = vld [vmem:[#allocation5 + $0x128] ss:$16 sps:$4 sm:$0xff]  }
 0x1a1   :  { %2717 = vmatprep.subr.bf16.mxu0 %v6027_v48  ;;  %2943 = vmatprep.subr.bf16.mxu1 %v6030_v51  ;;  %v6039_v48 = vld [vmem:[#allocation5 + $0x144] ss:$16 sps:$4 sm:$0xff]   ;;  %v6042_v51 = vld [vmem:[#allocation5 + $0x14c] ss:$16 sps:$4 sm:$0xff]  }
 0x1a2   :  { %1549 = vmatmul.mubr.bf16.gmra.mrb[48].mxu0 %v559_v17  ;;  %1775 = vmatmul.mubr.bf16.gmra.mrb[48].mxu1 %v559_v17  ;;  %v568_v17 = vpack.c.bf16 %v7843_v5, %v7844_v9  ;;  %v6040_v5 = vld [vmem:[#allocation5 + $0x148] ss:$16 sps:$4 sm:$0xff]  }
 0x1a3   :  { %1558 = vmatprep.mubr.bf16.mxu0 %v564_v57  ;;  %1784 = vmatprep.mubr.bf16.mxu1 %v564_v57  ;;  %v7111_v57 = vadd.f32 %v6955_v41, %v6871_v63  ;;  %v6037_v41 = vld [vmem:[#allocation5 + $0x140] ss:$16 sps:$4 sm:$0xff]   ;;  %v6045_v63 = vld [vmem:[#allocation5 + $0x164] ss:$16 sps:$4 sm:$0xff]  }
 0x1a4   :  { %2718 = vmatpush1.bf16.msra.mxu0 %v6025_v11  ;;  %2944 = vmatpush1.bf16.msra.mxu1 %v6028_v3  ;;  %v7932_v3 = vmax.f32 %v7099_v32, 0.0  ;;  %v7123_v11 = vadd.f32 %v6895_v45, %v6910_v62  ;;  %v7845_v45 = vmax.f32 %v7115_v50, 0.0 }
 0x1a5   :  { %2719 = vmatprep.subr.bf16.mxu0 %v6033_v39  ;;  %2945 = vmatprep.subr.bf16.mxu1 %v6036_v61  ;;  %7930 = vst [vmem:[#allocation58_spill] sm:$0xff] %v7111_v57  ;;  %v7127_v39 = vadd.f32 %v6912_v42, %v6910_v62 }
 0x1a6   :  { %v563_v61 = vpack.c.bf16 %v7932_v3, %v7851_v14  ;;  %7933 = vst [vmem:[#allocation60_spill] sm:$0xff] %v7123_v11  ;;  %v7846_v3 = vmax.f32 %v7111_v57, 0.0  ;;  %v7850_v9 = vmax.f32 %v7123_v11, 0.0 }
 0x1a7   :  { %7934 = vst [vmem:[#allocation61_spill] sm:$0xff] %v7127_v39  ;;  %v7847_v42 = vmax.f32 %v7127_v39, 0.0 }
 0x1a8   :  { %2720 = vmatpush1.bf16.msra.mxu0 %v6031_v21  ;;  %2946 = vmatpush1.bf16.msra.mxu1 %v6034_v54  ;;  %v6043_v21 = vld [vmem:[#allocation5 + $0x160] ss:$16 sps:$4 sm:$0xff]   ;;  %v6046_v54 = vld [vmem:[#allocation5 + $0x168] ss:$16 sps:$4 sm:$0xff]  }
 0x1a9   :  { %2721 = vmatprep.subr.bf16.mxu0 %v6039_v48  ;;  %2947 = vmatprep.subr.bf16.mxu1 %v6042_v51  ;;  %v6051_v48 = vld [vmem:[#allocation5 + $0x184] ss:$16 sps:$4 sm:$0xff]   ;;  %v6054_v51 = vld [vmem:[#allocation5 + $0x18c] ss:$16 sps:$4 sm:$0xff]  }
 0x1aa   :  { %1559 = vmatmul.mubr.bf16.gmra.mrb[52].mxu0 %v563_v61  ;;  %1785 = vmatmul.mubr.bf16.gmra.mrb[52].mxu1 %v563_v61  ;;  %v572_v61 = vpack.c.bf16 %v7845_v45, %v7846_v3  ;;  %v6057_v45 = vld [vmem:[#allocation5 + $0x1a4] ss:$16 sps:$4 sm:$0xff]   ;;  %v6060_v3 = vld [vmem:[#allocation5 + $0x1ac] ss:$16 sps:$4 sm:$0xff]  }
 0x1ab   :  { %1568 = vmatprep.mubr.bf16.mxu0 %v568_v17  ;;  %1794 = vmatprep.mubr.bf16.mxu1 %v568_v17  ;;  %v567_v17 = vpack.c.bf16 %v7847_v42, %v7850_v9 }
 0x1ac   :  { %2722 = vmatpush1.bf16.msra.mxu0 %v6037_v41  ;;  %2948 = vmatpush1.bf16.msra.mxu1 %v6040_v5  ;;  %v7143_v41 = vadd.f32 %v6953_v20, %v6910_v62  ;;  %v7147_v5 = vadd.f32 %v6957_v58, %v6910_v62  ;;  %v6055_v62 = vld [vmem:[#allocation5 + $0x1a0] ss:$16 sps:$4 sm:$0xff]   ;;  %v6058_v58 = vld [vmem:[#allocation5 + $0x1a8] ss:$16 sps:$4 sm:$0xff]  }
 0x1ad   :  { %2723 = vmatprep.subr.bf16.mxu0 %v6045_v63  ;;  %2949 = vmatprep.subr.bf16.mxu1 %v6048_v53  ;;  %v6049_v63 = vld [vmem:[#allocation5 + $0x180] ss:$16 sps:$4 sm:$0xff]   ;;  %v6052_v53 = vld [vmem:[#allocation5 + $0x188] ss:$16 sps:$4 sm:$0xff]  }
 0x1ae   :  { %7935 = vst [vmem:[#allocation62_spill] sm:$0xff] %v7143_v41  ;;  %7936 = vst [vmem:[#allocation63_spill] sm:$0xff] %v7147_v5  ;;  %v7849_v42 = vmax.f32 %v7143_v41, 0.0  ;;  %v7848_v20 = vmax.f32 %v7147_v5, 0.0 }
 0x1b0   :  { %2724 = vmatpush1.bf16.msra.mxu0 %v6043_v21  ;;  %2950 = vmatpush1.bf16.msra.mxu1 %v6046_v54  ;;  %v571_v21 = vpack.c.bf16 %v7848_v20, %v7849_v42  ;;  %v6063_v54 = vld [vmem:[#allocation5 + $0x1c4] ss:$16 sps:$4 sm:$0xff]  }
 0x1b1   :  { %2725 = vmatprep.subr.bf16.mxu0 %v6051_v48  ;;  %2951 = vmatprep.subr.bf16.mxu1 %v6054_v51  ;;  %v6066_v48 = vld [vmem:[#allocation5 + $0x1cc] ss:$16 sps:$4 sm:$0xff]   ;;  %v6061_v51 = vld [vmem:[#allocation5 + $0x1c0] ss:$16 sps:$4 sm:$0xff]  }
 0x1b2   :  { %1569 = vmatmul.mubr.bf16.gmra.mrb[56].mxu0 %v567_v17  ;;  %1795 = vmatmul.mubr.bf16.gmra.mrb[56].mxu1 %v567_v17  ;;  %v6069_v17 = vld [vmem:[#allocation5 + $0x1e4] ss:$16 sps:$4 sm:$0xff]  }
 0x1b3   :  { %1578 = vmatprep.mubr.bf16.mxu0 %v572_v61  ;;  %1804 = vmatprep.mubr.bf16.mxu1 %v572_v61  ;;  %v6064_v61 = vld [vmem:[#allocation5 + $0x1c8] ss:$16 sps:$4 sm:$0xff]  }
 0x1b4   :  { %2726 = vmatpush1.bf16.msra.mxu0 %v6049_v63  ;;  %2952 = vmatpush1.bf16.msra.mxu1 %v6052_v53  ;;  %v6070_v63 = vld [vmem:[#allocation5 + $0x1e8] ss:$16 sps:$4 sm:$0xff]   ;;  %v6075_v53 = vld [vmem:[#allocation5 + $0x204] ss:$16 sps:$4 sm:$0xff]  }
 0x1b5   :  { %2727 = vmatprep.subr.bf16.mxu0 %v6057_v45  ;;  %2953 = vmatprep.subr.bf16.mxu1 %v6060_v3  ;;  %v6072_v45 = vld [vmem:[#allocation5 + $0x1ec] ss:$16 sps:$4 sm:$0xff]   ;;  %v6067_v3 = vld [vmem:[#allocation5 + $0x1e0] ss:$16 sps:$4 sm:$0xff]  }
 0x1b8   :  { %2728 = vmatpush1.bf16.msra.mxu0 %v6055_v62  ;;  %2954 = vmatpush1.bf16.msra.mxu1 %v6058_v58  ;;  %v6078_v62 = vld [vmem:[#allocation5 + $0x20c] ss:$16 sps:$4 sm:$0xff]   ;;  %v701_v58 = vld [vmem:[%s7773_s7 + $0x4] sm:$0xf] }
 0x1b9   :  { %2729 = vmatprep.subr.bf16.mxu0 %v6063_v54  ;;  %2955 = vmatprep.subr.bf16.mxu1 %v6066_v48  ;;  %v7162_v54 = vrot.slane %v701_v58, %v6877_v12  ;;  %v7165_v48 = vrot.slane %v701_v58, %v6643_v26 }
 0x1ba   :  { %1579 = vmatmul.mubr.bf16.gmra.mrb[60].mxu0 %v571_v21  ;;  %1805 = vmatmul.mubr.bf16.gmra.mrb[60].mxu1 %v571_v21  ;;  %v7159_v21 = vrot.slane %v701_v58, %v6651_v28 }
 0x1bc   :  { %2730 = vmatpush1.bf16.msra.mxu0 %v6061_v51  ;;  %2956 = vmatpush1.bf16.msra.mxu1 %v6064_v61  ;;  %v7168_v51 = vrot.slane %v701_v58, %v6846_v0 }
 0x1bd   :  { %2731 = vmatprep.subr.bf16.mxu0 %v6069_v17  ;;  %2957 = vmatprep.subr.bf16.mxu1 %v6072_v45 }
 0x1c0   :  { %2732 = vmatpush1.bf16.msra.mxu0 %v6067_v3  ;;  %2958 = vmatpush1.bf16.msra.mxu1 %v6070_v63 }
 0x1c1   :  { %2814 = vmatprep.subr.bf16.mxu0 %v6075_v53  ;;  %3040 = vmatprep.subr.bf16.mxu1 %v6078_v62 }
 0x255   :  { %v1510_v61 = vpop.f32.mrb[32].mxu0  ;;  %v1736_v17 = vpop.f32.mrb[32].mxu1 }
 0x256   :  { %v5498_v45 = vadd.f32 %v1510_v61, %v7159_v21  ;;  %v5530_v3 = vadd.f32 %v1736_v17, %v7162_v54  ;;  %v1512_v63 = vpop.f32.mrb[33].mxu0  ;;  %v1738_v53 = vpop.f32.mrb[33].mxu1 }
 0x257   :  { %v5499_v62 = vadd.f32 %v1512_v63, %v7165_v48  ;;  %v5531_v20 = vadd.f32 %v1738_v53, %v7168_v51  ;;  %v1514_v42 = vpop.f32.mrb[34].mxu0  ;;  %v1740_v9 = vpop.f32.mrb[34].mxu1 }
 0x258   :  { %v5500_v14 = vadd.f32 %v1514_v42, %v7159_v21  ;;  %v5532_v50 = vadd.f32 %v1740_v9, %v7162_v54  ;;  %v1516_v58 = vpop.f32.mrb[35].mxu0  ;;  %v1742_v5 = vpop.f32.mrb[35].mxu1  ;;  %v1815_v41 = vmax.f32 %v5498_v45, 0.0  ;;  %v1817_v17 = vmax.f32 %v5530_v3, 0.0  ;;  %v6081_v3 = vld [vmem:[#allocation5 + $0x224] ss:$16 sps:$4 sm:$0xff]  }
 0x259   :  { %v5501_v57 = vadd.f32 %v1516_v58, %v7165_v48  ;;  %v5533_v61 = vadd.f32 %v1742_v5, %v7168_v51  ;;  %v1816_v23 = vmax.f32 %v5499_v62, 0.0  ;;  %v1818_v63 = vmax.f32 %v5531_v20, 0.0  ;;  %v6076_v58 = vld [vmem:[#allocation5 + $0x208] ss:$16 sps:$4 sm:$0xff]   ;;  %v6084_v20 = vld [vmem:[#allocation5 + $0x22c] ss:$16 sps:$4 sm:$0xff]  }
 0x25a   :  { %v1819_v44 = vmax.f32 %v5500_v14, 0.0  ;;  %v1821_v39 = vmax.f32 %v5532_v50, 0.0 }
 0x25b   :  { %v1820_v11 = vmax.f32 %v5501_v57, 0.0  ;;  %v1822_v53 = vmax.f32 %v5533_v61, 0.0 }
 0x25c   :  { %v1879_v24 = vpack.c.bf16 %v1819_v44, %v1815_v41  ;;  %v7178_v32 = vpack.c.bf16 %v1821_v39, %v1817_v17 }
 0x25d   :  { %v1880_v42 = vpack.c.bf16 %v1820_v11, %v1816_v23  ;;  %v7180_v1 = vpack.c.bf16 %v1822_v53, %v1818_v63  ;;  %v1520_v9 = vpop.f32.mrb[36].mxu0  ;;  %v1746_v60 = vpop.f32.mrb[36].mxu1  ;;  %v6079_v63 = vld [vmem:[#allocation5 + $0x220] ss:$16 sps:$4 sm:$0xff]   ;;  %v6082_v53 = vld [vmem:[#allocation5 + $0x228] ss:$16 sps:$4 sm:$0xff]  }
 0x25e   :  { %v5502_v5 = vadd.f32 %v1520_v9, %v7159_v21  ;;  %v5534_v45 = vadd.f32 %v1746_v60, %v7162_v54  ;;  %v1522_v14 = vpop.f32.mrb[37].mxu0  ;;  %v1748_v50 = vpop.f32.mrb[37].mxu1  ;;  %v6087_v9 = vld [vmem:[#allocation5 + $0x244] ss:$16 sps:$4 sm:$0xff]  }
 0x25f   :  { %v5503_v57 = vadd.f32 %v1522_v14, %v7165_v48  ;;  %v5535_v44 = vadd.f32 %v1748_v50, %v7168_v51  ;;  %v1524_v39 = vpop.f32.mrb[38].mxu0  ;;  %v1750_v23 = vpop.f32.mrb[38].mxu1  ;;  %2733 = vmatprep.mubr.bf16.mxu0 %v1880_v42  ;;  %2959 = vmatprep.mubr.bf16.mxu1 %v1880_v42 }
 0x260   :  { %v5504_v11 = vadd.f32 %v1524_v39, %v7159_v21  ;;  %v5536_v41 = vadd.f32 %v1750_v23, %v7162_v54  ;;  %v1526_v62 = vpop.f32.mrb[39].mxu0  ;;  %v1752_v61 = vpop.f32.mrb[39].mxu1  ;;  %2734 = vmatmul.mubr.bf16.vlgmr.msra.gmra.mrb[64].mxu0 %v1879_v24  ;;  %2960 = vmatmul.mubr.bf16.vlgmr.msra.gmra.mrb[64].mxu1 %v1879_v24  ;;  %v1823_v14 = vmax.f32 %v5502_v5, 0.0  ;;  %v1825_v50 = vmax.f32 %v5534_v45, 0.0  ;;  %v6090_v39 = vld [vmem:[#allocation5 + $0x24c] ss:$16 sps:$4 sm:$0xff]  }
 0x261   :  { %v5505_v60 = vadd.f32 %v1526_v62, %v7165_v48  ;;  %v5537_v17 = vadd.f32 %v1752_v61, %v7168_v51  ;;  %2815 = vmatpush1.bf16.msra.mxu0 %v6073_v10  ;;  %3041 = vmatpush1.bf16.msra.mxu1 %v6076_v58  ;;  %v1824_v23 = vmax.f32 %v5503_v57, 0.0  ;;  %v1826_v7 = vmax.f32 %v5535_v44, 0.0  ;;  %v6085_v5 = vld [vmem:[#allocation5 + $0x240] ss:$16 sps:$4 sm:$0xff]   ;;  %v6088_v45 = vld [vmem:[#allocation5 + $0x248] ss:$16 sps:$4 sm:$0xff]  }
 0x262   :  { %v1827_v42 = vmax.f32 %v5504_v11, 0.0  ;;  %v1829_v43 = vmax.f32 %v5536_v41, 0.0  ;;  %2816 = vmatprep.subr.bf16.mxu0 %v6081_v3  ;;  %3042 = vmatprep.subr.bf16.mxu1 %v6084_v20  ;;  %v6093_v11 = vld [vmem:[#allocation5 + $0x264] ss:$16 sps:$4 sm:$0xff]  }
 0x263   :  { %v1828_v47 = vmax.f32 %v5505_v60, 0.0  ;;  %v1830_v24 = vmax.f32 %v5537_v17, 0.0 }
 0x264   :  { %v1883_v4 = vpack.c.bf16 %v1827_v42, %v1823_v14  ;;  %v7190_v62 = vpack.c.bf16 %v1829_v43, %v1825_v50  ;;  %v6096_v43 = vld [vmem:[#allocation5 + $0x26c] ss:$16 sps:$4 sm:$0xff]   ;;  %v6091_v50 = vld [vmem:[#allocation5 + $0x260] ss:$16 sps:$4 sm:$0xff]   ;;  %v6094_v42 = vld [vmem:[#allocation5 + $0x268] ss:$16 sps:$4 sm:$0xff]  }
 0x265   :  { %v1884_v61 = vpack.c.bf16 %v1828_v47, %v1824_v23  ;;  %v7192_v10 = vpack.c.bf16 %v1830_v24, %v1826_v7  ;;  %2817 = vmatpush1.bf16.msra.mxu0 %v6079_v63  ;;  %v1530_v58 = vpop.f32.mrb[40].mxu0  ;;  %v1756_v46 = vpop.f32.mrb[40].mxu1  ;;  %3043 = vmatpush1.bf16.msra.mxu1 %v6082_v53 }
 0x266   :  { %v5506_v3 = vadd.f32 %v1530_v58, %v7159_v21  ;;  %v5538_v20 = vadd.f32 %v1756_v46, %v7162_v54  ;;  %v1532_v57 = vpop.f32.mrb[41].mxu0  ;;  %v1758_v44 = vpop.f32.mrb[41].mxu1  ;;  %2818 = vmatprep.subr.bf16.mxu0 %v6087_v9  ;;  %3044 = vmatprep.subr.bf16.mxu1 %v6090_v39  ;;  %v6099_v39 = vld [vmem:[#allocation5 + $0x284] ss:$16 sps:$4 sm:$0xff]  }
 0x267   :  { %v5507_v47 = vadd.f32 %v1532_v57, %v7165_v48  ;;  %v5539_v7 = vadd.f32 %v1758_v44, %v7168_v51  ;;  %v1534_v41 = vpop.f32.mrb[42].mxu0  ;;  %v1760_v60 = vpop.f32.mrb[42].mxu1  ;;  %2743 = vmatprep.mubr.bf16.mxu0 %v1884_v61  ;;  %2969 = vmatprep.mubr.bf16.mxu1 %v1884_v61  ;;  %v6102_v57 = vld [vmem:[#allocation5 + $0x28c] ss:$16 sps:$4 sm:$0xff]  }
 0x268   :  { %v5508_v17 = vadd.f32 %v1534_v41, %v7159_v21  ;;  %v5540_v63 = vadd.f32 %v1760_v60, %v7162_v54  ;;  %v1536_v53 = vpop.f32.mrb[43].mxu0  ;;  %v1762_v46 = vpop.f32.mrb[43].mxu1  ;;  %2744 = vmatmul.mubr.bf16.gmra.mrb[68].mxu0 %v1883_v4  ;;  %2970 = vmatmul.mubr.bf16.gmra.mrb[68].mxu1 %v1883_v4  ;;  %v1831_v23 = vmax.f32 %v5506_v3, 0.0  ;;  %v1833_v24 = vmax.f32 %v5538_v20, 0.0  ;;  %v6097_v3 = vld [vmem:[#allocation5 + $0x280] ss:$16 sps:$4 sm:$0xff]  }
 0x269   :  { %v5509_v9 = vadd.f32 %v1536_v53, %v7165_v48  ;;  %v5541_v14 = vadd.f32 %v1762_v46, %v7168_v51  ;;  %2819 = vmatpush1.bf16.msra.mxu0 %v6085_v5  ;;  %3045 = vmatpush1.bf16.msra.mxu1 %v6088_v45  ;;  %v1832_v44 = vmax.f32 %v5507_v47, 0.0  ;;  %v1834_v41 = vmax.f32 %v5539_v7, 0.0  ;;  %v6100_v20 = vld [vmem:[#allocation5 + $0x288] ss:$16 sps:$4 sm:$0xff]  }
 0x26a   :  { %v1835_v61 = vmax.f32 %v5508_v17, 0.0  ;;  %v1837_v58 = vmax.f32 %v5540_v63, 0.0  ;;  %2820 = vmatprep.subr.bf16.mxu0 %v6093_v11  ;;  %3046 = vmatprep.subr.bf16.mxu1 %v6096_v43  ;;  %v6105_v17 = vld [vmem:[#allocation5 + $0x2a4] ss:$16 sps:$4 sm:$0xff]   ;;  %v6108_v63 = vld [vmem:[#allocation5 + $0x2ac] ss:$16 sps:$4 sm:$0xff]  }
 0x26b   :  { %v1836_v60 = vmax.f32 %v5509_v9, 0.0  ;;  %v1838_v4 = vmax.f32 %v5541_v14, 0.0 }
 0x26c   :  { %v1887_v40 = vpack.c.bf16 %v1835_v61, %v1831_v23  ;;  %v7202_v53 = vpack.c.bf16 %v1837_v58, %v1833_v24 }
 0x26d   :  { %v1888_v46 = vpack.c.bf16 %v1836_v60, %v1832_v44  ;;  %v7204_v5 = vpack.c.bf16 %v1838_v4, %v1834_v41  ;;  %2821 = vmatpush1.bf16.msra.mxu0 %v6091_v50  ;;  %v1540_v45 = vpop.f32.mrb[44].mxu0  ;;  %v1766_v13 = vpop.f32.mrb[44].mxu1  ;;  %3047 = vmatpush1.bf16.msra.mxu1 %v6094_v42  ;;  %v6106_v44 = vld [vmem:[#allocation5 + $0x2a8] ss:$16 sps:$4 sm:$0xff]   ;;  %v6111_v41 = vld [vmem:[#allocation5 + $0x2c4] ss:$16 sps:$4 sm:$0xff]  }
 0x26e   :  { %v5510_v11 = vadd.f32 %v1540_v45, %v7159_v21  ;;  %v5542_v43 = vadd.f32 %v1766_v13, %v7162_v54  ;;  %v1542_v47 = vpop.f32.mrb[45].mxu0  ;;  %v1768_v7 = vpop.f32.mrb[45].mxu1  ;;  %2822 = vmatprep.subr.bf16.mxu0 %v6099_v39  ;;  %3048 = vmatprep.subr.bf16.mxu1 %v6102_v57  ;;  %v6103_v57 = vld [vmem:[#allocation5 + $0x2a0] ss:$16 sps:$4 sm:$0xff]  }
 0x26f   :  { %v5511_v9 = vadd.f32 %v1542_v47, %v7165_v48  ;;  %v5543_v14 = vadd.f32 %v1768_v7, %v7168_v51  ;;  %v1544_v50 = vpop.f32.mrb[46].mxu0  ;;  %v1770_v23 = vpop.f32.mrb[46].mxu1  ;;  %2753 = vmatprep.mubr.bf16.mxu0 %v1888_v46  ;;  %2979 = vmatprep.mubr.bf16.mxu1 %v1888_v46  ;;  %v6114_v47 = vld [vmem:[#allocation5 + $0x2cc] ss:$16 sps:$4 sm:$0xff]  }
 0x270   :  { %v5512_v42 = vadd.f32 %v1544_v50, %v7159_v21  ;;  %v5544_v24 = vadd.f32 %v1770_v23, %v7162_v54  ;;  %v1546_v61 = vpop.f32.mrb[47].mxu0  ;;  %v1772_v13 = vpop.f32.mrb[47].mxu1  ;;  %2754 = vmatmul.mubr.bf16.gmra.mrb[72].mxu0 %v1887_v40  ;;  %2980 = vmatmul.mubr.bf16.gmra.mrb[72].mxu1 %v1887_v40  ;;  %v1839_v60 = vmax.f32 %v5510_v11, 0.0  ;;  %v1841_v4 = vmax.f32 %v5542_v43, 0.0  ;;  %v6109_v11 = vld [vmem:[#allocation5 + $0x2c0] ss:$16 sps:$4 sm:$0xff]  }
 0x271   :  { %v5513_v39 = vadd.f32 %v1546_v61, %v7165_v48  ;;  %v5545_v58 = vadd.f32 %v1772_v13, %v7168_v51  ;;  %2823 = vmatpush1.bf16.msra.mxu0 %v6097_v3  ;;  %3049 = vmatpush1.bf16.msra.mxu1 %v6100_v20  ;;  %v1840_v7 = vmax.f32 %v5511_v9, 0.0  ;;  %v1842_v50 = vmax.f32 %v5543_v14, 0.0  ;;  %v6112_v43 = vld [vmem:[#allocation5 + $0x2c8] ss:$16 sps:$4 sm:$0xff]  }
 0x272   :  { %v1843_v46 = vmax.f32 %v5512_v42, 0.0  ;;  %v1845_v45 = vmax.f32 %v5544_v24, 0.0  ;;  %2824 = vmatprep.subr.bf16.mxu0 %v6105_v17  ;;  %3050 = vmatprep.subr.bf16.mxu1 %v6108_v63  ;;  %v6117_v42 = vld [vmem:[#allocation5 + $0x2e4] ss:$16 sps:$4 sm:$0xff]   ;;  %v6120_v24 = vld [vmem:[#allocation5 + $0x2ec] ss:$16 sps:$4 sm:$0xff]  }
 0x273   :  { %v1844_v23 = vmax.f32 %v5513_v39, 0.0  ;;  %v1846_v40 = vmax.f32 %v5545_v58, 0.0 }
 0x274   :  { %v1891_v49 = vpack.c.bf16 %v1843_v46, %v1839_v60  ;;  %v7214_v61 = vpack.c.bf16 %v1845_v45, %v1841_v4 }
 0x275   :  { %v1892_v13 = vpack.c.bf16 %v1844_v23, %v1840_v7  ;;  %v7216_v3 = vpack.c.bf16 %v1846_v40, %v1842_v50  ;;  %2825 = vmatpush1.bf16.msra.mxu0 %v6103_v57  ;;  %v1550_v20 = vpop.f32.mrb[48].mxu0  ;;  %v1776_v22 = vpop.f32.mrb[48].mxu1  ;;  %3051 = vmatpush1.bf16.msra.mxu1 %v6106_v44  ;;  %v6118_v7 = vld [vmem:[#allocation5 + $0x2e8] ss:$16 sps:$4 sm:$0xff]   ;;  %v6123_v50 = vld [vmem:[#allocation5 + $0x304] ss:$16 sps:$4 sm:$0xff]  }
 0x276   :  { %v5514_v17 = vadd.f32 %v1550_v20, %v7159_v21  ;;  %v5546_v63 = vadd.f32 %v1776_v22, %v7162_v54  ;;  %v1552_v9 = vpop.f32.mrb[49].mxu0  ;;  %v1778_v14 = vpop.f32.mrb[49].mxu1  ;;  %2826 = vmatprep.subr.bf16.mxu0 %v6111_v41  ;;  %3052 = vmatprep.subr.bf16.mxu1 %v6114_v47  ;;  %v6115_v47 = vld [vmem:[#allocation5 + $0x2e0] ss:$16 sps:$4 sm:$0xff]  }
 0x277   :  { %v5515_v39 = vadd.f32 %v1552_v9, %v7165_v48  ;;  %v5547_v58 = vadd.f32 %v1778_v14, %v7168_v51  ;;  %v1554_v57 = vpop.f32.mrb[50].mxu0  ;;  %v1780_v60 = vpop.f32.mrb[50].mxu1  ;;  %2763 = vmatprep.mubr.bf16.mxu0 %v1892_v13  ;;  %2989 = vmatprep.mubr.bf16.mxu1 %v1892_v13  ;;  %v6126_v9 = vld [vmem:[#allocation5 + $0x30c] ss:$16 sps:$4 sm:$0xff]  }
 0x278   :  { %v5516_v44 = vadd.f32 %v1554_v57, %v7159_v21  ;;  %v5548_v4 = vadd.f32 %v1780_v60, %v7162_v54  ;;  %v1556_v46 = vpop.f32.mrb[51].mxu0  ;;  %v1782_v22 = vpop.f32.mrb[51].mxu1  ;;  %2764 = vmatmul.mubr.bf16.gmra.mrb[76].mxu0 %v1891_v49  ;;  %2990 = vmatmul.mubr.bf16.gmra.mrb[76].mxu1 %v1891_v49  ;;  %v1847_v23 = vmax.f32 %v5514_v17, 0.0  ;;  %v1849_v40 = vmax.f32 %v5546_v63, 0.0  ;;  %v6121_v17 = vld [vmem:[#allocation5 + $0x300] ss:$16 sps:$4 sm:$0xff]  }
 0x279   :  { %v5517_v41 = vadd.f32 %v1556_v46, %v7165_v48  ;;  %v5549_v45 = vadd.f32 %v1782_v22, %v7168_v51  ;;  %2827 = vmatpush1.bf16.msra.mxu0 %v6109_v11  ;;  %3053 = vmatpush1.bf16.msra.mxu1 %v6112_v43  ;;  %v1848_v14 = vmax.f32 %v5515_v39, 0.0  ;;  %v1850_v57 = vmax.f32 %v5547_v58, 0.0  ;;  %v6124_v63 = vld [vmem:[#allocation5 + $0x308] ss:$16 sps:$4 sm:$0xff]  }
 0x27a   :  { %v1851_v13 = vmax.f32 %v5516_v44, 0.0  ;;  %v1853_v20 = vmax.f32 %v5548_v4, 0.0  ;;  %2828 = vmatprep.subr.bf16.mxu0 %v6117_v42  ;;  %3054 = vmatprep.subr.bf16.mxu1 %v6120_v24  ;;  %v6129_v44 = vld [vmem:[#allocation5 + $0x324] ss:$16 sps:$4 sm:$0xff]   ;;  %v6132_v4 = vld [vmem:[#allocation5 + $0x32c] ss:$16 sps:$4 sm:$0xff]  }
 0x27b   :  { %v1852_v60 = vmax.f32 %v5517_v41, 0.0  ;;  %v1854_v49 = vmax.f32 %v5549_v45, 0.0 }
 0x27c   :  { %v1895_v16 = vpack.c.bf16 %v1851_v13, %v1847_v23  ;;  %v7226_v46 = vpack.c.bf16 %v1853_v20, %v1849_v40 }
 0x27d   :  { %v1896_v22 = vpack.c.bf16 %v1852_v60, %v1848_v14  ;;  %v7228_v11 = vpack.c.bf16 %v1854_v49, %v1850_v57  ;;  %2829 = vmatpush1.bf16.msra.mxu0 %v6115_v47  ;;  %v1560_v43 = vpop.f32.mrb[52].mxu0  ;;  %v1786_v19 = vpop.f32.mrb[52].mxu1  ;;  %3055 = vmatpush1.bf16.msra.mxu1 %v6118_v7  ;;  %v6130_v14 = vld [vmem:[#allocation5 + $0x328] ss:$16 sps:$4 sm:$0xff]   ;;  %v6135_v57 = vld [vmem:[#allocation5 + $0x344] ss:$16 sps:$4 sm:$0xff]  }
 0x27e   :  { %v5518_v42 = vadd.f32 %v1560_v43, %v7159_v21  ;;  %v5550_v24 = vadd.f32 %v1786_v19, %v7162_v54  ;;  %v1562_v39 = vpop.f32.mrb[53].mxu0  ;;  %v1788_v58 = vpop.f32.mrb[53].mxu1  ;;  %2830 = vmatprep.subr.bf16.mxu0 %v6123_v50  ;;  %3056 = vmatprep.subr.bf16.mxu1 %v6126_v9  ;;  %v6127_v9 = vld [vmem:[#allocation5 + $0x320] ss:$16 sps:$4 sm:$0xff]  }
 0x27f   :  { %v5519_v41 = vadd.f32 %v1562_v39, %v7165_v48  ;;  %v5551_v45 = vadd.f32 %v1788_v58, %v7168_v51  ;;  %v1564_v47 = vpop.f32.mrb[54].mxu0  ;;  %v1790_v23 = vpop.f32.mrb[54].mxu1  ;;  %2773 = vmatprep.mubr.bf16.mxu0 %v1896_v22  ;;  %2999 = vmatprep.mubr.bf16.mxu1 %v1896_v22  ;;  %v6138_v39 = vld [vmem:[#allocation5 + $0x34c] ss:$16 sps:$4 sm:$0xff]  }
 0x280   :  { %v5520_v7 = vadd.f32 %v1564_v47, %v7159_v21  ;;  %v5552_v40 = vadd.f32 %v1790_v23, %v7162_v54  ;;  %v1566_v13 = vpop.f32.mrb[55].mxu0  ;;  %v1792_v19 = vpop.f32.mrb[55].mxu1  ;;  %2774 = vmatmul.mubr.bf16.gmra.mrb[80].mxu0 %v1895_v16  ;;  %3000 = vmatmul.mubr.bf16.gmra.mrb[80].mxu1 %v1895_v16  ;;  %v1855_v60 = vmax.f32 %v5518_v42, 0.0  ;;  %v1857_v49 = vmax.f32 %v5550_v24, 0.0  ;;  %v6133_v42 = vld [vmem:[#allocation5 + $0x340] ss:$16 sps:$4 sm:$0xff]  }
 0x281   :  { %v5521_v50 = vadd.f32 %v1566_v13, %v7165_v48  ;;  %v5553_v20 = vadd.f32 %v1792_v19, %v7168_v51  ;;  %2831 = vmatpush1.bf16.msra.mxu0 %v6121_v17  ;;  %3057 = vmatpush1.bf16.msra.mxu1 %v6124_v63  ;;  %v1856_v58 = vmax.f32 %v5519_v41, 0.0  ;;  %v1858_v47 = vmax.f32 %v5551_v45, 0.0  ;;  %v6136_v24 = vld [vmem:[#allocation5 + $0x348] ss:$16 sps:$4 sm:$0xff]  }
 0x282   :  { %v1859_v22 = vmax.f32 %v5520_v7, 0.0  ;;  %v1861_v43 = vmax.f32 %v5552_v40, 0.0  ;;  %2832 = vmatprep.subr.bf16.mxu0 %v6129_v44  ;;  %3058 = vmatprep.subr.bf16.mxu1 %v6132_v4  ;;  %v6141_v7 = vld [vmem:[#allocation5 + $0x364] ss:$16 sps:$4 sm:$0xff]   ;;  %v6144_v40 = vld [vmem:[#allocation5 + $0x36c] ss:$16 sps:$4 sm:$0xff]  }
 0x283   :  { %v1860_v23 = vmax.f32 %v5521_v50, 0.0  ;;  %v1862_v16 = vmax.f32 %v5553_v20, 0.0 }
 0x284   :  { %v1899_v2 = vpack.c.bf16 %v1859_v22, %v1855_v60  ;;  %v7238_v13 = vpack.c.bf16 %v1861_v43, %v1857_v49 }
 0x285   :  { %v1900_v19 = vpack.c.bf16 %v1860_v23, %v1856_v58  ;;  %v7240_v17 = vpack.c.bf16 %v1862_v16, %v1858_v47  ;;  %2833 = vmatpush1.bf16.msra.mxu0 %v6127_v9  ;;  %v1570_v63 = vpop.f32.mrb[56].mxu0  ;;  %v1796_v15 = vpop.f32.mrb[56].mxu1  ;;  %3059 = vmatpush1.bf16.msra.mxu1 %v6130_v14  ;;  %v6142_v58 = vld [vmem:[#allocation5 + $0x368] ss:$16 sps:$4 sm:$0xff]   ;;  %v6147_v47 = vld [vmem:[#allocation5 + $0x384] ss:$16 sps:$4 sm:$0xff]  }
 0x286   :  { %v5522_v44 = vadd.f32 %v1570_v63, %v7159_v21  ;;  %v5554_v4 = vadd.f32 %v1796_v15, %v7162_v54  ;;  %v1572_v41 = vpop.f32.mrb[57].mxu0  ;;  %v1798_v45 = vpop.f32.mrb[57].mxu1  ;;  %2834 = vmatprep.subr.bf16.mxu0 %v6135_v57  ;;  %3060 = vmatprep.subr.bf16.mxu1 %v6138_v39  ;;  %v6139_v39 = vld [vmem:[#allocation5 + $0x360] ss:$16 sps:$4 sm:$0xff]  }
 0x287   :  { %v5523_v50 = vadd.f32 %v1572_v41, %v7165_v48  ;;  %v5555_v20 = vadd.f32 %v1798_v45, %v7168_v51  ;;  %v1574_v9 = vpop.f32.mrb[58].mxu0  ;;  %v1800_v60 = vpop.f32.mrb[58].mxu1  ;;  %2783 = vmatprep.mubr.bf16.mxu0 %v1900_v19  ;;  %3009 = vmatprep.mubr.bf16.mxu1 %v1900_v19  ;;  %v6150_v41 = vld [vmem:[#allocation5 + $0x38c] ss:$16 sps:$4 sm:$0xff]  }
 0x288   :  { %v5524_v14 = vadd.f32 %v1574_v9, %v7159_v21  ;;  %v5556_v49 = vadd.f32 %v1800_v60, %v7162_v54  ;;  %v1576_v22 = vpop.f32.mrb[59].mxu0  ;;  %v1802_v15 = vpop.f32.mrb[59].mxu1  ;;  %2784 = vmatmul.mubr.bf16.gmra.mrb[84].mxu0 %v1899_v2  ;;  %3010 = vmatmul.mubr.bf16.gmra.mrb[84].mxu1 %v1899_v2  ;;  %v1863_v23 = vmax.f32 %v5522_v44, 0.0  ;;  %v1865_v16 = vmax.f32 %v5554_v4, 0.0  ;;  %v6145_v44 = vld [vmem:[#allocation5 + $0x380] ss:$16 sps:$4 sm:$0xff]  }
 0x289   :  { %v5525_v57 = vadd.f32 %v1576_v22, %v7165_v48  ;;  %v5557_v43 = vadd.f32 %v1802_v15, %v7168_v51  ;;  %2835 = vmatpush1.bf16.msra.mxu0 %v6133_v42  ;;  %3061 = vmatpush1.bf16.msra.mxu1 %v6136_v24  ;;  %v1864_v45 = vmax.f32 %v5523_v50, 0.0  ;;  %v1866_v9 = vmax.f32 %v5555_v20, 0.0  ;;  %v6148_v4 = vld [vmem:[#allocation5 + $0x388] ss:$16 sps:$4 sm:$0xff]  }
 0x28a   :  { %v1867_v19 = vmax.f32 %v5524_v14, 0.0  ;;  %v1869_v63 = vmax.f32 %v5556_v49, 0.0  ;;  %2836 = vmatprep.subr.bf16.mxu0 %v6141_v7  ;;  %3062 = vmatprep.subr.bf16.mxu1 %v6144_v40  ;;  %v6153_v14 = vld [vmem:[#allocation5 + $0x3a4] ss:$16 sps:$4 sm:$0xff]   ;;  %v6156_v49 = vld [vmem:[#allocation5 + $0x3ac] ss:$16 sps:$4 sm:$0xff]  }
 0x28b   :  { %v1868_v60 = vmax.f32 %v5525_v57, 0.0  ;;  %v1870_v2 = vmax.f32 %v5557_v43, 0.0 }
 0x28c   :  { %v1903_v6 = vpack.c.bf16 %v1867_v19, %v1863_v23  ;;  %v7250_v22 = vpack.c.bf16 %v1869_v63, %v1865_v16 }
 0x28d   :  { %v1904_v15 = vpack.c.bf16 %v1868_v60, %v1864_v45  ;;  %v7252_v42 = vpack.c.bf16 %v1870_v2, %v1866_v9  ;;  %2837 = vmatpush1.bf16.msra.mxu0 %v6139_v39  ;;  %v1580_v24 = vpop.f32.mrb[60].mxu0  ;;  %v1806_v18 = vpop.f32.mrb[60].mxu1  ;;  %3063 = vmatpush1.bf16.msra.mxu1 %v6142_v58  ;;  %v6154_v45 = vld [vmem:[#allocation5 + $0x3a8] ss:$16 sps:$4 sm:$0xff]   ;;  %v6159_v9 = vld [vmem:[#allocation5 + $0x3c4] ss:$16 sps:$4 sm:$0xff]  }
 0x28e   :  { %v5526_v7 = vadd.f32 %v1580_v24, %v7159_v21  ;;  %v5558_v40 = vadd.f32 %v1806_v18, %v7162_v54  ;;  %v1582_v50 = vpop.f32.mrb[61].mxu0  ;;  %v1808_v20 = vpop.f32.mrb[61].mxu1  ;;  %2838 = vmatprep.subr.bf16.mxu0 %v6147_v47  ;;  %3064 = vmatprep.subr.bf16.mxu1 %v6150_v41  ;;  %v6151_v41 = vld [vmem:[#allocation5 + $0x3a0] ss:$16 sps:$4 sm:$0xff]  }
 0x28f   :  { %v5527_v57 = vadd.f32 %v1582_v50, %v7165_v48  ;;  %v5559_v43 = vadd.f32 %v1808_v20, %v7168_v51  ;;  %v1584_v39 = vpop.f32.mrb[62].mxu0  ;;  %v1810_v23 = vpop.f32.mrb[62].mxu1  ;;  %2793 = vmatprep.mubr.bf16.mxu0 %v1904_v15  ;;  %3019 = vmatprep.mubr.bf16.mxu1 %v1904_v15 }
 0x290   :  { %v5528_v58 = vadd.f32 %v1584_v39, %v7159_v21  ;;  %v5560_v16 = vadd.f32 %v1810_v23, %v7162_v54  ;;  %v1586_v19 = vpop.f32.mrb[63].mxu0  ;;  %v1812_v18 = vpop.f32.mrb[63].mxu1  ;;  %2794 = vmatmul.mubr.bf16.gmra.mrb[88].mxu0 %v1903_v6  ;;  %3020 = vmatmul.mubr.bf16.gmra.mrb[88].mxu1 %v1903_v6  ;;  %v1871_v60 = vmax.f32 %v5526_v7, 0.0  ;;  %v1873_v2 = vmax.f32 %v5558_v40, 0.0  ;;  %v6162_v21 = vld [vmem:[#allocation5 + $0x3cc] ss:$16 sps:$4 sm:$0xff]  }
 0x291   :  { %v5529_v47 = vadd.f32 %v1586_v19, %v7165_v48  ;;  %v5561_v63 = vadd.f32 %v1812_v18, %v7168_v51  ;;  %2839 = vmatpush1.bf16.msra.mxu0 %v6145_v44  ;;  %3065 = vmatpush1.bf16.msra.mxu1 %v6148_v4  ;;  %v1872_v54 = vmax.f32 %v5527_v57, 0.0  ;;  %v1874_v50 = vmax.f32 %v5559_v43, 0.0  ;;  %v6157_v4 = vld [vmem:[#allocation5 + $0x3c0] ss:$16 sps:$4 sm:$0xff]   ;;  %v6160_v7 = vld [vmem:[#allocation5 + $0x3c8] ss:$16 sps:$4 sm:$0xff]  }
 0x292   :  { %v1875_v15 = vmax.f32 %v5528_v58, 0.0  ;;  %v1877_v24 = vmax.f32 %v5560_v16, 0.0  ;;  %2840 = vmatprep.subr.bf16.mxu0 %v6153_v14  ;;  %3066 = vmatprep.subr.bf16.mxu1 %v6156_v49  ;;  %v6165_v40 = vld [vmem:[#allocation5 + $0x3e4] ss:$16 sps:$4 sm:$0xff]   ;;  %v6168_v14 = vld [vmem:[#allocation5 + $0x3ec] ss:$16 sps:$4 sm:$0xff]  }
 0x293   :  { %v1876_v20 = vmax.f32 %v5529_v47, 0.0  ;;  %v1878_v6 = vmax.f32 %v5561_v63, 0.0  ;;  %v6163_v49 = vld [vmem:[#allocation5 + $0x3e0] ss:$16 sps:$4 sm:$0xff]   ;;  %v6166_v57 = vld [vmem:[#allocation5 + $0x3e8] ss:$16 sps:$4 sm:$0xff]  }
 0x294   :  { %v1907_v39 = vpack.c.bf16 %v1875_v15, %v1871_v60  ;;  %v7262_v48 = vpack.c.bf16 %v1877_v24, %v1873_v2  ;;  %v6169_v43 = vld [vmem:[#allocation7 + $0x40] sm:$0xff]   ;;  %v6173_v19 = vld [vmem:[#allocation7 + $0x48] sm:$0xff]   ;;  %v6177_v63 = vld [vmem:[#allocation7 + $0x50] sm:$0xff]  }
 0x295   :  { %v1908_v51 = vpack.c.bf16 %v1876_v20, %v1872_v54  ;;  %v7264_v44 = vpack.c.bf16 %v1878_v6, %v1874_v50  ;;  %2841 = vmatpush1.bf16.msra.mxu0 %v6151_v41  ;;  %3067 = vmatpush1.bf16.msra.mxu1 %v6154_v45  ;;  %v6171_v23 = vld [vmem:[#allocation7 + $0xc0] sm:$0xff]   ;;  %v6175_v18 = vld [vmem:[#allocation7 + $0xc8] sm:$0xff]   ;;  %v6179_v41 = vld [vmem:[#allocation7 + $0xd0] sm:$0xff]  }
 0x296   :  { %2842 = vmatprep.subr.bf16.mxu0 %v6159_v9  ;;  %3068 = vmatprep.subr.bf16.mxu1 %v6162_v21  ;;  %v6170_v58 = vld [vmem:[#allocation7] sm:$0xff]   ;;  %v6176_v47 = vld [vmem:[#allocation7 + $0x88] sm:$0xff]   ;;  %v6178_v45 = vld [vmem:[#allocation7 + $0x10] sm:$0xff]  }
 0x297   :  { %2803 = vmatprep.mubr.bf16.mxu0 %v1908_v51  ;;  %3029 = vmatprep.mubr.bf16.mxu1 %v1908_v51  ;;  %v6172_v16 = vld [vmem:[#allocation7 + $0x80] sm:$0xff]   ;;  %v6180_v9 = vld [vmem:[#allocation7 + $0x90] sm:$0xff]   ;;  %v6181_v60 = vld [vmem:[#allocation7 + $0x58] sm:$0xff]  }
 0x298   :  { %2804 = vmatmul.mubr.bf16.gmra.mrb[92].mxu0 %v1907_v39  ;;  %3030 = vmatmul.mubr.bf16.gmra.mrb[92].mxu1 %v1907_v39  ;;  %v6184_v2 = vld [vmem:[#allocation7 + $0x98] sm:$0xff]   ;;  %v6185_v15 = vld [vmem:[#allocation7 + $0x60] sm:$0xff]   ;;  %v6189_v50 = vld [vmem:[#allocation7 + $0x68] sm:$0xff]  }
 0x299   :  { %2843 = vmatpush1.bf16.msra.mxu0 %v6157_v4  ;;  %2846 = vmatprep.mubr.bf16.mxu0 %v7180_v1  ;;  %v6187_v24 = vld [vmem:[#allocation7 + $0xe0] sm:$0xff]   ;;  %v6192_v20 = vld [vmem:[#allocation7 + $0xa8] sm:$0xff]   ;;  %v6193_v6 = vld [vmem:[#allocation7 + $0x70] sm:$0xff]  }
 0x29a   :  { %3069 = vmatpush1.bf16.msra.mxu1 %v6160_v7  ;;  %3072 = vmatprep.mubr.bf16.mxu1 %v7180_v1  ;;  %v6174_v1 = vld [vmem:[#allocation7 + $0x8] sm:$0xff]   ;;  %v6186_v21 = vld [vmem:[#allocation7 + $0x20] sm:$0xff]   ;;  %v6195_v39 = vld [vmem:[#allocation7 + $0xf0] sm:$0xff]  }
 0x29b   :  { %2844 = vmatprep.subr.bf16.mxu0 %v6165_v40  ;;  %3070 = vmatprep.subr.bf16.mxu1 %v6168_v14  ;;  %v6188_v54 = vld [vmem:[#allocation7 + $0xa0] sm:$0xff]   ;;  %v6194_v51 = vld [vmem:[#allocation7 + $0x30] sm:$0xff]  }
 0x29c   :  { %v6196_v4 = vld [vmem:[#allocation7 + $0xb0] sm:$0xff]  }
 0x29d   :  { %2845 = vmatpush1.bf16.msra.mxu0 %v6163_v49 }
 0x29e   :  { %3071 = vmatpush1.bf16.msra.mxu1 %v6166_v57  ;;  %5242 = vmatprep.subr.bf16.mxu0 %v6169_v43 }
 0x29f   :  { %5306 = vmatprep.subr.bf16.mxu1 %v6171_v23 }
 0x2a0   :  { %2847 = vmatmul.mubr.bf16.vlgmr.msra.gmra.mrb[64].mxu0 %v7178_v32 }
 0x2a1   :  { %3073 = vmatmul.mubr.bf16.vlgmr.msra.gmra.mrb[64].mxu1 %v7178_v32  ;;  %2856 = vmatprep.mubr.bf16.mxu0 %v7192_v10  ;;  %v6183_v32 = vld [vmem:[#allocation7 + $0xd8] sm:$0xff]  }
 0x2a2   :  { %3082 = vmatprep.mubr.bf16.mxu1 %v7192_v10  ;;  %5243 = vmatpush3.bf16.msra.mxu0 %v6170_v58  ;;  %v6182_v10 = vld [vmem:[#allocation7 + $0x18] sm:$0xff]  }
 0x2a3   :  { %5307 = vmatpush3.bf16.msra.mxu1 %v6172_v16  ;;  %5244 = vmatprep.subr.bf16.mxu0 %v6173_v19  ;;  %v7937_v16 = vmax.f32 %v6665_v35, 0.0  ;;  %v7940_v35 = vmax.f32 %v6889_v25, 0.0 }
 0x2a4   :  { %5308 = vmatprep.subr.bf16.mxu1 %v6175_v18 }
 0x2a6   :  { %5245 = vmatpush3.bf16.msra.mxu0 %v6174_v1 }
 0x2a7   :  { %5309 = vmatpush3.bf16.msra.mxu1 %v6176_v47  ;;  %5246 = vmatprep.subr.bf16.mxu0 %v6177_v63 }
 0x2a8   :  { %2857 = vmatmul.mubr.bf16.gmra.mrb[68].mxu0 %v7190_v62  ;;  %5310 = vmatprep.subr.bf16.mxu1 %v6179_v41  ;;  %v7938_v41 = vmax.f32 %v6927_v37, 0.0 }
 0x2a9   :  { %3083 = vmatmul.mubr.bf16.gmra.mrb[68].mxu1 %v7190_v62  ;;  %2866 = vmatprep.mubr.bf16.mxu0 %v7204_v5  ;;  %v6191_v62 = vld [vmem:[#allocation7 + $0xe8] sm:$0xff]  }
 0x2aa   :  { %3092 = vmatprep.mubr.bf16.mxu1 %v7204_v5  ;;  %5247 = vmatpush3.bf16.msra.mxu0 %v6178_v45  ;;  %v6190_v5 = vld [vmem:[#allocation7 + $0x28] sm:$0xff]  }
 0x2ab   :  { %5311 = vmatpush3.bf16.msra.mxu1 %v6180_v9  ;;  %5248 = vmatprep.subr.bf16.mxu0 %v6181_v60  ;;  %v7939_v9 = vmax.f32 %v6662_v33, 0.0 }
 0x2ac   :  { %5312 = vmatprep.subr.bf16.mxu1 %v6183_v32 }
 0x2ae   :  { %5249 = vmatpush3.bf16.msra.mxu0 %v6182_v10 }
 0x2af   :  { %5313 = vmatpush3.bf16.msra.mxu1 %v6184_v2  ;;  %5250 = vmatprep.subr.bf16.mxu0 %v6185_v15 }
 0x2b0   :  { %2867 = vmatmul.mubr.bf16.gmra.mrb[72].mxu0 %v7202_v53  ;;  %5314 = vmatprep.subr.bf16.mxu1 %v6187_v24  ;;  %v7941_v24 = vmax.f32 %v6668_v36, 0.0 }
 0x2b1   :  { %3093 = vmatmul.mubr.bf16.gmra.mrb[72].mxu1 %v7202_v53  ;;  %2876 = vmatprep.mubr.bf16.mxu0 %v7216_v3  ;;  %v6197_v53 = vld [vmem:[#allocation7 + $0x78] sm:$0xff]  }
 0x2b2   :  { %3102 = vmatprep.mubr.bf16.mxu1 %v7216_v3  ;;  %5251 = vmatpush3.bf16.msra.mxu0 %v6186_v21  ;;  %v6198_v3 = vld [vmem:[#allocation7 + $0x38] sm:$0xff]  }
 0x2b3   :  { %5315 = vmatpush3.bf16.msra.mxu1 %v6188_v54  ;;  %5252 = vmatprep.subr.bf16.mxu0 %v6189_v50  ;;  %v7942_v50 = vmax.f32 %v6947_v29, 0.0 }
 0x2b4   :  { %5316 = vmatprep.subr.bf16.mxu1 %v6191_v62  ;;  %v7943_v62 = vmax.f32 %v6671_v38, 0.0 }
 0x2b6   :  { %5253 = vmatpush3.bf16.msra.mxu0 %v6190_v5 }
 0x2b7   :  { %5317 = vmatpush3.bf16.msra.mxu1 %v6192_v20  ;;  %5254 = vmatprep.subr.bf16.mxu0 %v6193_v6  ;;  %v7944_v6 = vmax.f32 %v6893_v34, 0.0 }
 0x2b8   :  { %2877 = vmatmul.mubr.bf16.gmra.mrb[76].mxu0 %v7214_v61  ;;  %5318 = vmatprep.subr.bf16.mxu1 %v6195_v39 }
 0x2b9   :  { %3103 = vmatmul.mubr.bf16.gmra.mrb[76].mxu1 %v7214_v61  ;;  %2886 = vmatprep.mubr.bf16.mxu0 %v7228_v11  ;;  %v6199_v61 = vld [vmem:[#allocation7 + $0xf8] sm:$0xff]  }
 0x2ba   :  { %3112 = vmatprep.mubr.bf16.mxu1 %v7228_v11  ;;  %5255 = vmatpush3.bf16.msra.mxu0 %v6194_v51  ;;  %v6203_v11 = vld [vmem:[#allocation8 + $0x4] ss:$16 sps:$4 sm:$0xff]  }
 0x2bb   :  { %5319 = vmatpush3.bf16.msra.mxu1 %v6196_v4  ;;  %5256 = vmatprep.subr.bf16.mxu0 %v6197_v53 }
 0x2bc   :  { %5320 = vmatprep.subr.bf16.mxu1 %v6199_v61 }
 0x2be   :  { %5257 = vmatpush3.bf16.msra.mxu0 %v6198_v3 }
 0x2bf   :  { %4008 = vmatprep.subr.bf16.mxu0 %v6203_v11 }
 0x2c0   :  { %2887 = vmatmul.mubr.bf16.gmra.mrb[80].mxu0 %v7226_v46 }
 0x2c1   :  { %3113 = vmatmul.mubr.bf16.gmra.mrb[80].mxu1 %v7226_v46  ;;  %2896 = vmatprep.mubr.bf16.mxu0 %v7240_v17  ;;  %v6200_v46 = vld [vmem:[#allocation7 + $0xb8] sm:$0xff]  }
 0x2c2   :  { %3122 = vmatprep.mubr.bf16.mxu1 %v7240_v17  ;;  %5321 = vmatpush3.bf16.msra.mxu1 %v6200_v46  ;;  %v2039_v17 = vld [vmem:[%s7773_s7 + $0x8] sm:$0xf] }
 0x2c8   :  { %2897 = vmatmul.mubr.bf16.gmra.mrb[84].mxu0 %v7238_v13 }
 0x2c9   :  { %3123 = vmatmul.mubr.bf16.gmra.mrb[84].mxu1 %v7238_v13  ;;  %2906 = vmatprep.mubr.bf16.mxu0 %v7252_v42  ;;  %v6206_v13 = vld [vmem:[#allocation8 + $0xc] ss:$16 sps:$4 sm:$0xff]  }
 0x2ca   :  { %3132 = vmatprep.mubr.bf16.mxu1 %v7252_v42  ;;  %4121 = vmatprep.subr.bf16.mxu1 %v6206_v13  ;;  %v7305_v42 = vrot.slane %v2039_v17, %v6877_v12 }
 0x2d0   :  { %2907 = vmatmul.mubr.bf16.gmra.mrb[88].mxu0 %v7250_v22 }
 0x2d1   :  { %3133 = vmatmul.mubr.bf16.gmra.mrb[88].mxu1 %v7250_v22  ;;  %2916 = vmatprep.mubr.bf16.mxu0 %v7264_v44  ;;  %v7302_v22 = vrot.slane %v2039_v17, %v6651_v28 }
 0x2d2   :  { %3142 = vmatprep.mubr.bf16.mxu1 %v7264_v44  ;;  %v7311_v44 = vrot.slane %v2039_v17, %v6846_v0 }
 0x2d8   :  { %2917 = vmatmul.mubr.bf16.gmra.mrb[92].mxu0 %v7262_v48 }
 0x2d9   :  { %3143 = vmatmul.mubr.bf16.gmra.mrb[92].mxu1 %v7262_v48  ;;  %v7308_v48 = vrot.slane %v2039_v17, %v6643_v26 }
 0x373   :  { %v2848_v7 = vpop.f32.mrb[64].mxu0 }
 0x374   :  { %v5562_v40 = vadd.f32 %v2848_v7, %v7302_v22  ;;  %v3074_v14 = vpop.f32.mrb[64].mxu1  ;;  %v2850_v49 = vpop.f32.mrb[65].mxu0 }
 0x375   :  { %v5594_v57 = vadd.f32 %v3074_v14, %v7305_v42  ;;  %v5563_v43 = vadd.f32 %v2850_v49, %v7308_v48  ;;  %v3076_v23 = vpop.f32.mrb[65].mxu1  ;;  %v2852_v58 = vpop.f32.mrb[66].mxu0  ;;  %v6201_v49 = vld [vmem:[#allocation8] ss:$16 sps:$4 sm:$0xff]  }
 0x376   :  { %v3153_v19 = vadd.f32 %v5562_v40, %v7937_v16  ;;  %v5595_v18 = vadd.f32 %v3076_v23, %v7311_v44  ;;  %v5564_v1 = vadd.f32 %v2852_v58, %v7302_v22  ;;  %v3078_v47 = vpop.f32.mrb[66].mxu1  ;;  %v2854_v63 = vpop.f32.mrb[67].mxu0 }
 0x377   :  { %v3155_v45 = vadd.f32 %v5594_v57, %v7938_v41  ;;  %v3154_v60 = vadd.f32 %v5563_v43, %v7939_v9  ;;  %v5596_v32 = vadd.f32 %v3078_v47, %v7305_v42  ;;  %v5565_v10 = vadd.f32 %v2854_v63, %v7308_v48  ;;  %v3080_v2 = vpop.f32.mrb[67].mxu1  ;;  %v6209_v47 = vld [vmem:[#allocation8 + $0x24] ss:$16 sps:$4 sm:$0xff]  }
 0x378   :  { %v3156_v15 = vadd.f32 %v5595_v18, %v7940_v35  ;;  %v3157_v21 = vadd.f32 %v5564_v1, %v7941_v24  ;;  %v5597_v54 = vadd.f32 %v3080_v2, %v7311_v44  ;;  %v3217_v5 = vmax.f32 %v3153_v19, 0.0  ;;  %v6204_v1 = vld [vmem:[#allocation8 + $0x8] ss:$16 sps:$4 sm:$0xff]  }
 0x379   :  { %v3159_v37 = vadd.f32 %v5596_v32, %v7942_v50  ;;  %v3158_v33 = vadd.f32 %v5565_v10, %v7943_v62  ;;  %v3219_v51 = vmax.f32 %v3155_v45, 0.0  ;;  %v3218_v4 = vmax.f32 %v3154_v60, 0.0  ;;  %v6212_v10 = vld [vmem:[#allocation8 + $0x2c] ss:$16 sps:$4 sm:$0xff]  }
 0x37a   :  { %v3221_v20 = vmax.f32 %v3157_v21, 0.0  ;;  %v3160_v39 = vadd.f32 %v5597_v54, %v7944_v6  ;;  %v3220_v36 = vmax.f32 %v3156_v15, 0.0  ;;  %v7945_v57 = vmax.f32 %v6693_v55, 0.0 }
 0x37b   :  { %v3223_v25 = vmax.f32 %v3159_v37, 0.0  ;;  %v3222_v53 = vmax.f32 %v3158_v33, 0.0  ;;  %v2858_v61 = vpop.f32.mrb[68].mxu0  ;;  %v7946_v63 = vmax.f32 %v6983_v30, 0.0  ;;  %v7947_v45 = vmax.f32 %v6688_v52, 0.0 }
 0x37c   :  { %v3281_v3 = vpack.c.bf16 %v3221_v20, %v3217_v5  ;;  %v3224_v46 = vmax.f32 %v3160_v39, 0.0  ;;  %v5566_v11 = vadd.f32 %v2858_v61, %v7302_v22  ;;  %v3084_v29 = vpop.f32.mrb[68].mxu1  ;;  %v2860_v13 = vpop.f32.mrb[69].mxu0  ;;  %v7948_v2 = vmax.f32 %v6935_v27, 0.0  ;;  %v6207_v37 = vld [vmem:[#allocation8 + $0x20] ss:$16 sps:$4 sm:$0xff]  }
 0x37d   :  { %v3283_v17 = vpack.c.bf16 %v3223_v25, %v3219_v51  ;;  %v5598_v38 = vadd.f32 %v3084_v29, %v7305_v42  ;;  %v5567_v7 = vadd.f32 %v2860_v13, %v7308_v48  ;;  %v3086_v40 = vpop.f32.mrb[69].mxu1  ;;  %v2862_v34 = vpop.f32.mrb[70].mxu0  ;;  %v3282_v14 = vpack.c.bf16 %v3222_v53, %v3218_v4 }
 0x37e   :  { %v3161_v43 = vadd.f32 %v5566_v11, %v7945_v57  ;;  %v5599_v23 = vadd.f32 %v3086_v40, %v7311_v44  ;;  %v5568_v58 = vadd.f32 %v2862_v34, %v7302_v22  ;;  %v3088_v16 = vpop.f32.mrb[70].mxu1  ;;  %v2864_v19 = vpop.f32.mrb[71].mxu0  ;;  %v3284_v18 = vpack.c.bf16 %v3224_v46, %v3220_v36 }
 0x37f   :  { %v3163_v41 = vadd.f32 %v5598_v38, %v7946_v63  ;;  %v3162_v9 = vadd.f32 %v5567_v7, %v7947_v45  ;;  %v5600_v60 = vadd.f32 %v3088_v16, %v7305_v42  ;;  %v5569_v55 = vadd.f32 %v2864_v19, %v7308_v48  ;;  %v3090_v32 = vpop.f32.mrb[71].mxu1  ;;  %3608 = vmatprep.mubr.bf16.mxu0 %v3282_v14  ;;  %v7953_v38 = vld [vmem:[#allocation17_spill] sm:$0xff]  ;;  %v7955_v16 = vld [vmem:[#allocation44_spill] sm:$0xff] }
 0x380   :  { %v3164_v35 = vadd.f32 %v5599_v23, %v7948_v2  ;;  %v7949_v15 = vmax.f32 %v6696_v56, 0.0  ;;  %v5601_v21 = vadd.f32 %v3090_v32, %v7311_v44  ;;  %3705 = vmatprep.mubr.bf16.mxu1 %v3284_v18  ;;  %3609 = vmatmul.mubr.bf16.vlgmr.msra.gmra.mrb[96].mxu0 %v3281_v3  ;;  %v7950_v52 = vmax.f32 %v6987_v31, 0.0  ;;  %v6210_v56 = vld [vmem:[#allocation8 + $0x28] ss:$16 sps:$4 sm:$0xff]   ;;  %v6213_v23 = vld [vmem:[#allocation8 + $0x40] ss:$16 sps:$4 sm:$0xff]  }
 0x381   :  { %v7951_v54 = vmax.f32 %v6701_v59, 0.0  ;;  %3706 = vmatmul.mubr.bf16.vlgmr.msra.gmra.mrb[96].mxu1 %v3283_v17  ;;  %4009 = vmatpush1.bf16.msra.mxu0 %v6201_v49  ;;  %v3225_v62 = vmax.f32 %v3161_v43, 0.0  ;;  %v7952_v27 = vmax.f32 %v6939_v8, 0.0  ;;  %v3227_v20 = vmax.f32 %v3163_v41, 0.0  ;;  %v6215_v17 = vld [vmem:[#allocation8 + $0x44] ss:$16 sps:$4 sm:$0xff]  }
 0x382   :  { %v3165_v24 = vadd.f32 %v5568_v58, %v7949_v15  ;;  %v3167_v30 = vadd.f32 %v5600_v60, %v7950_v52  ;;  %4122 = vmatpush1.bf16.msra.mxu1 %v6204_v1  ;;  %4010 = vmatprep.subr.bf16.mxu0 %v6209_v47  ;;  %v3226_v6 = vmax.f32 %v3162_v9, 0.0  ;;  %v3228_v4 = vmax.f32 %v3164_v35, 0.0  ;;  %v6218_v58 = vld [vmem:[#allocation8 + $0x4c] ss:$16 sps:$4 sm:$0xff]   ;;  %v7957_v1 = vld [vmem:[#allocation16_spill] sm:$0xff]  ;;  %v7961_v35 = vld [vmem:[#allocation18_spill] sm:$0xff] }
 0x383   :  { %v3166_v50 = vadd.f32 %v5569_v55, %v7951_v54  ;;  %v3168_v5 = vadd.f32 %v5601_v21, %v7952_v27  ;;  %v2868_v31 = vpop.f32.mrb[72].mxu0  ;;  %4123 = vmatprep.subr.bf16.mxu1 %v6212_v10  ;;  %v7954_v7 = vmax.f32 %v7953_v38, 0.0  ;;  %v7956_v19 = vmax.f32 %v7955_v16, 0.0  ;;  %v6216_v60 = vld [vmem:[#allocation8 + $0x48] ss:$16 sps:$4 sm:$0xff]   ;;  %v7959_v32 = vld [vmem:[#allocation40_spill] sm:$0xff] }
 0x384   :  { %v3229_v33 = vmax.f32 %v3165_v24, 0.0  ;;  %v3231_v39 = vmax.f32 %v3167_v30, 0.0  ;;  %v5570_v25 = vadd.f32 %v2868_v31, %v7302_v22  ;;  %v3094_v53 = vpop.f32.mrb[72].mxu1  ;;  %v2870_v61 = vpop.f32.mrb[73].mxu0  ;;  %v7958_v47 = vmax.f32 %v7957_v1, 0.0  ;;  %v7963_v30 = vld [vmem:[#allocation45_spill] sm:$0xff] }
 0x385   :  { %v3230_v51 = vmax.f32 %v3166_v50, 0.0  ;;  %v3232_v59 = vmax.f32 %v3168_v5, 0.0  ;;  %v5602_v3 = vadd.f32 %v3094_v53, %v7305_v42  ;;  %v5571_v8 = vadd.f32 %v2870_v61, %v7308_v48  ;;  %v3096_v46 = vpop.f32.mrb[73].mxu1  ;;  %v2872_v11 = vpop.f32.mrb[74].mxu0  ;;  %4011 = vmatpush1.bf16.msra.mxu0 %v6207_v37  ;;  %v6221_v55 = vld [vmem:[#allocation8 + $0x64] ss:$16 sps:$4 sm:$0xff]  }
 0x386   :  { %v3285_v36 = vpack.c.bf16 %v3229_v33, %v3225_v62  ;;  %v3287_v13 = vpack.c.bf16 %v3231_v39, %v3227_v20  ;;  %v3169_v40 = vadd.f32 %v5570_v25, %v7954_v7  ;;  %v5603_v34 = vadd.f32 %v3096_v46, %v7311_v44  ;;  %v3098_v49 = vpop.f32.mrb[74].mxu1  ;;  %v2874_v57 = vpop.f32.mrb[75].mxu0  ;;  %4124 = vmatpush1.bf16.msra.mxu1 %v6210_v56  ;;  %v6224_v52 = vld [vmem:[#allocation8 + $0x6c] ss:$16 sps:$4 sm:$0xff]   ;;  %v6219_v39 = vld [vmem:[#allocation8 + $0x60] ss:$16 sps:$4 sm:$0xff]  }
 0x387   :  { %v3286_v29 = vpack.c.bf16 %v3230_v51, %v3226_v6  ;;  %v5572_v14 = vadd.f32 %v2872_v11, %v7302_v22  ;;  %v3288_v43 = vpack.c.bf16 %v3232_v59, %v3228_v4  ;;  %v3171_v18 = vadd.f32 %v5602_v3, %v7956_v19  ;;  %v3100_v9 = vpop.f32.mrb[75].mxu1  ;;  %v7965_v37 = vld [vmem:[#allocation19_spill] sm:$0xff]  ;;  %4012 = vmatprep.subr.bf16.mxu0 %v6215_v17  ;;  %v7967_v56 = vld [vmem:[#allocation41_spill] sm:$0xff]  ;;  %v7971_v1 = vld [vmem:[#allocation48_spill] sm:$0xff] }
 0x388   :  { %v3170_v63 = vadd.f32 %v5571_v8, %v7958_v47  ;;  %v5604_v41 = vadd.f32 %v3098_v49, %v7305_v42  ;;  %v5573_v45 = vadd.f32 %v2874_v57, %v7308_v48  ;;  %v7960_v10 = vmax.f32 %v7959_v32, 0.0  ;;  %4125 = vmatprep.subr.bf16.mxu1 %v6218_v58  ;;  %v6222_v19 = vld [vmem:[#allocation8 + $0x68] ss:$16 sps:$4 sm:$0xff]  }
 0x389   :  { %3616 = vmatprep.mubr.bf16.mxu0 %v3286_v29  ;;  %v7962_v15 = vmax.f32 %v7961_v35, 0.0  ;;  %v5605_v21 = vadd.f32 %v3100_v9, %v7311_v44  ;;  %3713 = vmatprep.mubr.bf16.mxu1 %v3288_v43  ;;  %v7964_v54 = vmax.f32 %v7963_v30, 0.0  ;;  %v7966_v62 = vmax.f32 %v7965_v37, 0.0  ;;  %v7975_v35 = vld [vmem:[#allocation42_spill] sm:$0xff] }
 0x38a   :  { %v3172_v2 = vadd.f32 %v5603_v34, %v7960_v10  ;;  %3617 = vmatmul.mubr.bf16.gmra.mrb[100].mxu0 %v3285_v36  ;;  %3714 = vmatmul.mubr.bf16.gmra.mrb[100].mxu1 %v3287_v13  ;;  %v3233_v27 = vmax.f32 %v3169_v40, 0.0  ;;  %v7968_v20 = vmax.f32 %v7967_v56, 0.0  ;;  %v3235_v51 = vmax.f32 %v3171_v18, 0.0  ;;  %v6227_v40 = vld [vmem:[#allocation8 + $0x84] ss:$16 sps:$4 sm:$0xff]   ;;  %v7969_v34 = vld [vmem:[#allocation21_spill] sm:$0xff] }
 0x38b   :  { %v3173_v24 = vadd.f32 %v5572_v14, %v7962_v15  ;;  %v3175_v50 = vadd.f32 %v5604_v41, %v7964_v54  ;;  %v3174_v33 = vadd.f32 %v5573_v45, %v7966_v62  ;;  %4013 = vmatpush1.bf16.msra.mxu0 %v6213_v23  ;;  %v3234_v31 = vmax.f32 %v3170_v63, 0.0  ;;  %v2878_v25 = vpop.f32.mrb[76].mxu0  ;;  %4126 = vmatpush1.bf16.msra.mxu1 %v6216_v60  ;;  %v6225_v18 = vld [vmem:[#allocation8 + $0x80] ss:$16 sps:$4 sm:$0xff]   ;;  %v6230_v10 = vld [vmem:[#allocation8 + $0x8c] ss:$16 sps:$4 sm:$0xff]  }
 0x38c   :  { %v3176_v6 = vadd.f32 %v5605_v21, %v7968_v20  ;;  %4014 = vmatprep.subr.bf16.mxu0 %v6221_v55  ;;  %v3236_v53 = vmax.f32 %v3172_v2, 0.0  ;;  %v5574_v36 = vadd.f32 %v2878_v25, %v7302_v22  ;;  %v3104_v3 = vpop.f32.mrb[76].mxu1  ;;  %v2880_v8 = vpop.f32.mrb[77].mxu0  ;;  %4127 = vmatprep.subr.bf16.mxu1 %v6224_v52  ;;  %v7970_v14 = vmax.f32 %v7969_v34, 0.0  ;;  %v7973_v41 = vld [vmem:[#allocation20_spill] sm:$0xff]  ;;  %v7977_v21 = vld [vmem:[#allocation22_spill] sm:$0xff] }
 0x38d   :  { %v3237_v5 = vmax.f32 %v3173_v24, 0.0  ;;  %v3239_v4 = vmax.f32 %v3175_v50, 0.0  ;;  %v3238_v59 = vmax.f32 %v3174_v33, 0.0  ;;  %v5606_v11 = vadd.f32 %v3104_v3, %v7305_v42  ;;  %v3106_v13 = vpop.f32.mrb[77].mxu1  ;;  %v2882_v17 = vpop.f32.mrb[78].mxu0  ;;  %v7979_v50 = vld [vmem:[#allocation49_spill] sm:$0xff] }
 0x38e   :  { %v3240_v61 = vmax.f32 %v3176_v6, 0.0  ;;  %v5575_v29 = vadd.f32 %v2880_v8, %v7308_v48  ;;  %v3177_v49 = vadd.f32 %v5574_v36, %v7970_v14  ;;  %v5607_v57 = vadd.f32 %v3106_v13, %v7311_v44  ;;  %v3108_v23 = vpop.f32.mrb[78].mxu1  ;;  %v2884_v58 = vpop.f32.mrb[79].mxu0  ;;  %v6233_v2 = vld [vmem:[#allocation8 + $0xa4] ss:$16 sps:$4 sm:$0xff]   ;;  %v7981_v33 = vld [vmem:[#allocation23_spill] sm:$0xff] }
 0x38f   :  { %v3289_v46 = vpack.c.bf16 %v3237_v5, %v3233_v27  ;;  %v3290_v38 = vpack.c.bf16 %v3238_v59, %v3234_v31  ;;  %v3291_v7 = vpack.c.bf16 %v3239_v4, %v3235_v51  ;;  %v5576_v43 = vadd.f32 %v2882_v17, %v7302_v22  ;;  %4015 = vmatpush1.bf16.msra.mxu0 %v6219_v39  ;;  %v3110_v32 = vpop.f32.mrb[79].mxu1  ;;  %v7983_v6 = vld [vmem:[#allocation43_spill] sm:$0xff]  ;;  %v6231_v14 = vld [vmem:[#allocation8 + $0xa0] ss:$16 sps:$4 sm:$0xff]  }
 0x390   :  { %v3292_v16 = vpack.c.bf16 %v3240_v61, %v3236_v53  ;;  %v7972_v47 = vmax.f32 %v7971_v1, 0.0  ;;  %v7974_v45 = vmax.f32 %v7973_v41, 0.0  ;;  %v5608_v60 = vadd.f32 %v3108_v23, %v7305_v42  ;;  %4016 = vmatprep.subr.bf16.mxu0 %v6227_v40  ;;  %4128 = vmatpush1.bf16.msra.mxu1 %v6222_v19  ;;  %v6228_v31 = vld [vmem:[#allocation8 + $0x88] ss:$16 sps:$4 sm:$0xff]   ;;  %v6236_v1 = vld [vmem:[#allocation8 + $0xac] ss:$16 sps:$4 sm:$0xff]  }
 0x391   :  { %v5577_v55 = vadd.f32 %v2884_v58, %v7308_v48  ;;  %3624 = vmatprep.mubr.bf16.mxu0 %v3290_v38  ;;  %v7976_v15 = vmax.f32 %v7975_v35, 0.0  ;;  %v7978_v52 = vmax.f32 %v7977_v21, 0.0  ;;  %v5609_v54 = vadd.f32 %v3110_v32, %v7311_v44  ;;  %4129 = vmatprep.subr.bf16.mxu1 %v6230_v10  ;;  %v6234_v35 = vld [vmem:[#allocation8 + $0xa8] ss:$16 sps:$4 sm:$0xff]  }
 0x392   :  { %v3179_v63 = vadd.f32 %v5606_v11, %v7972_v47  ;;  %v3178_v9 = vadd.f32 %v5575_v29, %v7974_v45  ;;  %3721 = vmatprep.mubr.bf16.mxu1 %v3292_v16  ;;  %3625 = vmatmul.mubr.bf16.gmra.mrb[104].mxu0 %v3289_v46  ;;  %v7980_v37 = vmax.f32 %v7979_v50, 0.0  ;;  %v7982_v27 = vmax.f32 %v7981_v33, 0.0  ;;  %v6239_v47 = vld [vmem:[#allocation8 + $0xc4] ss:$16 sps:$4 sm:$0xff]  }
 0x393   :  { %v3180_v24 = vadd.f32 %v5607_v57, %v7976_v15  ;;  %v3181_v30 = vadd.f32 %v5576_v43, %v7978_v52  ;;  %3722 = vmatmul.mubr.bf16.gmra.mrb[104].mxu1 %v3291_v7  ;;  %v3241_v56 = vmax.f32 %v3177_v49, 0.0  ;;  %v7984_v39 = vmax.f32 %v7983_v6, 0.0  ;;  %4017 = vmatpush1.bf16.msra.mxu0 %v6225_v18  ;;  %v2888_v61 = vpop.f32.mrb[80].mxu0  ;;  %v7985_v49 = vld [vmem:[#allocation25_spill] sm:$0xff]  ;;  %v7991_v15 = vld [vmem:[#allocation46_spill] sm:$0xff] }
 0x394   :  { %v3183_v62 = vadd.f32 %v5608_v60, %v7980_v37  ;;  %v3182_v5 = vadd.f32 %v5577_v55, %v7982_v27  ;;  %v3243_v4 = vmax.f32 %v3179_v63, 0.0  ;;  %v3242_v59 = vmax.f32 %v3178_v9, 0.0  ;;  %4018 = vmatprep.subr.bf16.mxu0 %v6233_v2  ;;  %v3114_v46 = vpop.f32.mrb[80].mxu1  ;;  %v2890_v11 = vpop.f32.mrb[81].mxu0  ;;  %4130 = vmatpush1.bf16.msra.mxu1 %v6228_v31  ;;  %v7987_v63 = vld [vmem:[#allocation52_spill] sm:$0xff]  ;;  %v7993_v52 = vld [vmem:[#allocation26_spill] sm:$0xff] }
 0x395   :  { %v3245_v20 = vmax.f32 %v3181_v30, 0.0  ;;  %v3184_v51 = vadd.f32 %v5609_v54, %v7984_v39  ;;  %v3244_v36 = vmax.f32 %v3180_v24, 0.0  ;;  %v5578_v8 = vadd.f32 %v2888_v61, %v7302_v22  ;;  %v3116_v38 = vpop.f32.mrb[81].mxu1  ;;  %v2892_v7 = vpop.f32.mrb[82].mxu0  ;;  %v7989_v9 = vld [vmem:[#allocation24_spill] sm:$0xff]  ;;  %v7999_v31 = vld [vmem:[#allocation47_spill] sm:$0xff]  ;;  %4131 = vmatprep.subr.bf16.mxu1 %v6236_v1 }
 0x396   :  { %v3247_v25 = vmax.f32 %v3183_v62, 0.0  ;;  %v3246_v53 = vmax.f32 %v3182_v5, 0.0  ;;  %v5610_v13 = vadd.f32 %v3114_v46, %v7305_v42  ;;  %v5579_v17 = vadd.f32 %v2890_v11, %v7308_v48  ;;  %v3118_v16 = vpop.f32.mrb[82].mxu1  ;;  %v2894_v19 = vpop.f32.mrb[83].mxu0  ;;  %v6242_v37 = vld [vmem:[#allocation8 + $0xcc] ss:$16 sps:$4 sm:$0xff]  }
 0x397   :  { %v3248_v3 = vmax.f32 %v3184_v51, 0.0  ;;  %v3293_v29 = vpack.c.bf16 %v3245_v20, %v3241_v56  ;;  %v7986_v57 = vmax.f32 %v7985_v49, 0.0  ;;  %v5611_v23 = vadd.f32 %v3116_v38, %v7311_v44  ;;  %v3120_v2 = vpop.f32.mrb[83].mxu1  ;;  %v7995_v62 = vld [vmem:[#allocation53_spill] sm:$0xff]  ;;  %v7997_v5 = vld [vmem:[#allocation27_spill] sm:$0xff]  ;;  %4019 = vmatpush1.bf16.msra.mxu0 %v6231_v14 }
 0x398   :  { %v3294_v40 = vpack.c.bf16 %v3246_v53, %v3242_v59  ;;  %v3295_v34 = vpack.c.bf16 %v3247_v25, %v3243_v4  ;;  %v5580_v58 = vadd.f32 %v2892_v7, %v7302_v22  ;;  %v7988_v41 = vmax.f32 %v7987_v63, 0.0  ;;  %v6237_v6 = vld [vmem:[#allocation8 + $0xc0] ss:$16 sps:$4 sm:$0xff]   ;;  %4020 = vmatprep.subr.bf16.mxu0 %v6239_v47  ;;  %4132 = vmatpush1.bf16.msra.mxu1 %v6234_v35  ;;  %v6240_v47 = vld [vmem:[#allocation8 + $0xc8] ss:$16 sps:$4 sm:$0xff]  }
 0x399   :  { %v3185_v43 = vadd.f32 %v5578_v8, %v7986_v57  ;;  %v3296_v18 = vpack.c.bf16 %v3248_v3, %v3244_v36  ;;  %v7990_v60 = vmax.f32 %v7989_v9, 0.0  ;;  %v5612_v32 = vadd.f32 %v3118_v16, %v7305_v42  ;;  %4133 = vmatprep.subr.bf16.mxu1 %v6242_v37  ;;  %v8001_v57 = vld [vmem:[#allocation29_spill] sm:$0xff]  ;;  %v8003_v63 = vld [vmem:[#allocation56_spill] sm:$0xff]  ;;  %v8007_v35 = vld [vmem:[#allocation50_spill] sm:$0xff] }
 0x39a   :  { %v3187_v45 = vadd.f32 %v5610_v13, %v7988_v41  ;;  %v5581_v10 = vadd.f32 %v2894_v19, %v7308_v48  ;;  %3632 = vmatprep.mubr.bf16.mxu0 %v3294_v40  ;;  %v7992_v24 = vmax.f32 %v7991_v15, 0.0  ;;  %v7994_v30 = vmax.f32 %v7993_v52, 0.0  ;;  %v8005_v9 = vld [vmem:[#allocation28_spill] sm:$0xff] }
 0x39b   :  { %v3186_v55 = vadd.f32 %v5579_v17, %v7990_v60  ;;  %v5613_v50 = vadd.f32 %v3120_v2, %v7311_v44  ;;  %3729 = vmatprep.mubr.bf16.mxu1 %v3296_v18  ;;  %3633 = vmatmul.mubr.bf16.gmra.mrb[108].mxu0 %v3293_v29  ;;  %v7996_v33 = vmax.f32 %v7995_v62, 0.0  ;;  %v7998_v56 = vmax.f32 %v7997_v5, 0.0  ;;  %v2898_v3 = vpop.f32.mrb[84].mxu0 }
 0x39c   :  { %v3188_v21 = vadd.f32 %v5611_v23, %v7992_v24  ;;  %v3189_v54 = vadd.f32 %v5580_v58, %v7994_v30  ;;  %3730 = vmatmul.mubr.bf16.gmra.mrb[108].mxu1 %v3295_v34  ;;  %v3249_v39 = vmax.f32 %v3185_v43, 0.0  ;;  %v8000_v4 = vmax.f32 %v7999_v31, 0.0  ;;  %v3124_v29 = vpop.f32.mrb[84].mxu1  ;;  %v2900_v13 = vpop.f32.mrb[85].mxu0  ;;  %4021 = vmatpush1.bf16.msra.mxu0 %v6237_v6  ;;  %v8015_v6 = vld [vmem:[#allocation51_spill] sm:$0xff] }
 0x39d   :  { %v3191_v27 = vadd.f32 %v5612_v32, %v7996_v33  ;;  %v3190_v20 = vadd.f32 %v5581_v10, %v7998_v56  ;;  %v3251_v25 = vmax.f32 %v3187_v45, 0.0  ;;  %v3250_v53 = vmax.f32 %v3186_v55, 0.0  ;;  %v3126_v40 = vpop.f32.mrb[85].mxu1  ;;  %v2902_v34 = vpop.f32.mrb[86].mxu0  ;;  %v8013_v33 = vld [vmem:[#allocation31_spill] sm:$0xff]  ;;  %4134 = vmatpush1.bf16.msra.mxu1 %v6240_v47  ;;  %v8021_v47 = vld [vmem:[#allocation32_spill] sm:$0xff] }
 0x39e   :  { %v3253_v51 = vmax.f32 %v3189_v54, 0.0  ;;  %v3192_v59 = vadd.f32 %v5613_v50, %v8000_v4  ;;  %v3252_v8 = vmax.f32 %v3188_v21, 0.0  ;;  %v5582_v11 = vadd.f32 %v2898_v3, %v7302_v22  ;;  %v3128_v19 = vpop.f32.mrb[86].mxu1  ;;  %v2904_v18 = vpop.f32.mrb[87].mxu0  ;;  %v8009_v21 = vld [vmem:[#allocation30_spill] sm:$0xff]  ;;  %v8011_v50 = vld [vmem:[#allocation57_spill] sm:$0xff] }
 0x39f   :  { %v3255_v61 = vmax.f32 %v3191_v27, 0.0  ;;  %v3254_v36 = vmax.f32 %v3190_v20, 0.0  ;;  %v5614_v38 = vadd.f32 %v3124_v29, %v7305_v42  ;;  %v5583_v7 = vadd.f32 %v2900_v13, %v7308_v48  ;;  %v3130_v2 = vpop.f32.mrb[87].mxu1 }
 0x3a0   :  { %v3256_v46 = vmax.f32 %v3192_v59, 0.0  ;;  %v3297_v17 = vpack.c.bf16 %v3253_v51, %v3249_v39  ;;  %v8002_v43 = vmax.f32 %v8001_v57, 0.0  ;;  %v5615_v58 = vadd.f32 %v3126_v40, %v7311_v44 }
 0x3a1   :  { %v3298_v14 = vpack.c.bf16 %v3254_v36, %v3250_v53  ;;  %v3299_v49 = vpack.c.bf16 %v3255_v61, %v3251_v25  ;;  %v5584_v16 = vadd.f32 %v2902_v34, %v7302_v22  ;;  %v8004_v41 = vmax.f32 %v8003_v63, 0.0  ;;  %v8017_v34 = vld [vmem:[#allocation33_spill] sm:$0xff] }
 0x3a2   :  { %v3193_v23 = vadd.f32 %v5582_v11, %v8002_v43  ;;  %v3300_v1 = vpack.c.bf16 %v3256_v46, %v3252_v8  ;;  %v8006_v60 = vmax.f32 %v8005_v9, 0.0  ;;  %v5616_v32 = vadd.f32 %v3128_v19, %v7305_v42  ;;  %v8019_v19 = vld [vmem:[#allocation60_spill] sm:$0xff] }
 0x3a3   :  { %v3195_v45 = vadd.f32 %v5614_v38, %v8004_v41  ;;  %v5585_v10 = vadd.f32 %v2904_v18, %v7308_v48  ;;  %3640 = vmatprep.mubr.bf16.mxu0 %v3298_v14  ;;  %v8008_v15 = vmax.f32 %v8007_v35, 0.0  ;;  %v8010_v52 = vmax.f32 %v8009_v21, 0.0  ;;  %v2908_v53 = vpop.f32.mrb[88].mxu0  ;;  %v8027_v21 = vld [vmem:[#allocation61_spill] sm:$0xff] }
 0x3a4   :  { %v3194_v55 = vadd.f32 %v5583_v7, %v8006_v60  ;;  %v5617_v54 = vadd.f32 %v3130_v2, %v7311_v44  ;;  %3737 = vmatprep.mubr.bf16.mxu1 %v3300_v1  ;;  %3641 = vmatmul.mubr.bf16.gmra.mrb[112].mxu0 %v3297_v17  ;;  %v8012_v37 = vmax.f32 %v8011_v50, 0.0  ;;  %v8014_v27 = vmax.f32 %v8013_v33, 0.0  ;;  %v3134_v8 = vpop.f32.mrb[88].mxu1  ;;  %v2910_v46 = vpop.f32.mrb[89].mxu0  ;;  %v8025_v2 = vld [vmem:[#allocation34_spill] sm:$0xff] }
 0x3a5   :  { %v3196_v24 = vadd.f32 %v5615_v58, %v8008_v15  ;;  %v3197_v30 = vadd.f32 %v5584_v16, %v8010_v52  ;;  %3738 = vmatmul.mubr.bf16.gmra.mrb[112].mxu1 %v3299_v49  ;;  %v3257_v56 = vmax.f32 %v3193_v23, 0.0  ;;  %v8016_v39 = vmax.f32 %v8015_v6, 0.0  ;;  %v3136_v17 = vpop.f32.mrb[89].mxu1  ;;  %v2912_v38 = vpop.f32.mrb[90].mxu0 }
 0x3a6   :  { %v3199_v62 = vadd.f32 %v5616_v32, %v8012_v37  ;;  %v3198_v5 = vadd.f32 %v5585_v10, %v8014_v27  ;;  %v3259_v31 = vmax.f32 %v3195_v45, 0.0  ;;  %v3258_v4 = vmax.f32 %v3194_v55, 0.0  ;;  %v3138_v23 = vpop.f32.mrb[90].mxu1  ;;  %v2914_v58 = vpop.f32.mrb[91].mxu0  ;;  %v8023_v55 = vld [vmem:[#allocation54_spill] sm:$0xff]  ;;  %v8031_v27 = vld [vmem:[#allocation55_spill] sm:$0xff] }
 0x3a7   :  { %v3261_v20 = vmax.f32 %v3197_v30, 0.0  ;;  %v3200_v51 = vadd.f32 %v5617_v54, %v8016_v39  ;;  %v3260_v61 = vmax.f32 %v3196_v24, 0.0  ;;  %v5586_v3 = vadd.f32 %v2908_v53, %v7302_v22  ;;  %v3140_v60 = vpop.f32.mrb[91].mxu1  ;;  %v8029_v54 = vld [vmem:[#allocation35_spill] sm:$0xff] }
 0x3a8   :  { %v3263_v59 = vmax.f32 %v3199_v62, 0.0  ;;  %v3262_v25 = vmax.f32 %v3198_v5, 0.0  ;;  %v5618_v29 = vadd.f32 %v3134_v8, %v7305_v42  ;;  %v5587_v13 = vadd.f32 %v2910_v46, %v7308_v48 }
 0x3a9   :  { %v3264_v36 = vmax.f32 %v3200_v51, 0.0  ;;  %v3301_v11 = vpack.c.bf16 %v3261_v20, %v3257_v56  ;;  %v8018_v14 = vmax.f32 %v8017_v34, 0.0  ;;  %v5619_v57 = vadd.f32 %v3136_v17, %v7311_v44  ;;  %v8033_v17 = vld [vmem:[#allocation37_spill] sm:$0xff] }
 0x3aa   :  { %v3302_v7 = vpack.c.bf16 %v3262_v25, %v3258_v4  ;;  %v3303_v40 = vpack.c.bf16 %v3263_v59, %v3259_v31  ;;  %v5588_v43 = vadd.f32 %v2912_v38, %v7302_v22  ;;  %v8020_v18 = vmax.f32 %v8019_v19, 0.0 }
 0x3ab   :  { %v3201_v49 = vadd.f32 %v5586_v3, %v8018_v14  ;;  %v3304_v16 = vpack.c.bf16 %v3264_v36, %v3260_v61  ;;  %v8022_v63 = vmax.f32 %v8021_v47, 0.0  ;;  %v5620_v45 = vadd.f32 %v3138_v23, %v7305_v42  ;;  %v2918_v31 = vpop.f32.mrb[92].mxu0 }
 0x3ac   :  { %v3203_v1 = vadd.f32 %v5618_v29, %v8020_v18  ;;  %v5589_v9 = vadd.f32 %v2914_v58, %v7308_v48  ;;  %3648 = vmatprep.mubr.bf16.mxu0 %v3302_v7  ;;  %v8024_v32 = vmax.f32 %v8023_v55, 0.0  ;;  %v8026_v35 = vmax.f32 %v8025_v2, 0.0  ;;  %v3144_v53 = vpop.f32.mrb[92].mxu1  ;;  %v2920_v61 = vpop.f32.mrb[93].mxu0 }
 0x3ad   :  { %v3202_v41 = vadd.f32 %v5587_v13, %v8022_v63  ;;  %v5621_v24 = vadd.f32 %v3140_v60, %v7311_v44  ;;  %3745 = vmatprep.mubr.bf16.mxu1 %v3304_v16  ;;  %3649 = vmatmul.mubr.bf16.gmra.mrb[116].mxu0 %v3301_v11  ;;  %v8028_v52 = vmax.f32 %v8027_v21, 0.0  ;;  %v8030_v50 = vmax.f32 %v8029_v54, 0.0  ;;  %v3146_v46 = vpop.f32.mrb[93].mxu1  ;;  %v2922_v11 = vpop.f32.mrb[94].mxu0  ;;  %v8037_v16 = vld [vmem:[#allocation36_spill] sm:$0xff]  ;;  %v8041_v60 = vld [vmem:[#allocation38_spill] sm:$0xff] }
 0x3ae   :  { %v3204_v10 = vadd.f32 %v5619_v57, %v8024_v32  ;;  %v3205_v15 = vadd.f32 %v5588_v43, %v8026_v35  ;;  %3746 = vmatmul.mubr.bf16.gmra.mrb[116].mxu1 %v3303_v40  ;;  %v3265_v62 = vmax.f32 %v3201_v49, 0.0  ;;  %v8032_v5 = vmax.f32 %v8031_v27, 0.0  ;;  %v3148_v14 = vpop.f32.mrb[94].mxu1  ;;  %v2924_v49 = vpop.f32.mrb[95].mxu0  ;;  %v8035_v43 = vld [vmem:[#allocation62_spill] sm:$0xff] }
 0x3af   :  { %v3207_v30 = vadd.f32 %v5620_v45, %v8028_v52  ;;  %v3206_v37 = vadd.f32 %v5589_v9, %v8030_v50  ;;  %v3267_v20 = vmax.f32 %v3203_v1, 0.0  ;;  %v3266_v6 = vmax.f32 %v3202_v41, 0.0  ;;  %v3150_v63 = vpop.f32.mrb[95].mxu1  ;;  %v8039_v41 = vld [vmem:[#allocation58_spill] sm:$0xff]  ;;  %v8047_v52 = vld [vmem:[#allocation59_spill] sm:$0xff] }
 0x3b0   :  { %v3269_v33 = vmax.f32 %v3205_v15, 0.0  ;;  %v3208_v56 = vadd.f32 %v5621_v24, %v8032_v5  ;;  %v3268_v4 = vmax.f32 %v3204_v10, 0.0  ;;  %v5590_v25 = vadd.f32 %v2918_v31, %v7302_v22  ;;  %v8043_v10 = vld [vmem:[#allocation63_spill] sm:$0xff] }
 0x3b1   :  { %v3271_v39 = vmax.f32 %v3207_v30, 0.0  ;;  %v3270_v51 = vmax.f32 %v3206_v37, 0.0  ;;  %v5622_v3 = vadd.f32 %v3144_v53, %v7305_v42  ;;  %v5591_v8 = vadd.f32 %v2920_v61, %v7308_v48  ;;  %v8045_v15 = vld [vmem:[#allocation39_spill] sm:$0xff]  ;;  %v6251_v53 = vld [vmem:[#allocation10 + $0xc0] sm:$0xff]  }
 0x3b2   :  { %v3272_v59 = vmax.f32 %v3208_v56, 0.0  ;;  %v3305_v36 = vpack.c.bf16 %v3269_v33, %v3265_v62  ;;  %v8034_v38 = vmax.f32 %v8033_v17, 0.0  ;;  %v5623_v40 = vadd.f32 %v3146_v46, %v7311_v44  ;;  %v6248_v31 = vld [vmem:[#allocation8 + $0xec] ss:$16 sps:$4 sm:$0xff]  }
 0x3b3   :  { %v3306_v29 = vpack.c.bf16 %v3270_v51, %v3266_v6  ;;  %v3307_v13 = vpack.c.bf16 %v3271_v39, %v3267_v20  ;;  %v5592_v34 = vadd.f32 %v2922_v11, %v7302_v22  ;;  %v8036_v23 = vmax.f32 %v8035_v43, 0.0  ;;  %v6245_v51 = vld [vmem:[#allocation8 + $0xe4] ss:$16 sps:$4 sm:$0xff]   ;;  %4135 = vmatprep.subr.bf16.mxu1 %v6248_v31 }
 0x3b4   :  { %v3209_v7 = vadd.f32 %v5590_v25, %v8034_v38  ;;  %v3308_v57 = vpack.c.bf16 %v3272_v59, %v3268_v4  ;;  %v8038_v19 = vmax.f32 %v8037_v16, 0.0  ;;  %v5624_v1 = vadd.f32 %v3148_v14, %v7305_v42  ;;  %v6243_v4 = vld [vmem:[#allocation8 + $0xe0] ss:$16 sps:$4 sm:$0xff]   ;;  %v6246_v59 = vld [vmem:[#allocation8 + $0xe8] ss:$16 sps:$4 sm:$0xff]   ;;  %4022 = vmatprep.subr.bf16.mxu0 %v6245_v51 }
 0x3b5   :  { %v3211_v58 = vadd.f32 %v5622_v3, %v8036_v23  ;;  %v5593_v47 = vadd.f32 %v2924_v49, %v7308_v48  ;;  %3656 = vmatprep.mubr.bf16.mxu0 %v3306_v29  ;;  %v8040_v45 = vmax.f32 %v8039_v41, 0.0  ;;  %v8042_v22 = vmax.f32 %v8041_v60, 0.0  ;;  %4023 = vmatpush1.bf16.msra.mxu0 %v6243_v4  ;;  %v6249_v25 = vld [vmem:[#allocation10 + $0x40] sm:$0xff]   ;;  %v7510_v3 = vld [vmem:[%s7773_s7 + $0xc] ss:$0 sm:$0xff] }
 0x3b6   :  { %v3210_v18 = vadd.f32 %v5591_v8, %v8038_v19  ;;  %v5625_v32 = vadd.f32 %v3150_v63, %v7311_v44  ;;  %3753 = vmatprep.mubr.bf16.mxu1 %v3308_v57  ;;  %3657 = vmatmul.mubr.bf16.gmra.mrb[120].mxu0 %v3305_v36  ;;  %v8044_v2 = vmax.f32 %v8043_v10, 0.0  ;;  %v8046_v24 = vmax.f32 %v8045_v15, 0.0  ;;  %v6250_v10 = vld [vmem:[#allocation10] sm:$0xff]   ;;  %v6253_v15 = vld [vmem:[#allocation10 + $0x48] sm:$0xff]  }
 0x3b7   :  { %v3212_v9 = vadd.f32 %v5623_v40, %v8040_v45  ;;  %v3213_v55 = vadd.f32 %v5592_v34, %v8042_v22  ;;  %3754 = vmatmul.mubr.bf16.gmra.mrb[120].mxu1 %v3307_v13  ;;  %v3273_v48 = vmax.f32 %v3209_v7, 0.0  ;;  %v8048_v30 = vmax.f32 %v8047_v52, 0.0  ;;  %5370 = vmatprep.subr.bf16.mxu0 %v6249_v25 }
 0x3b8   :  { %v3215_v35 = vadd.f32 %v5624_v1, %v8044_v2  ;;  %v3214_v42 = vadd.f32 %v5593_v47, %v8046_v24  ;;  %v3275_v50 = vmax.f32 %v3211_v58, 0.0  ;;  %v3274_v37 = vmax.f32 %v3210_v18, 0.0  ;;  %4136 = vmatpush1.bf16.msra.mxu1 %v6246_v59  ;;  %v6252_v2 = vld [vmem:[#allocation10 + $0x80] sm:$0xff]   ;;  %v6255_v24 = vld [vmem:[#allocation10 + $0xc8] sm:$0xff]  }
 0x3b9   :  { %v3277_v21 = vmax.f32 %v3213_v55, 0.0  ;;  %v3216_v54 = vadd.f32 %v5625_v32, %v8048_v30  ;;  %v3276_v27 = vmax.f32 %v3212_v9, 0.0  ;;  %v8049_v39 = vmov 0   ;;  %5434 = vmatprep.subr.bf16.mxu1 %v6251_v53  ;;  %v6254_v30 = vld [vmem:[#allocation10 + $0x8] sm:$0xff]  }
 0x3ba   :  { %v3279_v62 = vmax.f32 %v3215_v35, 0.0  ;;  %v3278_v33 = vmax.f32 %v3214_v42, 0.0 }
 0x3bb   :  { %v3280_v44 = vmax.f32 %v3216_v54, 0.0  ;;  %v3309_v5 = vpack.c.bf16 %v3277_v21, %v3273_v48  ;;  %v6256_v54 = vld [vmem:[#allocation10 + $0x88] sm:$0xff]  }
 0x3bc   :  { %v3310_v56 = vpack.c.bf16 %v3278_v33, %v3274_v37  ;;  %v3311_v20 = vpack.c.bf16 %v3279_v62, %v3275_v50  ;;  %v6257_v62 = vld [vmem:[#allocation10 + $0x50] sm:$0xff]  }
 0x3bd   :  { %v3312_v6 = vpack.c.bf16 %v3280_v44, %v3276_v27  ;;  %v6259_v33 = vld [vmem:[#allocation10 + $0xd0] sm:$0xff]  }
 0x3be   :  { %3664 = vmatprep.mubr.bf16.mxu0 %v3310_v56 }
 0x3bf   :  { %3761 = vmatprep.mubr.bf16.mxu1 %v3312_v6  ;;  %3665 = vmatmul.mubr.bf16.gmra.mrb[124].mxu0 %v3309_v5 }
 0x3c0   :  { %3762 = vmatmul.mubr.bf16.gmra.mrb[124].mxu1 %v3311_v20  ;;  %4040 = vmatprep.mubr.bf16.mxu0 %v8049_v39 }
 0x3c1   :  { %4153 = vmatprep.mubr.bf16.mxu1 %v8049_v39 }
 0x453   :  { %v5258_v61 = vpop.f32.mrb[96].mxu0 }
 0x454   :  { %v5322_v36 = vpop.f32.mrb[96].mxu1  ;;  %v5259_v8 = vpop.f32.mrb[97].mxu0 }
 0x455   :  { %v5260_v46 = vadd.f32 %v5259_v8, %v5258_v61  ;;  %v5323_v11 = vpop.f32.mrb[97].mxu1  ;;  %v5261_v29 = vpop.f32.mrb[98].mxu0  ;;  %v6258_v61 = vld [vmem:[#allocation10 + $0x10] sm:$0xff]  }
 0x456   :  { %v5324_v13 = vadd.f32 %v5323_v11, %v5322_v36  ;;  %v5325_v17 = vpop.f32.mrb[98].mxu1  ;;  %v5262_v38 = vpop.f32.mrb[99].mxu0  ;;  %v6260_v36 = vld [vmem:[#allocation10 + $0x90] sm:$0xff]   ;;  %v6263_v11 = vld [vmem:[#allocation10 + $0xd8] sm:$0xff]  }
 0x457   :  { %v3611_v7 = vadd.f32 %v5260_v46, %v7510_v3  ;;  %v5263_v40 = vadd.f32 %v5262_v38, %v5261_v29  ;;  %v5326_v34 = vpop.f32.mrb[99].mxu1  ;;  %v6261_v46 = vld [vmem:[#allocation10 + $0x58] sm:$0xff]  }
 0x458   :  { %v5327_v14 = vadd.f32 %v5326_v34, %v5325_v17 }
 0x459   :  { %v7513_v49 = vadd.f32 %v5324_v13, %v3611_v7  ;;  %v3614_v57 = vadd.f32 %v5263_v40, %v7510_v3  ;;  %v6262_v7 = vld [vmem:[#allocation10 + $0x18] sm:$0xff]  }
 0x45a   :  { %v6264_v40 = vld [vmem:[#allocation10 + $0x98] sm:$0xff]  }
 0x45b   :  { %v7516_v43 = vadd.f32 %v5327_v14, %v3614_v57  ;;  %v3770_v19 = vmax.f32 %v7513_v49, 0.0  ;;  %v6265_v57 = vld [vmem:[#allocation10 + $0x60] sm:$0xff]  }
 0x45d   :  { %v5264_v23 = vpop.f32.mrb[100].mxu0  ;;  %v5328_v58 = vpop.f32.mrb[100].mxu1  ;;  %v3771_v18 = vmax.f32 %v7516_v43, 0.0 }
 0x45e   :  { %v5265_v16 = vpop.f32.mrb[101].mxu0  ;;  %v5329_v47 = vpop.f32.mrb[101].mxu1 }
 0x45f   :  { %v5266_v1 = vadd.f32 %v5265_v16, %v5264_v23  ;;  %v5267_v63 = vpop.f32.mrb[102].mxu0  ;;  %v5330_v41 = vadd.f32 %v5329_v47, %v5328_v58  ;;  %v5331_v45 = vpop.f32.mrb[102].mxu1  ;;  %v3786_v60 = vpack.c.bf16 %v3771_v18, %v3770_v19  ;;  %v6267_v23 = vld [vmem:[#allocation10 + $0xe0] sm:$0xff]  }
 0x460   :  { %v5268_v9 = vpop.f32.mrb[103].mxu0  ;;  %v5332_v32 = vpop.f32.mrb[103].mxu1 }
 0x461   :  { %v3619_v22 = vadd.f32 %v5266_v1, %v7510_v3  ;;  %v5269_v55 = vadd.f32 %v5268_v9, %v5267_v63  ;;  %v5333_v35 = vadd.f32 %v5332_v32, %v5331_v45  ;;  %4041 = vmatmul.mubr.bf16.vlgmr.msra.gmra.mrb[128].mxu0 %v3786_v60  ;;  %4154 = vmatmul.mubr.bf16.vlgmr.msra.gmra.mrb[128].mxu1 %v3786_v60 }
 0x462   :  { %4050 = vmatprep.mubr.bf16.mxu0 %v8049_v39  ;;  %4163 = vmatprep.mubr.bf16.mxu1 %v8049_v39 }
 0x463   :  { %v7525_v42 = vadd.f32 %v5330_v41, %v3619_v22  ;;  %v3622_v48 = vadd.f32 %v5269_v55, %v7510_v3  ;;  %5371 = vmatpush3.bf16.msra.mxu0 %v6250_v10  ;;  %5435 = vmatpush3.bf16.msra.mxu1 %v6252_v2  ;;  %v6266_v10 = vld [vmem:[#allocation10 + $0x20] sm:$0xff]  }
 0x464   :  { %5372 = vmatprep.subr.bf16.mxu0 %v6253_v15  ;;  %5436 = vmatprep.subr.bf16.mxu1 %v6255_v24  ;;  %v6268_v2 = vld [vmem:[#allocation10 + $0xa0] sm:$0xff]   ;;  %v6269_v15 = vld [vmem:[#allocation10 + $0x68] sm:$0xff]  }
 0x465   :  { %v7530_v21 = vadd.f32 %v5333_v35, %v3622_v48  ;;  %v5270_v52 = vpop.f32.mrb[104].mxu0  ;;  %v3772_v27 = vmax.f32 %v7525_v42, 0.0  ;;  %v6271_v24 = vld [vmem:[#allocation10 + $0xe8] sm:$0xff]  }
 0x466   :  { %v5334_v50 = vpop.f32.mrb[104].mxu1  ;;  %v5271_v37 = vpop.f32.mrb[105].mxu0 }
 0x467   :  { %v3773_v44 = vmax.f32 %v7530_v21, 0.0  ;;  %v5272_v5 = vadd.f32 %v5271_v37, %v5270_v52  ;;  %v5335_v56 = vpop.f32.mrb[105].mxu1  ;;  %v5273_v20 = vpop.f32.mrb[106].mxu0  ;;  %5373 = vmatpush3.bf16.msra.mxu0 %v6254_v30  ;;  %5437 = vmatpush3.bf16.msra.mxu1 %v6256_v54  ;;  %v6272_v37 = vld [vmem:[#allocation10 + $0xa8] sm:$0xff]  }
 0x468   :  { %v5336_v6 = vadd.f32 %v5335_v56, %v5334_v50  ;;  %v5337_v51 = vpop.f32.mrb[106].mxu1  ;;  %v5274_v31 = vpop.f32.mrb[107].mxu0  ;;  %5374 = vmatprep.subr.bf16.mxu0 %v6257_v62  ;;  %5438 = vmatprep.subr.bf16.mxu1 %v6259_v33  ;;  %v6270_v50 = vld [vmem:[#allocation10 + $0x28] sm:$0xff]   ;;  %v6275_v56 = vld [vmem:[#allocation10 + $0xf0] sm:$0xff]  }
 0x469   :  { %v3627_v4 = vadd.f32 %v5272_v5, %v7510_v3  ;;  %v5275_v59 = vadd.f32 %v5274_v31, %v5273_v20  ;;  %v5338_v25 = vpop.f32.mrb[107].mxu1  ;;  %v3787_v53 = vpack.c.bf16 %v3773_v44, %v3772_v27  ;;  %v6273_v5 = vld [vmem:[#allocation10 + $0x70] sm:$0xff]  }
 0x46a   :  { %v5339_v8 = vadd.f32 %v5338_v25, %v5337_v51 }
 0x46b   :  { %v7539_v29 = vadd.f32 %v5336_v6, %v3627_v4  ;;  %v3630_v13 = vadd.f32 %v5275_v59, %v7510_v3  ;;  %4051 = vmatmul.mubr.bf16.gmra.mrb[132].mxu0 %v3787_v53  ;;  %4164 = vmatmul.mubr.bf16.gmra.mrb[132].mxu1 %v3787_v53 }
 0x46c   :  { %4060 = vmatprep.mubr.bf16.mxu0 %v8049_v39  ;;  %4173 = vmatprep.mubr.bf16.mxu1 %v8049_v39 }
 0x46d   :  { %v7544_v17 = vadd.f32 %v5339_v8, %v3630_v13  ;;  %5375 = vmatpush3.bf16.msra.mxu0 %v6258_v61  ;;  %5439 = vmatpush3.bf16.msra.mxu1 %v6260_v36  ;;  %v3774_v58 = vmax.f32 %v7539_v29, 0.0  ;;  %v6276_v13 = vld [vmem:[#allocation10 + $0xb0] sm:$0xff]  }
 0x46e   :  { %v5276_v38 = vpop.f32.mrb[108].mxu0  ;;  %5376 = vmatprep.subr.bf16.mxu0 %v6261_v46  ;;  %5440 = vmatprep.subr.bf16.mxu1 %v6263_v11  ;;  %v6274_v11 = vld [vmem:[#allocation10 + $0x30] sm:$0xff]  }
 0x46f   :  { %v5340_v34 = vpop.f32.mrb[108].mxu1  ;;  %v5277_v14 = vpop.f32.mrb[109].mxu0  ;;  %v3775_v16 = vmax.f32 %v7544_v17, 0.0 }
 0x470   :  { %v5278_v1 = vadd.f32 %v5277_v14, %v5276_v38  ;;  %v5341_v47 = vpop.f32.mrb[109].mxu1  ;;  %v5279_v63 = vpop.f32.mrb[110].mxu0 }
 0x471   :  { %v5342_v41 = vadd.f32 %v5341_v47, %v5340_v34  ;;  %v5343_v45 = vpop.f32.mrb[110].mxu1  ;;  %v5280_v9 = vpop.f32.mrb[111].mxu0  ;;  %v3788_v32 = vpack.c.bf16 %v3775_v16, %v3774_v58  ;;  %5377 = vmatpush3.bf16.msra.mxu0 %v6262_v7  ;;  %5441 = vmatpush3.bf16.msra.mxu1 %v6264_v40 }
 0x472   :  { %v3635_v60 = vadd.f32 %v5278_v1, %v7510_v3  ;;  %v5281_v22 = vadd.f32 %v5280_v9, %v5279_v63  ;;  %v5344_v55 = vpop.f32.mrb[111].mxu1  ;;  %5378 = vmatprep.subr.bf16.mxu0 %v6265_v57  ;;  %5442 = vmatprep.subr.bf16.mxu1 %v6267_v23 }
 0x473   :  { %v5345_v35 = vadd.f32 %v5344_v55, %v5343_v45  ;;  %4061 = vmatmul.mubr.bf16.gmra.mrb[136].mxu0 %v3788_v32  ;;  %4174 = vmatmul.mubr.bf16.gmra.mrb[136].mxu1 %v3788_v32 }
 0x474   :  { %v7553_v48 = vadd.f32 %v5342_v41, %v3635_v60  ;;  %v3638_v52 = vadd.f32 %v5281_v22, %v7510_v3  ;;  %4070 = vmatprep.mubr.bf16.mxu0 %v8049_v39  ;;  %4183 = vmatprep.mubr.bf16.mxu1 %v8049_v39 }
 0x475   :  { %5379 = vmatpush3.bf16.msra.mxu0 %v6266_v10  ;;  %5443 = vmatpush3.bf16.msra.mxu1 %v6268_v2 }
 0x476   :  { %v7558_v30 = vadd.f32 %v5345_v35, %v3638_v52  ;;  %5380 = vmatprep.subr.bf16.mxu0 %v6269_v15  ;;  %5444 = vmatprep.subr.bf16.mxu1 %v6271_v24  ;;  %v3776_v20 = vmax.f32 %v7553_v48, 0.0 }
 0x477   :  { %v5282_v54 = vpop.f32.mrb[112].mxu0 }
 0x478   :  { %v5346_v62 = vpop.f32.mrb[112].mxu1  ;;  %v5283_v33 = vpop.f32.mrb[113].mxu0  ;;  %v3777_v6 = vmax.f32 %v7558_v30, 0.0 }
 0x479   :  { %v5284_v51 = vadd.f32 %v5283_v33, %v5282_v54  ;;  %v5347_v31 = vpop.f32.mrb[113].mxu1  ;;  %v5285_v4 = vpop.f32.mrb[114].mxu0  ;;  %5381 = vmatpush3.bf16.msra.mxu0 %v6270_v50  ;;  %5445 = vmatpush3.bf16.msra.mxu1 %v6272_v37 }
 0x47a   :  { %v5348_v59 = vadd.f32 %v5347_v31, %v5346_v62  ;;  %v5349_v25 = vpop.f32.mrb[114].mxu1  ;;  %v5286_v53 = vpop.f32.mrb[115].mxu0  ;;  %v3789_v46 = vpack.c.bf16 %v3777_v6, %v3776_v20  ;;  %5382 = vmatprep.subr.bf16.mxu0 %v6273_v5  ;;  %5446 = vmatprep.subr.bf16.mxu1 %v6275_v56 }
 0x47b   :  { %v3643_v61 = vadd.f32 %v5284_v51, %v7510_v3  ;;  %v5287_v36 = vadd.f32 %v5286_v53, %v5285_v4  ;;  %v5350_v8 = vpop.f32.mrb[115].mxu1 }
 0x47c   :  { %v5351_v38 = vadd.f32 %v5350_v8, %v5349_v25  ;;  %4071 = vmatmul.mubr.bf16.gmra.mrb[140].mxu0 %v3789_v46  ;;  %4184 = vmatmul.mubr.bf16.gmra.mrb[140].mxu1 %v3789_v46 }
 0x47d   :  { %v7567_v7 = vadd.f32 %v5348_v59, %v3643_v61  ;;  %v3646_v40 = vadd.f32 %v5287_v36, %v7510_v3  ;;  %4080 = vmatprep.mubr.bf16.mxu0 %v8049_v39  ;;  %4193 = vmatprep.mubr.bf16.mxu1 %v8049_v39 }
 0x47e   :  { %5383 = vmatpush3.bf16.msra.mxu0 %v6274_v11  ;;  %5447 = vmatpush3.bf16.msra.mxu1 %v6276_v13 }
 0x47f   :  { %v7572_v34 = vadd.f32 %v5351_v38, %v3646_v40  ;;  %v3778_v1 = vmax.f32 %v7567_v7, 0.0 }
 0x480   :  { %v5288_v14 = vpop.f32.mrb[116].mxu0 }
 0x481   :  { %v5352_v57 = vpop.f32.mrb[116].mxu1  ;;  %v5289_v23 = vpop.f32.mrb[117].mxu0  ;;  %v3779_v47 = vmax.f32 %v7572_v34, 0.0 }
 0x482   :  { %v5290_v63 = vadd.f32 %v5289_v23, %v5288_v14  ;;  %v5353_v41 = vpop.f32.mrb[117].mxu1  ;;  %v5291_v45 = vpop.f32.mrb[118].mxu0 }
 0x483   :  { %v5354_v9 = vadd.f32 %v5353_v41, %v5352_v57  ;;  %v5355_v60 = vpop.f32.mrb[118].mxu1  ;;  %v5292_v22 = vpop.f32.mrb[119].mxu0  ;;  %v3790_v2 = vpack.c.bf16 %v3779_v47, %v3778_v1 }
 0x484   :  { %v3651_v55 = vadd.f32 %v5290_v63, %v7510_v3  ;;  %v5293_v32 = vadd.f32 %v5292_v22, %v5291_v45  ;;  %v5356_v10 = vpop.f32.mrb[119].mxu1 }
 0x485   :  { %v5357_v35 = vadd.f32 %v5356_v10, %v5355_v60  ;;  %4081 = vmatmul.mubr.bf16.gmra.mrb[144].mxu0 %v3790_v2  ;;  %4194 = vmatmul.mubr.bf16.gmra.mrb[144].mxu1 %v3790_v2 }
 0x486   :  { %v7581_v15 = vadd.f32 %v5354_v9, %v3651_v55  ;;  %v3654_v24 = vadd.f32 %v5293_v32, %v7510_v3  ;;  %4090 = vmatprep.mubr.bf16.mxu0 %v8049_v39  ;;  %4203 = vmatprep.mubr.bf16.mxu1 %v8049_v39 }
 0x488   :  { %v7586_v52 = vadd.f32 %v5357_v35, %v3654_v24  ;;  %v3780_v62 = vmax.f32 %v7581_v15, 0.0 }
 0x489   :  { %v5294_v54 = vpop.f32.mrb[120].mxu0 }
 0x48a   :  { %v5358_v50 = vpop.f32.mrb[120].mxu1  ;;  %v5295_v37 = vpop.f32.mrb[121].mxu0  ;;  %v3781_v33 = vmax.f32 %v7586_v52, 0.0 }
 0x48b   :  { %v5296_v5 = vadd.f32 %v5295_v37, %v5294_v54  ;;  %v5359_v56 = vpop.f32.mrb[121].mxu1  ;;  %v5297_v51 = vpop.f32.mrb[122].mxu0 }
 0x48c   :  { %v5360_v31 = vadd.f32 %v5359_v56, %v5358_v50  ;;  %v5361_v4 = vpop.f32.mrb[122].mxu1  ;;  %v5298_v59 = vpop.f32.mrb[123].mxu0  ;;  %v3791_v36 = vpack.c.bf16 %v3781_v33, %v3780_v62 }
 0x48d   :  { %v3659_v25 = vadd.f32 %v5296_v5, %v7510_v3  ;;  %v5299_v53 = vadd.f32 %v5298_v59, %v5297_v51  ;;  %v5362_v61 = vpop.f32.mrb[123].mxu1  ;;  %v6279_v51 = vld [vmem:[#allocation10 + $0xf8] sm:$0xff]  }
 0x48e   :  { %v5363_v8 = vadd.f32 %v5362_v61, %v5361_v4  ;;  %4091 = vmatmul.mubr.bf16.gmra.mrb[148].mxu0 %v3791_v36  ;;  %4204 = vmatmul.mubr.bf16.gmra.mrb[148].mxu1 %v3791_v36  ;;  %v6280_v4 = vld [vmem:[#allocation10 + $0xb8] sm:$0xff]  }
 0x48f   :  { %v7595_v46 = vadd.f32 %v5360_v31, %v3659_v25  ;;  %v3662_v11 = vadd.f32 %v5299_v53, %v7510_v3  ;;  %4100 = vmatprep.mubr.bf16.mxu0 %v8049_v39  ;;  %4213 = vmatprep.mubr.bf16.mxu1 %v8049_v39  ;;  %v6278_v31 = vld [vmem:[#allocation10 + $0x38] sm:$0xff]  }
 0x490   :  { %5448 = vmatprep.subr.bf16.mxu1 %v6279_v51 }
 0x491   :  { %v7600_v13 = vadd.f32 %v5363_v8, %v3662_v11  ;;  %v3782_v57 = vmax.f32 %v7595_v46, 0.0  ;;  %5449 = vmatpush3.bf16.msra.mxu1 %v6280_v4 }
 0x492   :  { %v5300_v38 = vpop.f32.mrb[124].mxu0 }
 0x493   :  { %v5364_v40 = vpop.f32.mrb[124].mxu1  ;;  %v5301_v14 = vpop.f32.mrb[125].mxu0  ;;  %v3783_v23 = vmax.f32 %v7600_v13, 0.0 }
 0x494   :  { %v5302_v63 = vadd.f32 %v5301_v14, %v5300_v38  ;;  %v5365_v41 = vpop.f32.mrb[125].mxu1  ;;  %v5303_v45 = vpop.f32.mrb[126].mxu0 }
 0x495   :  { %v5366_v9 = vadd.f32 %v5365_v41, %v5364_v40  ;;  %v5367_v60 = vpop.f32.mrb[126].mxu1  ;;  %v5304_v22 = vpop.f32.mrb[127].mxu0  ;;  %v3792_v2 = vpack.c.bf16 %v3783_v23, %v3782_v57 }
 0x496   :  { %v3667_v55 = vadd.f32 %v5302_v63, %v7510_v3  ;;  %v5305_v32 = vadd.f32 %v5304_v22, %v5303_v45  ;;  %v5368_v10 = vpop.f32.mrb[127].mxu1 }
 0x497   :  { %v5369_v35 = vadd.f32 %v5368_v10, %v5367_v60  ;;  %4101 = vmatmul.mubr.bf16.gmra.mrb[152].mxu0 %v3792_v2  ;;  %4214 = vmatmul.mubr.bf16.gmra.mrb[152].mxu1 %v3792_v2 }
 0x498   :  { %v7609_v24 = vadd.f32 %v5366_v9, %v3667_v55  ;;  %v3670_v54 = vadd.f32 %v5305_v32, %v7510_v3  ;;  %4110 = vmatprep.mubr.bf16.mxu0 %v8049_v39  ;;  %4223 = vmatprep.mubr.bf16.mxu1 %v8049_v39  ;;  %v6277_v3 = vld [vmem:[#allocation10 + $0x78] sm:$0xff]  }
 0x499   :  { %5384 = vmatprep.subr.bf16.mxu0 %v6277_v3  ;;  %v3826_v39 = vld [vmem:[%s7773_s7 + $0xd] sm:$0xf] }
 0x49a   :  { %v7614_v50 = vadd.f32 %v5369_v35, %v3670_v54  ;;  %v3784_v37 = vmax.f32 %v7609_v24, 0.0  ;;  %5385 = vmatpush3.bf16.msra.mxu0 %v6278_v31  ;;  %v7626_v59 = vrot.slane %v3826_v39, %v6651_v28  ;;  %v7629_v25 = vrot.slane %v3826_v39, %v6877_v12 }
 0x49b   :  { %v7632_v53 = vrot.slane %v3826_v39, %v6643_v26  ;;  %v7635_v61 = vrot.slane %v3826_v39, %v6846_v0 }
 0x49c   :  { %v3785_v5 = vmax.f32 %v7614_v50, 0.0 }
 0x49e   :  { %v3793_v56 = vpack.c.bf16 %v3785_v5, %v3784_v37 }
 0x4a0   :  { %4111 = vmatmul.mubr.bf16.gmra.mrb[156].mxu0 %v3793_v56  ;;  %4224 = vmatmul.mubr.bf16.gmra.mrb[156].mxu1 %v3793_v56 }
 0x534   :  { %v4042_v36 = vpop.f32.mrb[128].mxu0  ;;  %v4155_v8 = vpop.f32.mrb[128].mxu1 }
 0x535   :  { %v4043_v11 = vadd.f32 %v4042_v36, %v7626_v59  ;;  %v4156_v38 = vadd.f32 %v4155_v8, %v7629_v25  ;;  %v4044_v40 = vpop.f32.mrb[129].mxu0  ;;  %v4157_v14 = vpop.f32.mrb[129].mxu1 }
 0x536   :  { %v4045_v28 = vadd.f32 %v4044_v40, %v7632_v53  ;;  %v4158_v63 = vadd.f32 %v4157_v14, %v7635_v61  ;;  %v4046_v12 = vpop.f32.mrb[130].mxu0  ;;  %v4159_v41 = vpop.f32.mrb[130].mxu1 }
 0x537   :  { %v4047_v26 = vadd.f32 %v4046_v12, %v7626_v59  ;;  %v4160_v45 = vadd.f32 %v4159_v41, %v7629_v25  ;;  %v4048_v0 = vpop.f32.mrb[131].mxu0  ;;  %v4161_v9 = vpop.f32.mrb[131].mxu1  ;;  %v4234_v55 = vmax.f32 %v4043_v11, 0.0  ;;  %v4236_v32 = vmax.f32 %v4156_v38, 0.0 }
 0x538   :  { %v4049_v60 = vadd.f32 %v4048_v0, %v7632_v53  ;;  %v4162_v22 = vadd.f32 %v4161_v9, %v7635_v61  ;;  %v4235_v35 = vmax.f32 %v4045_v28, 0.0  ;;  %v4237_v54 = vmax.f32 %v4158_v63, 0.0 }
 0x539   :  { %v4238_v10 = vmax.f32 %v4047_v26, 0.0  ;;  %v4240_v2 = vmax.f32 %v4160_v45, 0.0 }
 0x53a   :  { %v4239_v56 = vmax.f32 %v4049_v60, 0.0  ;;  %v4241_v3 = vmax.f32 %v4162_v22, 0.0 }
 0x53b   :  { %v4298_v51 = vpack.c.bf16 %v4238_v10, %v4234_v55  ;;  %v4300_v31 = vpack.c.bf16 %v4240_v2, %v4236_v32 }
 0x53c   :  { %v4299_v4 = vpack.c.bf16 %v4239_v56, %v4235_v35  ;;  %v4301_v39 = vpack.c.bf16 %v4241_v3, %v4237_v54 }
 0x53e   :  { %v4052_v36 = vpop.f32.mrb[132].mxu0  ;;  %v4165_v8 = vpop.f32.mrb[132].mxu1  ;;  %4625 = vmatprep.mubr.bf16.mxu0 %v4299_v4  ;;  %4722 = vmatprep.mubr.bf16.mxu1 %v4301_v39 }
 0x53f   :  { %v4053_v40 = vadd.f32 %v4052_v36, %v7626_v59  ;;  %v4166_v14 = vadd.f32 %v4165_v8, %v7629_v25  ;;  %v4054_v12 = vpop.f32.mrb[133].mxu0  ;;  %v4167_v41 = vpop.f32.mrb[133].mxu1  ;;  %4626 = vmatmul.mubr.bf16.vlgmr.msra.gmra.mrb[160].mxu0 %v4298_v51  ;;  %4723 = vmatmul.mubr.bf16.vlgmr.msra.gmra.mrb[160].mxu1 %v4300_v31 }
 0x540   :  { %v4055_v11 = vadd.f32 %v4054_v12, %v7632_v53  ;;  %v4168_v38 = vadd.f32 %v4167_v41, %v7635_v61  ;;  %v4056_v28 = vpop.f32.mrb[134].mxu0  ;;  %v4169_v63 = vpop.f32.mrb[134].mxu1 }
 0x541   :  { %v4057_v26 = vadd.f32 %v4056_v28, %v7626_v59  ;;  %v4170_v45 = vadd.f32 %v4169_v63, %v7629_v25  ;;  %v4058_v0 = vpop.f32.mrb[135].mxu0  ;;  %v4171_v9 = vpop.f32.mrb[135].mxu1  ;;  %v4242_v55 = vmax.f32 %v4053_v40, 0.0  ;;  %v4244_v32 = vmax.f32 %v4166_v14, 0.0 }
 0x542   :  { %v4059_v60 = vadd.f32 %v4058_v0, %v7632_v53  ;;  %v4172_v22 = vadd.f32 %v4171_v9, %v7635_v61  ;;  %v4243_v35 = vmax.f32 %v4055_v11, 0.0  ;;  %v4245_v54 = vmax.f32 %v4168_v38, 0.0 }
 0x543   :  { %v4246_v10 = vmax.f32 %v4057_v26, 0.0  ;;  %v4248_v2 = vmax.f32 %v4170_v45, 0.0 }
 0x544   :  { %v4247_v56 = vmax.f32 %v4059_v60, 0.0  ;;  %v4249_v3 = vmax.f32 %v4172_v22, 0.0 }
 0x545   :  { %v4302_v4 = vpack.c.bf16 %v4246_v10, %v4242_v55  ;;  %v4304_v39 = vpack.c.bf16 %v4248_v2, %v4244_v32 }
 0x546   :  { %v4303_v36 = vpack.c.bf16 %v4247_v56, %v4243_v35  ;;  %v4305_v8 = vpack.c.bf16 %v4249_v3, %v4245_v54  ;;  %v4062_v12 = vpop.f32.mrb[136].mxu0  ;;  %v4175_v41 = vpop.f32.mrb[136].mxu1 }
 0x547   :  { %v4063_v51 = vadd.f32 %v4062_v12, %v7626_v59  ;;  %v4176_v31 = vadd.f32 %v4175_v41, %v7629_v25  ;;  %v4064_v28 = vpop.f32.mrb[137].mxu0  ;;  %v4177_v63 = vpop.f32.mrb[137].mxu1 }
 0x548   :  { %v4065_v40 = vadd.f32 %v4064_v28, %v7632_v53  ;;  %v4178_v14 = vadd.f32 %v4177_v63, %v7635_v61  ;;  %v4066_v11 = vpop.f32.mrb[138].mxu0  ;;  %v4179_v38 = vpop.f32.mrb[138].mxu1  ;;  %4633 = vmatprep.mubr.bf16.mxu0 %v4303_v36  ;;  %4730 = vmatprep.mubr.bf16.mxu1 %v4305_v8 }
 0x549   :  { %v4067_v26 = vadd.f32 %v4066_v11, %v7626_v59  ;;  %v4180_v45 = vadd.f32 %v4179_v38, %v7629_v25  ;;  %v4068_v0 = vpop.f32.mrb[139].mxu0  ;;  %v4181_v9 = vpop.f32.mrb[139].mxu1  ;;  %4634 = vmatmul.mubr.bf16.gmra.mrb[164].mxu0 %v4302_v4  ;;  %4731 = vmatmul.mubr.bf16.gmra.mrb[164].mxu1 %v4304_v39  ;;  %v4250_v55 = vmax.f32 %v4063_v51, 0.0  ;;  %v4252_v32 = vmax.f32 %v4176_v31, 0.0 }
 0x54a   :  { %v4069_v60 = vadd.f32 %v4068_v0, %v7632_v53  ;;  %v4182_v22 = vadd.f32 %v4181_v9, %v7635_v61  ;;  %v4251_v35 = vmax.f32 %v4065_v40, 0.0  ;;  %v4253_v54 = vmax.f32 %v4178_v14, 0.0 }
 0x54b   :  { %v4254_v10 = vmax.f32 %v4067_v26, 0.0  ;;  %v4256_v2 = vmax.f32 %v4180_v45, 0.0 }
 0x54c   :  { %v4255_v56 = vmax.f32 %v4069_v60, 0.0  ;;  %v4257_v3 = vmax.f32 %v4182_v22, 0.0 }
 0x54d   :  { %v4306_v36 = vpack.c.bf16 %v4254_v10, %v4250_v55  ;;  %v4308_v8 = vpack.c.bf16 %v4256_v2, %v4252_v32 }
 0x54e   :  { %v4307_v12 = vpack.c.bf16 %v4255_v56, %v4251_v35  ;;  %v4309_v41 = vpack.c.bf16 %v4257_v3, %v4253_v54 }
 0x54f   :  { %v4072_v28 = vpop.f32.mrb[140].mxu0  ;;  %v4185_v63 = vpop.f32.mrb[140].mxu1 }
 0x550   :  { %v4073_v4 = vadd.f32 %v4072_v28, %v7626_v59  ;;  %v4186_v39 = vadd.f32 %v4185_v63, %v7629_v25  ;;  %v4074_v11 = vpop.f32.mrb[141].mxu0  ;;  %v4187_v38 = vpop.f32.mrb[141].mxu1  ;;  %4641 = vmatprep.mubr.bf16.mxu0 %v4307_v12  ;;  %4738 = vmatprep.mubr.bf16.mxu1 %v4309_v41 }
 0x551   :  { %v4075_v51 = vadd.f32 %v4074_v11, %v7632_v53  ;;  %v4188_v31 = vadd.f32 %v4187_v38, %v7635_v61  ;;  %v4076_v40 = vpop.f32.mrb[142].mxu0  ;;  %v4189_v14 = vpop.f32.mrb[142].mxu1  ;;  %4642 = vmatmul.mubr.bf16.gmra.mrb[168].mxu0 %v4306_v36  ;;  %4739 = vmatmul.mubr.bf16.gmra.mrb[168].mxu1 %v4308_v8 }
 0x552   :  { %v4077_v26 = vadd.f32 %v4076_v40, %v7626_v59  ;;  %v4190_v45 = vadd.f32 %v4189_v14, %v7629_v25  ;;  %v4078_v0 = vpop.f32.mrb[143].mxu0  ;;  %v4191_v9 = vpop.f32.mrb[143].mxu1  ;;  %v4258_v55 = vmax.f32 %v4073_v4, 0.0  ;;  %v4260_v32 = vmax.f32 %v4186_v39, 0.0 }
 0x553   :  { %v4079_v60 = vadd.f32 %v4078_v0, %v7632_v53  ;;  %v4192_v22 = vadd.f32 %v4191_v9, %v7635_v61  ;;  %v4259_v35 = vmax.f32 %v4075_v51, 0.0  ;;  %v4261_v54 = vmax.f32 %v4188_v31, 0.0 }
 0x554   :  { %v4262_v10 = vmax.f32 %v4077_v26, 0.0  ;;  %v4264_v2 = vmax.f32 %v4190_v45, 0.0 }
 0x555   :  { %v4263_v56 = vmax.f32 %v4079_v60, 0.0  ;;  %v4265_v3 = vmax.f32 %v4192_v22, 0.0 }
 0x556   :  { %v4310_v12 = vpack.c.bf16 %v4262_v10, %v4258_v55  ;;  %v4312_v41 = vpack.c.bf16 %v4264_v2, %v4260_v32 }
 0x557   :  { %v4311_v28 = vpack.c.bf16 %v4263_v56, %v4259_v35  ;;  %v4313_v63 = vpack.c.bf16 %v4265_v3, %v4261_v54 }
 0x558   :  { %v4082_v11 = vpop.f32.mrb[144].mxu0  ;;  %v4195_v38 = vpop.f32.mrb[144].mxu1 }
 0x559   :  { %v4083_v36 = vadd.f32 %v4082_v11, %v7626_v59  ;;  %v4196_v8 = vadd.f32 %v4195_v38, %v7629_v25  ;;  %v4084_v40 = vpop.f32.mrb[145].mxu0  ;;  %v4197_v14 = vpop.f32.mrb[145].mxu1  ;;  %4649 = vmatprep.mubr.bf16.mxu0 %v4311_v28  ;;  %4746 = vmatprep.mubr.bf16.mxu1 %v4313_v63 }
 0x55a   :  { %v4085_v4 = vadd.f32 %v4084_v40, %v7632_v53  ;;  %v4198_v39 = vadd.f32 %v4197_v14, %v7635_v61  ;;  %v4086_v51 = vpop.f32.mrb[146].mxu0  ;;  %v4199_v31 = vpop.f32.mrb[146].mxu1  ;;  %4650 = vmatmul.mubr.bf16.gmra.mrb[172].mxu0 %v4310_v12  ;;  %4747 = vmatmul.mubr.bf16.gmra.mrb[172].mxu1 %v4312_v41 }
 0x55b   :  { %v4087_v26 = vadd.f32 %v4086_v51, %v7626_v59  ;;  %v4200_v45 = vadd.f32 %v4199_v31, %v7629_v25  ;;  %v4088_v0 = vpop.f32.mrb[147].mxu0  ;;  %v4201_v9 = vpop.f32.mrb[147].mxu1  ;;  %v4266_v55 = vmax.f32 %v4083_v36, 0.0  ;;  %v4268_v32 = vmax.f32 %v4196_v8, 0.0 }
 0x55c   :  { %v4089_v60 = vadd.f32 %v4088_v0, %v7632_v53  ;;  %v4202_v22 = vadd.f32 %v4201_v9, %v7635_v61  ;;  %v4267_v35 = vmax.f32 %v4085_v4, 0.0  ;;  %v4269_v54 = vmax.f32 %v4198_v39, 0.0 }
 0x55d   :  { %v4270_v10 = vmax.f32 %v4087_v26, 0.0  ;;  %v4272_v2 = vmax.f32 %v4200_v45, 0.0 }
 0x55e   :  { %v4271_v56 = vmax.f32 %v4089_v60, 0.0  ;;  %v4273_v3 = vmax.f32 %v4202_v22, 0.0 }
 0x55f   :  { %v4314_v28 = vpack.c.bf16 %v4270_v10, %v4266_v55  ;;  %v4316_v63 = vpack.c.bf16 %v4272_v2, %v4268_v32 }
 0x560   :  { %v4315_v11 = vpack.c.bf16 %v4271_v56, %v4267_v35  ;;  %v4317_v38 = vpack.c.bf16 %v4273_v3, %v4269_v54 }
 0x561   :  { %v4092_v40 = vpop.f32.mrb[148].mxu0  ;;  %v4205_v14 = vpop.f32.mrb[148].mxu1 }
 0x562   :  { %v4093_v12 = vadd.f32 %v4092_v40, %v7626_v59  ;;  %v4206_v41 = vadd.f32 %v4205_v14, %v7629_v25  ;;  %v4094_v51 = vpop.f32.mrb[149].mxu0  ;;  %v4207_v31 = vpop.f32.mrb[149].mxu1  ;;  %4657 = vmatprep.mubr.bf16.mxu0 %v4315_v11  ;;  %4754 = vmatprep.mubr.bf16.mxu1 %v4317_v38 }
 0x563   :  { %v4095_v36 = vadd.f32 %v4094_v51, %v7632_v53  ;;  %v4208_v8 = vadd.f32 %v4207_v31, %v7635_v61  ;;  %v4096_v4 = vpop.f32.mrb[150].mxu0  ;;  %v4209_v39 = vpop.f32.mrb[150].mxu1  ;;  %4658 = vmatmul.mubr.bf16.gmra.mrb[176].mxu0 %v4314_v28  ;;  %4755 = vmatmul.mubr.bf16.gmra.mrb[176].mxu1 %v4316_v63 }
 0x564   :  { %v4097_v26 = vadd.f32 %v4096_v4, %v7626_v59  ;;  %v4210_v45 = vadd.f32 %v4209_v39, %v7629_v25  ;;  %v4098_v0 = vpop.f32.mrb[151].mxu0  ;;  %v4211_v9 = vpop.f32.mrb[151].mxu1  ;;  %v4274_v55 = vmax.f32 %v4093_v12, 0.0  ;;  %v4276_v32 = vmax.f32 %v4206_v41, 0.0 }
 0x565   :  { %v4099_v60 = vadd.f32 %v4098_v0, %v7632_v53  ;;  %v4212_v22 = vadd.f32 %v4211_v9, %v7635_v61  ;;  %v4275_v35 = vmax.f32 %v4095_v36, 0.0  ;;  %v4277_v54 = vmax.f32 %v4208_v8, 0.0 }
 0x566   :  { %v4278_v10 = vmax.f32 %v4097_v26, 0.0  ;;  %v4280_v2 = vmax.f32 %v4210_v45, 0.0 }
 0x567   :  { %v4279_v56 = vmax.f32 %v4099_v60, 0.0  ;;  %v4281_v3 = vmax.f32 %v4212_v22, 0.0 }
 0x568   :  { %v4318_v11 = vpack.c.bf16 %v4278_v10, %v4274_v55  ;;  %v4320_v38 = vpack.c.bf16 %v4280_v2, %v4276_v32 }
 0x569   :  { %v4319_v40 = vpack.c.bf16 %v4279_v56, %v4275_v35  ;;  %v4321_v14 = vpack.c.bf16 %v4281_v3, %v4277_v54 }
 0x56a   :  { %v4102_v51 = vpop.f32.mrb[152].mxu0  ;;  %v4215_v31 = vpop.f32.mrb[152].mxu1 }
 0x56b   :  { %v4103_v28 = vadd.f32 %v4102_v51, %v7626_v59  ;;  %v4216_v63 = vadd.f32 %v4215_v31, %v7629_v25  ;;  %v4104_v4 = vpop.f32.mrb[153].mxu0  ;;  %v4217_v39 = vpop.f32.mrb[153].mxu1  ;;  %4665 = vmatprep.mubr.bf16.mxu0 %v4319_v40  ;;  %4762 = vmatprep.mubr.bf16.mxu1 %v4321_v14 }
 0x56c   :  { %v4105_v12 = vadd.f32 %v4104_v4, %v7632_v53  ;;  %v4218_v41 = vadd.f32 %v4217_v39, %v7635_v61  ;;  %v4106_v36 = vpop.f32.mrb[154].mxu0  ;;  %v4219_v8 = vpop.f32.mrb[154].mxu1  ;;  %4666 = vmatmul.mubr.bf16.gmra.mrb[180].mxu0 %v4318_v11  ;;  %4763 = vmatmul.mubr.bf16.gmra.mrb[180].mxu1 %v4320_v38 }
 0x56d   :  { %v4107_v26 = vadd.f32 %v4106_v36, %v7626_v59  ;;  %v4220_v45 = vadd.f32 %v4219_v8, %v7629_v25  ;;  %v4108_v0 = vpop.f32.mrb[155].mxu0  ;;  %v4221_v9 = vpop.f32.mrb[155].mxu1  ;;  %v4282_v55 = vmax.f32 %v4103_v28, 0.0  ;;  %v4284_v32 = vmax.f32 %v4216_v63, 0.0 }
 0x56e   :  { %v4109_v60 = vadd.f32 %v4108_v0, %v7632_v53  ;;  %v4222_v22 = vadd.f32 %v4221_v9, %v7635_v61  ;;  %v4283_v35 = vmax.f32 %v4105_v12, 0.0  ;;  %v4285_v54 = vmax.f32 %v4218_v41, 0.0 }
 0x56f   :  { %v4286_v10 = vmax.f32 %v4107_v26, 0.0  ;;  %v4288_v2 = vmax.f32 %v4220_v45, 0.0 }
 0x570   :  { %v4287_v56 = vmax.f32 %v4109_v60, 0.0  ;;  %v4289_v3 = vmax.f32 %v4222_v22, 0.0 }
 0x571   :  { %v4322_v40 = vpack.c.bf16 %v4286_v10, %v4282_v55  ;;  %v4324_v14 = vpack.c.bf16 %v4288_v2, %v4284_v32 }
 0x572   :  { %v4323_v51 = vpack.c.bf16 %v4287_v56, %v4283_v35  ;;  %v4325_v31 = vpack.c.bf16 %v4289_v3, %v4285_v54 }
 0x573   :  { %v4112_v4 = vpop.f32.mrb[156].mxu0  ;;  %v4225_v39 = vpop.f32.mrb[156].mxu1 }
 0x574   :  { %v4113_v11 = vadd.f32 %v4112_v4, %v7626_v59  ;;  %v4226_v38 = vadd.f32 %v4225_v39, %v7629_v25  ;;  %v4114_v36 = vpop.f32.mrb[157].mxu0  ;;  %v4227_v8 = vpop.f32.mrb[157].mxu1  ;;  %4673 = vmatprep.mubr.bf16.mxu0 %v4323_v51  ;;  %4770 = vmatprep.mubr.bf16.mxu1 %v4325_v31 }
 0x575   :  { %v4115_v28 = vadd.f32 %v4114_v36, %v7632_v53  ;;  %v4228_v63 = vadd.f32 %v4227_v8, %v7635_v61  ;;  %v4116_v12 = vpop.f32.mrb[158].mxu0  ;;  %v4229_v41 = vpop.f32.mrb[158].mxu1  ;;  %4674 = vmatmul.mubr.bf16.gmra.mrb[184].mxu0 %v4322_v40  ;;  %4771 = vmatmul.mubr.bf16.gmra.mrb[184].mxu1 %v4324_v14 }
 0x576   :  { %v4117_v26 = vadd.f32 %v4116_v12, %v7626_v59  ;;  %v4230_v45 = vadd.f32 %v4229_v41, %v7629_v25  ;;  %v4118_v0 = vpop.f32.mrb[159].mxu0  ;;  %v4231_v9 = vpop.f32.mrb[159].mxu1  ;;  %v4290_v55 = vmax.f32 %v4113_v11, 0.0  ;;  %v4292_v32 = vmax.f32 %v4226_v38, 0.0 }
 0x577   :  { %v4119_v60 = vadd.f32 %v4118_v0, %v7632_v53  ;;  %v4232_v22 = vadd.f32 %v4231_v9, %v7635_v61  ;;  %v4291_v35 = vmax.f32 %v4115_v28, 0.0  ;;  %v4293_v54 = vmax.f32 %v4228_v63, 0.0  ;;  %v7704_v61 = vld [vmem:[%s7773_s7 + $0x11] ss:$0 sm:$0xff]  ;;  %s6431_s7 = smov [#allocation11]  }
 0x578   :  { %v4294_v10 = vmax.f32 %v4117_v26, 0.0  ;;  %v4296_v2 = vmax.f32 %v4230_v45, 0.0  ;;  %s4840_s2 = sshll.u32 %s6431_s7, 4  ;;  %s4841_s2 = int_to_ptr.vmem [resolvable:$true] %s4840_s2 }
 0x579   :  { %v4295_v56 = vmax.f32 %v4119_v60, 0.0  ;;  %v4297_v3 = vmax.f32 %v4232_v22, 0.0  ;;  %s6391_s17 = scalar_lea.vmem %s4841_s2, 2048  ;;  %p6396_p13 = scmp.lt.s32.totalorder %s4841_s2, %s4841_s2 }
 0x57a   :  { %v4326_v51 = vpack.c.bf16 %v4294_v10, %v4290_v55  ;;  %v4328_v59 = vpack.c.bf16 %v4296_v2, %v4292_v32  ;;  %p6392_p12 = scmp.ne.s32.totalorder %s4841_s2, %s6391_s17  ;;  %p6397_p0 = scmp.lt.s32.totalorder %s6391_s17, %s6391_s17 }
 0x57b   :  { %v4327_v31 = vpack.c.bf16 %v4295_v56, %v4291_v35  ;;  %v4329_v25 = vpack.c.bf16 %v4297_v3, %v4293_v54 }
 0x57c   :  { %p6398_p1 = por %p6397_p0, %p6396_p13 }
 0x57d   :  { %4681 = vmatprep.mubr.bf16.mxu0 %v4327_v31  ;;  %4778 = vmatprep.mubr.bf16.mxu1 %v4329_v25 }
 0x57e   :  { %4682 = vmatmul.mubr.bf16.gmra.mrb[188].mxu0 %v4326_v51  ;;  %4779 = vmatmul.mubr.bf16.gmra.mrb[188].mxu1 %v4328_v59  ;;  %p6399_p2 = pnand %p6398_p1, %p6392_p12 }
 0x612   :  { %v5386_v40 = vpop.f32.mrb[160].mxu0  ;;  %v5450_v53 = vpop.f32.mrb[160].mxu1 }
 0x613   :  { %v5387_v14 = vpop.f32.mrb[161].mxu0  ;;  %v5451_v4 = vpop.f32.mrb[161].mxu1 }
 0x614   :  { %v5388_v39 = vadd.f32 %v5387_v14, %v5386_v40  ;;  %v5452_v11 = vadd.f32 %v5451_v4, %v5450_v53  ;;  %v5389_v38 = vpop.f32.mrb[162].mxu0  ;;  %v5453_v36 = vpop.f32.mrb[162].mxu1 }
 0x615   :  { %v5390_v8 = vpop.f32.mrb[163].mxu0  ;;  %v5454_v28 = vpop.f32.mrb[163].mxu1 }
 0x616   :  { %v4628_v63 = vadd.f32 %v5388_v39, %v7704_v61  ;;  %v5391_v12 = vadd.f32 %v5390_v8, %v5389_v38  ;;  %v5455_v41 = vadd.f32 %v5454_v28, %v5453_v36 }
 0x618   :  { %v4725_v26 = vadd.f32 %v5452_v11, %v4628_v63  ;;  %v4631_v45 = vadd.f32 %v5391_v12, %v7704_v61 }
 0x61a   :  { %v4787_v0 = vadd.f32 %v4725_v26, %v3770_v19  ;;  %v4728_v9 = vadd.f32 %v5455_v41, %v4631_v45 }
 0x61c   :  { %v5392_v60 = vpop.f32.mrb[164].mxu0  ;;  %v5456_v22 = vpop.f32.mrb[164].mxu1  ;;  %v4803_v10 = vmax.f32 %v4787_v0, 0.0  ;;  %v4788_v2 = vadd.f32 %v4728_v9, %v3771_v18 }
 0x61d   :  { %v5393_v55 = vpop.f32.mrb[165].mxu0  ;;  %v5457_v32 = vpop.f32.mrb[165].mxu1 }
 0x61e   :  { %v5394_v35 = vadd.f32 %v5393_v55, %v5392_v60  ;;  %v5458_v54 = vadd.f32 %v5457_v32, %v5456_v22  ;;  %v5395_v56 = vpop.f32.mrb[166].mxu0  ;;  %v5459_v3 = vpop.f32.mrb[166].mxu1  ;;  %4819 = vst [vmem:[#allocation11] sm:$0xff] %v4803_v10  ;;  %v4804_v31 = vmax.f32 %v4788_v2, 0.0 }
 0x61f   :  { %v5396_v51 = vpop.f32.mrb[167].mxu0  ;;  %v5460_v59 = vpop.f32.mrb[167].mxu1 }
 0x620   :  { %v4636_v49 = vadd.f32 %v5394_v35, %v7704_v61  ;;  %v5397_v19 = vadd.f32 %v5396_v51, %v5395_v56  ;;  %v5461_v25 = vadd.f32 %v5460_v59, %v5459_v3  ;;  %4820 = vst [vmem:[#allocation11 + $0x8] sm:$0xff] %v4804_v31 }
 0x622   :  { %v4733_v40 = vadd.f32 %v5458_v54, %v4636_v49  ;;  %v4639_v53 = vadd.f32 %v5397_v19, %v7704_v61 }
 0x624   :  { %v4789_v43 = vadd.f32 %v4733_v40, %v3772_v27  ;;  %v4736_v18 = vadd.f32 %v5461_v25, %v4639_v53  ;;  %v5398_v14 = vpop.f32.mrb[168].mxu0  ;;  %v5462_v4 = vpop.f32.mrb[168].mxu1 }
 0x625   :  { %v5399_v39 = vpop.f32.mrb[169].mxu0  ;;  %v5463_v11 = vpop.f32.mrb[169].mxu1 }
 0x626   :  { %v4805_v38 = vmax.f32 %v4789_v43, 0.0  ;;  %v4790_v36 = vadd.f32 %v4736_v18, %v3773_v44  ;;  %v5400_v8 = vadd.f32 %v5399_v39, %v5398_v14  ;;  %v5464_v28 = vadd.f32 %v5463_v11, %v5462_v4  ;;  %v5401_v63 = vpop.f32.mrb[170].mxu0  ;;  %v5465_v12 = vpop.f32.mrb[170].mxu1 }
 0x627   :  { %v5402_v41 = vpop.f32.mrb[171].mxu0  ;;  %v5466_v26 = vpop.f32.mrb[171].mxu1 }
 0x628   :  { %4821 = vst [vmem:[#allocation11 + $0x10] sm:$0xff] %v4805_v38  ;;  %v4806_v45 = vmax.f32 %v4790_v36, 0.0  ;;  %v4644_v42 = vadd.f32 %v5400_v8, %v7704_v61  ;;  %v5403_v27 = vadd.f32 %v5402_v41, %v5401_v63  ;;  %v5467_v0 = vadd.f32 %v5466_v26, %v5465_v12 }
 0x62a   :  { %4822 = vst [vmem:[#allocation11 + $0x18] sm:$0xff] %v4806_v45  ;;  %v4741_v9 = vadd.f32 %v5464_v28, %v4644_v42  ;;  %v4647_v60 = vadd.f32 %v5403_v27, %v7704_v61 }
 0x62c   :  { %v4791_v21 = vadd.f32 %v4741_v9, %v3774_v58  ;;  %v4744_v44 = vadd.f32 %v5467_v0, %v4647_v60 }
 0x62d   :  { %v5404_v22 = vpop.f32.mrb[172].mxu0  ;;  %v5468_v55 = vpop.f32.mrb[172].mxu1 }
 0x62e   :  { %v5405_v32 = vpop.f32.mrb[173].mxu0  ;;  %v5469_v10 = vpop.f32.mrb[173].mxu1  ;;  %v4807_v2 = vmax.f32 %v4791_v21, 0.0  ;;  %v4792_v35 = vadd.f32 %v4744_v44, %v3775_v16 }
 0x62f   :  { %v5406_v54 = vadd.f32 %v5405_v32, %v5404_v22  ;;  %v5470_v56 = vadd.f32 %v5469_v10, %v5468_v55  ;;  %v5407_v3 = vpop.f32.mrb[174].mxu0  ;;  %v5471_v51 = vpop.f32.mrb[174].mxu1 }
 0x630   :  { %v5408_v59 = vpop.f32.mrb[175].mxu0  ;;  %v5472_v31 = vpop.f32.mrb[175].mxu1  ;;  %4823 = vst [vmem:[#allocation11 + $0x20] sm:$0xff] %v4807_v2  ;;  %v4808_v49 = vmax.f32 %v4792_v35, 0.0 }
 0x631   :  { %v4652_v29 = vadd.f32 %v5406_v54, %v7704_v61  ;;  %v5409_v58 = vadd.f32 %v5408_v59, %v5407_v3  ;;  %v5473_v19 = vadd.f32 %v5472_v31, %v5471_v51 }
 0x632   :  { %4824 = vst [vmem:[#allocation11 + $0x28] sm:$0xff] %v4808_v49 }
 0x633   :  { %v4749_v25 = vadd.f32 %v5470_v56, %v4652_v29  ;;  %v4655_v40 = vadd.f32 %v5409_v58, %v7704_v61 }
 0x635   :  { %v4793_v17 = vadd.f32 %v4749_v25, %v3776_v20  ;;  %v4752_v16 = vadd.f32 %v5473_v19, %v4655_v40 }
 0x636   :  { %v5410_v53 = vpop.f32.mrb[176].mxu0  ;;  %v5474_v43 = vpop.f32.mrb[176].mxu1 }
 0x637   :  { %v5411_v18 = vpop.f32.mrb[177].mxu0  ;;  %v5475_v14 = vpop.f32.mrb[177].mxu1  ;;  %v4809_v4 = vmax.f32 %v4793_v17, 0.0  ;;  %v4794_v39 = vadd.f32 %v4752_v16, %v3777_v6 }
 0x638   :  { %v5412_v11 = vadd.f32 %v5411_v18, %v5410_v53  ;;  %v5476_v38 = vadd.f32 %v5475_v14, %v5474_v43  ;;  %v5413_v36 = vpop.f32.mrb[178].mxu0  ;;  %v5477_v8 = vpop.f32.mrb[178].mxu1 }
 0x639   :  { %v5414_v28 = vpop.f32.mrb[179].mxu0  ;;  %v5478_v63 = vpop.f32.mrb[179].mxu1  ;;  %4825 = vst [vmem:[#allocation11 + $0x30] sm:$0xff] %v4809_v4  ;;  %v4810_v12 = vmax.f32 %v4794_v39, 0.0 }
 0x63a   :  { %v4660_v48 = vadd.f32 %v5412_v11, %v7704_v61  ;;  %v5415_v20 = vadd.f32 %v5414_v28, %v5413_v36  ;;  %v5479_v41 = vadd.f32 %v5478_v63, %v5477_v8 }
 0x63b   :  { %4826 = vst [vmem:[#allocation11 + $0x38] sm:$0xff] %v4810_v12 }
 0x63c   :  { %v4757_v26 = vadd.f32 %v5476_v38, %v4660_v48  ;;  %v4663_v45 = vadd.f32 %v5415_v20, %v7704_v61 }
 0x63e   :  { %v4795_v30 = vadd.f32 %v4757_v26, %v3778_v1  ;;  %v4760_v6 = vadd.f32 %v5479_v41, %v4663_v45 }
 0x63f   :  { %v5416_v42 = vpop.f32.mrb[180].mxu0  ;;  %v5480_v27 = vpop.f32.mrb[180].mxu1 }
 0x640   :  { %v5417_v0 = vpop.f32.mrb[181].mxu0  ;;  %v5481_v9 = vpop.f32.mrb[181].mxu1  ;;  %v4811_v60 = vmax.f32 %v4795_v30, 0.0  ;;  %v4796_v21 = vadd.f32 %v4760_v6, %v3779_v47 }
 0x641   :  { %v5418_v44 = vadd.f32 %v5417_v0, %v5416_v42  ;;  %v5482_v22 = vadd.f32 %v5481_v9, %v5480_v27  ;;  %v5419_v55 = vpop.f32.mrb[182].mxu0  ;;  %v5483_v32 = vpop.f32.mrb[182].mxu1 }
 0x642   :  { %v5420_v10 = vpop.f32.mrb[183].mxu0  ;;  %v5484_v2 = vpop.f32.mrb[183].mxu1  ;;  %4827 = vst [vmem:[#allocation11 + $0x40] sm:$0xff] %v4811_v60  ;;  %v4812_v35 = vmax.f32 %v4796_v21, 0.0 }
 0x643   :  { %v4668_v7 = vadd.f32 %v5418_v44, %v7704_v61  ;;  %v5421_v1 = vadd.f32 %v5420_v10, %v5419_v55  ;;  %v5485_v54 = vadd.f32 %v5484_v2, %v5483_v32 }
 0x644   :  { %4828 = vst [vmem:[#allocation11 + $0x48] sm:$0xff] %v4812_v35 }
 0x645   :  { %v4765_v56 = vadd.f32 %v5482_v22, %v4668_v7  ;;  %v4671_v3 = vadd.f32 %v5421_v1, %v7704_v61 }
 0x647   :  { %v4797_v34 = vadd.f32 %v4765_v56, %v3780_v62  ;;  %v4768_v47 = vadd.f32 %v5485_v54, %v4671_v3 }
 0x648   :  { %v5422_v51 = vpop.f32.mrb[184].mxu0  ;;  %v5486_v59 = vpop.f32.mrb[184].mxu1 }
 0x649   :  { %v5423_v31 = vpop.f32.mrb[185].mxu0  ;;  %v5487_v49 = vpop.f32.mrb[185].mxu1  ;;  %v4813_v29 = vmax.f32 %v4797_v34, 0.0  ;;  %v4798_v58 = vadd.f32 %v4768_v47, %v3781_v33 }
 0x64a   :  { %v5424_v19 = vadd.f32 %v5423_v31, %v5422_v51  ;;  %v5488_v25 = vadd.f32 %v5487_v49, %v5486_v59  ;;  %v5425_v40 = vpop.f32.mrb[186].mxu0  ;;  %v5489_v17 = vpop.f32.mrb[186].mxu1 }
 0x64b   :  { %v5426_v16 = vpop.f32.mrb[187].mxu0  ;;  %v5490_v53 = vpop.f32.mrb[187].mxu1  ;;  %4829 = vst [vmem:[#allocation11 + $0x50] sm:$0xff] %v4813_v29  ;;  %v4814_v43 = vmax.f32 %v4798_v58, 0.0 }
 0x64c   :  { %v4676_v15 = vadd.f32 %v5424_v19, %v7704_v61  ;;  %v5427_v62 = vadd.f32 %v5426_v16, %v5425_v40  ;;  %v5491_v18 = vadd.f32 %v5490_v53, %v5489_v17 }
 0x64d   :  { %4830 = vst [vmem:[#allocation11 + $0x58] sm:$0xff] %v4814_v43 }
 0x64e   :  { %v4773_v14 = vadd.f32 %v5488_v25, %v4676_v15  ;;  %v4679_v4 = vadd.f32 %v5427_v62, %v7704_v61 }
 0x650   :  { %v4799_v52 = vadd.f32 %v4773_v14, %v3782_v57  ;;  %v4776_v33 = vadd.f32 %v5491_v18, %v4679_v4 }
 0x651   :  { %v5428_v39 = vpop.f32.mrb[188].mxu0  ;;  %v5492_v11 = vpop.f32.mrb[188].mxu1 }
 0x652   :  { %v5429_v38 = vpop.f32.mrb[189].mxu0  ;;  %v5493_v36 = vpop.f32.mrb[189].mxu1  ;;  %v4815_v8 = vmax.f32 %v4799_v52, 0.0  ;;  %v4800_v28 = vadd.f32 %v4776_v33, %v3783_v23 }
 0x653   :  { %v5430_v63 = vadd.f32 %v5429_v38, %v5428_v39  ;;  %v5494_v12 = vadd.f32 %v5493_v36, %v5492_v11  ;;  %v5431_v48 = vpop.f32.mrb[190].mxu0  ;;  %v5495_v20 = vpop.f32.mrb[190].mxu1 }
 0x654   :  { %v5432_v41 = vpop.f32.mrb[191].mxu0  ;;  %v5496_v26 = vpop.f32.mrb[191].mxu1  ;;  %4831 = vst [vmem:[#allocation11 + $0x60] sm:$0xff] %v4815_v8  ;;  %v4816_v45 = vmax.f32 %v4800_v28, 0.0 }
 0x655   :  { %v4684_v46 = vadd.f32 %v5430_v63, %v7704_v61  ;;  %v5433_v57 = vadd.f32 %v5432_v41, %v5431_v48  ;;  %v5497_v30 = vadd.f32 %v5496_v26, %v5495_v20 }
 0x656   :  { %4832 = vst [vmem:[#allocation11 + $0x68] sm:$0xff] %v4816_v45 }
 0x657   :  { %v4781_v6 = vadd.f32 %v5494_v12, %v4684_v46  ;;  %v4687_v42 = vadd.f32 %v5433_v57, %v7704_v61 }
 0x659   :  { %v4801_v13 = vadd.f32 %v4781_v6, %v3784_v37  ;;  %v4784_v23 = vadd.f32 %v5497_v30, %v4687_v42 }
 0x65b   :  { %v4817_v27 = vmax.f32 %v4801_v13, 0.0  ;;  %v4802_v0 = vadd.f32 %v4784_v23, %v3785_v5 }
 0x65d   :  { %4833 = vst [vmem:[#allocation11 + $0x70] sm:$0xff] %v4817_v27  ;;  %v4818_v9 = vmax.f32 %v4802_v0, 0.0 }
 0x65f   :  { %4834 = vst [vmem:[#allocation11 + $0x78] sm:$0xff] %v4818_v9 }
 0x660   :  { %6402 = shalt.err (!%p6399_p2)
}
 0x661   :  { %s6403_s10 = scalar_lea.hbm %s7774_s8, 2048 }
 0x662   :  { %p6404_p3 = scmp.ne.s32.totalorder %s7774_s8, %s6403_s10  ;;  %p6407_p4 = scmp.lt.u32.totalorder %s6403_s10, %s7774_s8 }
 0x664   :  { %p6409_p5 = pnand %p6407_p4, %p6404_p3 }
 0x666   :  { %6412 = shalt.err (!%p6409_p5)
}
 0x667   :  { %s6432_s15 = smov 128   ;;  %s6433_s16 = smov 8  }
 0x668   :  { %4846 = dma.vmem_to_hbm [thread:$0]  %s4841_s2, 2048, %s7774_s8, [#allocation4], %s6432_s15, %s6432_s15, %s6433_s16  }
 0x669   :  { %6419 = dma.done.wait [#allocation4], 2048  }
 0x66a   :  { %6420 = vsyncadd [#allocation4], 4294965248 }
 0x66b   :  { %4850 = vsyncpa [#allocation3], 1 }
 0x66c   :  { %4851 = vsyncpa [#allocation6], 1 }
 0x66d   :  { %4852 = vsyncpa [#allocation9], 1 }
 0x66e   :  { %4853 = vsyncpa [#allocation4], 1 }

</bundles_post_ra>
